<compile_context>
chip_gen: v5e
topology: v5e:2x2
jax: 0.10.0
libtpu: 0.0.40
codegen_flags: <defaults>
</compile_context>

<pallas_src>
import numpy as np
import jax
import jax.numpy as jnp
from jax import lax
from jax.experimental import pallas as pl
from jax.experimental.pallas import tpu as pltpu


# ----------------------------- fused Pallas kernel ---------------------------

def _encoder_kernel(p1_ref, w1_ref, g2_ref, w2_ref, g3_ref, w3_ref,
                    sflat_ref, wl1_ref, wl2_ref, bias_ref, o_ref):
    """Entire encoder forward with VMEM-resident intermediates.

    p1_ref   : (B*14*14, 9)        conv1 im2col patches (input prep only)
    w1_ref   : (9, 8)              conv1 weight, GEMM layout
    g2_ref   : (9, B*49, B*196)    conv2 per-tap 0/1 gather matrices
    w2_ref   : (9, 8, 16)          conv2 per-tap weights
    g3_ref   : (9, B*9, B*49)      conv3 per-tap gather matrices
    w3_ref   : (9, 16, 32)         conv3 per-tap weights
    sflat_ref: (9, B, B*9)         flatten per-spatial-position row selectors
    wl1_ref  : (9, 32, 128)        Linear1 weight, reordered per spatial tap
    wl2_ref  : (128, latent)       Linear2 weight (transposed)
    bias_ref : (6, 128)            packed [b1, gamma, beta, b3, bl1, bl2]
    o_ref    : (B, latent)
    """
    f32 = jnp.float32
    c1 = w1_ref.shape[1]          # 8
    c2 = w2_ref.shape[2]          # 16
    c3 = w3_ref.shape[2]          # 32
    latent = wl2_ref.shape[1]

    b_all = bias_ref[...]                                   # (6, 128)

    # ---- Conv1 (3x3, s=2, p=1) as GEMM on prebuilt patches + bias + ReLU ----
    y1 = jnp.dot(p1_ref[...], w1_ref[...], preferred_element_type=f32)
    y1 = jnp.maximum(y1 + b_all[0:1, 0:c1], 0.0)            # (B*196, 8)

    # ---- Conv2 (3x3, s=2, p=1) via 9 gather-matmul taps -----------------
    # (b2 is intentionally omitted: it cancels in training-mode BatchNorm.)
    y2 = None
    for t in range(9):
        term = jnp.dot(jnp.dot(g2_ref[t], y1, preferred_element_type=f32),
                       w2_ref[t], preferred_element_type=f32)
        y2 = term if y2 is None else y2 + term               # (B*49, 16)

    # ---- BatchNorm2d(16), training mode, one-pass stats + ReLU ----------
    inv_m = 1.0 / y2.shape[0]
    mean = jnp.sum(y2, axis=0, keepdims=True) * inv_m        # (1, 16)
    var = jnp.sum(y2 * y2, axis=0, keepdims=True) * inv_m - mean * mean
    y2 = (y2 - mean) * lax.rsqrt(var + 1e-5)
    y2 = jnp.maximum(y2 * b_all[1:2, 0:c2] + b_all[2:3, 0:c2], 0.0)

    # ---- Conv3 (3x3, s=2, p=0) via 9 gather-matmul taps + bias + ReLU ----
    y3 = None
    for t in range(9):
        term = jnp.dot(jnp.dot(g3_ref[t], y2, preferred_element_type=f32),
                       w3_ref[t], preferred_element_type=f32)
        y3 = term if y3 is None else y3 + term               # (B*9, 32)
    y3 = jnp.maximum(y3 + b_all[3:4, 0:c3], 0.0)

    # ---- Flatten (PyTorch (C,H,W) order folded into wl1 slices) + Linear1 ----
    h = None
    for hw in range(9):
        term = jnp.dot(jnp.dot(sflat_ref[hw], y3, preferred_element_type=f32),
                       wl1_ref[hw], preferred_element_type=f32)
        h = term if h is None else h + term                  # (B, 128)
    h = jnp.maximum(h + b_all[4:5, :], 0.0)

    # ---- Linear2 ----------------------------------------------------------
    o_ref[...] = (jnp.dot(h, wl2_ref[...], preferred_element_type=f32)
                  + b_all[5:6, 0:latent])


# ------------------------------ host-side helpers ----------------------------

def _full_spec(shape):
    # Whole-array block (equals the full array dims -> satisfies (8,128) rule).
    return pl.BlockSpec(shape, lambda i, _s=shape: tuple(0 for _ in _s))


def _im2col(x_nhwc, kh, kw, stride, padding):
    """x: (B,H,W,C) -> (B*OH*OW, kh*kw*C), feature order (kh, kw, cin)."""
    B, H, W, C = x_nhwc.shape
    xp = jnp.pad(x_nhwc, ((0, 0), (padding, padding), (padding, padding), (0, 0)))
    OH = (H + 2 * padding - kh) // stride + 1
    OW = (W + 2 * padding - kw) // stride + 1
    cols = []
    for i in range(kh):
        for j in range(kw):
            cols.append(xp[:, i:i + stride * OH:stride, j:j + stride * OW:stride, :])
    p = jnp.concatenate(cols, axis=-1)
    return p.reshape(B * OH * OW, kh * kw * C), OH, OW


def _gather_mats(B):
    """0/1 gather matrices (numpy constants) for conv2, conv3 and flatten."""
    H1 = W1 = 14
    H2 = W2 = 7
    H3 = W3 = 3
    M1, M2, M3 = B * H1 * W1, B * H2 * W2, B * H3 * W3

    g2 = np.zeros((9, M2, M1), np.float32)        # conv2: pad=1, stride=2
    for t in range(9):
        i, j = divmod(t, 3)
        for n in range(B):
            for oh in range(H2):
                for ow in range(W2):
                    ih, iw = oh * 2 + i - 1, ow * 2 + j - 1
                    if 0 <= ih < H1 and 0 <= iw < W1:
                        g2[t, n * H2 * W2 + oh * W2 + ow,
                           n * H1 * W1 + ih * W1 + iw] = 1.0

    g3 = np.zeros((9, M3, M2), np.float32)        # conv3: pad=0, stride=2
    for t in range(9):
        i, j = divmod(t, 3)
        for n in range(B):
            for oh in range(H3):
                for ow in range(W3):
                    ih, iw = oh * 2 + i, ow * 2 + j
                    g3[t, n * H3 * W3 + oh * W3 + ow,
                       n * H2 * W2 + ih * W2 + iw] = 1.0

    sflat = np.zeros((9, B, M3), np.float32)      # row selector per (h,w)
    for hw in range(9):
        for n in range(B):
            sflat[hw, n, n * 9 + hw] = 1.0
    return g2, g3, sflat


@jax.jit
def encoder_forward(x_nchw, params):
    B = x_nchw.shape[0]
    L = params["bl2"].shape[0]
    assert L <= 128

    # Input prep (only pre-kernel data movement): NCHW->NHWC + conv1 im2col.
    x = jnp.transpose(x_nchw, (0, 2, 3, 1))                  # (B, 28, 28, 1)
    p1, _, _ = _im2col(x, 3, 3, 2, 1)                        # (B*196, 9)

    # Kernel-layout weights (tiny, fused by jit).
    w1g = jnp.transpose(params["w1"], (2, 3, 1, 0)).reshape(9, 8)
    w2p = jnp.transpose(params["w2"], (2, 3, 1, 0)).reshape(9, 8, 16)
    w3p = jnp.transpose(params["w3"], (2, 3, 1, 0)).reshape(9, 16, 32)
    wl1p = jnp.transpose(params["wl1"].T.reshape(32, 9, 128), (1, 0, 2))
    wl2t = params["wl2"].T                                   # (128, L)

    # Packed per-channel vectors: [b1, gamma, beta, b3, bl1, bl2] -> (6, 128).
    bias = jnp.zeros((6, 128), jnp.float32)
    bias = bias.at[0, :8].set(params["b1"])
    bias = bias.at[1, :16].set(params["gamma"])
    bias = bias.at[2, :16].set(params["beta"])
    bias = bias.at[3, :32].set(params["b3"])
    bias = bias.at[4, :128].set(params["bl1"])
    bias = bias.at[5, :L].set(params["bl2"])

    g2, g3, sflat = _gather_mats(B)                          # trace-time consts
    g2, g3, sflat = jnp.asarray(g2), jnp.asarray(g3), jnp.asarray(sflat)

    return pl.pallas_call(
        _encoder_kernel,
        out_shape=jax.ShapeDtypeStruct((B, L), jnp.float32),
        grid=(1,),
        in_specs=[_full_spec(p1.shape), _full_spec(w1g.shape),
                  _full_spec(g2.shape), _full_spec(w2p.shape),
                  _full_spec(g3.shape), _full_spec(w3p.shape),
                  _full_spec(sflat.shape), _full_spec(wl1p.shape),
                  _full_spec(wl2t.shape), _full_spec(bias.shape)],
        out_specs=_full_spec((B, L)),
        compiler_params=pltpu.CompilerParams(
            dimension_semantics=("arbitrary",)),
    )(p1, w1g, g2, w2p, g3, w3p, sflat, wl1p, wl2t, bias)


# --------------------------------- reference ---------------------------------

def reference_forward(x_nchw, params):
    dn = ("NCHW", "OIHW", "NCHW")
    hp = lax.Precision.HIGHEST

    y = lax.conv_general_dilated(x_nchw, params["w1"], (2, 2), [(1, 1), (1, 1)],
                                 dimension_numbers=dn, precision=hp)
    y = jnp.maximum(y + params["b1"][None, :, None, None], 0.0)

    y = lax.conv_general_dilated(y, params["w2"], (2, 2), [(1, 1), (1, 1)],
                                 dimension_numbers=dn, precision=hp)
    y = y + params["b2"][None, :, None, None]
    mean = jnp.mean(y, axis=(0, 2, 3), keepdims=True)
    var = jnp.mean((y - mean) ** 2, axis=(0, 2, 3), keepdims=True)
    y = (y - mean) * lax.rsqrt(var + 1e-5)
    y = y * params["gamma"][None, :, None, None] + params["beta"][None, :, None, None]
    y = jnp.maximum(y, 0.0)

    y = lax.conv_general_dilated(y, params["w3"], (2, 2), [(0, 0), (0, 0)],
                                 dimension_numbers=dn, precision=hp)
    y = jnp.maximum(y + params["b3"][None, :, None, None], 0.0)

    y = y.reshape(y.shape[0], -1)
    y = jnp.maximum(jnp.dot(y, params["wl1"].T, precision=hp) + params["bl1"], 0.0)
    return jnp.dot(y, params["wl2"].T, precision=hp) + params["bl2"]


# ------------------------------ parameter init --------------------------------

def init_params(key, latent_dim):
    def uniform(k, shape, fan_in):
        bound = 1.0 / jnp.sqrt(float(fan_in))
        return jax.random.uniform(k, shape, jnp.float32, -bound, bound)

    ks = jax.random.split(key, 10)
    return {
        "w1": uniform(ks[0], (8, 1, 3, 3), 1 * 9),
        "b1": uniform(ks[1], (8,), 1 * 9),
        "w2": uniform(ks[2], (16, 8, 3, 3), 8 * 9),
        "b2": uniform(ks[3], (16,), 8 * 9),       # dead under training-mode BN
        "gamma": jnp.ones((16,), jnp.float32),
        "beta": jnp.zeros((16,), jnp.float32),
        "w3": uniform(ks[4], (32, 16, 3, 3), 16 * 9),
        "b3": uniform(ks[5], (32,), 16 * 9),
        "wl1": uniform(ks[6], (128, 288), 288),
        "bl1": uniform(ks[7], (128,), 288),
        "wl2": uniform(ks[8], (latent_dim, 128), 128),
        "bl2": uniform(ks[9], (latent_dim,), 128),
    }


# ----------------------------------- main --------------------------------------

if __name__ == "__main__":
    latent_dim = 16
    key = jax.random.PRNGKey(0)
    k_x, k_p = jax.random.split(key)

    # Input spatial size is fixed to 28x28 by the 3*3*32 flatten in the module.
    x = jax.random.normal(k_x, (2, 1, 28, 28), jnp.float32)
    params = init_params(k_p, latent_dim)

    out = jax.block_until_ready(encoder_forward(x, params))
    ref = jax.block_until_ready(reference_forward(x, params))

    assert out.shape == (2, latent_dim), out.shape
    assert bool(jnp.all(jnp.isfinite(out)))
    assert bool(jnp.allclose(out, ref, rtol=1e-3, atol=1e-3)), (
        float(jnp.max(jnp.abs(out - ref))))

    print("KERNEL_OK")
</pallas_src>

<mosaic_0001>
module attributes {stable_mosaic.version = 11 : i64} {
  func.func @_encoder_kernel(%arg0: i32, %arg1: memref<392x9xf32, #tpu.memory_space<vmem>>, %arg2: memref<9x8xf32, #tpu.memory_space<vmem>>, %arg3: memref<9x98x392xf32, #tpu.memory_space<vmem>>, %arg4: memref<9x8x16xf32, #tpu.memory_space<vmem>>, %arg5: memref<9x18x98xf32, #tpu.memory_space<vmem>>, %arg6: memref<9x16x32xf32, #tpu.memory_space<vmem>>, %arg7: memref<9x2x18xf32, #tpu.memory_space<vmem>>, %arg8: memref<9x32x128xf32, #tpu.memory_space<vmem>>, %arg9: memref<128x16xf32, #tpu.memory_space<vmem>>, %arg10: memref<6x128xf32, #tpu.memory_space<vmem>>, %arg11: memref<2x16xf32, #tpu.memory_space<vmem>>) attributes {dimension_semantics = [#tpu.dimension_semantics<arbitrary>], iteration_bounds = array<i64: 1>, scalar_prefetch = 0 : i64, scratch_operands = 0 : i64, tpu.core_type = #tpu.core_type<tc>, window_params = [{pipeline_mode = #tpu.pipeline_mode<synchronous>, transform_indices = @transform_0, window_bounds = array<i64: 392, 9>}, {pipeline_mode = #tpu.pipeline_mode<synchronous>, transform_indices = @transform_1, window_bounds = array<i64: 9, 8>}, {pipeline_mode = #tpu.pipeline_mode<synchronous>, transform_indices = @transform_2, window_bounds = array<i64: 9, 98, 392>}, {pipeline_mode = #tpu.pipeline_mode<synchronous>, transform_indices = @transform_3, window_bounds = array<i64: 9, 8, 16>}, {pipeline_mode = #tpu.pipeline_mode<synchronous>, transform_indices = @transform_4, window_bounds = array<i64: 9, 18, 98>}, {pipeline_mode = #tpu.pipeline_mode<synchronous>, transform_indices = @transform_5, window_bounds = array<i64: 9, 16, 32>}, {pipeline_mode = #tpu.pipeline_mode<synchronous>, transform_indices = @transform_6, window_bounds = array<i64: 9, 2, 18>}, {pipeline_mode = #tpu.pipeline_mode<synchronous>, transform_indices = @transform_7, window_bounds = array<i64: 9, 32, 128>}, {pipeline_mode = #tpu.pipeline_mode<synchronous>, transform_indices = @transform_8, window_bounds = array<i64: 128, 16>}, {pipeline_mode = #tpu.pipeline_mode<synchronous>, transform_indices = @transform_9, window_bounds = array<i64: 6, 128>}, {pipeline_mode = #tpu.pipeline_mode<synchronous>, transform_indices = @transform_10, window_bounds = array<i64: 2, 16>}]} {
    %c0 = arith.constant 0 : index
    %c0_0 = arith.constant 0 : index
    %0 = vector.load %arg10[%c0, %c0_0] : memref<6x128xf32, #tpu.memory_space<vmem>>, vector<6x128xf32>
    %c0_1 = arith.constant 0 : index
    %c0_2 = arith.constant 0 : index
    %1 = vector.load %arg1[%c0_1, %c0_2] : memref<392x9xf32, #tpu.memory_space<vmem>>, vector<392x9xf32>
    %c0_3 = arith.constant 0 : index
    %c0_4 = arith.constant 0 : index
    %2 = vector.load %arg2[%c0_3, %c0_4] : memref<9x8xf32, #tpu.memory_space<vmem>>, vector<9x8xf32>
    %cst = arith.constant dense<0.000000e+00> : vector<392x8xf32>
    %3 = tpu.matmul %1, %2, %cst {dimension_numbers = #tpu.dot_dimension_numbers<[1], [0], [0], [1], [0, 0, 1, 1], [], []>} : vector<392x9xf32>, vector<9x8xf32>, vector<392x8xf32> -> vector<392x8xf32>
    %4 = vector.extract_strided_slice %0 {offsets = [0, 0], sizes = [1, 8], strides = [1, 1]} : vector<6x128xf32> to vector<1x8xf32>
    %5 = vector.broadcast %4 : vector<1x8xf32> to vector<392x8xf32>
    %6 = arith.addf %3, %5 : vector<392x8xf32>
    %cst_5 = arith.constant 0.000000e+00 : f32
    %7 = vector.broadcast %cst_5 : f32 to vector<392x8xf32>
    %8 = arith.maximumf %6, %7 : vector<392x8xf32>
    %c0_6 = arith.constant 0 : index
    %c0_7 = arith.constant 0 : index
    %c0_8 = arith.constant 0 : index
    %9 = vector.load %arg3[%c0_6, %c0_7, %c0_8] : memref<9x98x392xf32, #tpu.memory_space<vmem>>, vector<1x98x392xf32>
    %10 = vector.shape_cast %9 : vector<1x98x392xf32> to vector<98x392xf32>
    %cst_9 = arith.constant dense<0.000000e+00> : vector<98x8xf32>
    %11 = tpu.matmul %10, %8, %cst_9 {dimension_numbers = #tpu.dot_dimension_numbers<[1], [0], [0], [1], [0, 0, 1, 1], [], []>} : vector<98x392xf32>, vector<392x8xf32>, vector<98x8xf32> -> vector<98x8xf32>
    %c0_10 = arith.constant 0 : index
    %c0_11 = arith.constant 0 : index
    %c0_12 = arith.constant 0 : index
    %12 = vector.load %arg4[%c0_10, %c0_11, %c0_12] : memref<9x8x16xf32, #tpu.memory_space<vmem>>, vector<1x8x16xf32>
    %13 = vector.shape_cast %12 : vector<1x8x16xf32> to vector<8x16xf32>
    %cst_13 = arith.constant dense<0.000000e+00> : vector<98x16xf32>
    %14 = tpu.matmul %11, %13, %cst_13 {dimension_numbers = #tpu.dot_dimension_numbers<[1], [0], [0], [1], [0, 0, 1, 1], [], []>} : vector<98x8xf32>, vector<8x16xf32>, vector<98x16xf32> -> vector<98x16xf32>
    %c1 = arith.constant 1 : index
    %c0_14 = arith.constant 0 : index
    %c0_15 = arith.constant 0 : index
    %15 = vector.load %arg3[%c1, %c0_14, %c0_15] : memref<9x98x392xf32, #tpu.memory_space<vmem>>, vector<1x98x392xf32>
    %16 = vector.shape_cast %15 : vector<1x98x392xf32> to vector<98x392xf32>
    %cst_16 = arith.constant dense<0.000000e+00> : vector<98x8xf32>
    %17 = tpu.matmul %16, %8, %cst_16 {dimension_numbers = #tpu.dot_dimension_numbers<[1], [0], [0], [1], [0, 0, 1, 1], [], []>} : vector<98x392xf32>, vector<392x8xf32>, vector<98x8xf32> -> vector<98x8xf32>
    %c1_17 = arith.constant 1 : index
    %c0_18 = arith.constant 0 : index
    %c0_19 = arith.constant 0 : index
    %18 = vector.load %arg4[%c1_17, %c0_18, %c0_19] : memref<9x8x16xf32, #tpu.memory_space<vmem>>, vector<1x8x16xf32>
    %19 = vector.shape_cast %18 : vector<1x8x16xf32> to vector<8x16xf32>
    %cst_20 = arith.constant dense<0.000000e+00> : vector<98x16xf32>
    %20 = tpu.matmul %17, %19, %cst_20 {dimension_numbers = #tpu.dot_dimension_numbers<[1], [0], [0], [1], [0, 0, 1, 1], [], []>} : vector<98x8xf32>, vector<8x16xf32>, vector<98x16xf32> -> vector<98x16xf32>
    %21 = arith.addf %14, %20 : vector<98x16xf32>
    %c2 = arith.constant 2 : index
    %c0_21 = arith.constant 0 : index
    %c0_22 = arith.constant 0 : index
    %22 = vector.load %arg3[%c2, %c0_21, %c0_22] : memref<9x98x392xf32, #tpu.memory_space<vmem>>, vector<1x98x392xf32>
    %23 = vector.shape_cast %22 : vector<1x98x392xf32> to vector<98x392xf32>
    %cst_23 = arith.constant dense<0.000000e+00> : vector<98x8xf32>
    %24 = tpu.matmul %23, %8, %cst_23 {dimension_numbers = #tpu.dot_dimension_numbers<[1], [0], [0], [1], [0, 0, 1, 1], [], []>} : vector<98x392xf32>, vector<392x8xf32>, vector<98x8xf32> -> vector<98x8xf32>
    %c2_24 = arith.constant 2 : index
    %c0_25 = arith.constant 0 : index
    %c0_26 = arith.constant 0 : index
    %25 = vector.load %arg4[%c2_24, %c0_25, %c0_26] : memref<9x8x16xf32, #tpu.memory_space<vmem>>, vector<1x8x16xf32>
    %26 = vector.shape_cast %25 : vector<1x8x16xf32> to vector<8x16xf32>
    %cst_27 = arith.constant dense<0.000000e+00> : vector<98x16xf32>
    %27 = tpu.matmul %24, %26, %cst_27 {dimension_numbers = #tpu.dot_dimension_numbers<[1], [0], [0], [1], [0, 0, 1, 1], [], []>} : vector<98x8xf32>, vector<8x16xf32>, vector<98x16xf32> -> vector<98x16xf32>
    %28 = arith.addf %21, %27 : vector<98x16xf32>
    %c3 = arith.constant 3 : index
    %c0_28 = arith.constant 0 : index
    %c0_29 = arith.constant 0 : index
    %29 = vector.load %arg3[%c3, %c0_28, %c0_29] : memref<9x98x392xf32, #tpu.memory_space<vmem>>, vector<1x98x392xf32>
    %30 = vector.shape_cast %29 : vector<1x98x392xf32> to vector<98x392xf32>
    %cst_30 = arith.constant dense<0.000000e+00> : vector<98x8xf32>
    %31 = tpu.matmul %30, %8, %cst_30 {dimension_numbers = #tpu.dot_dimension_numbers<[1], [0], [0], [1], [0, 0, 1, 1], [], []>} : vector<98x392xf32>, vector<392x8xf32>, vector<98x8xf32> -> vector<98x8xf32>
    %c3_31 = arith.constant 3 : index
    %c0_32 = arith.constant 0 : index
    %c0_33 = arith.constant 0 : index
    %32 = vector.load %arg4[%c3_31, %c0_32, %c0_33] : memref<9x8x16xf32, #tpu.memory_space<vmem>>, vector<1x8x16xf32>
    %33 = vector.shape_cast %32 : vector<1x8x16xf32> to vector<8x16xf32>
    %cst_34 = arith.constant dense<0.000000e+00> : vector<98x16xf32>
    %34 = tpu.matmul %31, %33, %cst_34 {dimension_numbers = #tpu.dot_dimension_numbers<[1], [0], [0], [1], [0, 0, 1, 1], [], []>} : vector<98x8xf32>, vector<8x16xf32>, vector<98x16xf32> -> vector<98x16xf32>
    %35 = arith.addf %28, %34 : vector<98x16xf32>
    %c4 = arith.constant 4 : index
    %c0_35 = arith.constant 0 : index
    %c0_36 = arith.constant 0 : index
    %36 = vector.load %arg3[%c4, %c0_35, %c0_36] : memref<9x98x392xf32, #tpu.memory_space<vmem>>, vector<1x98x392xf32>
    %37 = vector.shape_cast %36 : vector<1x98x392xf32> to vector<98x392xf32>
    %cst_37 = arith.constant dense<0.000000e+00> : vector<98x8xf32>
    %38 = tpu.matmul %37, %8, %cst_37 {dimension_numbers = #tpu.dot_dimension_numbers<[1], [0], [0], [1], [0, 0, 1, 1], [], []>} : vector<98x392xf32>, vector<392x8xf32>, vector<98x8xf32> -> vector<98x8xf32>
    %c4_38 = arith.constant 4 : index
    %c0_39 = arith.constant 0 : index
    %c0_40 = arith.constant 0 : index
    %39 = vector.load %arg4[%c4_38, %c0_39, %c0_40] : memref<9x8x16xf32, #tpu.memory_space<vmem>>, vector<1x8x16xf32>
    %40 = vector.shape_cast %39 : vector<1x8x16xf32> to vector<8x16xf32>
    %cst_41 = arith.constant dense<0.000000e+00> : vector<98x16xf32>
    %41 = tpu.matmul %38, %40, %cst_41 {dimension_numbers = #tpu.dot_dimension_numbers<[1], [0], [0], [1], [0, 0, 1, 1], [], []>} : vector<98x8xf32>, vector<8x16xf32>, vector<98x16xf32> -> vector<98x16xf32>
    %42 = arith.addf %35, %41 : vector<98x16xf32>
    %c5 = arith.constant 5 : index
    %c0_42 = arith.constant 0 : index
    %c0_43 = arith.constant 0 : index
    %43 = vector.load %arg3[%c5, %c0_42, %c0_43] : memref<9x98x392xf32, #tpu.memory_space<vmem>>, vector<1x98x392xf32>
    %44 = vector.shape_cast %43 : vector<1x98x392xf32> to vector<98x392xf32>
    %cst_44 = arith.constant dense<0.000000e+00> : vector<98x8xf32>
    %45 = tpu.matmul %44, %8, %cst_44 {dimension_numbers = #tpu.dot_dimension_numbers<[1], [0], [0], [1], [0, 0, 1, 1], [], []>} : vector<98x392xf32>, vector<392x8xf32>, vector<98x8xf32> -> vector<98x8xf32>
    %c5_45 = arith.constant 5 : index
    %c0_46 = arith.constant 0 : index
    %c0_47 = arith.constant 0 : index
    %46 = vector.load %arg4[%c5_45, %c0_46, %c0_47] : memref<9x8x16xf32, #tpu.memory_space<vmem>>, vector<1x8x16xf32>
    %47 = vector.shape_cast %46 : vector<1x8x16xf32> to vector<8x16xf32>
    %cst_48 = arith.constant dense<0.000000e+00> : vector<98x16xf32>
    %48 = tpu.matmul %45, %47, %cst_48 {dimension_numbers = #tpu.dot_dimension_numbers<[1], [0], [0], [1], [0, 0, 1, 1], [], []>} : vector<98x8xf32>, vector<8x16xf32>, vector<98x16xf32> -> vector<98x16xf32>
    %49 = arith.addf %42, %48 : vector<98x16xf32>
    %c6 = arith.constant 6 : index
    %c0_49 = arith.constant 0 : index
    %c0_50 = arith.constant 0 : index
    %50 = vector.load %arg3[%c6, %c0_49, %c0_50] : memref<9x98x392xf32, #tpu.memory_space<vmem>>, vector<1x98x392xf32>
    %51 = vector.shape_cast %50 : vector<1x98x392xf32> to vector<98x392xf32>
    %cst_51 = arith.constant dense<0.000000e+00> : vector<98x8xf32>
    %52 = tpu.matmul %51, %8, %cst_51 {dimension_numbers = #tpu.dot_dimension_numbers<[1], [0], [0], [1], [0, 0, 1, 1], [], []>} : vector<98x392xf32>, vector<392x8xf32>, vector<98x8xf32> -> vector<98x8xf32>
    %c6_52 = arith.constant 6 : index
    %c0_53 = arith.constant 0 : index
    %c0_54 = arith.constant 0 : index
    %53 = vector.load %arg4[%c6_52, %c0_53, %c0_54] : memref<9x8x16xf32, #tpu.memory_space<vmem>>, vector<1x8x16xf32>
    %54 = vector.shape_cast %53 : vector<1x8x16xf32> to vector<8x16xf32>
    %cst_55 = arith.constant dense<0.000000e+00> : vector<98x16xf32>
    %55 = tpu.matmul %52, %54, %cst_55 {dimension_numbers = #tpu.dot_dimension_numbers<[1], [0], [0], [1], [0, 0, 1, 1], [], []>} : vector<98x8xf32>, vector<8x16xf32>, vector<98x16xf32> -> vector<98x16xf32>
    %56 = arith.addf %49, %55 : vector<98x16xf32>
    %c7 = arith.constant 7 : index
    %c0_56 = arith.constant 0 : index
    %c0_57 = arith.constant 0 : index
    %57 = vector.load %arg3[%c7, %c0_56, %c0_57] : memref<9x98x392xf32, #tpu.memory_space<vmem>>, vector<1x98x392xf32>
    %58 = vector.shape_cast %57 : vector<1x98x392xf32> to vector<98x392xf32>
    %cst_58 = arith.constant dense<0.000000e+00> : vector<98x8xf32>
    %59 = tpu.matmul %58, %8, %cst_58 {dimension_numbers = #tpu.dot_dimension_numbers<[1], [0], [0], [1], [0, 0, 1, 1], [], []>} : vector<98x392xf32>, vector<392x8xf32>, vector<98x8xf32> -> vector<98x8xf32>
    %c7_59 = arith.constant 7 : index
    %c0_60 = arith.constant 0 : index
    %c0_61 = arith.constant 0 : index
    %60 = vector.load %arg4[%c7_59, %c0_60, %c0_61] : memref<9x8x16xf32, #tpu.memory_space<vmem>>, vector<1x8x16xf32>
    %61 = vector.shape_cast %60 : vector<1x8x16xf32> to vector<8x16xf32>
    %cst_62 = arith.constant dense<0.000000e+00> : vector<98x16xf32>
    %62 = tpu.matmul %59, %61, %cst_62 {dimension_numbers = #tpu.dot_dimension_numbers<[1], [0], [0], [1], [0, 0, 1, 1], [], []>} : vector<98x8xf32>, vector<8x16xf32>, vector<98x16xf32> -> vector<98x16xf32>
    %63 = arith.addf %56, %62 : vector<98x16xf32>
    %c8 = arith.constant 8 : index
    %c0_63 = arith.constant 0 : index
    %c0_64 = arith.constant 0 : index
    %64 = vector.load %arg3[%c8, %c0_63, %c0_64] : memref<9x98x392xf32, #tpu.memory_space<vmem>>, vector<1x98x392xf32>
    %65 = vector.shape_cast %64 : vector<1x98x392xf32> to vector<98x392xf32>
    %cst_65 = arith.constant dense<0.000000e+00> : vector<98x8xf32>
    %66 = tpu.matmul %65, %8, %cst_65 {dimension_numbers = #tpu.dot_dimension_numbers<[1], [0], [0], [1], [0, 0, 1, 1], [], []>} : vector<98x392xf32>, vector<392x8xf32>, vector<98x8xf32> -> vector<98x8xf32>
    %c8_66 = arith.constant 8 : index
    %c0_67 = arith.constant 0 : index
    %c0_68 = arith.constant 0 : index
    %67 = vector.load %arg4[%c8_66, %c0_67, %c0_68] : memref<9x8x16xf32, #tpu.memory_space<vmem>>, vector<1x8x16xf32>
    %68 = vector.shape_cast %67 : vector<1x8x16xf32> to vector<8x16xf32>
    %cst_69 = arith.constant dense<0.000000e+00> : vector<98x16xf32>
    %69 = tpu.matmul %66, %68, %cst_69 {dimension_numbers = #tpu.dot_dimension_numbers<[1], [0], [0], [1], [0, 0, 1, 1], [], []>} : vector<98x8xf32>, vector<8x16xf32>, vector<98x16xf32> -> vector<98x16xf32>
    %70 = arith.addf %63, %69 : vector<98x16xf32>
    %cst_70 = arith.constant dense<0.000000e+00> : vector<16xf32>
    %71 = vector.multi_reduction <add>, %70, %cst_70 [0] : vector<98x16xf32> to vector<16xf32>
    %72 = vector.shape_cast %71 : vector<16xf32> to vector<1x16xf32>
    %cst_71 = arith.constant 0.0102040814 : f32
    %73 = vector.broadcast %cst_71 : f32 to vector<1x16xf32>
    %74 = arith.mulf %72, %73 : vector<1x16xf32>
    %75 = arith.mulf %70, %70 : vector<98x16xf32>
    %cst_72 = arith.constant dense<0.000000e+00> : vector<16xf32>
    %76 = vector.multi_reduction <add>, %75, %cst_72 [0] : vector<98x16xf32> to vector<16xf32>
    %77 = vector.shape_cast %76 : vector<16xf32> to vector<1x16xf32>
    %cst_73 = arith.constant 0.0102040814 : f32
    %78 = vector.broadcast %cst_73 : f32 to vector<1x16xf32>
    %79 = arith.mulf %77, %78 : vector<1x16xf32>
    %80 = arith.mulf %74, %74 : vector<1x16xf32>
    %81 = arith.subf %79, %80 : vector<1x16xf32>
    %82 = vector.broadcast %74 : vector<1x16xf32> to vector<98x16xf32>
    %83 = arith.subf %70, %82 : vector<98x16xf32>
    %cst_74 = arith.constant 9.99999974E-6 : f32
    %84 = vector.broadcast %cst_74 : f32 to vector<1x16xf32>
    %85 = arith.addf %81, %84 : vector<1x16xf32>
    %86 = math.rsqrt %85 : vector<1x16xf32>
    %87 = vector.broadcast %86 : vector<1x16xf32> to vector<98x16xf32>
    %88 = arith.mulf %83, %87 : vector<98x16xf32>
    %89 = vector.extract_strided_slice %0 {offsets = [1, 0], sizes = [1, 16], strides = [1, 1]} : vector<6x128xf32> to vector<1x16xf32>
    %90 = vector.broadcast %89 : vector<1x16xf32> to vector<98x16xf32>
    %91 = arith.mulf %88, %90 : vector<98x16xf32>
    %92 = vector.extract_strided_slice %0 {offsets = [2, 0], sizes = [1, 16], strides = [1, 1]} : vector<6x128xf32> to vector<1x16xf32>
    %93 = vector.broadcast %92 : vector<1x16xf32> to vector<98x16xf32>
    %94 = arith.addf %91, %93 : vector<98x16xf32>
    %cst_75 = arith.constant 0.000000e+00 : f32
    %95 = vector.broadcast %cst_75 : f32 to vector<98x16xf32>
    %96 = arith.maximumf %94, %95 : vector<98x16xf32>
    %c0_76 = arith.constant 0 : index
    %c0_77 = arith.constant 0 : index
    %c0_78 = arith.constant 0 : index
    %97 = vector.load %arg5[%c0_76, %c0_77, %c0_78] : memref<9x18x98xf32, #tpu.memory_space<vmem>>, vector<1x18x98xf32>
    %98 = vector.shape_cast %97 : vector<1x18x98xf32> to vector<18x98xf32>
    %cst_79 = arith.constant dense<0.000000e+00> : vector<18x16xf32>
    %99 = tpu.matmul %98, %96, %cst_79 {dimension_numbers = #tpu.dot_dimension_numbers<[1], [0], [0], [1], [0, 0, 1, 1], [], []>} : vector<18x98xf32>, vector<98x16xf32>, vector<18x16xf32> -> vector<18x16xf32>
    %c0_80 = arith.constant 0 : index
    %c0_81 = arith.constant 0 : index
    %c0_82 = arith.constant 0 : index
    %100 = vector.load %arg6[%c0_80, %c0_81, %c0_82] : memref<9x16x32xf32, #tpu.memory_space<vmem>>, vector<1x16x32xf32>
    %101 = vector.shape_cast %100 : vector<1x16x32xf32> to vector<16x32xf32>
    %cst_83 = arith.constant dense<0.000000e+00> : vector<18x32xf32>
    %102 = tpu.matmul %99, %101, %cst_83 {dimension_numbers = #tpu.dot_dimension_numbers<[1], [0], [0], [1], [0, 0, 1, 1], [], []>} : vector<18x16xf32>, vector<16x32xf32>, vector<18x32xf32> -> vector<18x32xf32>
    %c1_84 = arith.constant 1 : index
    %c0_85 = arith.constant 0 : index
    %c0_86 = arith.constant 0 : index
    %103 = vector.load %arg5[%c1_84, %c0_85, %c0_86] : memref<9x18x98xf32, #tpu.memory_space<vmem>>, vector<1x18x98xf32>
    %104 = vector.shape_cast %103 : vector<1x18x98xf32> to vector<18x98xf32>
    %cst_87 = arith.constant dense<0.000000e+00> : vector<18x16xf32>
    %105 = tpu.matmul %104, %96, %cst_87 {dimension_numbers = #tpu.dot_dimension_numbers<[1], [0], [0], [1], [0, 0, 1, 1], [], []>} : vector<18x98xf32>, vector<98x16xf32>, vector<18x16xf32> -> vector<18x16xf32>
    %c1_88 = arith.constant 1 : index
    %c0_89 = arith.constant 0 : index
    %c0_90 = arith.constant 0 : index
    %106 = vector.load %arg6[%c1_88, %c0_89, %c0_90] : memref<9x16x32xf32, #tpu.memory_space<vmem>>, vector<1x16x32xf32>
    %107 = vector.shape_cast %106 : vector<1x16x32xf32> to vector<16x32xf32>
    %cst_91 = arith.constant dense<0.000000e+00> : vector<18x32xf32>
    %108 = tpu.matmul %105, %107, %cst_91 {dimension_numbers = #tpu.dot_dimension_numbers<[1], [0], [0], [1], [0, 0, 1, 1], [], []>} : vector<18x16xf32>, vector<16x32xf32>, vector<18x32xf32> -> vector<18x32xf32>
    %109 = arith.addf %102, %108 : vector<18x32xf32>
    %c2_92 = arith.constant 2 : index
    %c0_93 = arith.constant 0 : index
    %c0_94 = arith.constant 0 : index
    %110 = vector.load %arg5[%c2_92, %c0_93, %c0_94] : memref<9x18x98xf32, #tpu.memory_space<vmem>>, vector<1x18x98xf32>
    %111 = vector.shape_cast %110 : vector<1x18x98xf32> to vector<18x98xf32>
    %cst_95 = arith.constant dense<0.000000e+00> : vector<18x16xf32>
    %112 = tpu.matmul %111, %96, %cst_95 {dimension_numbers = #tpu.dot_dimension_numbers<[1], [0], [0], [1], [0, 0, 1, 1], [], []>} : vector<18x98xf32>, vector<98x16xf32>, vector<18x16xf32> -> vector<18x16xf32>
    %c2_96 = arith.constant 2 : index
    %c0_97 = arith.constant 0 : index
    %c0_98 = arith.constant 0 : index
    %113 = vector.load %arg6[%c2_96, %c0_97, %c0_98] : memref<9x16x32xf32, #tpu.memory_space<vmem>>, vector<1x16x32xf32>
    %114 = vector.shape_cast %113 : vector<1x16x32xf32> to vector<16x32xf32>
    %cst_99 = arith.constant dense<0.000000e+00> : vector<18x32xf32>
    %115 = tpu.matmul %112, %114, %cst_99 {dimension_numbers = #tpu.dot_dimension_numbers<[1], [0], [0], [1], [0, 0, 1, 1], [], []>} : vector<18x16xf32>, vector<16x32xf32>, vector<18x32xf32> -> vector<18x32xf32>
    %116 = arith.addf %109, %115 : vector<18x32xf32>
    %c3_100 = arith.constant 3 : index
    %c0_101 = arith.constant 0 : index
    %c0_102 = arith.constant 0 : index
    %117 = vector.load %arg5[%c3_100, %c0_101, %c0_102] : memref<9x18x98xf32, #tpu.memory_space<vmem>>, vector<1x18x98xf32>
    %118 = vector.shape_cast %117 : vector<1x18x98xf32> to vector<18x98xf32>
    %cst_103 = arith.constant dense<0.000000e+00> : vector<18x16xf32>
    %119 = tpu.matmul %118, %96, %cst_103 {dimension_numbers = #tpu.dot_dimension_numbers<[1], [0], [0], [1], [0, 0, 1, 1], [], []>} : vector<18x98xf32>, vector<98x16xf32>, vector<18x16xf32> -> vector<18x16xf32>
    %c3_104 = arith.constant 3 : index
    %c0_105 = arith.constant 0 : index
    %c0_106 = arith.constant 0 : index
    %120 = vector.load %arg6[%c3_104, %c0_105, %c0_106] : memref<9x16x32xf32, #tpu.memory_space<vmem>>, vector<1x16x32xf32>
    %121 = vector.shape_cast %120 : vector<1x16x32xf32> to vector<16x32xf32>
    %cst_107 = arith.constant dense<0.000000e+00> : vector<18x32xf32>
    %122 = tpu.matmul %119, %121, %cst_107 {dimension_numbers = #tpu.dot_dimension_numbers<[1], [0], [0], [1], [0, 0, 1, 1], [], []>} : vector<18x16xf32>, vector<16x32xf32>, vector<18x32xf32> -> vector<18x32xf32>
    %123 = arith.addf %116, %122 : vector<18x32xf32>
    %c4_108 = arith.constant 4 : index
    %c0_109 = arith.constant 0 : index
    %c0_110 = arith.constant 0 : index
    %124 = vector.load %arg5[%c4_108, %c0_109, %c0_110] : memref<9x18x98xf32, #tpu.memory_space<vmem>>, vector<1x18x98xf32>
    %125 = vector.shape_cast %124 : vector<1x18x98xf32> to vector<18x98xf32>
    %cst_111 = arith.constant dense<0.000000e+00> : vector<18x16xf32>
    %126 = tpu.matmul %125, %96, %cst_111 {dimension_numbers = #tpu.dot_dimension_numbers<[1], [0], [0], [1], [0, 0, 1, 1], [], []>} : vector<18x98xf32>, vector<98x16xf32>, vector<18x16xf32> -> vector<18x16xf32>
    %c4_112 = arith.constant 4 : index
    %c0_113 = arith.constant 0 : index
    %c0_114 = arith.constant 0 : index
    %127 = vector.load %arg6[%c4_112, %c0_113, %c0_114] : memref<9x16x32xf32, #tpu.memory_space<vmem>>, vector<1x16x32xf32>
    %128 = vector.shape_cast %127 : vector<1x16x32xf32> to vector<16x32xf32>
    %cst_115 = arith.constant dense<0.000000e+00> : vector<18x32xf32>
    %129 = tpu.matmul %126, %128, %cst_115 {dimension_numbers = #tpu.dot_dimension_numbers<[1], [0], [0], [1], [0, 0, 1, 1], [], []>} : vector<18x16xf32>, vector<16x32xf32>, vector<18x32xf32> -> vector<18x32xf32>
    %130 = arith.addf %123, %129 : vector<18x32xf32>
    %c5_116 = arith.constant 5 : index
    %c0_117 = arith.constant 0 : index
    %c0_118 = arith.constant 0 : index
    %131 = vector.load %arg5[%c5_116, %c0_117, %c0_118] : memref<9x18x98xf32, #tpu.memory_space<vmem>>, vector<1x18x98xf32>
    %132 = vector.shape_cast %131 : vector<1x18x98xf32> to vector<18x98xf32>
    %cst_119 = arith.constant dense<0.000000e+00> : vector<18x16xf32>
    %133 = tpu.matmul %132, %96, %cst_119 {dimension_numbers = #tpu.dot_dimension_numbers<[1], [0], [0], [1], [0, 0, 1, 1], [], []>} : vector<18x98xf32>, vector<98x16xf32>, vector<18x16xf32> -> vector<18x16xf32>
    %c5_120 = arith.constant 5 : index
    %c0_121 = arith.constant 0 : index
    %c0_122 = arith.constant 0 : index
    %134 = vector.load %arg6[%c5_120, %c0_121, %c0_122] : memref<9x16x32xf32, #tpu.memory_space<vmem>>, vector<1x16x32xf32>
    %135 = vector.shape_cast %134 : vector<1x16x32xf32> to vector<16x32xf32>
    %cst_123 = arith.constant dense<0.000000e+00> : vector<18x32xf32>
    %136 = tpu.matmul %133, %135, %cst_123 {dimension_numbers = #tpu.dot_dimension_numbers<[1], [0], [0], [1], [0, 0, 1, 1], [], []>} : vector<18x16xf32>, vector<16x32xf32>, vector<18x32xf32> -> vector<18x32xf32>
    %137 = arith.addf %130, %136 : vector<18x32xf32>
    %c6_124 = arith.constant 6 : index
    %c0_125 = arith.constant 0 : index
    %c0_126 = arith.constant 0 : index
    %138 = vector.load %arg5[%c6_124, %c0_125, %c0_126] : memref<9x18x98xf32, #tpu.memory_space<vmem>>, vector<1x18x98xf32>
    %139 = vector.shape_cast %138 : vector<1x18x98xf32> to vector<18x98xf32>
    %cst_127 = arith.constant dense<0.000000e+00> : vector<18x16xf32>
    %140 = tpu.matmul %139, %96, %cst_127 {dimension_numbers = #tpu.dot_dimension_numbers<[1], [0], [0], [1], [0, 0, 1, 1], [], []>} : vector<18x98xf32>, vector<98x16xf32>, vector<18x16xf32> -> vector<18x16xf32>
    %c6_128 = arith.constant 6 : index
    %c0_129 = arith.constant 0 : index
    %c0_130 = arith.constant 0 : index
    %141 = vector.load %arg6[%c6_128, %c0_129, %c0_130] : memref<9x16x32xf32, #tpu.memory_space<vmem>>, vector<1x16x32xf32>
    %142 = vector.shape_cast %141 : vector<1x16x32xf32> to vector<16x32xf32>
    %cst_131 = arith.constant dense<0.000000e+00> : vector<18x32xf32>
    %143 = tpu.matmul %140, %142, %cst_131 {dimension_numbers = #tpu.dot_dimension_numbers<[1], [0], [0], [1], [0, 0, 1, 1], [], []>} : vector<18x16xf32>, vector<16x32xf32>, vector<18x32xf32> -> vector<18x32xf32>
    %144 = arith.addf %137, %143 : vector<18x32xf32>
    %c7_132 = arith.constant 7 : index
    %c0_133 = arith.constant 0 : index
    %c0_134 = arith.constant 0 : index
    %145 = vector.load %arg5[%c7_132, %c0_133, %c0_134] : memref<9x18x98xf32, #tpu.memory_space<vmem>>, vector<1x18x98xf32>
    %146 = vector.shape_cast %145 : vector<1x18x98xf32> to vector<18x98xf32>
    %cst_135 = arith.constant dense<0.000000e+00> : vector<18x16xf32>
    %147 = tpu.matmul %146, %96, %cst_135 {dimension_numbers = #tpu.dot_dimension_numbers<[1], [0], [0], [1], [0, 0, 1, 1], [], []>} : vector<18x98xf32>, vector<98x16xf32>, vector<18x16xf32> -> vector<18x16xf32>
    %c7_136 = arith.constant 7 : index
    %c0_137 = arith.constant 0 : index
    %c0_138 = arith.constant 0 : index
    %148 = vector.load %arg6[%c7_136, %c0_137, %c0_138] : memref<9x16x32xf32, #tpu.memory_space<vmem>>, vector<1x16x32xf32>
    %149 = vector.shape_cast %148 : vector<1x16x32xf32> to vector<16x32xf32>
    %cst_139 = arith.constant dense<0.000000e+00> : vector<18x32xf32>
    %150 = tpu.matmul %147, %149, %cst_139 {dimension_numbers = #tpu.dot_dimension_numbers<[1], [0], [0], [1], [0, 0, 1, 1], [], []>} : vector<18x16xf32>, vector<16x32xf32>, vector<18x32xf32> -> vector<18x32xf32>
    %151 = arith.addf %144, %150 : vector<18x32xf32>
    %c8_140 = arith.constant 8 : index
    %c0_141 = arith.constant 0 : index
    %c0_142 = arith.constant 0 : index
    %152 = vector.load %arg5[%c8_140, %c0_141, %c0_142] : memref<9x18x98xf32, #tpu.memory_space<vmem>>, vector<1x18x98xf32>
    %153 = vector.shape_cast %152 : vector<1x18x98xf32> to vector<18x98xf32>
    %cst_143 = arith.constant dense<0.000000e+00> : vector<18x16xf32>
    %154 = tpu.matmul %153, %96, %cst_143 {dimension_numbers = #tpu.dot_dimension_numbers<[1], [0], [0], [1], [0, 0, 1, 1], [], []>} : vector<18x98xf32>, vector<98x16xf32>, vector<18x16xf32> -> vector<18x16xf32>
    %c8_144 = arith.constant 8 : index
    %c0_145 = arith.constant 0 : index
    %c0_146 = arith.constant 0 : index
    %155 = vector.load %arg6[%c8_144, %c0_145, %c0_146] : memref<9x16x32xf32, #tpu.memory_space<vmem>>, vector<1x16x32xf32>
    %156 = vector.shape_cast %155 : vector<1x16x32xf32> to vector<16x32xf32>
    %cst_147 = arith.constant dense<0.000000e+00> : vector<18x32xf32>
    %157 = tpu.matmul %154, %156, %cst_147 {dimension_numbers = #tpu.dot_dimension_numbers<[1], [0], [0], [1], [0, 0, 1, 1], [], []>} : vector<18x16xf32>, vector<16x32xf32>, vector<18x32xf32> -> vector<18x32xf32>
    %158 = arith.addf %151, %157 : vector<18x32xf32>
    %159 = vector.extract_strided_slice %0 {offsets = [3, 0], sizes = [1, 32], strides = [1, 1]} : vector<6x128xf32> to vector<1x32xf32>
    %160 = vector.broadcast %159 : vector<1x32xf32> to vector<18x32xf32>
    %161 = arith.addf %158, %160 : vector<18x32xf32>
    %cst_148 = arith.constant 0.000000e+00 : f32
    %162 = vector.broadcast %cst_148 : f32 to vector<18x32xf32>
    %163 = arith.maximumf %161, %162 : vector<18x32xf32>
    %c0_149 = arith.constant 0 : index
    %c0_150 = arith.constant 0 : index
    %c0_151 = arith.constant 0 : index
    %164 = vector.load %arg7[%c0_149, %c0_150, %c0_151] : memref<9x2x18xf32, #tpu.memory_space<vmem>>, vector<1x2x18xf32>
    %165 = vector.shape_cast %164 : vector<1x2x18xf32> to vector<2x18xf32>
    %cst_152 = arith.constant dense<0.000000e+00> : vector<2x32xf32>
    %166 = tpu.matmul %165, %163, %cst_152 {dimension_numbers = #tpu.dot_dimension_numbers<[1], [0], [0], [1], [0, 0, 1, 1], [], []>} : vector<2x18xf32>, vector<18x32xf32>, vector<2x32xf32> -> vector<2x32xf32>
    %c0_153 = arith.constant 0 : index
    %c0_154 = arith.constant 0 : index
    %c0_155 = arith.constant 0 : index
    %167 = vector.load %arg8[%c0_153, %c0_154, %c0_155] : memref<9x32x128xf32, #tpu.memory_space<vmem>>, vector<1x32x128xf32>
    %168 = vector.shape_cast %167 : vector<1x32x128xf32> to vector<32x128xf32>
    %cst_156 = arith.constant dense<0.000000e+00> : vector<2x128xf32>
    %169 = tpu.matmul %166, %168, %cst_156 {dimension_numbers = #tpu.dot_dimension_numbers<[1], [0], [0], [1], [0, 0, 1, 1], [], []>} : vector<2x32xf32>, vector<32x128xf32>, vector<2x128xf32> -> vector<2x128xf32>
    %c1_157 = arith.constant 1 : index
    %c0_158 = arith.constant 0 : index
    %c0_159 = arith.constant 0 : index
    %170 = vector.load %arg7[%c1_157, %c0_158, %c0_159] : memref<9x2x18xf32, #tpu.memory_space<vmem>>, vector<1x2x18xf32>
    %171 = vector.shape_cast %170 : vector<1x2x18xf32> to vector<2x18xf32>
    %cst_160 = arith.constant dense<0.000000e+00> : vector<2x32xf32>
    %172 = tpu.matmul %171, %163, %cst_160 {dimension_numbers = #tpu.dot_dimension_numbers<[1], [0], [0], [1], [0, 0, 1, 1], [], []>} : vector<2x18xf32>, vector<18x32xf32>, vector<2x32xf32> -> vector<2x32xf32>
    %c1_161 = arith.constant 1 : index
    %c0_162 = arith.constant 0 : index
    %c0_163 = arith.constant 0 : index
    %173 = vector.load %arg8[%c1_161, %c0_162, %c0_163] : memref<9x32x128xf32, #tpu.memory_space<vmem>>, vector<1x32x128xf32>
    %174 = vector.shape_cast %173 : vector<1x32x128xf32> to vector<32x128xf32>
    %cst_164 = arith.constant dense<0.000000e+00> : vector<2x128xf32>
    %175 = tpu.matmul %172, %174, %cst_164 {dimension_numbers = #tpu.dot_dimension_numbers<[1], [0], [0], [1], [0, 0, 1, 1], [], []>} : vector<2x32xf32>, vector<32x128xf32>, vector<2x128xf32> -> vector<2x128xf32>
    %176 = arith.addf %169, %175 : vector<2x128xf32>
    %c2_165 = arith.constant 2 : index
    %c0_166 = arith.constant 0 : index
    %c0_167 = arith.constant 0 : index
    %177 = vector.load %arg7[%c2_165, %c0_166, %c0_167] : memref<9x2x18xf32, #tpu.memory_space<vmem>>, vector<1x2x18xf32>
    %178 = vector.shape_cast %177 : vector<1x2x18xf32> to vector<2x18xf32>
    %cst_168 = arith.constant dense<0.000000e+00> : vector<2x32xf32>
    %179 = tpu.matmul %178, %163, %cst_168 {dimension_numbers = #tpu.dot_dimension_numbers<[1], [0], [0], [1], [0, 0, 1, 1], [], []>} : vector<2x18xf32>, vector<18x32xf32>, vector<2x32xf32> -> vector<2x32xf32>
    %c2_169 = arith.constant 2 : index
    %c0_170 = arith.constant 0 : index
    %c0_171 = arith.constant 0 : index
    %180 = vector.load %arg8[%c2_169, %c0_170, %c0_171] : memref<9x32x128xf32, #tpu.memory_space<vmem>>, vector<1x32x128xf32>
    %181 = vector.shape_cast %180 : vector<1x32x128xf32> to vector<32x128xf32>
    %cst_172 = arith.constant dense<0.000000e+00> : vector<2x128xf32>
    %182 = tpu.matmul %179, %181, %cst_172 {dimension_numbers = #tpu.dot_dimension_numbers<[1], [0], [0], [1], [0, 0, 1, 1], [], []>} : vector<2x32xf32>, vector<32x128xf32>, vector<2x128xf32> -> vector<2x128xf32>
    %183 = arith.addf %176, %182 : vector<2x128xf32>
    %c3_173 = arith.constant 3 : index
    %c0_174 = arith.constant 0 : index
    %c0_175 = arith.constant 0 : index
    %184 = vector.load %arg7[%c3_173, %c0_174, %c0_175] : memref<9x2x18xf32, #tpu.memory_space<vmem>>, vector<1x2x18xf32>
    %185 = vector.shape_cast %184 : vector<1x2x18xf32> to vector<2x18xf32>
    %cst_176 = arith.constant dense<0.000000e+00> : vector<2x32xf32>
    %186 = tpu.matmul %185, %163, %cst_176 {dimension_numbers = #tpu.dot_dimension_numbers<[1], [0], [0], [1], [0, 0, 1, 1], [], []>} : vector<2x18xf32>, vector<18x32xf32>, vector<2x32xf32> -> vector<2x32xf32>
    %c3_177 = arith.constant 3 : index
    %c0_178 = arith.constant 0 : index
    %c0_179 = arith.constant 0 : index
    %187 = vector.load %arg8[%c3_177, %c0_178, %c0_179] : memref<9x32x128xf32, #tpu.memory_space<vmem>>, vector<1x32x128xf32>
    %188 = vector.shape_cast %187 : vector<1x32x128xf32> to vector<32x128xf32>
    %cst_180 = arith.constant dense<0.000000e+00> : vector<2x128xf32>
    %189 = tpu.matmul %186, %188, %cst_180 {dimension_numbers = #tpu.dot_dimension_numbers<[1], [0], [0], [1], [0, 0, 1, 1], [], []>} : vector<2x32xf32>, vector<32x128xf32>, vector<2x128xf32> -> vector<2x128xf32>
    %190 = arith.addf %183, %189 : vector<2x128xf32>
    %c4_181 = arith.constant 4 : index
    %c0_182 = arith.constant 0 : index
    %c0_183 = arith.constant 0 : index
    %191 = vector.load %arg7[%c4_181, %c0_182, %c0_183] : memref<9x2x18xf32, #tpu.memory_space<vmem>>, vector<1x2x18xf32>
    %192 = vector.shape_cast %191 : vector<1x2x18xf32> to vector<2x18xf32>
    %cst_184 = arith.constant dense<0.000000e+00> : vector<2x32xf32>
    %193 = tpu.matmul %192, %163, %cst_184 {dimension_numbers = #tpu.dot_dimension_numbers<[1], [0], [0], [1], [0, 0, 1, 1], [], []>} : vector<2x18xf32>, vector<18x32xf32>, vector<2x32xf32> -> vector<2x32xf32>
    %c4_185 = arith.constant 4 : index
    %c0_186 = arith.constant 0 : index
    %c0_187 = arith.constant 0 : index
    %194 = vector.load %arg8[%c4_185, %c0_186, %c0_187] : memref<9x32x128xf32, #tpu.memory_space<vmem>>, vector<1x32x128xf32>
    %195 = vector.shape_cast %194 : vector<1x32x128xf32> to vector<32x128xf32>
    %cst_188 = arith.constant dense<0.000000e+00> : vector<2x128xf32>
    %196 = tpu.matmul %193, %195, %cst_188 {dimension_numbers = #tpu.dot_dimension_numbers<[1], [0], [0], [1], [0, 0, 1, 1], [], []>} : vector<2x32xf32>, vector<32x128xf32>, vector<2x128xf32> -> vector<2x128xf32>
    %197 = arith.addf %190, %196 : vector<2x128xf32>
    %c5_189 = arith.constant 5 : index
    %c0_190 = arith.constant 0 : index
    %c0_191 = arith.constant 0 : index
    %198 = vector.load %arg7[%c5_189, %c0_190, %c0_191] : memref<9x2x18xf32, #tpu.memory_space<vmem>>, vector<1x2x18xf32>
    %199 = vector.shape_cast %198 : vector<1x2x18xf32> to vector<2x18xf32>
    %cst_192 = arith.constant dense<0.000000e+00> : vector<2x32xf32>
    %200 = tpu.matmul %199, %163, %cst_192 {dimension_numbers = #tpu.dot_dimension_numbers<[1], [0], [0], [1], [0, 0, 1, 1], [], []>} : vector<2x18xf32>, vector<18x32xf32>, vector<2x32xf32> -> vector<2x32xf32>
    %c5_193 = arith.constant 5 : index
    %c0_194 = arith.constant 0 : index
    %c0_195 = arith.constant 0 : index
    %201 = vector.load %arg8[%c5_193, %c0_194, %c0_195] : memref<9x32x128xf32, #tpu.memory_space<vmem>>, vector<1x32x128xf32>
    %202 = vector.shape_cast %201 : vector<1x32x128xf32> to vector<32x128xf32>
    %cst_196 = arith.constant dense<0.000000e+00> : vector<2x128xf32>
    %203 = tpu.matmul %200, %202, %cst_196 {dimension_numbers = #tpu.dot_dimension_numbers<[1], [0], [0], [1], [0, 0, 1, 1], [], []>} : vector<2x32xf32>, vector<32x128xf32>, vector<2x128xf32> -> vector<2x128xf32>
    %204 = arith.addf %197, %203 : vector<2x128xf32>
    %c6_197 = arith.constant 6 : index
    %c0_198 = arith.constant 0 : index
    %c0_199 = arith.constant 0 : index
    %205 = vector.load %arg7[%c6_197, %c0_198, %c0_199] : memref<9x2x18xf32, #tpu.memory_space<vmem>>, vector<1x2x18xf32>
    %206 = vector.shape_cast %205 : vector<1x2x18xf32> to vector<2x18xf32>
    %cst_200 = arith.constant dense<0.000000e+00> : vector<2x32xf32>
    %207 = tpu.matmul %206, %163, %cst_200 {dimension_numbers = #tpu.dot_dimension_numbers<[1], [0], [0], [1], [0, 0, 1, 1], [], []>} : vector<2x18xf32>, vector<18x32xf32>, vector<2x32xf32> -> vector<2x32xf32>
    %c6_201 = arith.constant 6 : index
    %c0_202 = arith.constant 0 : index
    %c0_203 = arith.constant 0 : index
    %208 = vector.load %arg8[%c6_201, %c0_202, %c0_203] : memref<9x32x128xf32, #tpu.memory_space<vmem>>, vector<1x32x128xf32>
    %209 = vector.shape_cast %208 : vector<1x32x128xf32> to vector<32x128xf32>
    %cst_204 = arith.constant dense<0.000000e+00> : vector<2x128xf32>
    %210 = tpu.matmul %207, %209, %cst_204 {dimension_numbers = #tpu.dot_dimension_numbers<[1], [0], [0], [1], [0, 0, 1, 1], [], []>} : vector<2x32xf32>, vector<32x128xf32>, vector<2x128xf32> -> vector<2x128xf32>
    %211 = arith.addf %204, %210 : vector<2x128xf32>
    %c7_205 = arith.constant 7 : index
    %c0_206 = arith.constant 0 : index
    %c0_207 = arith.constant 0 : index
    %212 = vector.load %arg7[%c7_205, %c0_206, %c0_207] : memref<9x2x18xf32, #tpu.memory_space<vmem>>, vector<1x2x18xf32>
    %213 = vector.shape_cast %212 : vector<1x2x18xf32> to vector<2x18xf32>
    %cst_208 = arith.constant dense<0.000000e+00> : vector<2x32xf32>
    %214 = tpu.matmul %213, %163, %cst_208 {dimension_numbers = #tpu.dot_dimension_numbers<[1], [0], [0], [1], [0, 0, 1, 1], [], []>} : vector<2x18xf32>, vector<18x32xf32>, vector<2x32xf32> -> vector<2x32xf32>
    %c7_209 = arith.constant 7 : index
    %c0_210 = arith.constant 0 : index
    %c0_211 = arith.constant 0 : index
    %215 = vector.load %arg8[%c7_209, %c0_210, %c0_211] : memref<9x32x128xf32, #tpu.memory_space<vmem>>, vector<1x32x128xf32>
    %216 = vector.shape_cast %215 : vector<1x32x128xf32> to vector<32x128xf32>
    %cst_212 = arith.constant dense<0.000000e+00> : vector<2x128xf32>
    %217 = tpu.matmul %214, %216, %cst_212 {dimension_numbers = #tpu.dot_dimension_numbers<[1], [0], [0], [1], [0, 0, 1, 1], [], []>} : vector<2x32xf32>, vector<32x128xf32>, vector<2x128xf32> -> vector<2x128xf32>
    %218 = arith.addf %211, %217 : vector<2x128xf32>
    %c8_213 = arith.constant 8 : index
    %c0_214 = arith.constant 0 : index
    %c0_215 = arith.constant 0 : index
    %219 = vector.load %arg7[%c8_213, %c0_214, %c0_215] : memref<9x2x18xf32, #tpu.memory_space<vmem>>, vector<1x2x18xf32>
    %220 = vector.shape_cast %219 : vector<1x2x18xf32> to vector<2x18xf32>
    %cst_216 = arith.constant dense<0.000000e+00> : vector<2x32xf32>
    %221 = tpu.matmul %220, %163, %cst_216 {dimension_numbers = #tpu.dot_dimension_numbers<[1], [0], [0], [1], [0, 0, 1, 1], [], []>} : vector<2x18xf32>, vector<18x32xf32>, vector<2x32xf32> -> vector<2x32xf32>
    %c8_217 = arith.constant 8 : index
    %c0_218 = arith.constant 0 : index
    %c0_219 = arith.constant 0 : index
    %222 = vector.load %arg8[%c8_217, %c0_218, %c0_219] : memref<9x32x128xf32, #tpu.memory_space<vmem>>, vector<1x32x128xf32>
    %223 = vector.shape_cast %222 : vector<1x32x128xf32> to vector<32x128xf32>
    %cst_220 = arith.constant dense<0.000000e+00> : vector<2x128xf32>
    %224 = tpu.matmul %221, %223, %cst_220 {dimension_numbers = #tpu.dot_dimension_numbers<[1], [0], [0], [1], [0, 0, 1, 1], [], []>} : vector<2x32xf32>, vector<32x128xf32>, vector<2x128xf32> -> vector<2x128xf32>
    %225 = arith.addf %218, %224 : vector<2x128xf32>
    %226 = vector.extract_strided_slice %0 {offsets = [4, 0], sizes = [1, 128], strides = [1, 1]} : vector<6x128xf32> to vector<1x128xf32>
    %227 = vector.broadcast %226 : vector<1x128xf32> to vector<2x128xf32>
    %228 = arith.addf %225, %227 : vector<2x128xf32>
    %cst_221 = arith.constant 0.000000e+00 : f32
    %229 = vector.broadcast %cst_221 : f32 to vector<2x128xf32>
    %230 = arith.maximumf %228, %229 : vector<2x128xf32>
    %c0_222 = arith.constant 0 : index
    %c0_223 = arith.constant 0 : index
    %231 = vector.load %arg9[%c0_222, %c0_223] : memref<128x16xf32, #tpu.memory_space<vmem>>, vector<128x16xf32>
    %cst_224 = arith.constant dense<0.000000e+00> : vector<2x16xf32>
    %232 = tpu.matmul %230, %231, %cst_224 {dimension_numbers = #tpu.dot_dimension_numbers<[1], [0], [0], [1], [0, 0, 1, 1], [], []>} : vector<2x128xf32>, vector<128x16xf32>, vector<2x16xf32> -> vector<2x16xf32>
    %233 = vector.extract_strided_slice %0 {offsets = [5, 0], sizes = [1, 16], strides = [1, 1]} : vector<6x128xf32> to vector<1x16xf32>
    %234 = vector.broadcast %233 : vector<1x16xf32> to vector<2x16xf32>
    %235 = arith.addf %232, %234 : vector<2x16xf32>
    %c0_225 = arith.constant 0 : index
    %c0_226 = arith.constant 0 : index
    %236 = vector.load %arg11[%c0_225, %c0_226] : memref<2x16xf32, #tpu.memory_space<vmem>>, vector<2x16xf32>
    tpu.vector_store %arg11[%c0_225, %c0_226], %235 {strides = array<i32>} : memref<2x16xf32, #tpu.memory_space<vmem>>, vector<2x16xf32>,
    return
  }
  func.func @transform_0(%arg0: i32) -> (i32, i32) {
    %c0_i32 = arith.constant 0 : i32
    %c0_i32_0 = arith.constant 0 : i32
    %c0_i32_1 = arith.constant 0 : i32
    return %c0_i32, %c0_i32_0 : i32, i32
  }
  func.func @transform_1(%arg0: i32) -> (i32, i32) {
    %c0_i32 = arith.constant 0 : i32
    %c0_i32_0 = arith.constant 0 : i32
    %c0_i32_1 = arith.constant 0 : i32
    return %c0_i32, %c0_i32_0 : i32, i32
  }
  func.func @transform_2(%arg0: i32) -> (i32, i32, i32) {
    %c0_i32 = arith.constant 0 : i32
    %c0_i32_0 = arith.constant 0 : i32
    %c0_i32_1 = arith.constant 0 : i32
    %c0_i32_2 = arith.constant 0 : i32
    return %c0_i32, %c0_i32_0, %c0_i32_1 : i32, i32, i32
  }
  func.func @transform_3(%arg0: i32) -> (i32, i32, i32) {
    %c0_i32 = arith.constant 0 : i32
    %c0_i32_0 = arith.constant 0 : i32
    %c0_i32_1 = arith.constant 0 : i32
    %c0_i32_2 = arith.constant 0 : i32
    return %c0_i32, %c0_i32_0, %c0_i32_1 : i32, i32, i32
  }
  func.func @transform_4(%arg0: i32) -> (i32, i32, i32) {
    %c0_i32 = arith.constant 0 : i32
    %c0_i32_0 = arith.constant 0 : i32
    %c0_i32_1 = arith.constant 0 : i32
    %c0_i32_2 = arith.constant 0 : i32
    return %c0_i32, %c0_i32_0, %c0_i32_1 : i32, i32, i32
  }
  func.func @transform_5(%arg0: i32) -> (i32, i32, i32) {
    %c0_i32 = arith.constant 0 : i32
    %c0_i32_0 = arith.constant 0 : i32
    %c0_i32_1 = arith.constant 0 : i32
    %c0_i32_2 = arith.constant 0 : i32
    return %c0_i32, %c0_i32_0, %c0_i32_1 : i32, i32, i32
  }
  func.func @transform_6(%arg0: i32) -> (i32, i32, i32) {
    %c0_i32 = arith.constant 0 : i32
    %c0_i32_0 = arith.constant 0 : i32
    %c0_i32_1 = arith.constant 0 : i32
    %c0_i32_2 = arith.constant 0 : i32
    return %c0_i32, %c0_i32_0, %c0_i32_1 : i32, i32, i32
  }
  func.func @transform_7(%arg0: i32) -> (i32, i32, i32) {
    %c0_i32 = arith.constant 0 : i32
    %c0_i32_0 = arith.constant 0 : i32
    %c0_i32_1 = arith.constant 0 : i32
    %c0_i32_2 = arith.constant 0 : i32
    return %c0_i32, %c0_i32_0, %c0_i32_1 : i32, i32, i32
  }
  func.func @transform_8(%arg0: i32) -> (i32, i32) {
    %c0_i32 = arith.constant 0 : i32
    %c0_i32_0 = arith.constant 0 : i32
    %c0_i32_1 = arith.constant 0 : i32
    return %c0_i32, %c0_i32_0 : i32, i32
  }
  func.func @transform_9(%arg0: i32) -> (i32, i32) {
    %c0_i32 = arith.constant 0 : i32
    %c0_i32_0 = arith.constant 0 : i32
    %c0_i32_1 = arith.constant 0 : i32
    return %c0_i32, %c0_i32_0 : i32, i32
  }
  func.func @transform_10(%arg0: i32) -> (i32, i32) {
    %c0_i32 = arith.constant 0 : i32
    %c0_i32_0 = arith.constant 0 : i32
    %c0_i32_1 = arith.constant 0 : i32
    return %c0_i32, %c0_i32_0 : i32, i32
  }
}

</mosaic_0001>

<bundles_post_ra>
// kernel: encoder_forward.1
= control target key start
LH: loop header
LB: loop body
LE: loop exit
PB: predicated region body
PF: predicated region fallthrough
CT: control target
= control target key end

     0   :  { %vm237_vm0 = vcmask 1040384   ;;  %vm89_vm1 = vcmask 72704   ;;  %s10553_s0 = inlined_call_operand.vmem [shape: f32[392,9], index: 0, kind: input, shape index: {}]   ;;  %s10554_s1 = inlined_call_operand.vmem [shape: f32[9,8], index: 1, kind: input, shape index: {}]   ;;  %s10555_s2 = inlined_call_operand.vmem [shape: f32[9,98,392], index: 2, kind: input, shape index: {}]   ;;  %s10556_s3 = inlined_call_operand.vmem [shape: f32[9,8,16], index: 3, kind: input, shape index: {}]   ;;  %s10557_s4 = inlined_call_operand.vmem [shape: f32[9,18,98], index: 4, kind: input, shape index: {}]   ;;  %s10558_s5 = inlined_call_operand.vmem [shape: f32[9,16,32], index: 5, kind: input, shape index: {}]   ;;  %s10559_s6 = inlined_call_operand.vmem [shape: f32[9,2,18], index: 6, kind: input, shape index: {}]   ;;  %s10560_s7 = inlined_call_operand.vmem [shape: f32[9,32,128], index: 7, kind: input, shape index: {}]   ;;  %s10561_s8 = inlined_call_operand.vmem [shape: f32[128,16], index: 8, kind: input, shape index: {}]   ;;  %s10562_s9 = inlined_call_operand.vmem [shape: f32[6,128], index: 9, kind: input, shape index: {}]   ;;  %s10563_s10 = inlined_call_operand.hbm [shape: f32[2,16], index: 10, kind: output, shape index: {}]  }
   0x1   :  { %v87_v0 = vld [vmem:[%s10554_s1 + $0x8] sm:$0x1]  ;;  %v86_v1 = vld [vmem:[%s10554_s1] sm:$0xff] }
   0x2   :  { %5688 = vmatpush.msk.msra.mxu0 %vm237_vm0, %v87_v0  ;;  %v37_v2 = vld [vmem:[%s10553_s0] sm:$0xff] }
   0x3   :  { %15 = vsyncpa [#allocation3], 0  ;;  %v38_v3 = vld [vmem:[%s10553_s0 + $0x8] sm:$0xff]  ;;  %v39_v4 = vld [vmem:[%s10553_s0 + $0x10] sm:$0xff]  ;;  %vm506_vm2 = vcmask 64512   ;;  %vm4261_vm3 = vcmask 130048  }
   0x4   :  { %256 = vmatpush.msra.mxu0 %v86_v1  ;;  %v40_v5 = vld [vmem:[%s10553_s0 + $0x18] sm:$0xff]  ;;  %v41_v6 = vld [vmem:[%s10553_s0 + $0x20] sm:$0xff]  ;;  %v42_v7 = vld [vmem:[%s10553_s0 + $0x28] sm:$0xff]  ;;  %vm4285_vm4 = vcmask 123904   ;;  %vm4433_vm8 = vcmask 1041408   ;;  %vm4423_vm9 = vcmask 801792  }
   0x5   :  { %5689 = vmatmul.msk.f32.vlgmr.msra.gmra.mxu0 %vm89_vm1, %v37_v2  ;;  %v43_v8 = vld [vmem:[%s10553_s0 + $0x30] sm:$0xff]  ;;  %v44_v9 = vld [vmem:[%s10553_s0 + $0x38] sm:$0xff]  ;;  %v45_v10 = vld [vmem:[%s10553_s0 + $0x40] sm:$0xff]  ;;  %vm5145_vm10 = vcmask 146432   ;;  %vm5206_vm11 = vcmask 261120   ;;  %s5679_s29 = sshll.u32 %s10563_s10, 4  ;;  %s5680_s29 = int_to_ptr.hbm [resolvable:$true] %s5679_s29 }
   0x6   :  { %v46_v11 = vld [vmem:[%s10553_s0 + $0x48] sm:$0xff]  ;;  %v47_v12 = vld [vmem:[%s10553_s0 + $0x50] sm:$0xff]  ;;  %v48_v13 = vld [vmem:[%s10553_s0 + $0x58] sm:$0xff] }
   0x7   :  { %v49_v14 = vld [vmem:[%s10553_s0 + $0x60] sm:$0xff]  ;;  %v50_v15 = vld [vmem:[%s10553_s0 + $0x68] sm:$0xff]  ;;  %v51_v16 = vld [vmem:[%s10553_s0 + $0x70] sm:$0xff] }
   0x8   :  { %v52_v17 = vld [vmem:[%s10553_s0 + $0x78] sm:$0xff]  ;;  %v53_v19 = vld [vmem:[%s10553_s0 + $0x80] sm:$0xff]  ;;  %v54_v21 = vld [vmem:[%s10553_s0 + $0x88] sm:$0xff] }
   0x9   :  { %v55_v23 = vld [vmem:[%s10553_s0 + $0x90] sm:$0xff]  ;;  %v56_v25 = vld [vmem:[%s10553_s0 + $0x98] sm:$0xff]  ;;  %v57_v27 = vld [vmem:[%s10553_s0 + $0xa0] sm:$0xff] }
   0xa   :  { %v58_v29 = vld [vmem:[%s10553_s0 + $0xa8] sm:$0xff]  ;;  %v59_v31 = vld [vmem:[%s10553_s0 + $0xb0] sm:$0xff]  ;;  %v60_v33 = vld [vmem:[%s10553_s0 + $0xb8] sm:$0xff] }
   0xb   :  { %v61_v35 = vld [vmem:[%s10553_s0 + $0xc0] sm:$0xff]  ;;  %v62_v37 = vld [vmem:[%s10553_s0 + $0xc8] sm:$0xff]  ;;  %v63_v39 = vld [vmem:[%s10553_s0 + $0xd0] sm:$0xff] }
   0xc   :  { %v64_v41 = vld [vmem:[%s10553_s0 + $0xd8] sm:$0xff]  ;;  %v65_v43 = vld [vmem:[%s10553_s0 + $0xe0] sm:$0xff]  ;;  %v66_v45 = vld [vmem:[%s10553_s0 + $0xe8] sm:$0xff] }
   0xd   :  { %5690 = vmatmul.msk.f32.gmra.mxu0 %vm89_vm1, %v38_v3  ;;  %v67_v47 = vld [vmem:[%s10553_s0 + $0xf0] sm:$0xff]  ;;  %v36_v48 = vld [vmem:[%s10562_s9] sm:$0x3f]  ;;  %v68_v51 = vld [vmem:[%s10553_s0 + $0xf8] sm:$0xff] }
   0xe   :  { %v6830_v49 = vperm.slane %v36_v48, 0  ;;  %v69_v61 = vld [vmem:[%s10553_s0 + $0x100] sm:$0xff] }
  0x15   :  { %5691 = vmatmul.msk.f32.gmra.mxu0 %vm89_vm1, %v39_v4 }
  0x1d   :  { %5692 = vmatmul.msk.f32.gmra.mxu0 %vm89_vm1, %v40_v5 }
  0x25   :  { %5693 = vmatmul.msk.f32.gmra.mxu0 %vm89_vm1, %v41_v6 }
  0x2d   :  { %5694 = vmatmul.msk.f32.gmra.mxu0 %vm89_vm1, %v42_v7  ;;  %v70_v7 = vld [vmem:[%s10553_s0 + $0x108] sm:$0xff] }
  0x35   :  { %5695 = vmatmul.msk.f32.gmra.mxu0 %vm89_vm1, %v43_v8 }
  0x3d   :  { %5696 = vmatmul.msk.f32.gmra.mxu0 %vm89_vm1, %v44_v9 }
  0x45   :  { %5697 = vmatmul.msk.f32.gmra.mxu0 %vm89_vm1, %v45_v10 }
  0x4d   :  { %5698 = vmatmul.msk.f32.gmra.mxu0 %vm89_vm1, %v46_v11 }
  0x55   :  { %5699 = vmatmul.msk.f32.gmra.mxu0 %vm89_vm1, %v47_v12 }
  0x5d   :  { %5700 = vmatmul.msk.f32.gmra.mxu0 %vm89_vm1, %v48_v13 }
  0x65   :  { %5701 = vmatmul.msk.f32.gmra.mxu0 %vm89_vm1, %v49_v14 }
  0x6d   :  { %5702 = vmatmul.msk.f32.gmra.mxu0 %vm89_vm1, %v50_v15 }
  0x75   :  { %5703 = vmatmul.msk.f32.gmra.mxu0 %vm89_vm1, %v51_v16 }
  0x7d   :  { %5704 = vmatmul.msk.f32.gmra.mxu0 %vm89_vm1, %v52_v17  ;;  %v71_v17 = vld [vmem:[%s10553_s0 + $0x110] sm:$0xff] }
  0x82   :  { %v6755_v18 = vpop.f32.mrf.mxu0 }
  0x85   :  { %5705 = vmatmul.msk.f32.gmra.mxu0 %vm89_vm1, %v53_v19 }
  0x8a   :  { %v6761_v20 = vpop.f32.mrf.mxu0 }
  0x8d   :  { %5706 = vmatmul.msk.f32.gmra.mxu0 %vm89_vm1, %v54_v21 }
  0x92   :  { %v6767_v22 = vpop.f32.mrf.mxu0 }
  0x93   :  { %v265_v19 = vadd.f32 %v6767_v22, %v6830_v49 }
  0x95   :  { %5707 = vmatmul.msk.f32.gmra.mxu0 %vm89_vm1, %v55_v23  ;;  %v262_v23 = vadd.f32 %v6761_v20, %v6830_v49  ;;  %v72_v20 = vld [vmem:[%s10553_s0 + $0x118] sm:$0xff] }
  0x97   :  { %v6917_v22 = vmax.f32 %v262_v23, 0.0 }
  0x99   :  { %10656 = vst [vmem:[#allocation19_spill] sm:$0xff] %v6917_v22 }
  0x9a   :  { %v6773_v24 = vpop.f32.mrf.mxu0 }
  0x9b   :  { %v268_v14 = vadd.f32 %v6773_v24, %v6830_v49 }
  0x9d   :  { %5708 = vmatmul.msk.f32.gmra.mxu0 %vm89_vm1, %v56_v25  ;;  %v6908_v24 = vmax.f32 %v268_v14, 0.0  ;;  %v259_v25 = vadd.f32 %v6755_v18, %v6830_v49 }
  0x9f   :  { %10654 = vst [vmem:[#allocation17_spill] sm:$0xff] %v6908_v24 }
  0xa2   :  { %v6779_v26 = vpop.f32.mrf.mxu0 }
  0xa3   :  { %v271_v12 = vadd.f32 %v6779_v26, %v6830_v49  ;;  %v6914_v26 = vmax.f32 %v265_v19, 0.0 }
  0xa5   :  { %5709 = vmatmul.msk.f32.gmra.mxu0 %vm89_vm1, %v57_v27  ;;  %v6903_v21 = vmax.f32 %v271_v12, 0.0  ;;  %10655 = vst [vmem:[#allocation18_spill] sm:$0xff] %v6914_v26 }
  0xa7   :  { %10653 = vst [vmem:[#allocation16_spill] sm:$0xff] %v6903_v21 }
  0xaa   :  { %v6785_v28 = vpop.f32.mrf.mxu0 }
  0xab   :  { %v274_v10 = vadd.f32 %v6785_v28, %v6830_v49  ;;  %v6925_v28 = vmax.f32 %v259_v25, 0.0  ;;  %v458_v25 = vld [vmem:[%s10555_s2 + $0x20] sm:$0xff] }
  0xad   :  { %5710 = vmatmul.msk.f32.gmra.mxu0 %vm89_vm1, %v58_v29  ;;  %v6893_v15 = vmax.f32 %v274_v10, 0.0  ;;  %10657 = vst [vmem:[#allocation20_spill] sm:$0xff] %v6925_v28  ;;  %v73_v29 = vld [vmem:[%s10553_s0 + $0x120] sm:$0xff] }
  0xaf   :  { %10652 = vst [vmem:[#allocation15_spill] sm:$0xff] %v6893_v15 }
  0xb2   :  { %v276_v30 = vpop.f32.mrf.mxu0 }
  0xb3   :  { %v277_v8 = vadd.f32 %v276_v30, %v6830_v49 }
  0xb5   :  { %5711 = vmatmul.msk.f32.gmra.mxu0 %vm89_vm1, %v59_v31  ;;  %v6888_v13 = vmax.f32 %v277_v8, 0.0  ;;  %v74_v31 = vld [vmem:[%s10553_s0 + $0x128] sm:$0xff]  ;;  %v85_v8 = vld [vmem:[%s10553_s0 + $0x180] sm:$0xff] }
  0xb7   :  { %10651 = vst [vmem:[#allocation14_spill] sm:$0xff] %v6888_v13 }
  0xba   :  { %v279_v32 = vpop.f32.mrf.mxu0 }
  0xbb   :  { %v280_v4 = vadd.f32 %v279_v32, %v6830_v49 }
  0xbd   :  { %5712 = vmatmul.msk.f32.gmra.mxu0 %vm89_vm1, %v60_v33  ;;  %v6882_v11 = vmax.f32 %v280_v4, 0.0  ;;  %v75_v33 = vld [vmem:[%s10553_s0 + $0x130] sm:$0xff] }
  0xbf   :  { %10650 = vst [vmem:[#allocation13_spill] sm:$0xff] %v6882_v11 }
  0xc2   :  { %v282_v34 = vpop.f32.mrf.mxu0 }
  0xc3   :  { %v283_v2 = vadd.f32 %v282_v34, %v6830_v49 }
  0xc5   :  { %5713 = vmatmul.msk.f32.gmra.mxu0 %vm89_vm1, %v61_v35  ;;  %v6877_v9 = vmax.f32 %v283_v2, 0.0  ;;  %v76_v35 = vld [vmem:[%s10553_s0 + $0x138] sm:$0xff] }
  0xc7   :  { %10649 = vst [vmem:[#allocation12_spill] sm:$0xff] %v6877_v9 }
  0xca   :  { %v285_v36 = vpop.f32.mrf.mxu0 }
  0xcb   :  { %v286_v0 = vadd.f32 %v285_v36, %v6830_v49 }
  0xcd   :  { %5714 = vmatmul.msk.f32.gmra.mxu0 %vm89_vm1, %v62_v37  ;;  %v6868_v5 = vmax.f32 %v286_v0, 0.0  ;;  %v77_v37 = vld [vmem:[%s10553_s0 + $0x140] sm:$0xff] }
  0xce   :  { %v454_v0 = vld [vmem:[%s10555_s2] sm:$0xff] }
  0xcf   :  { %10648 = vst [vmem:[#allocation11_spill] sm:$0xff] %v6868_v5 }
  0xd2   :  { %v288_v38 = vpop.f32.mrf.mxu0 }
  0xd3   :  { %v289_v62 = vadd.f32 %v288_v38, %v6830_v49 }
  0xd5   :  { %5715 = vmatmul.msk.f32.gmra.mxu0 %vm89_vm1, %v63_v39  ;;  %v6864_v3 = vmax.f32 %v289_v62, 0.0  ;;  %v78_v39 = vld [vmem:[%s10553_s0 + $0x148] sm:$0xff] }
  0xd7   :  { %10647 = vst [vmem:[#allocation10_spill] sm:$0xff] %v6864_v3 }
  0xda   :  { %v291_v40 = vpop.f32.mrf.mxu0 }
  0xdb   :  { %v292_v58 = vadd.f32 %v291_v40, %v6830_v49 }
  0xdd   :  { %5716 = vmatmul.msk.f32.gmra.mxu0 %vm89_vm1, %v64_v41  ;;  %v6859_v1 = vmax.f32 %v292_v58, 0.0  ;;  %v79_v41 = vld [vmem:[%s10553_s0 + $0x150] sm:$0xff] }
  0xdf   :  { %10646 = vst [vmem:[#allocation9_spill] sm:$0xff] %v6859_v1 }
  0xe2   :  { %v294_v42 = vpop.f32.mrf.mxu0 }
  0xe3   :  { %v295_v56 = vadd.f32 %v294_v42, %v6830_v49 }
  0xe5   :  { %5717 = vmatmul.msk.f32.gmra.mxu0 %vm89_vm1, %v65_v43  ;;  %v6855_v63 = vmax.f32 %v295_v56, 0.0  ;;  %v80_v43 = vld [vmem:[%s10553_s0 + $0x158] sm:$0xff] }
  0xe7   :  { %10645 = vst [vmem:[#allocation8_spill] sm:$0xff] %v6855_v63 }
  0xea   :  { %v297_v44 = vpop.f32.mrf.mxu0 }
  0xeb   :  { %v298_v54 = vadd.f32 %v297_v44, %v6830_v49 }
  0xed   :  { %5718 = vmatmul.msk.f32.gmra.mxu0 %vm89_vm1, %v66_v45  ;;  %v6846_v59 = vmax.f32 %v298_v54, 0.0  ;;  %v81_v45 = vld [vmem:[%s10553_s0 + $0x160] sm:$0xff] }
  0xef   :  { %10644 = vst [vmem:[#allocation7_spill] sm:$0xff] %v6846_v59 }
  0xf2   :  { %v300_v46 = vpop.f32.mrf.mxu0 }
  0xf3   :  { %v301_v52 = vadd.f32 %v300_v46, %v6830_v49 }
  0xf5   :  { %5719 = vmatmul.msk.f32.gmra.mxu0 %vm89_vm1, %v67_v47  ;;  %v6842_v57 = vmax.f32 %v301_v52, 0.0  ;;  %v82_v47 = vld [vmem:[%s10553_s0 + $0x168] sm:$0xff]  ;;  %v84_v52 = vld [vmem:[%s10553_s0 + $0x178] sm:$0xff] }
  0xf7   :  { %10643 = vst [vmem:[#allocation6_spill] sm:$0xff] %v6842_v57 }
  0xfa   :  { %v303_v50 = vpop.f32.mrf.mxu0 }
  0xfb   :  { %v304_v53 = vadd.f32 %v303_v50, %v6830_v49  ;;  %v83_v50 = vld [vmem:[%s10553_s0 + $0x170] sm:$0xff] }
  0xfd   :  { %v6838_v55 = vmax.f32 %v304_v53, 0.0  ;;  %5720 = vmatmul.msk.f32.gmra.mxu0 %vm89_vm1, %v68_v51 }
  0xff   :  { %10642 = vst [vmem:[#allocation5_spill] sm:$0xff] %v6838_v55  ;;  %546 = vmatpush.msra.mxu1 %v6838_v55 }
 0x101   :  { %547 = vmatpush.msra.mxu1 %v6842_v57 }
 0x102   :  { %v6849_v60 = vpop.f32.mrf.mxu0 }
 0x103   :  { %548 = vmatpush.msra.mxu1 %v6846_v59 }
 0x105   :  { %5721 = vmatmul.msk.f32.gmra.mxu0 %vm89_vm1, %v69_v61  ;;  %549 = vmatpush.msra.mxu1 %v6855_v63 }
 0x107   :  { %550 = vmatpush.msra.mxu1 %v6859_v1 }
 0x109   :  { %551 = vmatpush.msra.mxu1 %v6864_v3 }
 0x10a   :  { %v6871_v6 = vpop.f32.mrf.mxu0 }
 0x10b   :  { %552 = vmatpush.msra.mxu1 %v6868_v5 }
 0x10d   :  { %5722 = vmatmul.msk.f32.gmra.mxu0 %vm89_vm1, %v70_v7  ;;  %553 = vmatpush.msra.mxu1 %v6877_v9 }
 0x10f   :  { %554 = vmatpush.msra.mxu1 %v6882_v11 }
 0x111   :  { %555 = vmatpush.msra.mxu1 %v6888_v13 }
 0x112   :  { %v6896_v16 = vpop.f32.mrf.mxu0 }
 0x113   :  { %556 = vmatpush.msra.mxu1 %v6893_v15 }
 0x115   :  { %5723 = vmatmul.msk.f32.gmra.mxu0 %vm89_vm1, %v71_v17  ;;  %557 = vmatpush.msra.mxu1 %v6903_v21 }
 0x117   :  { %558 = vmatpush.msra.mxu1 %v6908_v24 }
 0x119   :  { %559 = vmatpush.msra.mxu1 %v6914_v26 }
 0x11a   :  { %v6920_v27 = vpop.f32.mrf.mxu0 }
 0x11b   :  { %560 = vmatpush.msra.mxu1 %v6917_v22 }
 0x11d   :  { %5724 = vmatmul.msk.f32.gmra.mxu0 %vm89_vm1, %v72_v20  ;;  %561 = vmatpush.msra.mxu1 %v6925_v28 }
 0x11e   :  { %562 = vmatmul.f32.vlgmr.msra.gmra.mxu1 %v454_v0  ;;  %v482_v0 = vld [vmem:[%s10555_s2 + $0xe0] sm:$0xff] }
 0x122   :  { %v6930_v18 = vpop.f32.mrf.mxu0 }
 0x125   :  { %5725 = vmatmul.msk.f32.gmra.mxu0 %vm89_vm1, %v73_v29 }
 0x126   :  { %565 = vmatmul.f32.gmra.mxu1 %v458_v25  ;;  %v490_v25 = vld [vmem:[%s10555_s2 + $0x120] sm:$0xff] }
 0x12a   :  { %v6936_v30 = vpop.f32.mrf.mxu0 }
 0x12d   :  { %5726 = vmatmul.msk.f32.gmra.mxu0 %vm89_vm1, %v74_v31 }
 0x132   :  { %v324_v32 = vpop.f32.mrf.mxu0 }
 0x135   :  { %5727 = vmatmul.msk.f32.gmra.mxu0 %vm89_vm1, %v75_v33  ;;  %v325_v33 = vadd.f32 %v324_v32, %v6830_v49  ;;  %v462_v32 = vld [vmem:[%s10555_s2 + $0x40] sm:$0xff] }
 0x136   :  { %568 = vmatmul.f32.gmra.mxu1 %v462_v32  ;;  %v483_v32 = vld [vmem:[%s10555_s2 + $0xe8] sm:$0xff] }
 0x13a   :  { %v327_v34 = vpop.f32.mrf.mxu0 }
 0x13b   :  { %v328_v20 = vadd.f32 %v327_v34, %v6830_v49  ;;  %v319_v34 = vadd.f32 %v6930_v18, %v6830_v49  ;;  %v313_v18 = vadd.f32 %v6896_v16, %v6830_v49  ;;  %v466_v16 = vld [vmem:[%s10555_s2 + $0x60] sm:$0xff] }
 0x13d   :  { %5728 = vmatmul.msk.f32.gmra.mxu0 %vm89_vm1, %v76_v35 }
 0x13e   :  { %571 = vmatmul.f32.gmra.mxu1 %v466_v16 }
 0x142   :  { %v330_v36 = vpop.f32.mrf.mxu0 }
 0x143   :  { %v331_v19 = vadd.f32 %v330_v36, %v6830_v49  ;;  %v322_v36 = vadd.f32 %v6936_v30, %v6830_v49 }
 0x145   :  { %5729 = vmatmul.msk.f32.gmra.mxu0 %vm89_vm1, %v77_v37  ;;  %v7026_v35 = vmax.f32 %v331_v19, 0.0  ;;  %v7031_v37 = vmax.f32 %v328_v20, 0.0  ;;  %v7044_v30 = vmax.f32 %v322_v36, 0.0  ;;  %v475_v19 = vld [vmem:[%s10555_s2 + $0xa8] sm:$0xff]  ;;  %v494_v36 = vld [vmem:[%s10555_s2 + $0x140] sm:$0xff] }
 0x147   :  { %10665 = vst [vmem:[#allocation28_spill] sm:$0xff] %v7026_v35 }
 0x148   :  { %10666 = vst [vmem:[#allocation29_spill] sm:$0xff] %v7031_v37 }
 0x149   :  { %10668 = vst [vmem:[#allocation31_spill] sm:$0xff] %v7044_v30 }
 0x14a   :  { %v333_v38 = vpop.f32.mrf.mxu0 }
 0x14b   :  { %v334_v14 = vadd.f32 %v333_v38, %v6830_v49  ;;  %v7036_v38 = vmax.f32 %v325_v33, 0.0  ;;  %v479_v33 = vld [vmem:[%s10555_s2 + $0xc8] sm:$0xff] }
 0x14d   :  { %5730 = vmatmul.msk.f32.gmra.mxu0 %vm89_vm1, %v78_v39  ;;  %v7020_v29 = vmax.f32 %v334_v14, 0.0  ;;  %10667 = vst [vmem:[#allocation30_spill] sm:$0xff] %v7036_v38  ;;  %v316_v39 = vadd.f32 %v6920_v27, %v6830_v49  ;;  %v307_v27 = vadd.f32 %v6849_v60, %v6830_v49  ;;  %v455_v60 = vld [vmem:[%s10555_s2 + $0x8] sm:$0xff] }
 0x14f   :  { %10664 = vst [vmem:[#allocation27_spill] sm:$0xff] %v7020_v29 }
 0x152   :  { %v336_v40 = vpop.f32.mrf.mxu0 }
 0x153   :  { %v337_v10 = vadd.f32 %v336_v40, %v6830_v49 }
 0x155   :  { %5731 = vmatmul.msk.f32.gmra.mxu0 %vm89_vm1, %v79_v41  ;;  %v7013_v23 = vmax.f32 %v337_v10, 0.0  ;;  %v7051_v41 = vmax.f32 %v319_v34, 0.0  ;;  %v486_v10 = vld [vmem:[%s10555_s2 + $0x100] sm:$0xff] }
 0x157   :  { %10663 = vst [vmem:[#allocation26_spill] sm:$0xff] %v7013_v23 }
 0x158   :  { %10669 = vst [vmem:[#allocation32_spill] sm:$0xff] %v7051_v41 }
 0x15a   :  { %v339_v42 = vpop.f32.mrf.mxu0 }
 0x15b   :  { %v340_v2 = vadd.f32 %v339_v42, %v6830_v49  ;;  %v310_v42 = vadd.f32 %v6871_v6, %v6830_v49 }
 0x15d   :  { %5732 = vmatmul.msk.f32.gmra.mxu0 %vm89_vm1, %v80_v43  ;;  %v7008_v17 = vmax.f32 %v340_v2, 0.0  ;;  %v7056_v43 = vmax.f32 %v316_v39, 0.0  ;;  %v498_v39 = vld [vmem:[%s10555_s2 + $0x160] sm:$0xff] }
 0x15f   :  { %10662 = vst [vmem:[#allocation25_spill] sm:$0xff] %v7008_v17 }
 0x160   :  { %10670 = vst [vmem:[#allocation33_spill] sm:$0xff] %v7056_v43 }
 0x162   :  { %v342_v44 = vpop.f32.mrf.mxu0 }
 0x163   :  { %v343_v61 = vadd.f32 %v342_v44, %v6830_v49  ;;  %v7061_v44 = vmax.f32 %v313_v18, 0.0 }
 0x165   :  { %5733 = vmatmul.msk.f32.gmra.mxu0 %vm89_vm1, %v81_v45  ;;  %v7004_v12 = vmax.f32 %v343_v61, 0.0  ;;  %10671 = vst [vmem:[#allocation34_spill] sm:$0xff] %v7061_v44  ;;  %v7067_v45 = vmax.f32 %v310_v42, 0.0  ;;  %v467_v61 = vld [vmem:[%s10555_s2 + $0x68] sm:$0xff] }
 0x166   :  { %v487_v42 = vld [vmem:[%s10555_s2 + $0x108] sm:$0xff] }
 0x167   :  { %10661 = vst [vmem:[#allocation24_spill] sm:$0xff] %v7004_v12 }
 0x168   :  { %10672 = vst [vmem:[#allocation35_spill] sm:$0xff] %v7067_v45 }
 0x16a   :  { %v345_v46 = vpop.f32.mrf.mxu0 }
 0x16b   :  { %v346_v56 = vadd.f32 %v345_v46, %v6830_v49  ;;  %v7072_v46 = vmax.f32 %v307_v27, 0.0  ;;  %v502_v27 = vld [vmem:[%s10555_s2 + $0x180] sm:$0x3] }
 0x16d   :  { %5734 = vmatmul.msk.f32.gmra.mxu0 %vm89_vm1, %v82_v47  ;;  %v6995_v4 = vmax.f32 %v346_v56, 0.0  ;;  %10673 = vst [vmem:[#allocation36_spill] sm:$0xff] %v7072_v46  ;;  %v470_v47 = vld [vmem:[%s10555_s2 + $0x80] sm:$0xff] }
 0x16e   :  { %574 = vmatmul.f32.gmra.mxu1 %v470_v47 }
 0x16f   :  { %10660 = vst [vmem:[#allocation23_spill] sm:$0xff] %v6995_v4 }
 0x172   :  { %v348_v48 = vpop.f32.mrf.mxu0 }
 0x173   :  { %v349_v53 = vadd.f32 %v348_v48, %v6830_v49 }
 0x175   :  { %5735 = vmatmul.msk.f32.gmra.mxu0 %vm89_vm1, %v83_v50  ;;  %v6988_v62 = vmax.f32 %v349_v53, 0.0  ;;  %v459_v50 = vld [vmem:[%s10555_s2 + $0x28] sm:$0xff] }
 0x176   :  { %v463_v53 = vld [vmem:[%s10555_s2 + $0x48] sm:$0xff] }
 0x177   :  { %10659 = vst [vmem:[#allocation22_spill] sm:$0xff] %v6988_v62 }
 0x17a   :  { %v351_v51 = vpop.f32.mrf.mxu0 }
 0x17b   :  { %v352_v54 = vadd.f32 %v351_v51, %v6830_v49  ;;  %v474_v51 = vld [vmem:[%s10555_s2 + $0xa0] sm:$0xff] }
 0x17c   :  { %577 = vmatmul.f32.gmra.mxu1 %v474_v51 }
 0x17d   :  { %v6984_v58 = vmax.f32 %v352_v54, 0.0  ;;  %5736 = vmatmul.msk.f32.gmra.mxu0 %vm89_vm1, %v84_v52  ;;  %v478_v54 = vld [vmem:[%s10555_s2 + $0xc0] sm:$0xff] }
 0x17f   :  { %10658 = vst [vmem:[#allocation21_spill] sm:$0xff] %v6984_v58  ;;  %602 = vmatpush.msra.mxu2 %v6984_v58 }
 0x181   :  { %603 = vmatpush.msra.mxu2 %v6988_v62 }
 0x182   :  { %v6998_v7 = vpop.f32.mrf.mxu0 }
 0x183   :  { %604 = vmatpush.msra.mxu2 %v6995_v4 }
 0x184   :  { %580 = vmatmul.f32.gmra.mxu1 %v478_v54 }
 0x185   :  { %5737 = vmatmul.msk.f32.gmra.mxu0 %vm89_vm1, %v85_v8  ;;  %605 = vmatpush.msra.mxu2 %v7004_v12  ;;  %v471_v8 = vld [vmem:[%s10555_s2 + $0x88] sm:$0xff] }
 0x187   :  { %606 = vmatpush.msra.mxu2 %v7008_v17 }
 0x189   :  { %607 = vmatpush.msra.mxu2 %v7013_v23 }
 0x18a   :  { %v7023_v31 = vpop.f32.mrf.mxu0 }
 0x18b   :  { %608 = vmatpush.msra.mxu2 %v7020_v29 }
 0x18c   :  { %583 = vmatmul.f32.gmra.mxu1 %v482_v0 }
 0x18d   :  { %609 = vmatpush.msra.mxu2 %v7026_v35 }
 0x18f   :  { %610 = vmatpush.msra.mxu2 %v7031_v37 }
 0x191   :  { %611 = vmatpush.msra.mxu2 %v7036_v38 }
 0x192   :  { %v7047_v40 = vpop.f32.mrf.mxu0 }
 0x193   :  { %612 = vmatpush.msra.mxu2 %v7044_v30 }
 0x194   :  { %586 = vmatmul.f32.gmra.mxu1 %v486_v10 }
 0x195   :  { %613 = vmatpush.msra.mxu2 %v7051_v41 }
 0x197   :  { %614 = vmatpush.msra.mxu2 %v7056_v43 }
 0x199   :  { %615 = vmatpush.msra.mxu2 %v7061_v44 }
 0x19a   :  { %v7070_v6 = vpop.f32.mrf.mxu0 }
 0x19b   :  { %616 = vmatpush.msra.mxu2 %v7067_v45 }
 0x19c   :  { %589 = vmatmul.f32.gmra.mxu1 %v490_v25 }
 0x19d   :  { %617 = vmatpush.msra.mxu2 %v7072_v46 }
 0x19e   :  { %618 = vmatmul.f32.vlgmr.msra.gmra.mxu2 %v455_v60  ;;  %v491_v60 = vld [vmem:[%s10555_s2 + $0x128] sm:$0xff] }
 0x19f   :  { %863 = vmatpush.msrb.mxu2 %v6838_v55 }
 0x1a1   :  { %864 = vmatpush.msrb.mxu2 %v6842_v57 }
 0x1a2   :  { %v7084_v48 = vpop.f32.mrf.mxu0 }
 0x1a3   :  { %865 = vmatpush.msrb.mxu2 %v6846_v59 }
 0x1a4   :  { %592 = vmatmul.f32.gmra.mxu1 %v494_v36 }
 0x1a5   :  { %866 = vmatpush.msrb.mxu2 %v6855_v63 }
 0x1a6   :  { %621 = vmatmul.f32.gmra.mxu2 %v459_v50  ;;  %v495_v50 = vld [vmem:[%s10555_s2 + $0x148] sm:$0xff] }
 0x1a7   :  { %867 = vmatpush.msrb.mxu2 %v6859_v1 }
 0x1a9   :  { %868 = vmatpush.msrb.mxu2 %v6864_v3 }
 0x1aa   :  { %v7096_v52 = vpop.f32.mrf.mxu0 }
 0x1ab   :  { %869 = vmatpush.msrb.mxu2 %v6868_v5 }
 0x1ac   :  { %595 = vmatmul.f32.gmra.mxu1 %v498_v39 }
 0x1ad   :  { %870 = vmatpush.msrb.mxu2 %v6877_v9 }
 0x1ae   :  { %624 = vmatmul.f32.gmra.mxu2 %v463_v53  ;;  %v499_v53 = vld [vmem:[%s10555_s2 + $0x168] sm:$0xff] }
 0x1af   :  { %871 = vmatpush.msrb.mxu2 %v6882_v11 }
 0x1b1   :  { %872 = vmatpush.msrb.mxu2 %v6888_v13 }
 0x1b2   :  { %v7108_v56 = vpop.f32.mrf.mxu0 }
 0x1b3   :  { %873 = vmatpush.msrb.mxu2 %v6893_v15 }
 0x1b4   :  { %598 = vmatmul.f32.gmra.mxu1 %v502_v27 }
 0x1b5   :  { %874 = vmatpush.msrb.mxu2 %v6903_v21 }
 0x1b6   :  { %627 = vmatmul.f32.gmra.mxu2 %v467_v61 }
 0x1b7   :  { %875 = vmatpush.msrb.mxu2 %v6908_v24 }
 0x1b9   :  { %876 = vmatpush.msrb.mxu2 %v6914_v26 }
 0x1ba   :  { %v7120_v2 = vpop.f32.mrf.mxu0 }
 0x1bb   :  { %877 = vmatpush.msrb.mxu2 %v6917_v22 }
 0x1bd   :  { %878 = vmatpush.msrb.mxu2 %v6925_v28 }
 0x1be   :  { %630 = vmatmul.f32.gmra.mxu2 %v471_v8  ;;  %v503_v8 = vld [vmem:[%s10555_s2 + $0x188] sm:$0x3] }
 0x1c2   :  { %v378_v14 = vpop.f32.mrf.mxu0 }
 0x1c6   :  { %633 = vmatmul.f32.gmra.mxu2 %v475_v19 }
 0x1ca   :  { %v381_v20 = vpop.f32.mrf.mxu0 }
 0x1ce   :  { %636 = vmatmul.f32.gmra.mxu2 %v479_v33 }
 0x1d2   :  { %v384_v34 = vpop.f32.mrf.mxu0 }
 0x1d6   :  { %639 = vmatmul.f32.gmra.mxu2 %v483_v32 }
 0x1da   :  { %v387_v18 = vpop.f32.mrf.mxu0 }
 0x1db   :  { %v388_v36 = vadd.f32 %v387_v18, %v6830_v49  ;;  %v385_v18 = vadd.f32 %v384_v34, %v6830_v49  ;;  %v379_v34 = vadd.f32 %v378_v14, %v6830_v49 }
 0x1dd   :  { %v7219_v14 = vmax.f32 %v379_v34, 0.0  ;;  %v355_v34 = vadd.f32 %v6998_v7, %v6830_v49  ;;  %v456_v7 = vld [vmem:[%s10555_s2 + $0x10] sm:$0xff] }
 0x1de   :  { %642 = vmatmul.f32.gmra.mxu2 %v487_v42 }
 0x1e2   :  { %v390_v16 = vpop.f32.mrf.mxu0 }
 0x1e3   :  { %v391_v25 = vadd.f32 %v390_v16, %v6830_v49  ;;  %v5751_v16 = vld [vmem:[%s10555_s2 + $0x1a0] sm:$0xff] }
 0x1e5   :  { %v7181_v42 = vmax.f32 %v391_v25, 0.0 }
 0x1e6   :  { %645 = vmatmul.f32.gmra.mxu2 %v491_v60  ;;  %v7190_v60 = vpop.f32.mrf.mxu1 }
 0x1ea   :  { %v393_v47 = vpop.f32.mrf.mxu0 }
 0x1eb   :  { %v394_v10 = vadd.f32 %v393_v47, %v6830_v49  ;;  %v7192_v47 = vmax.f32 %v388_v36, 0.0  ;;  %v367_v36 = vadd.f32 %v7084_v48, %v6830_v49 }
 0x1ed   :  { %v7177_v32 = vmax.f32 %v394_v10, 0.0  ;;  %v370_v10 = vadd.f32 %v7096_v52, %v6830_v49  ;;  %v7260_v48 = vmax.f32 %v367_v36, 0.0 }
 0x1ee   :  { %648 = vmatmul.f32.gmra.mxu2 %v495_v50 }
 0x1ef   :  { %v7252_v52 = vmax.f32 %v370_v10, 0.0  ;;  %v469_v10 = vld [vmem:[%s10555_s2 + $0x78] sm:$0xff] }
 0x1f2   :  { %v396_v51 = vpop.f32.mrf.mxu0 }
 0x1f3   :  { %v397_v61 = vadd.f32 %v396_v51, %v6830_v49  ;;  %v382_v51 = vadd.f32 %v381_v20, %v6830_v49 }
 0x1f5   :  { %v7172_v33 = vmax.f32 %v397_v61, 0.0  ;;  %v7211_v20 = vmax.f32 %v382_v51, 0.0  ;;  %v376_v61 = vadd.f32 %v7120_v2, %v6830_v49  ;;  %v7232_v2 = vpop.f32.mrf.mxu1 }
 0x1f6   :  { %651 = vmatmul.f32.gmra.mxu2 %v499_v53  ;;  %v457_v53 = vld [vmem:[%s10555_s2 + $0x18] sm:$0xff] }
 0x1f7   :  { %v7236_v25 = vmax.f32 %v376_v61, 0.0 }
 0x1fa   :  { %v399_v54 = vpop.f32.mrf.mxu0 }
 0x1fb   :  { %v400_v0 = vadd.f32 %v399_v54, %v6830_v49  ;;  %v7205_v54 = vmax.f32 %v385_v18, 0.0  ;;  %v361_v18 = vadd.f32 %v7047_v40, %v6830_v49  ;;  %v465_v40 = vld [vmem:[%s10555_s2 + $0x58] sm:$0xff] }
 0x1fd   :  { %v7169_v19 = vmax.f32 %v400_v0, 0.0  ;;  %v5755_v0 = vld [vmem:[%s10555_s2 + $0x1c0] sm:$0xff]  ;;  %v7287_v61 = vmax.f32 %v361_v18, 0.0  ;;  %v5849_v18 = vld [vmem:[%s10555_s2 + $0x370] sm:$0xff] }
 0x1fe   :  { %654 = vmatmul.f32.gmra.mxu2 %v503_v8  ;;  %v373_v8 = vadd.f32 %v7108_v56, %v6830_v49  ;;  %v461_v56 = vld [vmem:[%s10555_s2 + $0x38] sm:$0xff] }
 0x1ff   :  { %658 = vmatpush.msra.mxu3 %v7169_v19  ;;  %1483 = vmatpush.msrb.mxu0 %v7169_v19 }
 0x201   :  { %659 = vmatpush.msra.mxu3 %v7172_v33  ;;  %1484 = vmatpush.msrb.mxu0 %v7172_v33 }
 0x202   :  { %v402_v39 = vpop.f32.mrf.mxu0 }
 0x203   :  { %v403_v27 = vadd.f32 %v402_v39, %v6830_v49  ;;  %660 = vmatpush.msra.mxu3 %v7177_v32  ;;  %1485 = vmatpush.msrb.mxu0 %v7177_v32  ;;  %v7246_v39 = vmax.f32 %v373_v8, 0.0  ;;  %v5845_v8 = vld [vmem:[%s10555_s2 + $0x350] sm:$0xff] }
 0x205   :  { %v7194_v50 = vmax.f32 %v403_v27, 0.0  ;;  %661 = vmatpush.msra.mxu3 %v7181_v42  ;;  %1486 = vmatpush.msrb.mxu0 %v7181_v42  ;;  %v364_v27 = vadd.f32 %v7070_v6, %v6830_v49  ;;  %v358_v6 = vadd.f32 %v7023_v31, %v6830_v49  ;;  %v7299_v49 = vmax.f32 %v355_v34, 0.0 }
 0x206   :  { %879 = vmatmul.f32.vlgmr.msrb.gmra.mxu2 %v5751_v16  ;;  %v5759_v16 = vld [vmem:[%s10555_s2 + $0x1e0] sm:$0xff] }
 0x207   :  { %662 = vmatpush.msra.mxu3 %v7192_v47  ;;  %729 = vmatpush.msrb.mxu1 %v7194_v50  ;;  %v7275_v51 = vmax.f32 %v364_v27, 0.0  ;;  %v7293_v31 = vmax.f32 %v358_v6, 0.0  ;;  %v460_v27 = vld [vmem:[%s10555_s2 + $0x30] sm:$0xff]  ;;  %v473_v6 = vld [vmem:[%s10555_s2 + $0x98] sm:$0xff] }
 0x208   :  { %1046 = vmatpush.msra.mxu2 %v7194_v50  ;;  %1487 = vmatpush.msrb.mxu0 %v7192_v47 }
 0x209   :  { %5738 = vmatmul.msk.f32.vlgmr.msrb.gmra.mxu1 %vm506_vm2, %v457_v53  ;;  %663 = vmatpush.msra.mxu3 %v7205_v54  ;;  %v7281_v53 = vpop.f32.mrf.mxu1 }
 0x20a   :  { %1371 = vmatpush.msrb.mxu2 %v6838_v55  ;;  %975 = vmatpush.msra.mxu1 %v7169_v19 }
 0x20b   :  { %1488 = vmatpush.msrb.mxu0 %v7205_v54  ;;  %664 = vmatpush.msra.mxu3 %v7211_v20 }
 0x20c   :  { %1372 = vmatpush.msrb.mxu2 %v6842_v57  ;;  %976 = vmatpush.msra.mxu1 %v7172_v33 }
 0x20d   :  { %1489 = vmatpush.msrb.mxu0 %v7211_v20  ;;  %665 = vmatpush.msra.mxu3 %v7219_v14 }
 0x20e   :  { %1373 = vmatpush.msrb.mxu2 %v6846_v59  ;;  %977 = vmatpush.msra.mxu1 %v7177_v32 }
 0x20f   :  { %1490 = vmatpush.msrb.mxu0 %v7219_v14  ;;  %882 = vmatmul.f32.gmra.mxu2 %v5755_v0  ;;  %v5763_v0 = vld [vmem:[%s10555_s2 + $0x200] sm:$0xff] }
 0x210   :  { %978 = vmatpush.msra.mxu1 %v7181_v42  ;;  %1374 = vmatpush.msrb.mxu2 %v6855_v63 }
 0x211   :  { %666 = vmatpush.msra.mxu3 %v7236_v25  ;;  %1491 = vmatpush.msrb.mxu0 %v7236_v25 }
 0x212   :  { %5739 = vmatmul.msk.f32.gmra.mxu1 %vm506_vm2, %v461_v56  ;;  %1375 = vmatpush.msrb.mxu2 %v6859_v1  ;;  %v7321_v56 = vpop.f32.mrf.mxu1 }
 0x213   :  { %979 = vmatpush.msra.mxu1 %v7192_v47  ;;  %667 = vmatpush.msra.mxu3 %v7246_v39 }
 0x214   :  { %1492 = vmatpush.msrb.mxu0 %v7246_v39  ;;  %1376 = vmatpush.msrb.mxu2 %v6864_v3 }
 0x215   :  { %980 = vmatpush.msra.mxu1 %v7205_v54  ;;  %668 = vmatpush.msra.mxu3 %v7252_v52 }
 0x216   :  { %1493 = vmatpush.msrb.mxu0 %v7252_v52  ;;  %1377 = vmatpush.msrb.mxu2 %v6868_v5 }
 0x217   :  { %981 = vmatpush.msra.mxu1 %v7211_v20  ;;  %669 = vmatpush.msra.mxu3 %v7260_v48 }
 0x218   :  { %1494 = vmatpush.msrb.mxu0 %v7260_v48  ;;  %885 = vmatmul.f32.gmra.mxu2 %v5759_v16  ;;  %v5767_v16 = vld [vmem:[%s10555_s2 + $0x220] sm:$0xff] }
 0x219   :  { %982 = vmatpush.msra.mxu1 %v7219_v14  ;;  %1378 = vmatpush.msrb.mxu2 %v6877_v9 }
 0x21a   :  { %670 = vmatpush.msra.mxu3 %v7275_v51  ;;  %1495 = vmatpush.msrb.mxu0 %v7275_v51  ;;  %v7356_v34 = vpop.f32.mrf.mxu1 }
 0x21b   :  { %5740 = vmatmul.msk.f32.gmra.mxu1 %vm506_vm2, %v465_v40  ;;  %1379 = vmatpush.msrb.mxu2 %v6882_v11 }
 0x21c   :  { %983 = vmatpush.msra.mxu1 %v7236_v25  ;;  %671 = vmatpush.msra.mxu3 %v7287_v61 }
 0x21d   :  { %1496 = vmatpush.msrb.mxu0 %v7287_v61  ;;  %1380 = vmatpush.msrb.mxu2 %v6888_v13 }
 0x21e   :  { %984 = vmatpush.msra.mxu1 %v7246_v39  ;;  %672 = vmatpush.msra.mxu3 %v7293_v31 }
 0x21f   :  { %1497 = vmatpush.msrb.mxu0 %v7293_v31  ;;  %1381 = vmatpush.msrb.mxu2 %v6893_v15 }
 0x220   :  { %985 = vmatpush.msra.mxu1 %v7252_v52  ;;  %673 = vmatpush.msra.mxu3 %v7299_v49 }
 0x221   :  { %1498 = vmatpush.msrb.mxu0 %v7299_v49  ;;  %674 = vmatmul.f32.vlgmr.msra.gmra.mxu3 %v456_v7  ;;  %v7325_v36 = vpop.f32.mrf.mxu2  ;;  %v464_v7 = vld [vmem:[%s10555_s2 + $0x50] sm:$0xff] }
 0x222   :  { %888 = vmatmul.f32.gmra.mxu2 %v5763_v0  ;;  %919 = vmatpush.msrb.mxu3 %v6984_v58  ;;  %v5771_v0 = vld [vmem:[%s10555_s2 + $0x240] sm:$0xff] }
 0x223   :  { %986 = vmatpush.msra.mxu1 %v7260_v48  ;;  %1382 = vmatpush.msrb.mxu2 %v6903_v21 }
 0x224   :  { %1499 = vmatmul.f32.vlgmr.msrb.gmra.mxu0 %v5845_v8  ;;  %5741 = vmatmul.msk.f32.gmra.mxu1 %vm506_vm2, %v469_v10  ;;  %v5853_v8 = vld [vmem:[%s10555_s2 + $0x390] sm:$0xff]  ;;  %v477_v10 = vld [vmem:[%s10555_s2 + $0xb8] sm:$0xff] }
 0x225   :  { %1853 = vmatpush.msra.mxu0 %v6984_v58  ;;  %920 = vmatpush.msrb.mxu3 %v6988_v62 }
 0x226   :  { %987 = vmatpush.msra.mxu1 %v7275_v51  ;;  %1383 = vmatpush.msrb.mxu2 %v6908_v24 }
 0x227   :  { %1854 = vmatpush.msra.mxu0 %v6988_v62  ;;  %921 = vmatpush.msrb.mxu3 %v6995_v4 }
 0x228   :  { %988 = vmatpush.msra.mxu1 %v7287_v61  ;;  %1384 = vmatpush.msrb.mxu2 %v6914_v26 }
 0x229   :  { %1855 = vmatpush.msra.mxu0 %v6995_v4  ;;  %922 = vmatpush.msrb.mxu3 %v7004_v12  ;;  %v7353_v40 = vpop.f32.mrf.mxu2 }
 0x22a   :  { %989 = vmatpush.msra.mxu1 %v7293_v31  ;;  %1385 = vmatpush.msrb.mxu2 %v6917_v22 }
 0x22b   :  { %1856 = vmatpush.msra.mxu0 %v7004_v12  ;;  %677 = vmatmul.f32.gmra.mxu3 %v460_v27 }
 0x22c   :  { %891 = vmatmul.f32.gmra.mxu2 %v5767_v16  ;;  %923 = vmatpush.msrb.mxu3 %v7008_v17  ;;  %v7384_v16 = vpop.f32.mrf.mxu1 }
 0x22d   :  { %990 = vmatpush.msra.mxu1 %v7299_v49  ;;  %1386 = vmatpush.msrb.mxu2 %v6925_v28  ;;  %10674 = vst [vmem:[#allocation37_spill] sm:$0xff] %v7384_v16  ;;  %v476_v16 = vld [vmem:[%s10555_s2 + $0xb0] sm:$0xff] }
 0x22e   :  { %1502 = vmatmul.f32.gmra.mxu0 %v5849_v18  ;;  %5742 = vmatmul.msk.f32.gmra.mxu1 %vm506_vm2, %v473_v6  ;;  %v468_v18 = vld [vmem:[%s10555_s2 + $0x70] sm:$0xff]  ;;  %v5775_v6 = vld [vmem:[%s10555_s2 + $0x260] sm:$0xff] }
 0x22f   :  { %1857 = vmatpush.msra.mxu0 %v7008_v17  ;;  %924 = vmatpush.msrb.mxu3 %v7013_v23 }
 0x231   :  { %1858 = vmatpush.msra.mxu0 %v7013_v23  ;;  %925 = vmatpush.msrb.mxu3 %v7020_v29  ;;  %v7379_v27 = vpop.f32.mrf.mxu2 }
 0x233   :  { %1859 = vmatpush.msra.mxu0 %v7020_v29  ;;  %926 = vmatpush.msrb.mxu3 %v7026_v35 }
 0x234   :  { %680 = vmatmul.f32.gmra.mxu3 %v464_v7  ;;  %894 = vmatmul.f32.gmra.mxu2 %v5771_v0  ;;  %v5857_v7 = vld [vmem:[%s10555_s2 + $0x3b0] sm:$0xff]  ;;  %v481_v0 = vld [vmem:[%s10555_s2 + $0xd8] sm:$0xff] }
 0x235   :  { %1860 = vmatpush.msra.mxu0 %v7026_v35  ;;  %927 = vmatpush.msrb.mxu3 %v7031_v37 }
 0x236   :  { %1505 = vmatmul.f32.gmra.mxu0 %v5853_v8  ;;  %5743 = vmatmul.msk.f32.gmra.mxu1 %vm506_vm2, %v477_v10  ;;  %v7411_v10 = vpop.f32.mrf.mxu1 }
 0x237   :  { %1861 = vmatpush.msra.mxu0 %v7031_v37  ;;  %928 = vmatpush.msrb.mxu3 %v7036_v38  ;;  %10675 = vst [vmem:[#allocation38_spill] sm:$0xff] %v7411_v10  ;;  %v5861_v10 = vld [vmem:[%s10555_s2 + $0x3d0] sm:$0xff] }
 0x239   :  { %1862 = vmatpush.msra.mxu0 %v7036_v38  ;;  %929 = vmatpush.msrb.mxu3 %v7044_v30  ;;  %v7404_v8 = vpop.f32.mrf.mxu2 }
 0x23b   :  { %1863 = vmatpush.msra.mxu0 %v7044_v30  ;;  %930 = vmatpush.msrb.mxu3 %v7051_v41 }
 0x23c   :  { %683 = vmatmul.f32.gmra.mxu3 %v468_v18  ;;  %897 = vmatmul.f32.gmra.mxu2 %v5775_v6  ;;  %v472_v18 = vld [vmem:[%s10555_s2 + $0x90] sm:$0xff]  ;;  %v5779_v6 = vld [vmem:[%s10555_s2 + $0x280] sm:$0xff] }
 0x23d   :  { %1864 = vmatpush.msra.mxu0 %v7051_v41  ;;  %931 = vmatpush.msrb.mxu3 %v7056_v43 }
 0x23e   :  { %1508 = vmatmul.f32.gmra.mxu0 %v5857_v7  ;;  %5744 = vmatmul.msk.f32.gmra.mxu1 %vm506_vm2, %v481_v0  ;;  %v485_v7 = vld [vmem:[%s10555_s2 + $0xf8] sm:$0xff] }
 0x23f   :  { %1865 = vmatpush.msra.mxu0 %v7056_v43  ;;  %932 = vmatpush.msrb.mxu3 %v7061_v44 }
 0x241   :  { %1866 = vmatpush.msra.mxu0 %v7061_v44  ;;  %933 = vmatpush.msrb.mxu3 %v7067_v45  ;;  %v7426_v0 = vpop.f32.mrf.mxu2 }
 0x243   :  { %1867 = vmatpush.msra.mxu0 %v7067_v45  ;;  %934 = vmatpush.msrb.mxu3 %v7072_v46 }
 0x244   :  { %686 = vmatmul.f32.gmra.mxu3 %v472_v18  ;;  %900 = vmatmul.f32.gmra.mxu2 %v5779_v6  ;;  %v5783_v18 = vld [vmem:[%s10555_s2 + $0x2a0] sm:$0xff]  ;;  %v7442_v6 = vpop.f32.mrf.mxu1 }
 0x245   :  { %1868 = vmatpush.msra.mxu0 %v7072_v46 }
 0x246   :  { %5745 = vmatmul.msk.f32.gmra.mxu1 %vm506_vm2, %v485_v7  ;;  %1511 = vmatmul.f32.gmra.mxu0 %v5861_v10  ;;  %v5865_v10 = vld [vmem:[%s10555_s2 + $0x3f0] sm:$0xff] }
 0x247   :  { %2223 = vmatpush.msrb.mxu0 %v6838_v55  ;;  %v489_v55 = vld [vmem:[%s10555_s2 + $0x118] sm:$0xff] }
 0x249   :  { %2224 = vmatpush.msrb.mxu0 %v6842_v57  ;;  %v7447_v7 = vpop.f32.mrf.mxu2 }
 0x24b   :  { %2225 = vmatpush.msrb.mxu0 %v6846_v59  ;;  %v480_v59 = vld [vmem:[%s10555_s2 + $0xd0] sm:$0xff] }
 0x24c   :  { %689 = vmatmul.f32.gmra.mxu3 %v476_v16  ;;  %903 = vmatmul.f32.gmra.mxu2 %v5783_v18  ;;  %v5787_v16 = vld [vmem:[%s10555_s2 + $0x2c0] sm:$0xff]  ;;  %v493_v18 = vld [vmem:[%s10555_s2 + $0x138] sm:$0xff] }
 0x24d   :  { %2226 = vmatpush.msrb.mxu0 %v6855_v63 }
 0x24e   :  { %5746 = vmatmul.msk.f32.gmra.mxu1 %vm506_vm2, %v489_v55  ;;  %1514 = vmatmul.f32.gmra.mxu0 %v5865_v10  ;;  %v5869_v55 = vld [vmem:[%s10555_s2 + $0x410] sm:$0xff]  ;;  %v7472_v10 = vpop.f32.mrf.mxu1 }
 0x24f   :  { %2227 = vmatpush.msrb.mxu0 %v6859_v1 }
 0x251   :  { %2228 = vmatpush.msrb.mxu0 %v6864_v3  ;;  %v7466_v1 = vpop.f32.mrf.mxu2  ;;  %v5843_v3 = vld [vmem:[%s10555_s2 + $0x340] sm:$0xff] }
 0x253   :  { %2229 = vmatpush.msrb.mxu0 %v6868_v5  ;;  %v770_v5 = vld [vmem:[%s10556_s3] sm:$0xff] }
 0x254   :  { %692 = vmatmul.f32.gmra.mxu3 %v480_v59  ;;  %906 = vmatmul.f32.gmra.mxu2 %v5787_v16  ;;  %v484_v59 = vld [vmem:[%s10555_s2 + $0xf0] sm:$0xff]  ;;  %v5791_v16 = vld [vmem:[%s10555_s2 + $0x2e0] sm:$0xff] }
 0x255   :  { %2230 = vmatpush.msrb.mxu0 %v6877_v9  ;;  %1238 = vmatpush.msrb.mxu1 %v770_v5  ;;  %v5873_v5 = vld [vmem:[%s10555_s2 + $0x430] sm:$0xff] }
 0x256   :  { %5747 = vmatmul.msk.f32.gmra.mxu1 %vm506_vm2, %v493_v18  ;;  %1517 = vmatmul.f32.gmra.mxu0 %v5869_v55  ;;  %v497_v18 = vld [vmem:[%s10555_s2 + $0x158] sm:$0xff] }
 0x257   :  { %2231 = vmatpush.msrb.mxu0 %v6882_v11  ;;  %v504_v11 = vld [vmem:[%s10555_s2 + $0x190] sm:$0x3] }
 0x259   :  { %2232 = vmatpush.msrb.mxu0 %v6888_v13  ;;  %v7490_v55 = vpop.f32.mrf.mxu2  ;;  %v488_v13 = vld [vmem:[%s10555_s2 + $0x110] sm:$0xff] }
 0x25b   :  { %2233 = vmatpush.msrb.mxu0 %v6893_v15  ;;  %v7498_v15 = vpop.f32.mrf.mxu1 }
 0x25c   :  { %695 = vmatmul.f32.gmra.mxu3 %v484_v59  ;;  %909 = vmatmul.f32.gmra.mxu2 %v5791_v16  ;;  %v5795_v59 = vld [vmem:[%s10555_s2 + $0x300] sm:$0xff]  ;;  %v501_v16 = vld [vmem:[%s10555_s2 + $0x178] sm:$0xff] }
 0x25d   :  { %2234 = vmatpush.msrb.mxu0 %v6903_v21 }
 0x25e   :  { %5748 = vmatmul.msk.f32.gmra.mxu1 %vm506_vm2, %v497_v18  ;;  %1520 = vmatmul.f32.gmra.mxu0 %v5873_v5  ;;  %v5877_v5 = vld [vmem:[%s10555_s2 + $0x450] sm:$0xff] }
 0x25f   :  { %2235 = vmatpush.msrb.mxu0 %v6908_v24  ;;  %v5754_v24 = vld [vmem:[%s10555_s2 + $0x1b8] sm:$0xff] }
 0x261   :  { %2236 = vmatpush.msrb.mxu0 %v6914_v26  ;;  %v7511_v18 = vpop.f32.mrf.mxu2 }
 0x263   :  { %2237 = vmatpush.msrb.mxu0 %v6917_v22  ;;  %v5816_v22 = vld [vmem:[%s10556_s3 + $0x8] sm:$0xff]  ;;  %v7521_v26 = vpop.f32.mrf.mxu1 }
 0x264   :  { %698 = vmatmul.f32.gmra.mxu3 %v488_v13  ;;  %912 = vmatmul.f32.gmra.mxu2 %v5795_v59  ;;  %10676 = vst [vmem:[#allocation39_spill] sm:$0xff] %v7521_v26  ;;  %v5799_v13 = vld [vmem:[%s10555_s2 + $0x320] sm:$0x3]  ;;  %v505_v59 = vld [vmem:[%s10555_s2 + $0x198] sm:$0x3]  ;;  %v5788_v26 = vld [vmem:[%s10555_s2 + $0x2c8] sm:$0xff] }
 0x265   :  { %2238 = vmatpush.msrb.mxu0 %v6925_v28  ;;  %1143 = vmatpush.msra.mxu3 %v5816_v22  ;;  %v492_v28 = vld [vmem:[%s10555_s2 + $0x130] sm:$0xff] }
 0x266   :  { %5749 = vmatmul.msk.f32.gmra.mxu1 %vm506_vm2, %v501_v16  ;;  %1523 = vmatmul.f32.gmra.mxu0 %v5877_v5  ;;  %v5881_v5 = vld [vmem:[%s10555_s2 + $0x470] sm:$0xff] }
 0x267   :  { %v496_v22 = vld [vmem:[%s10555_s2 + $0x150] sm:$0xff] }
 0x269   :  { %v7532_v16 = vpop.f32.mrf.mxu2 }
 0x26b   :  { %v7544_v21 = vpop.f32.mrf.mxu1 }
 0x26c   :  { %701 = vmatmul.f32.gmra.mxu3 %v492_v28  ;;  %915 = vmatmul.f32.gmra.mxu2 %v5799_v13  ;;  %10677 = vst [vmem:[#allocation40_spill] sm:$0xff] %v7544_v21  ;;  %v5753_v28 = vld [vmem:[%s10555_s2 + $0x1b0] sm:$0xff] }
 0x26d   :  { %v5885_v13 = vld [vmem:[%s10555_s2 + $0x490] sm:$0xff] }
 0x26e   :  { %5750 = vmatmul.msk.f32.gmra.mxu1 %vm506_vm2, %v505_v59  ;;  %1526 = vmatmul.f32.gmra.mxu0 %v5881_v5  ;;  %v500_v5 = vld [vmem:[%s10555_s2 + $0x170] sm:$0xff] }
 0x26f   :  { %v5757_v21 = vld [vmem:[%s10555_s2 + $0x1d0] sm:$0xff] }
 0x271   :  { %v7552_v59 = vpop.f32.mrf.mxu2 }
 0x272   :  { %10678 = vst [vmem:[#allocation41_spill] sm:$0xff] %v7552_v59  ;;  %v5761_v59 = vld [vmem:[%s10555_s2 + $0x1f0] sm:$0xff] }
 0x274   :  { %704 = vmatmul.f32.gmra.mxu3 %v496_v22  ;;  %5803 = vmatmul.msk.f32.vlgmr.msra.gmra.mxu2 %vm506_vm2, %v5754_v24  ;;  %v5758_v22 = vld [vmem:[%s10555_s2 + $0x1d8] sm:$0xff]  ;;  %v5889_v24 = vld [vmem:[%s10555_s2 + $0x4b0] sm:$0xff] }
 0x276   :  { %991 = vmatmul.f32.vlgmr.msra.gmra.mxu1 %v5753_v28  ;;  %1529 = vmatmul.f32.gmra.mxu0 %v5885_v13  ;;  %v7568_v28 = vpop.f32.mrf.mxu1 }
 0x277   :  { %1554 = vmatpush.msra.mxu1 %v7194_v50  ;;  %10679 = vst [vmem:[#allocation42_spill] sm:$0xff] %v7568_v28  ;;  %v5893_v28 = vld [vmem:[%s10555_s2 + $0x4d0] sm:$0x3] }
 0x279   :  { %v7570_v13 = vpop.f32.mrf.mxu2 }
 0x27a   :  { %10680 = vst [vmem:[#allocation43_spill] sm:$0xff] %v7570_v13  ;;  %v5765_v13 = vld [vmem:[%s10555_s2 + $0x210] sm:$0xff] }
 0x27c   :  { %707 = vmatmul.f32.gmra.mxu3 %v500_v5  ;;  %5804 = vmatmul.msk.f32.gmra.mxu2 %vm506_vm2, %v5758_v22  ;;  %v5762_v5 = vld [vmem:[%s10555_s2 + $0x1f8] sm:$0xff] }
 0x27e   :  { %994 = vmatmul.f32.gmra.mxu1 %v5757_v21  ;;  %1532 = vmatmul.f32.gmra.mxu0 %v5889_v24  ;;  %v5752_v24 = vld [vmem:[%s10555_s2 + $0x1a8] sm:$0xff] }
 0x281   :  { %v7588_v22 = vpop.f32.mrf.mxu2 }
 0x282   :  { %10681 = vst [vmem:[#allocation44_spill] sm:$0xff] %v7588_v22 }
 0x284   :  { %710 = vmatmul.f32.gmra.mxu3 %v504_v11  ;;  %5805 = vmatmul.msk.f32.gmra.mxu2 %vm506_vm2, %v5762_v5  ;;  %v5766_v11 = vld [vmem:[%s10555_s2 + $0x218] sm:$0xff] }
 0x286   :  { %997 = vmatmul.f32.gmra.mxu1 %v5761_v59  ;;  %v7586_v21 = vpop.f32.mrf.mxu1  ;;  %1535 = vmatmul.f32.gmra.mxu0 %v5893_v28  ;;  %v5923_v59 = vld [vmem:[%s10555_s2 + $0x4e8] sm:$0xff] }
 0x289   :  { %v7604_v28 = vpop.f32.mrf.mxu2 }
 0x28c   :  { %935 = vmatmul.f32.vlgmr.msrb.gmra.mxu3 %v5752_v24  ;;  %5806 = vmatmul.msk.f32.gmra.mxu2 %vm506_vm2, %v5766_v11  ;;  %v5756_v24 = vld [vmem:[%s10555_s2 + $0x1c8] sm:$0xff]  ;;  %v5769_v11 = vld [vmem:[%s10555_s2 + $0x230] sm:$0xff] }
 0x28d   :  { %1427 = vmatpush.msrb.mxu3 %v6984_v58 }
 0x28e   :  { %1000 = vmatmul.f32.gmra.mxu1 %v5765_v13  ;;  %1869 = vmatmul.f32.vlgmr.msra.gmra.mxu0 %v5923_v59  ;;  %v5770_v13 = vld [vmem:[%s10555_s2 + $0x238] sm:$0xff]  ;;  %v5927_v59 = vld [vmem:[%s10555_s2 + $0x508] sm:$0xff] }
 0x28f   :  { %1428 = vmatpush.msrb.mxu3 %v6988_v62  ;;  %v7607_v5 = vpop.f32.mrf.mxu1  ;;  %2335 = vmatpush.msra.mxu0 %v7169_v19 }
 0x291   :  { %1429 = vmatpush.msrb.mxu3 %v6995_v4  ;;  %2336 = vmatpush.msra.mxu0 %v7172_v33 }
 0x292   :  { %v7629_v4 = vpop.f32.mrf.mxu2 }
 0x293   :  { %1430 = vmatpush.msrb.mxu3 %v7004_v12  ;;  %2337 = vmatpush.msra.mxu0 %v7177_v32 }
 0x294   :  { %938 = vmatmul.f32.gmra.mxu3 %v5756_v24  ;;  %5807 = vmatmul.msk.f32.gmra.mxu2 %vm506_vm2, %v5770_v13  ;;  %v5760_v24 = vld [vmem:[%s10555_s2 + $0x1e8] sm:$0xff]  ;;  %v5774_v13 = vld [vmem:[%s10555_s2 + $0x258] sm:$0xff] }
 0x295   :  { %1431 = vmatpush.msrb.mxu3 %v7008_v17  ;;  %2338 = vmatpush.msra.mxu0 %v7181_v42 }
 0x296   :  { %1003 = vmatmul.f32.gmra.mxu1 %v5769_v11  ;;  %1872 = vmatmul.f32.gmra.mxu0 %v5927_v59  ;;  %v5773_v11 = vld [vmem:[%s10555_s2 + $0x250] sm:$0xff]  ;;  %v5931_v59 = vld [vmem:[%s10555_s2 + $0x528] sm:$0xff] }
 0x297   :  { %1432 = vmatpush.msrb.mxu3 %v7013_v23  ;;  %2339 = vmatpush.msra.mxu0 %v7192_v47  ;;  %v5776_v23 = vld [vmem:[%s10555_s2 + $0x268] sm:$0xff] }
 0x298   :  { %v7633_v12 = vpop.f32.mrf.mxu1 }
 0x299   :  { %1433 = vmatpush.msrb.mxu3 %v7020_v29  ;;  %2340 = vmatpush.msra.mxu0 %v7205_v54 }
 0x29b   :  { %1434 = vmatpush.msrb.mxu3 %v7026_v35  ;;  %2341 = vmatpush.msra.mxu0 %v7211_v20  ;;  %v7654_v29 = vpop.f32.mrf.mxu2 }
 0x29c   :  { %941 = vmatmul.f32.gmra.mxu3 %v5760_v24  ;;  %5808 = vmatmul.msk.f32.gmra.mxu2 %vm506_vm2, %v5774_v13  ;;  %10682 = vst [vmem:[#allocation45_spill] sm:$0xff] %v7654_v29  ;;  %v5764_v13 = vld [vmem:[%s10555_s2 + $0x208] sm:$0xff] }
 0x29d   :  { %1435 = vmatpush.msrb.mxu3 %v7031_v37  ;;  %2342 = vmatpush.msra.mxu0 %v7219_v14 }
 0x29e   :  { %1006 = vmatmul.f32.gmra.mxu1 %v5773_v11  ;;  %1875 = vmatmul.f32.gmra.mxu0 %v5931_v59  ;;  %v5778_v11 = vld [vmem:[%s10555_s2 + $0x278] sm:$0xff]  ;;  %v5777_v59 = vld [vmem:[%s10555_s2 + $0x270] sm:$0xff] }
 0x29f   :  { %1436 = vmatpush.msrb.mxu3 %v7036_v38  ;;  %2343 = vmatpush.msra.mxu0 %v7236_v25 }
 0x2a1   :  { %1437 = vmatpush.msrb.mxu3 %v7044_v30  ;;  %v7659_v24 = vpop.f32.mrf.mxu1  ;;  %2344 = vmatpush.msra.mxu0 %v7246_v39  ;;  %v5935_v30 = vld [vmem:[%s10555_s2 + $0x548] sm:$0xff] }
 0x2a3   :  { %1438 = vmatpush.msrb.mxu3 %v7051_v41  ;;  %2345 = vmatpush.msra.mxu0 %v7252_v52 }
 0x2a4   :  { %944 = vmatmul.f32.gmra.mxu3 %v5764_v13  ;;  %v7676_v38 = vpop.f32.mrf.mxu3  ;;  %5809 = vmatmul.msk.f32.gmra.mxu2 %vm506_vm2, %v5778_v11  ;;  %v5768_v13 = vld [vmem:[%s10555_s2 + $0x228] sm:$0xff]  ;;  %v5782_v11 = vld [vmem:[%s10555_s2 + $0x298] sm:$0xff] }
 0x2a5   :  { %1439 = vmatpush.msrb.mxu3 %v7056_v43  ;;  %2346 = vmatpush.msra.mxu0 %v7260_v48  ;;  %v7681_v41 = vpop.f32.mrf.mxu2  ;;  %v5772_v43 = vld [vmem:[%s10555_s2 + $0x248] sm:$0xff] }
 0x2a6   :  { %1009 = vmatmul.f32.gmra.mxu1 %v5777_v59  ;;  %10683 = vst [vmem:[#allocation46_spill] sm:$0xff] %v7681_v41  ;;  %1878 = vmatmul.f32.gmra.mxu0 %v5935_v30  ;;  %v5781_v30 = vld [vmem:[%s10555_s2 + $0x290] sm:$0xff] }
 0x2a7   :  { %1440 = vmatpush.msrb.mxu3 %v7061_v44  ;;  %2347 = vmatpush.msra.mxu0 %v7275_v51 }
 0x2a9   :  { %1441 = vmatpush.msrb.mxu3 %v7067_v45  ;;  %2348 = vmatpush.msra.mxu0 %v7287_v61  ;;  %v5939_v45 = vld [vmem:[%s10555_s2 + $0x568] sm:$0xff] }
 0x2ab   :  { %1442 = vmatpush.msrb.mxu3 %v7072_v46  ;;  %v7694_v59 = vpop.f32.mrf.mxu1  ;;  %2349 = vmatpush.msra.mxu0 %v7293_v31 }
 0x2ac   :  { %947 = vmatmul.f32.gmra.mxu3 %v5768_v13  ;;  %5810 = vmatmul.msk.f32.gmra.mxu2 %vm506_vm2, %v5782_v11  ;;  %v5786_v13 = vld [vmem:[%s10555_s2 + $0x2b8] sm:$0xff]  ;;  %v5785_v11 = vld [vmem:[%s10555_s2 + $0x2b0] sm:$0xff] }
 0x2ad   :  { %2350 = vmatpush.msra.mxu0 %v7299_v49 }
 0x2ae   :  { %1012 = vmatmul.f32.gmra.mxu1 %v5781_v30  ;;  %v7705_v44 = vpop.f32.mrf.mxu3  ;;  %1881 = vmatmul.f32.gmra.mxu0 %v5939_v45  ;;  %v5943_v45 = vld [vmem:[%s10555_s2 + $0x588] sm:$0xff] }
 0x2af   :  { %v7707_v46 = vpop.f32.mrf.mxu2 }
 0x2b0   :  { %10684 = vst [vmem:[#allocation47_spill] sm:$0xff] %v7707_v46  ;;  %v5784_v46 = vld [vmem:[%s10555_s2 + $0x2a8] sm:$0xff] }
 0x2b3   :  { %v7715_v37 = vpop.f32.mrf.mxu1 }
 0x2b4   :  { %950 = vmatmul.f32.gmra.mxu3 %v5772_v43  ;;  %5811 = vmatmul.msk.f32.gmra.mxu2 %vm506_vm2, %v5786_v13  ;;  %v5790_v43 = vld [vmem:[%s10555_s2 + $0x2d8] sm:$0xff]  ;;  %v5789_v13 = vld [vmem:[%s10555_s2 + $0x2d0] sm:$0xff] }
 0x2b6   :  { %1015 = vmatmul.f32.gmra.mxu1 %v5785_v11  ;;  %1884 = vmatmul.f32.gmra.mxu0 %v5943_v45  ;;  %v5908_v11 = vld [vmem:[%s10556_s3 + $0x10] sm:$0xff]  ;;  %v5947_v45 = vld [vmem:[%s10555_s2 + $0x5a8] sm:$0xff] }
 0x2b7   :  { %v7724_v30 = vpop.f32.mrf.mxu3  ;;  %v7726_v35 = vpop.f32.mrf.mxu2  ;;  %1651 = vmatpush.msra.mxu2 %v5908_v11 }
 0x2b8   :  { %10685 = vst [vmem:[#allocation48_spill] sm:$0xff] %v7726_v35  ;;  %v5780_v35 = vld [vmem:[%s10555_s2 + $0x288] sm:$0xff]  ;;  %v7765_v11 = vpop.f32.mrf.mxu0 }
 0x2b9   :  { %10687 = vst [vmem:[#allocation50_spill] sm:$0xff] %v7765_v11 }
 0x2bb   :  { %v7734_v17 = vpop.f32.mrf.mxu1 }
 0x2bc   :  { %953 = vmatmul.f32.gmra.mxu3 %v5776_v23  ;;  %5812 = vmatmul.msk.f32.gmra.mxu2 %vm506_vm2, %v5790_v43  ;;  %v5794_v23 = vld [vmem:[%s10555_s2 + $0x2f8] sm:$0xff]  ;;  %v5793_v43 = vld [vmem:[%s10555_s2 + $0x2f0] sm:$0xff] }
 0x2be   :  { %1018 = vmatmul.f32.gmra.mxu1 %v5789_v13  ;;  %1887 = vmatmul.f32.gmra.mxu0 %v5947_v45  ;;  %v5951_v13 = vld [vmem:[%s10555_s2 + $0x5c8] sm:$0xff] }
 0x2bf   :  { %v7746_v62 = vpop.f32.mrf.mxu3  ;;  %v7748_v58 = vpop.f32.mrf.mxu2 }
 0x2c0   :  { %10686 = vst [vmem:[#allocation49_spill] sm:$0xff] %v7748_v58 }
 0x2c3   :  { %v7756_v22 = vpop.f32.mrf.mxu1 }
 0x2c4   :  { %956 = vmatmul.f32.gmra.mxu3 %v5780_v35  ;;  %5813 = vmatmul.msk.f32.gmra.mxu2 %vm506_vm2, %v5794_v23  ;;  %v5798_v35 = vld [vmem:[%s10555_s2 + $0x318] sm:$0xff]  ;;  %v5797_v23 = vld [vmem:[%s10555_s2 + $0x310] sm:$0xff] }
 0x2c6   :  { %1021 = vmatmul.f32.gmra.mxu1 %v5793_v43  ;;  %1890 = vmatmul.f32.gmra.mxu0 %v5951_v13  ;;  %v5955_v43 = vld [vmem:[%s10555_s2 + $0x5e8] sm:$0xff] }
 0x2c7   :  { %v7767_v45 = vpop.f32.mrf.mxu3  ;;  %v7769_v58 = vpop.f32.mrf.mxu2 }
 0x2c8   :  { %10688 = vst [vmem:[#allocation51_spill] sm:$0xff] %v7769_v58  ;;  %v7790_v58 = vpop.f32.mrf.mxu0 }
 0x2c9   :  { %10690 = vst [vmem:[#allocation53_spill] sm:$0xff] %v7790_v58 }
 0x2cb   :  { %v7777_v41 = vpop.f32.mrf.mxu1 }
 0x2cc   :  { %959 = vmatmul.f32.gmra.mxu3 %v5784_v46  ;;  %5814 = vmatmul.msk.f32.gmra.mxu2 %vm506_vm2, %v5798_v35  ;;  %v5802_v46 = vld [vmem:[%s10555_s2 + $0x338] sm:$0x3]  ;;  %v5801_v35 = vld [vmem:[%s10555_s2 + $0x330] sm:$0x3] }
 0x2ce   :  { %1024 = vmatmul.f32.gmra.mxu1 %v5797_v23  ;;  %1893 = vmatmul.f32.gmra.mxu0 %v5955_v43  ;;  %v5959_v23 = vld [vmem:[%s10555_s2 + $0x608] sm:$0xff]  ;;  %v620_v43 = vadd.f32 %v7325_v36, %v7190_v60  ;;  %v623_v36 = vadd.f32 %v7353_v40, %v7232_v2 }
 0x2cf   :  { %v7786_v13 = vpop.f32.mrf.mxu3  ;;  %v7788_v11 = vpop.f32.mrf.mxu2 }
 0x2d0   :  { %10689 = vst [vmem:[#allocation52_spill] sm:$0xff] %v7788_v11  ;;  %v676_v11 = vadd.f32 %v7676_v38, %v620_v43  ;;  %v5963_v38 = vld [vmem:[%s10555_s2 + $0x628] sm:$0xff]  ;;  %v626_v43 = vadd.f32 %v7379_v27, %v7281_v53 }
 0x2d2   :  { %v732_v60 = vadd.f32 %v7586_v21, %v676_v11  ;;  %v679_v21 = vadd.f32 %v7705_v44, %v623_v36  ;;  %v5971_v36 = vld [vmem:[%s10555_s2 + $0x668] sm:$0x3] }
 0x2d3   :  { %v7798_v9 = vpop.f32.mrf.mxu1 }
 0x2d4   :  { %10691 = vst [vmem:[#allocation54_spill] sm:$0xff] %v7798_v9  ;;  %962 = vmatmul.f32.gmra.mxu3 %v5788_v26  ;;  %5815 = vmatmul.msk.f32.gmra.mxu2 %vm506_vm2, %v5802_v46  ;;  %v5792_v26 = vld [vmem:[%s10555_s2 + $0x2e8] sm:$0xff]  ;;  %v7820_v46 = vpop.f32.mrf.mxu0  ;;  %v735_v40 = vadd.f32 %v7607_v5, %v679_v21  ;;  %v682_v5 = vadd.f32 %v7724_v30, %v626_v43 }
 0x2d5   :  { %v629_v30 = vadd.f32 %v7404_v8, %v7321_v56  ;;  %v6001_v8 = vld [vmem:[%s10555_s2 + $0x680] sm:$0xff]  ;;  %v632_v43 = vadd.f32 %v7426_v0, %v7356_v34 }
 0x2d6   :  { %1027 = vmatmul.f32.gmra.mxu1 %v5801_v35  ;;  %1896 = vmatmul.f32.gmra.mxu0 %v5959_v23  ;;  %v5967_v23 = vld [vmem:[%s10555_s2 + $0x648] sm:$0xff]  ;;  %v738_v27 = vadd.f32 %v7633_v12, %v682_v5  ;;  %v6005_v34 = vld [vmem:[%s10555_s2 + $0x6a0] sm:$0xff] }
 0x2d7   :  { %v7809_v58 = vpop.f32.mrf.mxu3  ;;  %v7812_v9 = vpop.f32.mrf.mxu2  ;;  %v685_v12 = vadd.f32 %v7746_v62, %v629_v30  ;;  %v688_v5 = vadd.f32 %v7767_v45, %v632_v43  ;;  %v10693_v0 = vld [vmem:[#allocation37_spill] sm:$0xff] }
 0x2d8   :  { %v635_v30 = vadd.f32 %v7447_v7, %v10693_v0 }
 0x2d9   :  { %v741_v56 = vadd.f32 %v7659_v24, %v685_v12 }
 0x2da   :  { %v691_v12 = vadd.f32 %v7786_v13, %v635_v30 }
 0x2db   :  { %v7822_v29 = vpop.f32.mrf.mxu1 }
 0x2dc   :  { %965 = vmatmul.f32.gmra.mxu3 %v5792_v26  ;;  %1387 = vmatmul.f32.vlgmr.msrb.gmra.mxu2 %v5843_v3  ;;  %v5796_v3 = vld [vmem:[%s10555_s2 + $0x308] sm:$0xff]  ;;  %v7849_v44 = vpop.f32.mrf.mxu0  ;;  %v747_v43 = vadd.f32 %v7715_v37, %v691_v12  ;;  %v6013_v37 = vld [vmem:[%s10555_s2 + $0x6e0] sm:$0xff] }
 0x2dd   :  { %1980 = vmatpush.msrb.mxu2 %v7194_v50 }
 0x2de   :  { %5830 = vmatmul.msk.f32.vlgmr.msrb.gmra.mxu1 %vm506_vm2, %v732_v60  ;;  %1899 = vmatmul.f32.gmra.mxu0 %v5963_v38  ;;  %v5800_v38 = vld [vmem:[%s10555_s2 + $0x328] sm:$0x3] }
 0x2df   :  { %1909 = vmatpush.msrb.mxu1 %v7169_v19  ;;  %v7833_v35 = vpop.f32.mrf.mxu3  ;;  %v7836_v11 = vpop.f32.mrf.mxu2 }
 0x2e1   :  { %1910 = vmatpush.msrb.mxu1 %v7172_v33 }
 0x2e3   :  { %1911 = vmatpush.msrb.mxu1 %v7177_v32  ;;  %v7843_v2 = vpop.f32.mrf.mxu1 }
 0x2e4   :  { %968 = vmatmul.f32.gmra.mxu3 %v5796_v3  ;;  %v7876_v21 = vpop.f32.mrf.mxu0 }
 0x2e5   :  { %1912 = vmatpush.msrb.mxu1 %v7181_v42 }
 0x2e6   :  { %5831 = vmatmul.msk.f32.gmra.mxu1 %vm506_vm2, %v735_v40  ;;  %1902 = vmatmul.f32.gmra.mxu0 %v5967_v23 }
 0x2e7   :  { %1913 = vmatpush.msrb.mxu1 %v7192_v47  ;;  %v7856_v26 = vpop.f32.mrf.mxu3  ;;  %v7859_v60 = vpop.f32.mrf.mxu2 }
 0x2e9   :  { %1914 = vmatpush.msrb.mxu1 %v7205_v54 }
 0x2eb   :  { %1915 = vmatpush.msrb.mxu1 %v7211_v20  ;;  %v7866_v53 = vpop.f32.mrf.mxu1 }
 0x2ec   :  { %971 = vmatmul.f32.gmra.mxu3 %v5800_v38  ;;  %v7898_v38 = vpop.f32.mrf.mxu0 }
 0x2ed   :  { %1916 = vmatpush.msrb.mxu1 %v7219_v14  ;;  %10692 = vst [vmem:[#allocation55_spill] sm:$0xff] %v7898_v38  ;;  %v10694_v38 = vld [vmem:[#allocation38_spill] sm:$0xff] }
 0x2ee   :  { %5832 = vmatmul.msk.f32.gmra.mxu1 %vm506_vm2, %v738_v27  ;;  %1905 = vmatmul.f32.gmra.mxu0 %v5971_v36  ;;  %v744_v36 = vadd.f32 %v7694_v59, %v688_v5  ;;  %v6009_v5 = vld [vmem:[%s10555_s2 + $0x6c0] sm:$0xff]  ;;  %v638_v7 = vadd.f32 %v7466_v1, %v10694_v38  ;;  %v641_v1 = vadd.f32 %v7490_v55, %v7442_v6 }
 0x2ef   :  { %1917 = vmatpush.msrb.mxu1 %v7236_v25  ;;  %v7879_v3 = vpop.f32.mrf.mxu3  ;;  %v7882_v40 = vpop.f32.mrf.mxu2  ;;  %v644_v6 = vadd.f32 %v7511_v18, %v7472_v10 }
 0x2f0   :  { %v694_v13 = vadd.f32 %v7809_v58, %v638_v7 }
 0x2f1   :  { %1918 = vmatpush.msrb.mxu1 %v7246_v39 }
 0x2f2   :  { %v750_v0 = vadd.f32 %v7734_v17, %v694_v13 }
 0x2f3   :  { %1919 = vmatpush.msrb.mxu1 %v7252_v52  ;;  %v992_v23 = vpop.f32.mrf.mxu1 }
 0x2f5   :  { %1920 = vmatpush.msrb.mxu1 %v7260_v48 }
 0x2f6   :  { %5833 = vmatmul.msk.f32.gmra.mxu1 %vm506_vm2, %v741_v56  ;;  %2239 = vmatmul.f32.vlgmr.msrb.gmra.mxu0 %v6001_v8  ;;  %v7913_v56 = vpop.f32.mrf.mxu0 }
 0x2f7   :  { %1921 = vmatpush.msrb.mxu1 %v7275_v51  ;;  %v7895_v62 = vpop.f32.mrf.mxu3  ;;  %v1048_v24 = vpop.f32.mrf.mxu2 }
 0x2f9   :  { %1922 = vmatpush.msrb.mxu1 %v7287_v61 }
 0x2fb   :  { %1923 = vmatpush.msrb.mxu1 %v7293_v31  ;;  %v995_v27 = vpop.f32.mrf.mxu1 }
 0x2fd   :  { %1924 = vmatpush.msrb.mxu1 %v7299_v49 }
 0x2fe   :  { %5834 = vmatmul.msk.f32.gmra.mxu1 %vm506_vm2, %v744_v36  ;;  %2242 = vmatmul.f32.gmra.mxu0 %v6005_v34  ;;  %v7929_v30 = vpop.f32.mrf.mxu0 }
 0x2ff   :  { %v7910_v45 = vpop.f32.mrf.mxu3  ;;  %v1051_v59 = vpop.f32.mrf.mxu2  ;;  %10695 = vst [vmem:[#allocation37_spill] sm:$0xff] %v7929_v30  ;;  %v6017_v30 = vld [vmem:[%s10555_s2 + $0x700] sm:$0xff] }
 0x303   :  { %v998_v8 = vpop.f32.mrf.mxu1 }
 0x306   :  { %5835 = vmatmul.msk.f32.gmra.mxu1 %vm506_vm2, %v747_v43  ;;  %2245 = vmatmul.f32.gmra.mxu0 %v6009_v5  ;;  %v697_v43 = vadd.f32 %v7833_v35, %v641_v1  ;;  %v7946_v55 = vpop.f32.mrf.mxu0 }
 0x307   :  { %v7922_v36 = vpop.f32.mrf.mxu3  ;;  %v1054_v12 = vpop.f32.mrf.mxu2 }
 0x308   :  { %v753_v7 = vadd.f32 %v7756_v22, %v697_v43  ;;  %v700_v22 = vadd.f32 %v7856_v26, %v644_v6  ;;  %v647_v26 = vadd.f32 %v7532_v16, %v7498_v15  ;;  %v10703_v16 = vld [vmem:[#allocation54_spill] sm:$0xff] }
 0x30a   :  { %v756_v18 = vadd.f32 %v7777_v41, %v700_v22  ;;  %v703_v41 = vadd.f32 %v7879_v3, %v647_v26  ;;  %v6025_v22 = vld [vmem:[%s10555_s2 + $0x740] sm:$0xff]  ;;  %v10705_v3 = vld [vmem:[#allocation39_spill] sm:$0xff] }
 0x30b   :  { %v1001_v34 = vpop.f32.mrf.mxu1 }
 0x30c   :  { %v759_v6 = vadd.f32 %v10703_v16, %v703_v41 }
 0x30e   :  { %5836 = vmatmul.msk.f32.gmra.mxu1 %vm506_vm2, %v750_v0  ;;  %2248 = vmatmul.f32.gmra.mxu0 %v6013_v37  ;;  %v10697_v37 = vld [vmem:[#allocation7_spill] sm:$0xff]  ;;  %v7967_v43 = vpop.f32.mrf.mxu0 }
 0x30f   :  { %v936_v38 = vpop.f32.mrf.mxu3  ;;  %10700 = vst [vmem:[#allocation38_spill] sm:$0xff] %v7967_v43  ;;  %v6037_v43 = vld [vmem:[%s10555_s2 + $0x7a0] sm:$0xff] }
 0x310   :  { %v937_v58 = vadd.f32 %v936_v38, %v7604_v28  ;;  %v10696_v28 = vld [vmem:[#allocation5_spill] sm:$0xff] }
 0x312   :  { %v993_v5 = vadd.f32 %v992_v23, %v937_v58  ;;  %v1057_v23 = vpop.f32.mrf.mxu2  ;;  %v10701_v58 = vld [vmem:[#allocation10_spill] sm:$0xff] }
 0x313   :  { %v7936_v17 = vpop.f32.mrf.mxu1 }
 0x314   :  { %v1049_v13 = vadd.f32 %v1048_v24, %v993_v5 }
 0x316   :  { %5817 = vmatmul.msk.f32.vlgmr.msra.gmra.mxu3 %vm506_vm2, %v1049_v13  ;;  %5837 = vmatmul.msk.f32.gmra.mxu1 %vm506_vm2, %v753_v7  ;;  %v10702_v13 = vld [vmem:[#allocation11_spill] sm:$0xff] }
 0x317   :  { %2251 = vmatmul.f32.gmra.mxu0 %v6017_v30  ;;  %1797 = vmatpush.msra.mxu3 %v10696_v28  ;;  %v939_v35 = vpop.f32.mrf.mxu3  ;;  %v6021_v30 = vld [vmem:[%s10555_s2 + $0x720] sm:$0xff] }
 0x318   :  { %v940_v24 = vadd.f32 %v939_v35, %v7629_v4  ;;  %v10698_v4 = vld [vmem:[#allocation9_spill] sm:$0xff] }
 0x319   :  { %1798 = vmatpush.msra.mxu3 %v6842_v57 }
 0x31a   :  { %v996_v0 = vadd.f32 %v995_v27, %v940_v24  ;;  %v1060_v5 = vpop.f32.mrf.mxu2  ;;  %v10704_v24 = vld [vmem:[#allocation12_spill] sm:$0xff] }
 0x31b   :  { %1799 = vmatpush.msra.mxu3 %v10697_v37  ;;  %v7953_v10 = vpop.f32.mrf.mxu1 }
 0x31c   :  { %v1052_v1 = vadd.f32 %v1051_v59, %v996_v0  ;;  %v10699_v59 = vld [vmem:[#allocation45_spill] sm:$0xff] }
 0x31d   :  { %1800 = vmatpush.msra.mxu3 %v6855_v63  ;;  %v10706_v0 = vld [vmem:[#allocation41_spill] sm:$0xff] }
 0x31e   :  { %5818 = vmatmul.msk.f32.gmra.mxu3 %vm506_vm2, %v1052_v1  ;;  %5838 = vmatmul.msk.f32.gmra.mxu1 %vm506_vm2, %v756_v18  ;;  %v650_v18 = vadd.f32 %v10706_v0, %v10705_v3  ;;  %v10712_v3 = vld [vmem:[#allocation16_spill] sm:$0xff]  ;;  %v10714_v0 = vld [vmem:[#allocation43_spill] sm:$0xff] }
 0x31f   :  { %2254 = vmatmul.f32.gmra.mxu0 %v6021_v30  ;;  %1801 = vmatpush.msra.mxu3 %v10698_v4  ;;  %v942_v27 = vpop.f32.mrf.mxu3 }
 0x320   :  { %v943_v38 = vadd.f32 %v942_v27, %v10699_v59  ;;  %v706_v30 = vadd.f32 %v7895_v62, %v650_v18  ;;  %v10709_v27 = vld [vmem:[#allocation14_spill] sm:$0xff]  ;;  %v7984_v59 = vpop.f32.mrf.mxu0  ;;  %v10713_v62 = vld [vmem:[#allocation40_spill] sm:$0xff] }
 0x321   :  { %1802 = vmatpush.msra.mxu3 %v10701_v58  ;;  %10710 = vst [vmem:[#allocation45_spill] sm:$0xff] %v7984_v59  ;;  %v653_v18 = vadd.f32 %v10714_v0, %v10713_v62  ;;  %v10720_v59 = vld [vmem:[#allocation20_spill] sm:$0xff] }
 0x322   :  { %v999_v7 = vadd.f32 %v998_v8, %v943_v38  ;;  %v10707_v8 = vld [vmem:[#allocation13_spill] sm:$0xff]  ;;  %v10711_v38 = vld [vmem:[#allocation15_spill] sm:$0xff]  ;;  %v1063_v16 = vpop.f32.mrf.mxu2 }
 0x323   :  { %1803 = vmatpush.msra.mxu3 %v10702_v13  ;;  %v1010_v15 = vpop.f32.mrf.mxu1 }
 0x324   :  { %v1055_v35 = vadd.f32 %v1054_v12, %v999_v7  ;;  %v10708_v12 = vld [vmem:[#allocation46_spill] sm:$0xff] }
 0x325   :  { %1804 = vmatpush.msra.mxu3 %v10704_v24 }
 0x326   :  { %5819 = vmatmul.msk.f32.gmra.mxu3 %vm506_vm2, %v1055_v35  ;;  %5839 = vmatmul.msk.f32.gmra.mxu1 %vm506_vm2, %v759_v6  ;;  %v762_v35 = vadd.f32 %v7822_v29, %v706_v30  ;;  %v709_v29 = vadd.f32 %v7910_v45, %v653_v18  ;;  %v10721_v18 = vld [vmem:[#allocation42_spill] sm:$0xff] }
 0x327   :  { %2257 = vmatmul.f32.gmra.mxu0 %v6025_v22  ;;  %1805 = vmatpush.msra.mxu3 %v10707_v8  ;;  %v945_v1 = vpop.f32.mrf.mxu3  ;;  %v6029_v22 = vld [vmem:[%s10555_s2 + $0x760] sm:$0xff] }
 0x328   :  { %v946_v26 = vadd.f32 %v945_v1, %v10708_v12  ;;  %v10717_v12 = vld [vmem:[#allocation18_spill] sm:$0xff]  ;;  %v765_v62 = vadd.f32 %v7843_v2, %v709_v29 }
 0x329   :  { %1806 = vmatpush.msra.mxu3 %v10709_v27 }
 0x32a   :  { %v1002_v41 = vadd.f32 %v1001_v34, %v946_v26  ;;  %v10715_v34 = vld [vmem:[#allocation17_spill] sm:$0xff]  ;;  %v1066_v45 = vpop.f32.mrf.mxu2 }
 0x32b   :  { %1807 = vmatpush.msra.mxu3 %v10711_v38  ;;  %v1013_v7 = vpop.f32.mrf.mxu1 }
 0x32c   :  { %v1058_v6 = vadd.f32 %v1057_v23, %v1002_v41  ;;  %v10716_v23 = vld [vmem:[#allocation47_spill] sm:$0xff] }
 0x32d   :  { %1808 = vmatpush.msra.mxu3 %v10712_v3  ;;  %v10718_v41 = vld [vmem:[#allocation19_spill] sm:$0xff] }
 0x32e   :  { %5820 = vmatmul.msk.f32.gmra.mxu3 %vm506_vm2, %v1058_v6  ;;  %5840 = vmatmul.msk.f32.gmra.mxu1 %vm506_vm2, %v762_v35  ;;  %v6033_v35 = vld [vmem:[%s10555_s2 + $0x780] sm:$0xff] }
 0x32f   :  { %2260 = vmatmul.f32.gmra.mxu0 %v6029_v22  ;;  %1809 = vmatpush.msra.mxu3 %v10715_v34  ;;  %v948_v1 = vpop.f32.mrf.mxu3  ;;  %v8006_v22 = vpop.f32.mrf.mxu0 }
 0x330   :  { %v949_v30 = vadd.f32 %v948_v1, %v10716_v23  ;;  %10719 = vst [vmem:[#allocation54_spill] sm:$0xff] %v8006_v22  ;;  %v10722_v1 = vld [vmem:[#allocation44_spill] sm:$0xff] }
 0x331   :  { %1810 = vmatpush.msra.mxu3 %v10717_v12  ;;  %v656_v23 = vadd.f32 %v10722_v1, %v10721_v18  ;;  %v5846_v1 = vld [vmem:[%s10555_s2 + $0x358] sm:$0xff] }
 0x332   :  { %v1005_v26 = vadd.f32 %v7936_v17, %v949_v30 }
 0x333   :  { %1811 = vmatpush.msra.mxu3 %v10718_v41  ;;  %v1016_v0 = vpop.f32.mrf.mxu1  ;;  %v712_v17 = vadd.f32 %v7922_v36, %v656_v23 }
 0x334   :  { %v1061_v6 = vadd.f32 %v1060_v5, %v1005_v26  ;;  %v10723_v5 = vld [vmem:[#allocation48_spill] sm:$0xff] }
 0x335   :  { %1812 = vmatpush.msra.mxu3 %v10720_v59  ;;  %v768_v26 = vadd.f32 %v7866_v53, %v712_v17  ;;  %v1069_v53 = vpop.f32.mrf.mxu2 }
 0x336   :  { %5821 = vmatmul.msk.f32.gmra.mxu3 %vm506_vm2, %v1061_v6  ;;  %5841 = vmatmul.msk.f32.gmra.mxu1 %vm506_vm2, %v765_v62  ;;  %v6066_v6 = vld [vmem:[%s10556_s3 + $0x20] sm:$0xff] }
 0x337   :  { %2263 = vmatmul.f32.gmra.mxu0 %v6033_v35  ;;  %v951_v2 = vpop.f32.mrf.mxu3  ;;  %v8025_v36 = vpop.f32.mrf.mxu0 }
 0x338   :  { %v952_v29 = vadd.f32 %v951_v2, %v10723_v5  ;;  %2503 = vmatpush.msrb.mxu0 %v6066_v6  ;;  %v6041_v2 = vld [vmem:[%s10555_s2 + $0x7c0] sm:$0xff]  ;;  %v10726_v5 = vld [vmem:[#allocation51_spill] sm:$0xff] }
 0x339   :  { %v10729_v6 = vld [vmem:[#allocation23_spill] sm:$0xff] }
 0x33a   :  { %v1008_v30 = vadd.f32 %v7953_v10, %v952_v29  ;;  %v10727_v29 = vld [vmem:[#allocation22_spill] sm:$0xff] }
 0x33b   :  { %v1019_v62 = vpop.f32.mrf.mxu1 }
 0x33c   :  { %v1064_v22 = vadd.f32 %v1063_v16, %v1008_v30  ;;  %v10724_v16 = vld [vmem:[#allocation49_spill] sm:$0xff] }
 0x33e   :  { %5822 = vmatmul.msk.f32.gmra.mxu3 %vm506_vm2, %v1064_v22  ;;  %5842 = vmatmul.msk.f32.gmra.mxu1 %vm506_vm2, %v768_v26 }
 0x33f   :  { %2266 = vmatmul.f32.gmra.mxu0 %v6037_v43  ;;  %v954_v10 = vpop.f32.mrf.mxu3  ;;  %v10725_v43 = vld [vmem:[#allocation21_spill] sm:$0xff]  ;;  %v8039_v30 = vpop.f32.mrf.mxu0 }
 0x340   :  { %v955_v35 = vadd.f32 %v954_v10, %v10724_v16  ;;  %10728 = vst [vmem:[#allocation39_spill] sm:$0xff] %v8039_v30  ;;  %v5850_v10 = vld [vmem:[%s10555_s2 + $0x378] sm:$0xff] }
 0x342   :  { %v1011_v18 = vadd.f32 %v1010_v15, %v955_v35  ;;  %v6045_v35 = vld [vmem:[%s10555_s2 + $0x7e0] sm:$0xff] }
 0x343   :  { %v1022_v17 = vpop.f32.mrf.mxu1 }
 0x344   :  { %v1067_v23 = vadd.f32 %v1066_v45, %v1011_v18  ;;  %v1072_v45 = vpop.f32.mrf.mxu2  ;;  %v10730_v18 = vld [vmem:[#allocation24_spill] sm:$0xff] }
 0x346   :  { %5823 = vmatmul.msk.f32.gmra.mxu3 %vm506_vm2, %v1067_v23  ;;  %5895 = vmatmul.msk.f32.vlgmr.msra.gmra.mxu1 %vm506_vm2, %v5846_v1  ;;  %v10731_v1 = vld [vmem:[#allocation25_spill] sm:$0xff]  ;;  %v10732_v23 = vld [vmem:[#allocation52_spill] sm:$0xff] }
 0x347   :  { %2269 = vmatmul.f32.gmra.mxu0 %v6041_v2  ;;  %2279 = vmatpush.msra.mxu1 %v10725_v43  ;;  %v957_v22 = vpop.f32.mrf.mxu3 }
 0x348   :  { %v958_v15 = vadd.f32 %v957_v22, %v10726_v5  ;;  %v10733_v22 = vld [vmem:[#allocation26_spill] sm:$0xff] }
 0x349   :  { %2280 = vmatpush.msra.mxu1 %v10727_v29 }
 0x34a   :  { %v1014_v26 = vadd.f32 %v1013_v7, %v958_v15  ;;  %v10734_v15 = vld [vmem:[#allocation27_spill] sm:$0xff] }
 0x34b   :  { %2281 = vmatpush.msra.mxu1 %v10729_v6  ;;  %v1025_v5 = vpop.f32.mrf.mxu1 }
 0x34c   :  { %v1070_v16 = vadd.f32 %v1069_v53, %v1014_v26  ;;  %v8055_v26 = vpop.f32.mrf.mxu0  ;;  %v1075_v30 = vpop.f32.mrf.mxu2 }
 0x34d   :  { %2282 = vmatpush.msra.mxu1 %v10730_v18  ;;  %10735 = vst [vmem:[#allocation41_spill] sm:$0xff] %v8055_v26 }
 0x34e   :  { %5824 = vmatmul.msk.f32.gmra.mxu3 %vm506_vm2, %v1070_v16  ;;  %5896 = vmatmul.msk.f32.gmra.mxu1 %vm506_vm2, %v5850_v10  ;;  %v5854_v16 = vld [vmem:[%s10555_s2 + $0x398] sm:$0xff] }
 0x34f   :  { %2272 = vmatmul.f32.gmra.mxu0 %v6045_v35  ;;  %2283 = vmatpush.msra.mxu1 %v10731_v1  ;;  %v960_v7 = vpop.f32.mrf.mxu3  ;;  %v6049_v35 = vld [vmem:[%s10555_s2 + $0x800] sm:$0x3] }
 0x350   :  { %v961_v2 = vadd.f32 %v960_v7, %v10732_v23  ;;  %v10736_v1 = vld [vmem:[#allocation28_spill] sm:$0xff] }
 0x351   :  { %2284 = vmatpush.msra.mxu1 %v10733_v22 }
 0x352   :  { %v1017_v53 = vadd.f32 %v1016_v0, %v961_v2  ;;  %v10737_v0 = vld [vmem:[#allocation29_spill] sm:$0xff]  ;;  %v10738_v2 = vld [vmem:[#allocation30_spill] sm:$0xff] }
 0x353   :  { %2285 = vmatpush.msra.mxu1 %v10734_v15 }
 0x354   :  { %v1073_v10 = vadd.f32 %v1072_v45, %v1017_v53  ;;  %v10739_v45 = vld [vmem:[#allocation31_spill] sm:$0xff] }
 0x355   :  { %2286 = vmatpush.msra.mxu1 %v10736_v1  ;;  %v5858_v53 = vld [vmem:[%s10555_s2 + $0x3b8] sm:$0xff]  ;;  %v1028_v1 = vpop.f32.mrf.mxu1 }
 0x356   :  { %5825 = vmatmul.msk.f32.gmra.mxu3 %vm506_vm2, %v1073_v10  ;;  %5897 = vmatmul.msk.f32.gmra.mxu1 %vm506_vm2, %v5854_v16  ;;  %v6003_v16 = vld [vmem:[%s10555_s2 + $0x690] sm:$0xff]  ;;  %v8076_v10 = vpop.f32.mrf.mxu0 }
 0x357   :  { %2275 = vmatmul.f32.gmra.mxu0 %v6049_v35  ;;  %2287 = vmatpush.msra.mxu1 %v10737_v0  ;;  %v963_v7 = vpop.f32.mrf.mxu3  ;;  %10740 = vst [vmem:[#allocation46_spill] sm:$0xff] %v8076_v10  ;;  %v10741_v35 = vld [vmem:[#allocation32_spill] sm:$0xff] }
 0x358   :  { %v964_v23 = vadd.f32 %v963_v7, %v7812_v9  ;;  %v1078_v9 = vpop.f32.mrf.mxu2  ;;  %v5862_v10 = vld [vmem:[%s10555_s2 + $0x3d8] sm:$0xff] }
 0x359   :  { %2288 = vmatpush.msra.mxu1 %v10738_v2 }
 0x35a   :  { %v1020_v26 = vadd.f32 %v1019_v62, %v964_v23  ;;  %v10742_v62 = vld [vmem:[#allocation33_spill] sm:$0xff] }
 0x35b   :  { %2289 = vmatpush.msra.mxu1 %v10739_v45  ;;  %v10744_v45 = vld [vmem:[#allocation35_spill] sm:$0xff] }
 0x35c   :  { %v1076_v15 = vadd.f32 %v1075_v30, %v1020_v26  ;;  %v10743_v26 = vld [vmem:[#allocation34_spill] sm:$0xff] }
 0x35d   :  { %2290 = vmatpush.msra.mxu1 %v10741_v35 }
 0x35e   :  { %5826 = vmatmul.msk.f32.gmra.mxu3 %vm506_vm2, %v1076_v15  ;;  %5898 = vmatmul.msk.f32.gmra.mxu1 %vm506_vm2, %v5858_v53  ;;  %v5847_v15 = vld [vmem:[%s10555_s2 + $0x360] sm:$0xff] }
 0x35f   :  { %2351 = vmatmul.f32.vlgmr.msra.gmra.mxu0 %v6003_v16  ;;  %2291 = vmatpush.msra.mxu1 %v10742_v62  ;;  %v966_v7 = vpop.f32.mrf.mxu3  ;;  %v10745_v16 = vld [vmem:[#allocation36_spill] sm:$0xff]  ;;  %v1240_v62 = vpop.f32.mrf.mxu1 }
 0x360   :  { %2832 = vmatpush.msra.mxu0 %v7194_v50  ;;  %v967_v30 = vadd.f32 %v966_v7, %v7836_v11  ;;  %1390 = vmatmul.f32.gmra.mxu2 %v5847_v15 }
 0x361   :  { %2292 = vmatpush.msra.mxu1 %v10743_v26 }
 0x362   :  { %v1023_v23 = vadd.f32 %v1022_v17, %v967_v30  ;;  %v1081_v17 = vpop.f32.mrf.mxu2 }
 0x363   :  { %2293 = vmatpush.msra.mxu1 %v10744_v45  ;;  %v5866_v45 = vld [vmem:[%s10555_s2 + $0x3f8] sm:$0xff] }
 0x364   :  { %v1079_v53 = vadd.f32 %v1078_v9, %v1023_v23  ;;  %v5851_v9 = vld [vmem:[%s10555_s2 + $0x380] sm:$0xff] }
 0x365   :  { %2294 = vmatpush.msra.mxu1 %v10745_v16 }
 0x366   :  { %5827 = vmatmul.msk.f32.gmra.mxu3 %vm506_vm2, %v1079_v53  ;;  %5899 = vmatmul.msk.f32.gmra.mxu1 %vm506_vm2, %v5862_v10 }
 0x367   :  { %v969_v11 = vpop.f32.mrf.mxu3  ;;  %v1243_v15 = vpop.f32.mrf.mxu1 }
 0x368   :  { %v970_v7 = vadd.f32 %v969_v11, %v7859_v60  ;;  %1393 = vmatmul.f32.gmra.mxu2 %v5851_v9  ;;  %v5870_v11 = vld [vmem:[%s10555_s2 + $0x418] sm:$0xff]  ;;  %v5848_v9 = vld [vmem:[%s10555_s2 + $0x368] sm:$0xff] }
 0x36a   :  { %v1026_v30 = vadd.f32 %v1025_v5, %v970_v7  ;;  %v1084_v60 = vpop.f32.mrf.mxu2  ;;  %v5855_v7 = vld [vmem:[%s10555_s2 + $0x3a0] sm:$0xff] }
 0x36c   :  { %v1082_v23 = vadd.f32 %v1081_v17, %v1026_v30  ;;  %v5859_v30 = vld [vmem:[%s10555_s2 + $0x3c0] sm:$0xff] }
 0x36e   :  { %5828 = vmatmul.msk.f32.gmra.mxu3 %vm506_vm2, %v1082_v23  ;;  %5900 = vmatmul.msk.f32.gmra.mxu1 %vm506_vm2, %v5866_v45  ;;  %v5878_v23 = vld [vmem:[%s10555_s2 + $0x458] sm:$0xff] }
 0x36f   :  { %v972_v10 = vpop.f32.mrf.mxu3  ;;  %v1246_v45 = vpop.f32.mrf.mxu1 }
 0x370   :  { %v973_v53 = vadd.f32 %v972_v10, %v7882_v40  ;;  %1396 = vmatmul.f32.gmra.mxu2 %v5855_v7  ;;  %v5844_v40 = vld [vmem:[%s10555_s2 + $0x348] sm:$0xff]  ;;  %v5863_v10 = vld [vmem:[%s10555_s2 + $0x3e0] sm:$0xff] }
 0x372   :  { %v1029_v5 = vadd.f32 %v1028_v1, %v973_v53  ;;  %v5874_v1 = vld [vmem:[%s10555_s2 + $0x438] sm:$0xff] }
 0x374   :  { %v1085_v17 = vadd.f32 %v1084_v60, %v1029_v5  ;;  %v5852_v60 = vld [vmem:[%s10555_s2 + $0x388] sm:$0xff]  ;;  %v5882_v5 = vld [vmem:[%s10555_s2 + $0x478] sm:$0xff] }
 0x376   :  { %5829 = vmatmul.msk.f32.gmra.mxu3 %vm506_vm2, %v1085_v17  ;;  %5901 = vmatmul.msk.f32.gmra.mxu1 %vm506_vm2, %v5870_v11  ;;  %v5867_v11 = vld [vmem:[%s10555_s2 + $0x400] sm:$0xff]  ;;  %v5856_v17 = vld [vmem:[%s10555_s2 + $0x3a8] sm:$0xff] }
 0x377   :  { %v8132_v53 = vpop.f32.mrf.mxu1 }
 0x378   :  { %1399 = vmatmul.f32.gmra.mxu2 %v5859_v30 }
 0x37e   :  { %1443 = vmatmul.f32.vlgmr.msrb.gmra.mxu3 %v5844_v40  ;;  %5902 = vmatmul.msk.f32.gmra.mxu1 %vm506_vm2, %v5874_v1  ;;  %v5886_v40 = vld [vmem:[%s10555_s2 + $0x498] sm:$0xff]  ;;  %v5871_v1 = vld [vmem:[%s10555_s2 + $0x420] sm:$0xff] }
 0x37f   :  { %v8144_v7 = vpop.f32.mrf.mxu1 }
 0x380   :  { %1402 = vmatmul.f32.gmra.mxu2 %v5863_v10  ;;  %v5860_v10 = vld [vmem:[%s10555_s2 + $0x3c8] sm:$0xff] }
 0x386   :  { %1446 = vmatmul.f32.gmra.mxu3 %v5848_v9  ;;  %5903 = vmatmul.msk.f32.gmra.mxu1 %vm506_vm2, %v5878_v23 }
 0x387   :  { %v8157_v30 = vpop.f32.mrf.mxu1 }
 0x388   :  { %1405 = vmatmul.f32.gmra.mxu2 %v5867_v11 }
 0x38e   :  { %1449 = vmatmul.f32.gmra.mxu3 %v5852_v60  ;;  %5904 = vmatmul.msk.f32.gmra.mxu1 %vm506_vm2, %v5882_v5  ;;  %v5890_v60 = vld [vmem:[%s10555_s2 + $0x4b8] sm:$0xff]  ;;  %v5875_v5 = vld [vmem:[%s10555_s2 + $0x440] sm:$0xff] }
 0x390   :  { %1408 = vmatmul.f32.gmra.mxu2 %v5871_v1  ;;  %v5894_v1 = vld [vmem:[%s10555_s2 + $0x4d8] sm:$0x3] }
 0x396   :  { %1452 = vmatmul.f32.gmra.mxu3 %v5856_v17  ;;  %5905 = vmatmul.msk.f32.gmra.mxu1 %vm506_vm2, %v5886_v40  ;;  %v8171_v17 = vpop.f32.mrf.mxu1  ;;  %v5864_v40 = vld [vmem:[%s10555_s2 + $0x3e8] sm:$0xff] }
 0x398   :  { %1411 = vmatmul.f32.gmra.mxu2 %v5875_v5  ;;  %v5924_v5 = vld [vmem:[%s10555_s2 + $0x4f0] sm:$0xff] }
 0x399   :  { %v1145_v9 = vpop.f32.mrf.mxu3 }
 0x39a   :  { %v8159_v23 = vadd.f32 %v1240_v62, %v1145_v9  ;;  %v5879_v9 = vld [vmem:[%s10555_s2 + $0x460] sm:$0xff] }
 0x39e   :  { %1455 = vmatmul.f32.gmra.mxu3 %v5860_v10  ;;  %5906 = vmatmul.msk.f32.gmra.mxu1 %vm506_vm2, %v5890_v60 }
 0x3a0   :  { %1414 = vmatmul.f32.gmra.mxu2 %v5879_v9  ;;  %v5928_v9 = vld [vmem:[%s10555_s2 + $0x510] sm:$0xff] }
 0x3a1   :  { %v1148_v11 = vpop.f32.mrf.mxu3 }
 0x3a2   :  { %v8173_v62 = vadd.f32 %v1243_v15, %v1148_v11  ;;  %v5868_v15 = vld [vmem:[%s10555_s2 + $0x408] sm:$0xff]  ;;  %v8193_v11 = vpop.f32.mrf.mxu1 }
 0x3a6   :  { %1458 = vmatmul.f32.gmra.mxu3 %v5864_v40  ;;  %5907 = vmatmul.msk.f32.gmra.mxu1 %vm506_vm2, %v5894_v1  ;;  %v5883_v40 = vld [vmem:[%s10555_s2 + $0x480] sm:$0xff]  ;;  %v5872_v1 = vld [vmem:[%s10555_s2 + $0x428] sm:$0xff] }
 0x3a8   :  { %1417 = vmatmul.f32.gmra.mxu2 %v5883_v40  ;;  %v5876_v40 = vld [vmem:[%s10555_s2 + $0x448] sm:$0xff] }
 0x3a9   :  { %v1151_v10 = vpop.f32.mrf.mxu3 }
 0x3aa   :  { %v8185_v60 = vadd.f32 %v1246_v45, %v1151_v10  ;;  %v5887_v10 = vld [vmem:[%s10555_s2 + $0x4a0] sm:$0xff] }
 0x3ae   :  { %1461 = vmatmul.f32.gmra.mxu3 %v5868_v15  ;;  %1925 = vmatmul.f32.vlgmr.msrb.gmra.mxu1 %v5924_v5  ;;  %v8213_v15 = vpop.f32.mrf.mxu1 }
 0x3af   :  { %2649 = vmatpush.msrb.mxu1 %v10696_v28 }
 0x3b0   :  { %1420 = vmatmul.f32.gmra.mxu2 %v5887_v10 }
 0x3b1   :  { %2650 = vmatpush.msrb.mxu1 %v6842_v57  ;;  %v8200_v45 = vpop.f32.mrf.mxu3  ;;  %v10754_v57 = vld [vmem:[#allocation50_spill] sm:$0xff] }
 0x3b3   :  { %2651 = vmatpush.msrb.mxu1 %v10697_v37 }
 0x3b5   :  { %2652 = vmatpush.msrb.mxu1 %v6855_v63  ;;  %v5932_v63 = vld [vmem:[%s10555_s2 + $0x530] sm:$0xff] }
 0x3b6   :  { %1464 = vmatmul.f32.gmra.mxu3 %v5872_v1  ;;  %1928 = vmatmul.f32.gmra.mxu1 %v5928_v9  ;;  %v5891_v1 = vld [vmem:[%s10555_s2 + $0x4c0] sm:$0x3]  ;;  %v8231_v9 = vpop.f32.mrf.mxu1 }
 0x3b7   :  { %2653 = vmatpush.msrb.mxu1 %v10698_v4  ;;  %10746 = vst [vmem:[#allocation40_spill] sm:$0xff] %v8231_v9 }
 0x3b8   :  { %1423 = vmatmul.f32.gmra.mxu2 %v5891_v1 }
 0x3b9   :  { %2654 = vmatpush.msrb.mxu1 %v10701_v58  ;;  %v8217_v5 = vpop.f32.mrf.mxu3  ;;  %v5960_v58 = vld [vmem:[%s10555_s2 + $0x610] sm:$0xff] }
 0x3bb   :  { %2655 = vmatpush.msrb.mxu1 %v10702_v13  ;;  %v5987_v13 = vld [vmem:[%s10556_s3 + $0x18] sm:$0xff] }
 0x3bc   :  { %2077 = vmatpush.msrb.mxu3 %v5987_v13  ;;  %v5940_v13 = vld [vmem:[%s10555_s2 + $0x570] sm:$0xff] }
 0x3bd   :  { %2656 = vmatpush.msrb.mxu1 %v10704_v24  ;;  %v1388_v24 = vpop.f32.mrf.mxu2 }
 0x3be   :  { %1467 = vmatmul.f32.gmra.mxu3 %v5876_v40  ;;  %1931 = vmatmul.f32.gmra.mxu1 %v5932_v63  ;;  %v5880_v40 = vld [vmem:[%s10555_s2 + $0x468] sm:$0xff]  ;;  %v5936_v63 = vld [vmem:[%s10555_s2 + $0x550] sm:$0xff] }
 0x3bf   :  { %2657 = vmatpush.msrb.mxu1 %v10707_v8 }
 0x3c1   :  { %2658 = vmatpush.msrb.mxu1 %v10709_v27  ;;  %v8234_v10 = vpop.f32.mrf.mxu3  ;;  %v5884_v27 = vld [vmem:[%s10555_s2 + $0x488] sm:$0xff] }
 0x3c3   :  { %2659 = vmatpush.msrb.mxu1 %v10711_v38  ;;  %v8251_v38 = vpop.f32.mrf.mxu1 }
 0x3c4   :  { %10747 = vst [vmem:[#allocation43_spill] sm:$0xff] %v8251_v38 }
 0x3c5   :  { %2660 = vmatpush.msrb.mxu1 %v10712_v3 }
 0x3c6   :  { %1470 = vmatmul.f32.gmra.mxu3 %v5880_v40  ;;  %1934 = vmatmul.f32.gmra.mxu1 %v5936_v63  ;;  %v5888_v63 = vld [vmem:[%s10555_s2 + $0x4a8] sm:$0xff] }
 0x3c7   :  { %2661 = vmatpush.msrb.mxu1 %v10715_v34 }
 0x3c9   :  { %2662 = vmatpush.msrb.mxu1 %v10717_v12  ;;  %v8249_v1 = vpop.f32.mrf.mxu3 }
 0x3cb   :  { %2663 = vmatpush.msrb.mxu1 %v10718_v41  ;;  %v5944_v41 = vld [vmem:[%s10555_s2 + $0x590] sm:$0xff]  ;;  %v8269_v12 = vpop.f32.mrf.mxu1 }
 0x3cc   :  { %10748 = vst [vmem:[#allocation47_spill] sm:$0xff] %v8269_v12 }
 0x3cd   :  { %2664 = vmatpush.msrb.mxu1 %v10720_v59 }
 0x3ce   :  { %1473 = vmatmul.f32.gmra.mxu3 %v5884_v27  ;;  %1937 = vmatmul.f32.gmra.mxu1 %v5940_v13  ;;  %v5892_v27 = vld [vmem:[%s10555_s2 + $0x4c8] sm:$0x3]  ;;  %v5948_v13 = vld [vmem:[%s10555_s2 + $0x5b0] sm:$0xff] }
 0x3d1   :  { %v8261_v40 = vpop.f32.mrf.mxu3 }
 0x3d3   :  { %v8279_v59 = vpop.f32.mrf.mxu1 }
 0x3d4   :  { %10749 = vst [vmem:[#allocation42_spill] sm:$0xff] %v8279_v59 }
 0x3d6   :  { %1476 = vmatmul.f32.gmra.mxu3 %v5888_v63  ;;  %1940 = vmatmul.f32.gmra.mxu1 %v5944_v41  ;;  %v5922_v41 = vld [vmem:[%s10555_s2 + $0x4e0] sm:$0xff]  ;;  %v5952_v63 = vld [vmem:[%s10555_s2 + $0x5d0] sm:$0xff] }
 0x3d9   :  { %v8271_v34 = vpop.f32.mrf.mxu3 }
 0x3db   :  { %v1556_v8 = vpop.f32.mrf.mxu1 }
 0x3de   :  { %1479 = vmatmul.f32.gmra.mxu3 %v5892_v27  ;;  %1943 = vmatmul.f32.gmra.mxu1 %v5948_v13  ;;  %v5956_v13 = vld [vmem:[%s10555_s2 + $0x5f0] sm:$0xff] }
 0x3e1   :  { %v8281_v3 = vpop.f32.mrf.mxu3 }
 0x3e2   :  { %10750 = vst [vmem:[#allocation44_spill] sm:$0xff] %v8281_v3  ;;  %v10755_v3 = vld [vmem:[#allocation53_spill] sm:$0xff] }
 0x3e3   :  { %v1391_v59 = vpop.f32.mrf.mxu2 }
 0x3e6   :  { %1813 = vmatmul.f32.vlgmr.msra.gmra.mxu3 %v5922_v41  ;;  %1946 = vmatmul.f32.gmra.mxu1 %v5952_v63  ;;  %v1559_v41 = vpop.f32.mrf.mxu1 }
 0x3e7   :  { %6567 = vmatpush.msra.mxu3 %v7169_v19 }
 0x3e9   :  { %6569 = vmatpush.msra.mxu3 %v7172_v33  ;;  %v8291_v27 = vpop.f32.mrf.mxu3 }
 0x3ea   :  { %10751 = vst [vmem:[#allocation48_spill] sm:$0xff] %v8291_v27 }
 0x3eb   :  { %6571 = vmatpush.msra.mxu3 %v7177_v32  ;;  %v1394_v4 = vpop.f32.mrf.mxu2 }
 0x3ed   :  { %6573 = vmatpush.msra.mxu3 %v7181_v42 }
 0x3ee   :  { %1949 = vmatmul.f32.gmra.mxu1 %v5956_v13  ;;  %v1562_v12 = vpop.f32.mrf.mxu1 }
 0x3ef   :  { %6575 = vmatpush.msra.mxu3 %v7192_v47 }
 0x3f1   :  { %6577 = vmatpush.msra.mxu3 %v7205_v54  ;;  %v8300_v63 = vpop.f32.mrf.mxu3 }
 0x3f2   :  { %10752 = vst [vmem:[#allocation49_spill] sm:$0xff] %v8300_v63  ;;  %v5964_v63 = vld [vmem:[%s10555_s2 + $0x630] sm:$0xff] }
 0x3f3   :  { %6579 = vmatpush.msra.mxu3 %v7211_v20  ;;  %v1397_v28 = vpop.f32.mrf.mxu2 }
 0x3f5   :  { %6581 = vmatpush.msra.mxu3 %v7219_v14 }
 0x3f6   :  { %1952 = vmatmul.f32.gmra.mxu1 %v5960_v58  ;;  %v1565_v27 = vpop.f32.mrf.mxu1 }
 0x3f7   :  { %6583 = vmatpush.msra.mxu3 %v7236_v25 }
 0x3f9   :  { %6585 = vmatpush.msra.mxu3 %v7246_v39  ;;  %v8309_v13 = vpop.f32.mrf.mxu3 }
 0x3fa   :  { %10753 = vst [vmem:[#allocation21_spill] sm:$0xff] %v8309_v13  ;;  %v5968_v13 = vld [vmem:[%s10555_s2 + $0x650] sm:$0xff] }
 0x3fb   :  { %6587 = vmatpush.msra.mxu3 %v7252_v52 }
 0x3fd   :  { %6589 = vmatpush.msra.mxu3 %v7260_v48 }
 0x3fe   :  { %1955 = vmatmul.f32.gmra.mxu1 %v5964_v63 }
 0x3ff   :  { %6591 = vmatpush.msra.mxu3 %v7275_v51 }
 0x401   :  { %6593 = vmatpush.msra.mxu3 %v7287_v61  ;;  %v1444_v58 = vpop.f32.mrf.mxu3 }
 0x402   :  { %v1445_v37 = vadd.f32 %v1444_v58, %v1388_v24  ;;  %v5972_v58 = vld [vmem:[%s10555_s2 + $0x670] sm:$0x3] }
 0x403   :  { %6595 = vmatpush.msra.mxu3 %v7293_v31 }
 0x404   :  { %v1501_v38 = vadd.f32 %v10754_v57, %v1445_v37 }
 0x405   :  { %6597 = vmatpush.msra.mxu3 %v7299_v49 }
 0x406   :  { %v1557_v9 = vadd.f32 %v1556_v8, %v1501_v38  ;;  %1958 = vmatmul.f32.gmra.mxu1 %v5968_v13  ;;  %v1568_v8 = vpop.f32.mrf.mxu1  ;;  %v1400_v38 = vpop.f32.mrf.mxu2 }
 0x408   :  { %5909 = vmatmul.msk.f32.vlgmr.msra.gmra.mxu2 %vm506_vm2, %v1557_v9 }
 0x409   :  { %6566 = vmatpush.msra.mxu2 %v7169_v19  ;;  %v1447_v63 = vpop.f32.mrf.mxu3 }
 0x40a   :  { %v1448_v24 = vadd.f32 %v1447_v63, %v1391_v59 }
 0x40b   :  { %6568 = vmatpush.msra.mxu2 %v7172_v33 }
 0x40c   :  { %v1504_v57 = vadd.f32 %v10755_v3, %v1448_v24  ;;  %v6002_v3 = vld [vmem:[%s10555_s2 + $0x688] sm:$0xff] }
 0x40d   :  { %6570 = vmatpush.msra.mxu2 %v7177_v32 }
 0x40e   :  { %v1560_v37 = vadd.f32 %v1559_v41, %v1504_v57  ;;  %1961 = vmatmul.f32.gmra.mxu1 %v5972_v58  ;;  %v1571_v63 = vpop.f32.mrf.mxu1  ;;  %v1403_v24 = vpop.f32.mrf.mxu2 }
 0x40f   :  { %6572 = vmatpush.msra.mxu2 %v7181_v42 }
 0x410   :  { %5910 = vmatmul.msk.f32.gmra.mxu2 %vm506_vm2, %v1560_v37 }
 0x411   :  { %6574 = vmatpush.msra.mxu2 %v7192_v47  ;;  %v1450_v59 = vpop.f32.mrf.mxu3 }
 0x412   :  { %v1451_v9 = vadd.f32 %v1450_v59, %v1394_v4 }
 0x413   :  { %6576 = vmatpush.msra.mxu2 %v7205_v54 }
 0x414   :  { %v1507_v13 = vadd.f32 %v7820_v46, %v1451_v9  ;;  %v6006_v46 = vld [vmem:[%s10555_s2 + $0x6a8] sm:$0xff] }
 0x415   :  { %6578 = vmatpush.msra.mxu2 %v7211_v20  ;;  %v6010_v9 = vld [vmem:[%s10555_s2 + $0x6c8] sm:$0xff] }
 0x416   :  { %v1563_v41 = vadd.f32 %v1562_v12, %v1507_v13  ;;  %2295 = vmatmul.f32.vlgmr.msra.gmra.mxu1 %v6002_v3  ;;  %v1574_v59 = vpop.f32.mrf.mxu1 }
 0x417   :  { %6580 = vmatpush.msra.mxu2 %v7219_v14 }
 0x418   :  { %5911 = vmatmul.msk.f32.gmra.mxu2 %vm506_vm2, %v1563_v41  ;;  %v6014_v41 = vld [vmem:[%s10555_s2 + $0x6e8] sm:$0xff] }
 0x419   :  { %6582 = vmatpush.msra.mxu2 %v7236_v25  ;;  %v1453_v4 = vpop.f32.mrf.mxu3 }
 0x41a   :  { %v1454_v58 = vadd.f32 %v1453_v4, %v1397_v28  ;;  %v10756_v4 = vld [vmem:[#allocation55_spill] sm:$0xff] }
 0x41b   :  { %6584 = vmatpush.msra.mxu2 %v7246_v39 }
 0x41c   :  { %v1510_v57 = vadd.f32 %v7849_v44, %v1454_v58  ;;  %v1406_v44 = vpop.f32.mrf.mxu2 }
 0x41d   :  { %6586 = vmatpush.msra.mxu2 %v7252_v52 }
 0x41e   :  { %v1566_v12 = vadd.f32 %v1565_v27, %v1510_v57  ;;  %2298 = vmatmul.f32.gmra.mxu1 %v6006_v46  ;;  %v1577_v46 = vpop.f32.mrf.mxu1 }
 0x41f   :  { %6588 = vmatpush.msra.mxu2 %v7260_v48 }
 0x420   :  { %5912 = vmatmul.msk.f32.gmra.mxu2 %vm506_vm2, %v1566_v12 }
 0x421   :  { %6590 = vmatpush.msra.mxu2 %v7275_v51  ;;  %v1456_v37 = vpop.f32.mrf.mxu3 }
 0x422   :  { %v1457_v28 = vadd.f32 %v1456_v37, %v1400_v38  ;;  %v6018_v37 = vld [vmem:[%s10555_s2 + $0x708] sm:$0xff] }
 0x423   :  { %6592 = vmatpush.msra.mxu2 %v7287_v61 }
 0x424   :  { %v1513_v3 = vadd.f32 %v7876_v21, %v1457_v28  ;;  %v1409_v57 = vpop.f32.mrf.mxu2 }
 0x425   :  { %6594 = vmatpush.msra.mxu2 %v7293_v31 }
 0x426   :  { %v1569_v27 = vadd.f32 %v1568_v8, %v1513_v3  ;;  %2301 = vmatmul.f32.gmra.mxu1 %v6010_v9  ;;  %v1580_v9 = vpop.f32.mrf.mxu1 }
 0x427   :  { %6596 = vmatpush.msra.mxu2 %v7299_v49 }
 0x428   :  { %5913 = vmatmul.msk.f32.gmra.mxu2 %vm506_vm2, %v1569_v27 }
 0x429   :  { %v1459_v13 = vpop.f32.mrf.mxu3 }
 0x42a   :  { %v1460_v38 = vadd.f32 %v1459_v13, %v1403_v24 }
 0x42c   :  { %v1516_v58 = vadd.f32 %v10756_v4, %v1460_v38  ;;  %v1412_v3 = vpop.f32.mrf.mxu2  ;;  %v10757_v38 = vld [vmem:[#allocation37_spill] sm:$0xff] }
 0x42e   :  { %v1572_v12 = vadd.f32 %v1571_v63, %v1516_v58  ;;  %2304 = vmatmul.f32.gmra.mxu1 %v6014_v41  ;;  %v6022_v63 = vld [vmem:[%s10555_s2 + $0x728] sm:$0xff]  ;;  %v1583_v4 = vpop.f32.mrf.mxu1 }
 0x430   :  { %5914 = vmatmul.msk.f32.gmra.mxu2 %vm506_vm2, %v1572_v12  ;;  %v6026_v12 = vld [vmem:[%s10555_s2 + $0x748] sm:$0xff] }
 0x431   :  { %v1462_v21 = vpop.f32.mrf.mxu3 }
 0x432   :  { %v1463_v8 = vadd.f32 %v1462_v21, %v1406_v44 }
 0x434   :  { %v1519_v24 = vadd.f32 %v7913_v56, %v1463_v8 }
 0x436   :  { %v1575_v28 = vadd.f32 %v1574_v59, %v1519_v24  ;;  %2307 = vmatmul.f32.gmra.mxu1 %v6018_v37  ;;  %v1415_v59 = vpop.f32.mrf.mxu2  ;;  %v6030_v24 = vld [vmem:[%s10555_s2 + $0x768] sm:$0xff] }
 0x438   :  { %5915 = vmatmul.msk.f32.gmra.mxu2 %vm506_vm2, %v1575_v28 }
 0x439   :  { %v1465_v27 = vpop.f32.mrf.mxu3 }
 0x43a   :  { %v1466_v13 = vadd.f32 %v1465_v27, %v1409_v57  ;;  %v10758_v27 = vld [vmem:[#allocation38_spill] sm:$0xff] }
 0x43c   :  { %v1522_v44 = vadd.f32 %v10757_v38, %v1466_v13  ;;  %v5926_v38 = vld [vmem:[%s10555_s2 + $0x500] sm:$0xff] }
 0x43d   :  { %1816 = vmatmul.f32.gmra.mxu3 %v5926_v38 }
 0x43e   :  { %v1578_v41 = vadd.f32 %v1577_v46, %v1522_v44  ;;  %2310 = vmatmul.f32.gmra.mxu1 %v6022_v63  ;;  %v1586_v46 = vpop.f32.mrf.mxu1  ;;  %v1418_v28 = vpop.f32.mrf.mxu2  ;;  %v10759_v44 = vld [vmem:[#allocation45_spill] sm:$0xff] }
 0x440   :  { %5916 = vmatmul.msk.f32.gmra.mxu2 %vm506_vm2, %v1578_v41 }
 0x441   :  { %v1468_v56 = vpop.f32.mrf.mxu3 }
 0x442   :  { %v1469_v58 = vadd.f32 %v1468_v56, %v1412_v3 }
 0x444   :  { %v1525_v57 = vadd.f32 %v7946_v55, %v1469_v58 }
 0x446   :  { %v1581_v21 = vadd.f32 %v1580_v9, %v1525_v57  ;;  %2313 = vmatmul.f32.gmra.mxu1 %v6026_v12  ;;  %v6034_v9 = vld [vmem:[%s10555_s2 + $0x788] sm:$0xff]  ;;  %v1589_v56 = vpop.f32.mrf.mxu1 }
 0x447   :  { %v6038_v57 = vld [vmem:[%s10555_s2 + $0x7a8] sm:$0xff] }
 0x448   :  { %5917 = vmatmul.msk.f32.gmra.mxu2 %vm506_vm2, %v1581_v21  ;;  %v5930_v21 = vld [vmem:[%s10555_s2 + $0x520] sm:$0xff] }
 0x449   :  { %v1471_v8 = vpop.f32.mrf.mxu3  ;;  %1819 = vmatmul.f32.gmra.mxu3 %v5930_v21  ;;  %v6080_v21 = vld [vmem:[%s10555_s2 + $0x820] sm:$0xff] }
 0x44a   :  { %v1472_v37 = vadd.f32 %v1471_v8, %v1415_v59  ;;  %v1421_v59 = vpop.f32.mrf.mxu2  ;;  %v10760_v8 = vld [vmem:[#allocation54_spill] sm:$0xff] }
 0x44c   :  { %v1528_v3 = vadd.f32 %v10758_v27, %v1472_v37 }
 0x44e   :  { %v1584_v13 = vadd.f32 %v1583_v4, %v1528_v3  ;;  %2316 = vmatmul.f32.gmra.mxu1 %v6030_v24 }
 0x450   :  { %5918 = vmatmul.msk.f32.gmra.mxu2 %vm506_vm2, %v1584_v13 }
 0x451   :  { %v1474_v63 = vpop.f32.mrf.mxu3 }
 0x452   :  { %v1475_v55 = vadd.f32 %v1474_v63, %v1418_v28  ;;  %v1592_v28 = vpop.f32.mrf.mxu1  ;;  %v1424_v27 = vpop.f32.mrf.mxu2  ;;  %v6042_v63 = vld [vmem:[%s10555_s2 + $0x7c8] sm:$0xff] }
 0x454   :  { %v1531_v41 = vadd.f32 %v10759_v44, %v1475_v55  ;;  %v5934_v55 = vld [vmem:[%s10555_s2 + $0x540] sm:$0xff] }
 0x455   :  { %1822 = vmatmul.f32.gmra.mxu3 %v5934_v55 }
 0x456   :  { %v1587_v58 = vadd.f32 %v1586_v46, %v1531_v41  ;;  %2319 = vmatmul.f32.gmra.mxu1 %v6034_v9  ;;  %v6145_v46 = vld [vmem:[%s10556_s3 + $0x28] sm:$0xff] }
 0x457   :  { %2929 = vmatpush.msra.mxu1 %v6145_v46  ;;  %v6046_v41 = vld [vmem:[%s10555_s2 + $0x7e8] sm:$0xff]  ;;  %v10762_v46 = vld [vmem:[#allocation27_spill] sm:$0xff] }
 0x458   :  { %5919 = vmatmul.msk.f32.gmra.mxu2 %vm506_vm2, %v1587_v58  ;;  %v6050_v58 = vld [vmem:[%s10555_s2 + $0x808] sm:$0x3] }
 0x459   :  { %v1477_v4 = vpop.f32.mrf.mxu3 }
 0x45a   :  { %v1478_v12 = vadd.f32 %v1477_v4, %v1421_v59  ;;  %v8413_v44 = vpop.f32.mrf.mxu1  ;;  %v5925_v59 = vld [vmem:[%s10555_s2 + $0x4f8] sm:$0xff]  ;;  %v5942_v4 = vld [vmem:[%s10555_s2 + $0x580] sm:$0xff] }
 0x45c   :  { %v1534_v37 = vadd.f32 %v10760_v8, %v1478_v12  ;;  %v5929_v12 = vld [vmem:[%s10555_s2 + $0x518] sm:$0xff] }
 0x45e   :  { %v1590_v24 = vadd.f32 %v1589_v56, %v1534_v37  ;;  %2322 = vmatmul.f32.gmra.mxu1 %v6038_v57  ;;  %v5938_v56 = vld [vmem:[%s10555_s2 + $0x560] sm:$0xff] }
 0x45f   :  { %1825 = vmatmul.f32.gmra.mxu3 %v5938_v56  ;;  %v10761_v57 = vld [vmem:[#allocation25_spill] sm:$0xff]  ;;  %v5941_v56 = vld [vmem:[%s10555_s2 + $0x578] sm:$0xff] }
 0x460   :  { %5920 = vmatmul.msk.f32.gmra.mxu2 %vm506_vm2, %v1590_v24  ;;  %v5946_v37 = vld [vmem:[%s10555_s2 + $0x5a0] sm:$0xff]  ;;  %v5933_v24 = vld [vmem:[%s10555_s2 + $0x538] sm:$0xff] }
 0x461   :  { %v1480_v3 = vpop.f32.mrf.mxu3 }
 0x462   :  { %v1481_v13 = vadd.f32 %v1480_v3, %v1424_v27  ;;  %v5950_v27 = vld [vmem:[%s10555_s2 + $0x5c0] sm:$0xff]  ;;  %v10764_v3 = vld [vmem:[#allocation31_spill] sm:$0xff] }
 0x464   :  { %v1537_v9 = vadd.f32 %v8025_v36, %v1481_v13  ;;  %v8426_v36 = vpop.f32.mrf.mxu1  ;;  %v5937_v13 = vld [vmem:[%s10555_s2 + $0x558] sm:$0xff] }
 0x466   :  { %v1593_v38 = vadd.f32 %v1592_v28, %v1537_v9  ;;  %2325 = vmatmul.f32.gmra.mxu1 %v6042_v63  ;;  %v10763_v28 = vld [vmem:[#allocation28_spill] sm:$0xff]  ;;  %v10765_v63 = vld [vmem:[#allocation33_spill] sm:$0xff] }
 0x467   :  { %1828 = vmatmul.f32.gmra.mxu3 %v5942_v4  ;;  %v5945_v4 = vld [vmem:[%s10555_s2 + $0x598] sm:$0xff] }
 0x468   :  { %5921 = vmatmul.msk.f32.gmra.mxu2 %vm506_vm2, %v1593_v38  ;;  %v5954_v38 = vld [vmem:[%s10555_s2 + $0x5e0] sm:$0xff] }
 0x46c   :  { %v8446_v8 = vpop.f32.mrf.mxu1 }
 0x46e   :  { %2328 = vmatmul.f32.gmra.mxu1 %v6046_v41  ;;  %v10766_v41 = vld [vmem:[#allocation35_spill] sm:$0xff] }
 0x46f   :  { %1831 = vmatmul.f32.gmra.mxu3 %v5946_v37  ;;  %v5949_v37 = vld [vmem:[%s10555_s2 + $0x5b8] sm:$0xff] }
 0x470   :  { %5974 = vmatmul.msk.f32.vlgmr.msrb.gmra.mxu2 %vm506_vm2, %v5925_v59 }
 0x471   :  { %2705 = vmatpush.msrb.mxu2 %v10725_v43 }
 0x473   :  { %2706 = vmatpush.msrb.mxu2 %v10727_v29 }
 0x475   :  { %2707 = vmatpush.msrb.mxu2 %v10729_v6 }
 0x476   :  { %2331 = vmatmul.f32.gmra.mxu1 %v6050_v58 }
 0x477   :  { %2708 = vmatpush.msrb.mxu2 %v10730_v18  ;;  %1834 = vmatmul.f32.gmra.mxu3 %v5950_v27 }
 0x478   :  { %5975 = vmatmul.msk.f32.gmra.mxu2 %vm506_vm2, %v5929_v12 }
 0x479   :  { %2709 = vmatpush.msrb.mxu2 %v10761_v57 }
 0x47b   :  { %2710 = vmatpush.msrb.mxu2 %v10733_v22 }
 0x47d   :  { %2711 = vmatpush.msrb.mxu2 %v10762_v46 }
 0x47e   :  { %2665 = vmatmul.f32.vlgmr.msrb.gmra.mxu1 %v6080_v21 }
 0x47f   :  { %2712 = vmatpush.msrb.mxu2 %v10763_v28  ;;  %3258 = vmatpush.msrb.mxu1 %v7194_v50 }
 0x480   :  { %5976 = vmatmul.msk.f32.gmra.mxu2 %vm506_vm2, %v5933_v24  ;;  %1837 = vmatmul.f32.gmra.mxu3 %v5954_v38  ;;  %v1250_v24 = vadd.f32 %v8132_v53, %v8200_v45  ;;  %v1253_v38 = vadd.f32 %v8144_v7, %v8217_v5  ;;  %v5970_v53 = vld [vmem:[%s10555_s2 + $0x660] sm:$0x3]  ;;  %v5957_v45 = vld [vmem:[%s10555_s2 + $0x5f8] sm:$0xff]  ;;  %v1259_v5 = vadd.f32 %v8171_v17, %v8249_v1 }
 0x481   :  { %2713 = vmatpush.msrb.mxu2 %v10737_v0  ;;  %v5961_v7 = vld [vmem:[%s10555_s2 + $0x618] sm:$0xff]  ;;  %v1265_v17 = vadd.f32 %v8213_v15, %v8271_v34  ;;  %v6007_v34 = vld [vmem:[%s10555_s2 + $0x6b0] sm:$0xff]  ;;  %v10769_v15 = vld [vmem:[#allocation5_spill] sm:$0xff] }
 0x483   :  { %2714 = vmatpush.msrb.mxu2 %v10738_v2 }
 0x485   :  { %2715 = vmatpush.msrb.mxu2 %v10764_v3 }
 0x487   :  { %2716 = vmatpush.msrb.mxu2 %v10741_v35 }
 0x488   :  { %5977 = vmatmul.msk.f32.gmra.mxu2 %vm506_vm2, %v5937_v13 }
 0x489   :  { %2717 = vmatpush.msrb.mxu2 %v10765_v63 }
 0x48b   :  { %2718 = vmatpush.msrb.mxu2 %v10743_v26  ;;  %v1653_v55 = vpop.f32.mrf.mxu2 }
 0x48c   :  { %v8472_v9 = vadd.f32 %v1653_v55, %v8159_v23  ;;  %v5958_v23 = vld [vmem:[%s10555_s2 + $0x600] sm:$0xff]  ;;  %v5953_v55 = vld [vmem:[%s10555_s2 + $0x5d8] sm:$0xff] }
 0x48d   :  { %2719 = vmatpush.msrb.mxu2 %v10766_v41  ;;  %1840 = vmatmul.f32.gmra.mxu3 %v5958_v23  ;;  %v1256_v23 = vadd.f32 %v8157_v30, %v8234_v10  ;;  %v1262_v30 = vadd.f32 %v8193_v11, %v8261_v40  ;;  %v1814_v11 = vpop.f32.mrf.mxu3  ;;  %v10767_v40 = vld [vmem:[#allocation44_spill] sm:$0xff] }
 0x48f   :  { %2720 = vmatpush.msrb.mxu2 %v10745_v16 }
 0x490   :  { %5978 = vmatmul.msk.f32.gmra.mxu2 %vm506_vm2, %v5941_v56 }
 0x493   :  { %v1656_v59 = vpop.f32.mrf.mxu2 }
 0x494   :  { %v8484_v58 = vadd.f32 %v1656_v59, %v8173_v62  ;;  %v5962_v62 = vld [vmem:[%s10555_s2 + $0x620] sm:$0xff] }
 0x495   :  { %1843 = vmatmul.f32.gmra.mxu3 %v5962_v62 }
 0x498   :  { %5979 = vmatmul.msk.f32.gmra.mxu2 %vm506_vm2, %v5945_v4 }
 0x49b   :  { %v1659_v12 = vpop.f32.mrf.mxu2 }
 0x49c   :  { %v8494_v21 = vadd.f32 %v1659_v12, %v8185_v60  ;;  %v5966_v60 = vld [vmem:[%s10555_s2 + $0x640] sm:$0xff] }
 0x49d   :  { %1846 = vmatmul.f32.gmra.mxu3 %v5966_v60  ;;  %v5969_v60 = vld [vmem:[%s10555_s2 + $0x658] sm:$0xff] }
 0x4a0   :  { %5980 = vmatmul.msk.f32.gmra.mxu2 %vm506_vm2, %v5949_v37 }
 0x4a3   :  { %v1662_v27 = vpop.f32.mrf.mxu2 }
 0x4a4   :  { %v8505_v13 = vadd.f32 %v1662_v27, %v1250_v24  ;;  %v5965_v24 = vld [vmem:[%s10555_s2 + $0x638] sm:$0xff] }
 0x4a5   :  { %1849 = vmatmul.f32.gmra.mxu3 %v5970_v53 }
 0x4a8   :  { %5981 = vmatmul.msk.f32.gmra.mxu2 %vm506_vm2, %v5953_v55 }
 0x4ab   :  { %v1665_v56 = vpop.f32.mrf.mxu2 }
 0x4ac   :  { %v8516_v59 = vadd.f32 %v1665_v56, %v1253_v38  ;;  %v5973_v38 = vld [vmem:[%s10555_s2 + $0x678] sm:$0x3]  ;;  %v10768_v56 = vld [vmem:[#allocation40_spill] sm:$0xff] }
 0x4ad   :  { %v1268_v53 = vadd.f32 %v10768_v56, %v10767_v40  ;;  %v10777_v40 = vld [vmem:[#allocation49_spill] sm:$0xff]  ;;  %v10778_v56 = vld [vmem:[#allocation47_spill] sm:$0xff] }
 0x4b0   :  { %5982 = vmatmul.msk.f32.gmra.mxu2 %vm506_vm2, %v5957_v45 }
 0x4b3   :  { %v1668_v4 = vpop.f32.mrf.mxu2 }
 0x4b4   :  { %v8527_v12 = vadd.f32 %v1668_v4, %v1256_v23  ;;  %v10770_v4 = vld [vmem:[#allocation48_spill] sm:$0xff] }
 0x4b8   :  { %5983 = vmatmul.msk.f32.gmra.mxu2 %vm506_vm2, %v5961_v7  ;;  %v10771_v7 = vld [vmem:[#allocation43_spill] sm:$0xff] }
 0x4bb   :  { %v1671_v62 = vpop.f32.mrf.mxu2 }
 0x4bc   :  { %v8535_v37 = vadd.f32 %v1671_v62, %v1259_v5  ;;  %v1271_v5 = vadd.f32 %v10771_v7, %v10770_v4  ;;  %v10772_v62 = vld [vmem:[#allocation6_spill] sm:$0xff]  ;;  %v10781_v7 = vld [vmem:[#allocation11_spill] sm:$0xff] }
 0x4c0   :  { %5984 = vmatmul.msk.f32.gmra.mxu2 %vm506_vm2, %v5965_v24 }
 0x4c3   :  { %v1674_v10 = vpop.f32.mrf.mxu2 }
 0x4c4   :  { %v8543_v27 = vadd.f32 %v1674_v10, %v1262_v30  ;;  %v1817_v30 = vpop.f32.mrf.mxu3 }
 0x4c8   :  { %5985 = vmatmul.msk.f32.gmra.mxu2 %vm506_vm2, %v5969_v60  ;;  %v10774_v60 = vld [vmem:[#allocation7_spill] sm:$0xff] }
 0x4cb   :  { %v1677_v1 = vpop.f32.mrf.mxu2 }
 0x4cc   :  { %v8551_v55 = vadd.f32 %v1677_v1, %v1265_v17  ;;  %v6011_v17 = vld [vmem:[%s10555_s2 + $0x6d0] sm:$0xff]  ;;  %v10775_v1 = vld [vmem:[#allocation8_spill] sm:$0xff] }
 0x4d0   :  { %5986 = vmatmul.msk.f32.gmra.mxu2 %vm506_vm2, %v5973_v38  ;;  %v10776_v38 = vld [vmem:[#allocation9_spill] sm:$0xff] }
 0x4d3   :  { %v1680_v45 = vpop.f32.mrf.mxu2 }
 0x4d4   :  { %v8559_v23 = vadd.f32 %v1680_v45, %v1268_v53  ;;  %v1274_v53 = vadd.f32 %v10778_v56, %v10777_v40  ;;  %v10779_v45 = vld [vmem:[#allocation10_spill] sm:$0xff] }
 0x4d5   :  { %v10786_v56 = vld [vmem:[#allocation14_spill] sm:$0xff] }
 0x4d8   :  { %2354 = vmatmul.f32.vlgmr.msra.gmra.mxu2 %v6007_v34 }
 0x4d9   :  { %3075 = vmatpush.msra.mxu2 %v10769_v15 }
 0x4db   :  { %3076 = vmatpush.msra.mxu2 %v10772_v62  ;;  %v1683_v24 = vpop.f32.mrf.mxu2  ;;  %v6019_v62 = vld [vmem:[%s10555_s2 + $0x710] sm:$0xff] }
 0x4dc   :  { %v8568_v10 = vadd.f32 %v1683_v24, %v1271_v5  ;;  %v6015_v5 = vld [vmem:[%s10555_s2 + $0x6f0] sm:$0xff]  ;;  %v1820_v24 = vpop.f32.mrf.mxu3 }
 0x4dd   :  { %3077 = vmatpush.msra.mxu2 %v10774_v60  ;;  %v10782_v60 = vld [vmem:[#allocation12_spill] sm:$0xff] }
 0x4de   :  { %10773 = vst [vmem:[#allocation51_spill] sm:$0xff] %v8568_v10 }
 0x4df   :  { %3078 = vmatpush.msra.mxu2 %v10775_v1  ;;  %v10785_v1 = vld [vmem:[#allocation42_spill] sm:$0xff] }
 0x4e0   :  { %2357 = vmatmul.f32.gmra.mxu2 %v6011_v17  ;;  %v10783_v17 = vld [vmem:[#allocation13_spill] sm:$0xff] }
 0x4e1   :  { %3079 = vmatpush.msra.mxu2 %v10776_v38  ;;  %v10784_v38 = vld [vmem:[#allocation21_spill] sm:$0xff] }
 0x4e2   :  { %v1277_v40 = vadd.f32 %v10785_v1, %v10784_v38  ;;  %v1879_v1 = vpop.f32.mrf.mxu0  ;;  %v10791_v38 = vld [vmem:[#allocation17_spill] sm:$0xff] }
 0x4e3   :  { %3080 = vmatpush.msra.mxu2 %v10779_v45  ;;  %v1686_v34 = vpop.f32.mrf.mxu2 }
 0x4e4   :  { %v8579_v4 = vadd.f32 %v1686_v34, %v1274_v53  ;;  %v10788_v34 = vld [vmem:[#allocation39_spill] sm:$0xff] }
 0x4e5   :  { %3081 = vmatpush.msra.mxu2 %v10781_v7  ;;  %v1871_v7 = vadd.f32 %v10788_v34, %v1814_v11  ;;  %v10793_v34 = vld [vmem:[#allocation41_spill] sm:$0xff] }
 0x4e6   :  { %10780 = vst [vmem:[#allocation22_spill] sm:$0xff] %v8579_v4  ;;  %v10789_v4 = vld [vmem:[#allocation15_spill] sm:$0xff] }
 0x4e7   :  { %3082 = vmatpush.msra.mxu2 %v10782_v60  ;;  %v10790_v60 = vld [vmem:[#allocation16_spill] sm:$0xff] }
 0x4e8   :  { %2360 = vmatmul.f32.gmra.mxu2 %v6015_v5  ;;  %v1823_v5 = vpop.f32.mrf.mxu3 }
 0x4e9   :  { %3083 = vmatpush.msra.mxu2 %v10783_v17  ;;  %v1927_v17 = vadd.f32 %v8413_v44, %v1871_v7  ;;  %v10795_v44 = vld [vmem:[#allocation20_spill] sm:$0xff] }
 0x4eb   :  { %3084 = vmatpush.msra.mxu2 %v10786_v56  ;;  %v1689_v45 = vpop.f32.mrf.mxu2  ;;  %v10792_v56 = vld [vmem:[#allocation18_spill] sm:$0xff] }
 0x4ec   :  { %v8590_v53 = vadd.f32 %v1689_v45, %v1277_v40  ;;  %v1935_v40 = vpop.f32.mrf.mxu1 }
 0x4ed   :  { %3085 = vmatpush.msra.mxu2 %v10789_v4  ;;  %v1874_v4 = vadd.f32 %v10793_v34, %v1817_v30  ;;  %v10796_v30 = vld [vmem:[#allocation46_spill] sm:$0xff] }
 0x4ee   :  { %10787 = vst [vmem:[#allocation23_spill] sm:$0xff] %v8590_v53  ;;  %v10794_v53 = vld [vmem:[#allocation19_spill] sm:$0xff]  ;;  %v1877_v34 = vadd.f32 %v10796_v30, %v1820_v24 }
 0x4ef   :  { %3086 = vmatpush.msra.mxu2 %v10790_v60  ;;  %v6023_v60 = vld [vmem:[%s10555_s2 + $0x730] sm:$0xff] }
 0x4f0   :  { %2363 = vmatmul.f32.gmra.mxu2 %v6019_v62  ;;  %v1930_v62 = vadd.f32 %v8426_v36, %v1874_v4  ;;  %v1826_v7 = vpop.f32.mrf.mxu3  ;;  %v1880_v36 = vadd.f32 %v1879_v1, %v1823_v5 }
 0x4f1   :  { %3087 = vmatpush.msra.mxu2 %v10791_v38 }
 0x4f3   :  { %3088 = vmatpush.msra.mxu2 %v10792_v56  ;;  %v1982_v45 = vpop.f32.mrf.mxu2  ;;  %v1882_v56 = vpop.f32.mrf.mxu0 }
 0x4f4   :  { %v1983_v11 = vadd.f32 %v1982_v45, %v1927_v17  ;;  %v1938_v38 = vpop.f32.mrf.mxu1 }
 0x4f5   :  { %3089 = vmatpush.msra.mxu2 %v10794_v53  ;;  %v6027_v53 = vld [vmem:[%s10555_s2 + $0x750] sm:$0xff] }
 0x4f6   :  { %5988 = vmatmul.msk.f32.vlgmr.msrb.gmra.mxu3 %vm506_vm2, %v1983_v11  ;;  %v1933_v11 = vadd.f32 %v8446_v8, %v1877_v34  ;;  %v6035_v8 = vld [vmem:[%s10555_s2 + $0x790] sm:$0xff] }
 0x4f7   :  { %2406 = vmatpush.msrb.mxu3 %v7194_v50  ;;  %3090 = vmatpush.msra.mxu2 %v10795_v44 }
 0x4f8   :  { %2366 = vmatmul.f32.gmra.mxu2 %v6023_v60  ;;  %v1829_v60 = vpop.f32.mrf.mxu3 }
 0x4fb   :  { %v1985_v17 = vpop.f32.mrf.mxu2  ;;  %v1885_v4 = vpop.f32.mrf.mxu0 }
 0x4fc   :  { %v1986_v45 = vadd.f32 %v1985_v17, %v1930_v62  ;;  %v6031_v62 = vld [vmem:[%s10555_s2 + $0x770] sm:$0xff]  ;;  %v1941_v24 = vpop.f32.mrf.mxu1  ;;  %v1936_v17 = vadd.f32 %v1935_v40, %v1880_v36 }
 0x4fd   :  { %v6039_v40 = vld [vmem:[%s10555_s2 + $0x7b0] sm:$0xff] }
 0x4fe   :  { %5989 = vmatmul.msk.f32.gmra.mxu3 %vm506_vm2, %v1986_v45  ;;  %v1883_v45 = vadd.f32 %v1882_v56, %v1826_v7 }
 0x500   :  { %2369 = vmatmul.f32.gmra.mxu2 %v6027_v53  ;;  %v1832_v53 = vpop.f32.mrf.mxu3  ;;  %v1939_v1 = vadd.f32 %v1938_v38, %v1883_v45  ;;  %v6043_v38 = vld [vmem:[%s10555_s2 + $0x7d0] sm:$0xff] }
 0x503   :  { %v1988_v44 = vpop.f32.mrf.mxu2  ;;  %v1888_v5 = vpop.f32.mrf.mxu0 }
 0x504   :  { %v1989_v15 = vadd.f32 %v1988_v44, %v1933_v11  ;;  %v1944_v44 = vpop.f32.mrf.mxu1 }
 0x506   :  { %5990 = vmatmul.msk.f32.gmra.mxu3 %vm506_vm2, %v1989_v15  ;;  %v1886_v15 = vadd.f32 %v1885_v4, %v1829_v60 }
 0x508   :  { %2372 = vmatmul.f32.gmra.mxu2 %v6031_v62  ;;  %v1835_v56 = vpop.f32.mrf.mxu3  ;;  %v1942_v7 = vadd.f32 %v1941_v24, %v1886_v15  ;;  %v6047_v24 = vld [vmem:[%s10555_s2 + $0x7f0] sm:$0xff] }
 0x50b   :  { %v1991_v30 = vpop.f32.mrf.mxu2  ;;  %v1891_v36 = vpop.f32.mrf.mxu0 }
 0x50c   :  { %v1992_v10 = vadd.f32 %v1991_v30, %v1936_v17  ;;  %v1947_v17 = vpop.f32.mrf.mxu1  ;;  %v1889_v30 = vadd.f32 %v1888_v5, %v1832_v53 }
 0x50e   :  { %5991 = vmatmul.msk.f32.gmra.mxu3 %vm506_vm2, %v1992_v10  ;;  %v1945_v60 = vadd.f32 %v1944_v44, %v1889_v30  ;;  %v6081_v44 = vld [vmem:[%s10555_s2 + $0x828] sm:$0xff] }
 0x510   :  { %2375 = vmatmul.f32.gmra.mxu2 %v6035_v8  ;;  %v1838_v4 = vpop.f32.mrf.mxu3 }
 0x513   :  { %v1994_v34 = vpop.f32.mrf.mxu2  ;;  %v1894_v45 = vpop.f32.mrf.mxu0 }
 0x514   :  { %v1995_v11 = vadd.f32 %v1994_v34, %v1939_v1  ;;  %v1892_v34 = vadd.f32 %v1891_v36, %v1835_v56 }
 0x516   :  { %5992 = vmatmul.msk.f32.gmra.mxu3 %vm506_vm2, %v1995_v11  ;;  %v1950_v11 = vpop.f32.mrf.mxu1  ;;  %v1948_v53 = vadd.f32 %v1947_v17, %v1892_v34  ;;  %v6085_v17 = vld [vmem:[%s10555_s2 + $0x848] sm:$0xff] }
 0x518   :  { %2378 = vmatmul.f32.gmra.mxu2 %v6039_v40  ;;  %v1841_v15 = vpop.f32.mrf.mxu3 }
 0x51b   :  { %v1997_v62 = vpop.f32.mrf.mxu2 }
 0x51c   :  { %v1998_v10 = vadd.f32 %v1997_v62, %v1942_v7  ;;  %v1895_v7 = vadd.f32 %v1894_v45, %v1838_v4  ;;  %v1897_v62 = vpop.f32.mrf.mxu0 }
 0x51e   :  { %5993 = vmatmul.msk.f32.gmra.mxu3 %vm506_vm2, %v1998_v10  ;;  %v1953_v56 = vpop.f32.mrf.mxu1  ;;  %v1951_v36 = vadd.f32 %v1950_v11, %v1895_v7  ;;  %v6089_v11 = vld [vmem:[%s10555_s2 + $0x868] sm:$0xff] }
 0x520   :  { %2381 = vmatmul.f32.gmra.mxu2 %v6043_v38  ;;  %v1898_v38 = vadd.f32 %v1897_v62, %v1841_v15 }
 0x522   :  { %v1954_v45 = vadd.f32 %v1953_v56, %v1898_v38  ;;  %v6093_v56 = vld [vmem:[%s10555_s2 + $0x888] sm:$0xff] }
 0x523   :  { %v2000_v8 = vpop.f32.mrf.mxu2 }
 0x524   :  { %v2001_v1 = vadd.f32 %v2000_v8, %v1945_v60  ;;  %v1844_v60 = vpop.f32.mrf.mxu3  ;;  %v1900_v4 = vpop.f32.mrf.mxu0 }
 0x526   :  { %5994 = vmatmul.msk.f32.gmra.mxu3 %vm506_vm2, %v2001_v1  ;;  %v1956_v8 = vpop.f32.mrf.mxu1 }
 0x528   :  { %2384 = vmatmul.f32.gmra.mxu2 %v6047_v24  ;;  %v1901_v24 = vadd.f32 %v1900_v4, %v1844_v60  ;;  %v6097_v4 = vld [vmem:[%s10555_s2 + $0x8a8] sm:$0xff] }
 0x52b   :  { %v2003_v5 = vpop.f32.mrf.mxu2 }
 0x52c   :  { %v2004_v40 = vadd.f32 %v2003_v5, %v1948_v53  ;;  %v1847_v53 = vpop.f32.mrf.mxu3  ;;  %v1957_v5 = vadd.f32 %v1956_v8, %v1901_v24  ;;  %v1903_v15 = vpop.f32.mrf.mxu0  ;;  %v6101_v24 = vld [vmem:[%s10555_s2 + $0x8c8] sm:$0xff] }
 0x52e   :  { %5995 = vmatmul.msk.f32.gmra.mxu3 %vm506_vm2, %v2004_v40  ;;  %v1959_v7 = vpop.f32.mrf.mxu1 }
 0x530   :  { %2721 = vmatmul.f32.vlgmr.msrb.gmra.mxu2 %v6081_v44  ;;  %v1904_v44 = vadd.f32 %v1903_v15, %v1847_v53  ;;  %v6105_v53 = vld [vmem:[%s10555_s2 + $0x8e8] sm:$0xff]  ;;  %v6004_v15 = vld [vmem:[%s10555_s2 + $0x698] sm:$0xff] }
 0x533   :  { %v2006_v10 = vpop.f32.mrf.mxu2 }
 0x534   :  { %v2007_v30 = vadd.f32 %v2006_v10, %v1951_v36  ;;  %v1960_v36 = vadd.f32 %v1959_v7, %v1904_v44  ;;  %v1850_v10 = vpop.f32.mrf.mxu3  ;;  %v6008_v7 = vld [vmem:[%s10555_s2 + $0x6b8] sm:$0xff]  ;;  %v6113_v44 = vld [vmem:[%s10555_s2 + $0x928] sm:$0xff] }
 0x536   :  { %5996 = vmatmul.msk.f32.gmra.mxu3 %vm506_vm2, %v2007_v30  ;;  %v1906_v30 = vpop.f32.mrf.mxu0 }
 0x537   :  { %v1907_v60 = vadd.f32 %v1906_v30, %v1850_v10  ;;  %v6224_v30 = vld [vmem:[%s10556_s3 + $0x30] sm:$0xff] }
 0x538   :  { %2724 = vmatmul.f32.gmra.mxu2 %v6085_v17 }
 0x539   :  { %3355 = vmatpush.msrb.mxu2 %v6224_v30 }
 0x53b   :  { %v2009_v1 = vpop.f32.mrf.mxu2 }
 0x53c   :  { %v2010_v34 = vadd.f32 %v2009_v1, %v1954_v45  ;;  %v1962_v45 = vpop.f32.mrf.mxu1 }
 0x53d   :  { %v1963_v8 = vadd.f32 %v1962_v45, %v1907_v60  ;;  %v6016_v60 = vld [vmem:[%s10555_s2 + $0x6f8] sm:$0xff] }
 0x53e   :  { %5997 = vmatmul.msk.f32.gmra.mxu3 %vm506_vm2, %v2010_v34 }
 0x540   :  { %2727 = vmatmul.f32.gmra.mxu2 %v6089_v11  ;;  %v6051_v11 = vld [vmem:[%s10555_s2 + $0x810] sm:$0x3] }
 0x543   :  { %v2012_v40 = vpop.f32.mrf.mxu2 }
 0x544   :  { %v2013_v62 = vadd.f32 %v2012_v40, %v1957_v5  ;;  %v8668_v5 = vpop.f32.mrf.mxu0  ;;  %v6109_v40 = vld [vmem:[%s10555_s2 + $0x908] sm:$0xff] }
 0x546   :  { %5998 = vmatmul.msk.f32.gmra.mxu3 %vm506_vm2, %v2013_v62 }
 0x548   :  { %2730 = vmatmul.f32.gmra.mxu2 %v6093_v56  ;;  %v6012_v56 = vld [vmem:[%s10555_s2 + $0x6d8] sm:$0xff] }
 0x54b   :  { %v2015_v38 = vpop.f32.mrf.mxu2 }
 0x54c   :  { %v2016_v17 = vadd.f32 %v2015_v38, %v1960_v36  ;;  %v8685_v62 = vpop.f32.mrf.mxu0  ;;  %v6117_v36 = vld [vmem:[%s10555_s2 + $0x948] sm:$0xff] }
 0x54e   :  { %5999 = vmatmul.msk.f32.gmra.mxu3 %vm506_vm2, %v2016_v17 }
 0x550   :  { %2733 = vmatmul.f32.gmra.mxu2 %v6097_v4  ;;  %v6121_v4 = vld [vmem:[%s10555_s2 + $0x968] sm:$0xff] }
 0x553   :  { %v2018_v1 = vpop.f32.mrf.mxu2 }
 0x554   :  { %v2019_v34 = vadd.f32 %v2018_v1, %v1963_v8  ;;  %v8703_v10 = vpop.f32.mrf.mxu0  ;;  %v6020_v1 = vld [vmem:[%s10555_s2 + $0x718] sm:$0xff] }
 0x556   :  { %6000 = vmatmul.msk.f32.gmra.mxu3 %vm506_vm2, %v2019_v34  ;;  %v6125_v34 = vld [vmem:[%s10555_s2 + $0x988] sm:$0xff] }
 0x558   :  { %2736 = vmatmul.f32.gmra.mxu2 %v6101_v24 }
 0x55e   :  { %2387 = vmatmul.f32.vlgmr.msra.gmra.mxu3 %v6051_v11 }
 0x55f   :  { %2761 = vmatpush.msra.mxu3 %v7169_v19 }
 0x560   :  { %2739 = vmatmul.f32.gmra.mxu2 %v6105_v53  ;;  %v6024_v53 = vld [vmem:[%s10555_s2 + $0x738] sm:$0xff] }
 0x561   :  { %2762 = vmatpush.msra.mxu3 %v7172_v33 }
 0x563   :  { %2763 = vmatpush.msra.mxu3 %v7177_v32 }
 0x565   :  { %2764 = vmatpush.msra.mxu3 %v7181_v42 }
 0x566   :  { %6053 = vmatmul.msk.f32.vlgmr.msrb.gmra.mxu3 %vm506_vm2, %v6004_v15  ;;  %v6129_v15 = vld [vmem:[%s10555_s2 + $0x9a8] sm:$0x3] }
 0x567   :  { %2765 = vmatpush.msra.mxu3 %v7192_v47 }
 0x568   :  { %2742 = vmatmul.f32.gmra.mxu2 %v6109_v40 }
 0x569   :  { %2766 = vmatpush.msra.mxu3 %v7205_v54 }
 0x56b   :  { %2767 = vmatpush.msra.mxu3 %v7211_v20 }
 0x56d   :  { %2768 = vmatpush.msra.mxu3 %v7219_v14 }
 0x56e   :  { %6054 = vmatmul.msk.f32.gmra.mxu3 %vm506_vm2, %v6008_v7  ;;  %v6028_v7 = vld [vmem:[%s10555_s2 + $0x758] sm:$0xff] }
 0x56f   :  { %2769 = vmatpush.msra.mxu3 %v7236_v25 }
 0x570   :  { %2745 = vmatmul.f32.gmra.mxu2 %v6113_v44 }
 0x571   :  { %2770 = vmatpush.msra.mxu3 %v7246_v39 }
 0x573   :  { %2771 = vmatpush.msra.mxu3 %v7252_v52 }
 0x575   :  { %2772 = vmatpush.msra.mxu3 %v7260_v48 }
 0x576   :  { %6055 = vmatmul.msk.f32.gmra.mxu3 %vm506_vm2, %v6012_v56  ;;  %v6159_v56 = vld [vmem:[%s10555_s2 + $0x9c0] sm:$0xff] }
 0x577   :  { %2773 = vmatpush.msra.mxu3 %v7275_v51 }
 0x578   :  { %2748 = vmatmul.f32.gmra.mxu2 %v6117_v36 }
 0x579   :  { %2774 = vmatpush.msra.mxu3 %v7287_v61  ;;  %v2079_v38 = vpop.f32.mrf.mxu3 }
 0x57a   :  { %v8711_v17 = vadd.f32 %v2079_v38, %v8472_v9  ;;  %v8724_v9 = vpop.f32.mrf.mxu0  ;;  %v6032_v38 = vld [vmem:[%s10555_s2 + $0x778] sm:$0xff] }
 0x57b   :  { %2775 = vmatpush.msra.mxu3 %v7293_v31 }
 0x57c   :  { %10797 = vst [vmem:[#allocation24_spill] sm:$0xff] %v8711_v17 }
 0x57d   :  { %2776 = vmatpush.msra.mxu3 %v7299_v49 }
 0x57e   :  { %6056 = vmatmul.msk.f32.gmra.mxu3 %vm506_vm2, %v6016_v60 }
 0x57f   :  { %3131 = vmatpush.msrb.mxu3 %v10725_v43 }
 0x580   :  { %2751 = vmatmul.f32.gmra.mxu2 %v6121_v4 }
 0x581   :  { %3132 = vmatpush.msrb.mxu3 %v10727_v29  ;;  %v2082_v45 = vpop.f32.mrf.mxu3 }
 0x582   :  { %v8727_v8 = vadd.f32 %v2082_v45, %v8484_v58  ;;  %v8744_v11 = vpop.f32.mrf.mxu0 }
 0x583   :  { %3133 = vmatpush.msrb.mxu3 %v10729_v6 }
 0x584   :  { %10798 = vst [vmem:[#allocation52_spill] sm:$0xff] %v8727_v8  ;;  %v10820_v8 = vld [vmem:[#allocation12_spill] sm:$0xff] }
 0x585   :  { %3134 = vmatpush.msrb.mxu3 %v10730_v18 }
 0x586   :  { %6057 = vmatmul.msk.f32.gmra.mxu3 %vm506_vm2, %v6020_v1 }
 0x587   :  { %3135 = vmatpush.msrb.mxu3 %v10761_v57 }
 0x588   :  { %2754 = vmatmul.f32.gmra.mxu2 %v6125_v34 }
 0x589   :  { %3136 = vmatpush.msrb.mxu3 %v10733_v22  ;;  %v2085_v58 = vpop.f32.mrf.mxu3 }
 0x58a   :  { %v8741_v24 = vadd.f32 %v2085_v58, %v8494_v21  ;;  %v8764_v44 = vpop.f32.mrf.mxu0 }
 0x58b   :  { %3137 = vmatpush.msrb.mxu3 %v10762_v46 }
 0x58c   :  { %10799 = vst [vmem:[#allocation26_spill] sm:$0xff] %v8741_v24 }
 0x58d   :  { %3138 = vmatpush.msrb.mxu3 %v10763_v28 }
 0x58e   :  { %6058 = vmatmul.msk.f32.gmra.mxu3 %vm506_vm2, %v6024_v53  ;;  %v6040_v53 = vld [vmem:[%s10555_s2 + $0x7b8] sm:$0xff] }
 0x58f   :  { %3139 = vmatpush.msrb.mxu3 %v10737_v0 }
 0x590   :  { %2757 = vmatmul.f32.gmra.mxu2 %v6129_v15 }
 0x591   :  { %3140 = vmatpush.msrb.mxu3 %v10738_v2  ;;  %v2088_v21 = vpop.f32.mrf.mxu3 }
 0x592   :  { %v8757_v40 = vadd.f32 %v2088_v21, %v8505_v13  ;;  %v8771_v13 = vpop.f32.mrf.mxu2  ;;  %v8783_v60 = vpop.f32.mrf.mxu0 }
 0x593   :  { %3141 = vmatpush.msrb.mxu3 %v10764_v3 }
 0x594   :  { %10800 = vst [vmem:[#allocation29_spill] sm:$0xff] %v8757_v40 }
 0x595   :  { %3142 = vmatpush.msrb.mxu3 %v10741_v35 }
 0x596   :  { %6059 = vmatmul.msk.f32.gmra.mxu3 %vm506_vm2, %v6028_v7  ;;  %v6044_v7 = vld [vmem:[%s10555_s2 + $0x7d8] sm:$0xff] }
 0x597   :  { %3143 = vmatpush.msrb.mxu3 %v10765_v63 }
 0x598   :  { %3091 = vmatmul.f32.vlgmr.msra.gmra.mxu2 %v6159_v56 }
 0x599   :  { %3144 = vmatpush.msrb.mxu3 %v10743_v26  ;;  %3684 = vmatpush.msra.mxu2 %v7194_v50  ;;  %v2091_v36 = vpop.f32.mrf.mxu3 }
 0x59a   :  { %v8776_v30 = vadd.f32 %v2091_v36, %v8516_v59  ;;  %v6036_v59 = vld [vmem:[%s10555_s2 + $0x798] sm:$0xff]  ;;  %v8793_v1 = vpop.f32.mrf.mxu0 }
 0x59b   :  { %3145 = vmatpush.msrb.mxu3 %v10766_v41  ;;  %v6048_v36 = vld [vmem:[%s10555_s2 + $0x7f8] sm:$0xff] }
 0x59c   :  { %10801 = vst [vmem:[#allocation30_spill] sm:$0xff] %v8776_v30  ;;  %v10817_v30 = vld [vmem:[#allocation23_spill] sm:$0xff] }
 0x59d   :  { %3146 = vmatpush.msrb.mxu3 %v10745_v16 }
 0x59e   :  { %6060 = vmatmul.msk.f32.gmra.mxu3 %vm506_vm2, %v6032_v38 }
 0x5a1   :  { %v2094_v4 = vpop.f32.mrf.mxu3 }
 0x5a2   :  { %v8787_v45 = vadd.f32 %v2094_v4, %v8527_v12  ;;  %v8805_v21 = vpop.f32.mrf.mxu0 }
 0x5a4   :  { %10802 = vst [vmem:[#allocation32_spill] sm:$0xff] %v8787_v45  ;;  %v10816_v45 = vld [vmem:[#allocation10_spill] sm:$0xff] }
 0x5a6   :  { %6061 = vmatmul.msk.f32.gmra.mxu3 %vm506_vm2, %v6036_v59  ;;  %v6052_v59 = vld [vmem:[%s10555_s2 + $0x818] sm:$0x3] }
 0x5a9   :  { %v2097_v34 = vpop.f32.mrf.mxu3 }
 0x5aa   :  { %v8796_v58 = vadd.f32 %v2097_v34, %v8535_v37  ;;  %v8817_v38 = vpop.f32.mrf.mxu0 }
 0x5ac   :  { %10803 = vst [vmem:[#allocation34_spill] sm:$0xff] %v8796_v58  ;;  %v10813_v58 = vld [vmem:[#allocation7_spill] sm:$0xff] }
 0x5ae   :  { %6062 = vmatmul.msk.f32.gmra.mxu3 %vm506_vm2, %v6040_v53  ;;  %v2296_v53 = vpop.f32.mrf.mxu1 }
 0x5b1   :  { %v2100_v12 = vpop.f32.mrf.mxu3 }
 0x5b2   :  { %v8803_v15 = vadd.f32 %v2100_v12, %v8543_v27  ;;  %v8826_v34 = vpop.f32.mrf.mxu0  ;;  %v10807_v12 = vld [vmem:[#allocation51_spill] sm:$0xff] }
 0x5b4   :  { %10804 = vst [vmem:[#allocation36_spill] sm:$0xff] %v8803_v15 }
 0x5b6   :  { %6063 = vmatmul.msk.f32.gmra.mxu3 %vm506_vm2, %v6044_v7 }
 0x5b9   :  { %v2103_v37 = vpop.f32.mrf.mxu3 }
 0x5ba   :  { %v8812_v56 = vadd.f32 %v2103_v37, %v8551_v55  ;;  %v6082_v37 = vld [vmem:[%s10555_s2 + $0x830] sm:$0xff] }
 0x5bc   :  { %10805 = vst [vmem:[#allocation50_spill] sm:$0xff] %v8812_v56  ;;  %v10811_v56 = vld [vmem:[#allocation22_spill] sm:$0xff] }
 0x5be   :  { %6064 = vmatmul.msk.f32.gmra.mxu3 %vm506_vm2, %v6048_v36  ;;  %v8836_v36 = vpop.f32.mrf.mxu0 }
 0x5c1   :  { %v2106_v27 = vpop.f32.mrf.mxu3 }
 0x5c2   :  { %v8821_v4 = vadd.f32 %v2106_v27, %v8559_v23  ;;  %v10809_v23 = vld [vmem:[#allocation5_spill] sm:$0xff] }
 0x5c4   :  { %10806 = vst [vmem:[#allocation53_spill] sm:$0xff] %v8821_v4  ;;  %v10810_v4 = vld [vmem:[#allocation6_spill] sm:$0xff] }
 0x5c6   :  { %6065 = vmatmul.msk.f32.gmra.mxu3 %vm506_vm2, %v6052_v59  ;;  %v2299_v59 = vpop.f32.mrf.mxu1 }
 0x5c9   :  { %v2109_v55 = vpop.f32.mrf.mxu3 }
 0x5ca   :  { %v8830_v7 = vadd.f32 %v2109_v55, %v10807_v12  ;;  %v6086_v55 = vld [vmem:[%s10555_s2 + $0x850] sm:$0xff]  ;;  %v10814_v12 = vld [vmem:[#allocation8_spill] sm:$0xff] }
 0x5cc   :  { %10808 = vst [vmem:[#allocation55_spill] sm:$0xff] %v8830_v7 }
 0x5ce   :  { %2777 = vmatmul.f32.vlgmr.msra.gmra.mxu3 %v6082_v37  ;;  %v10815_v37 = vld [vmem:[#allocation9_spill] sm:$0xff]  ;;  %v2302_v24 = vpop.f32.mrf.mxu1 }
 0x5cf   :  { %3501 = vmatpush.msra.mxu3 %v10809_v23 }
 0x5d1   :  { %v2112_v27 = vpop.f32.mrf.mxu3  ;;  %3502 = vmatpush.msra.mxu3 %v10810_v4  ;;  %v10826_v4 = vld [vmem:[#allocation18_spill] sm:$0xff] }
 0x5d2   :  { %v8840_v15 = vadd.f32 %v2112_v27, %v10811_v56  ;;  %v8852_v56 = vpop.f32.mrf.mxu0  ;;  %v10819_v27 = vld [vmem:[#allocation11_spill] sm:$0xff] }
 0x5d3   :  { %3503 = vmatpush.msra.mxu3 %v10813_v58 }
 0x5d4   :  { %10812 = vst [vmem:[#allocation37_spill] sm:$0xff] %v8840_v15  ;;  %v6090_v15 = vld [vmem:[%s10555_s2 + $0x870] sm:$0xff] }
 0x5d5   :  { %3504 = vmatpush.msra.mxu3 %v10814_v12  ;;  %v10824_v12 = vld [vmem:[#allocation16_spill] sm:$0xff] }
 0x5d6   :  { %2780 = vmatmul.f32.gmra.mxu3 %v6086_v55  ;;  %v10821_v55 = vld [vmem:[#allocation13_spill] sm:$0xff] }
 0x5d7   :  { %3505 = vmatpush.msra.mxu3 %v10815_v37 }
 0x5d9   :  { %v2115_v7 = vpop.f32.mrf.mxu3  ;;  %3506 = vmatpush.msra.mxu3 %v10816_v45  ;;  %v10822_v45 = vld [vmem:[#allocation14_spill] sm:$0xff] }
 0x5da   :  { %v8850_v40 = vadd.f32 %v2115_v7, %v10817_v30  ;;  %v2297_v30 = vadd.f32 %v2296_v53, %v8668_v5  ;;  %v2358_v7 = vpop.f32.mrf.mxu2  ;;  %v2352_v37 = vpop.f32.mrf.mxu0  ;;  %v2300_v5 = vadd.f32 %v2299_v59, %v8685_v62  ;;  %v10827_v53 = vld [vmem:[#allocation19_spill] sm:$0xff] }
 0x5db   :  { %3507 = vmatpush.msra.mxu3 %v10819_v27  ;;  %v6094_v27 = vld [vmem:[%s10555_s2 + $0x890] sm:$0xff] }
 0x5dc   :  { %10818 = vst [vmem:[#allocation38_spill] sm:$0xff] %v8850_v40  ;;  %v10823_v40 = vld [vmem:[#allocation15_spill] sm:$0xff] }
 0x5dd   :  { %3508 = vmatpush.msra.mxu3 %v10820_v8  ;;  %v2305_v8 = vpop.f32.mrf.mxu1 }
 0x5de   :  { %2783 = vmatmul.f32.gmra.mxu3 %v6090_v15  ;;  %v2353_v15 = vadd.f32 %v2352_v37, %v2297_v30 }
 0x5df   :  { %3509 = vmatpush.msra.mxu3 %v10821_v55  ;;  %v10825_v55 = vld [vmem:[#allocation17_spill] sm:$0xff] }
 0x5e1   :  { %v8860_v17 = vpop.f32.mrf.mxu3  ;;  %3510 = vmatpush.msra.mxu3 %v10822_v45 }
 0x5e2   :  { %v2361_v37 = vpop.f32.mrf.mxu2 }
 0x5e3   :  { %3511 = vmatpush.msra.mxu3 %v10823_v40  ;;  %v6098_v40 = vld [vmem:[%s10555_s2 + $0x8b0] sm:$0xff] }
 0x5e5   :  { %3512 = vmatpush.msra.mxu3 %v10824_v12  ;;  %v2308_v59 = vpop.f32.mrf.mxu1 }
 0x5e6   :  { %2786 = vmatmul.f32.gmra.mxu3 %v6094_v27  ;;  %v10828_v27 = vld [vmem:[#allocation20_spill] sm:$0xff] }
 0x5e7   :  { %3513 = vmatpush.msra.mxu3 %v10825_v55 }
 0x5e9   :  { %v2408_v58 = vpop.f32.mrf.mxu3  ;;  %3514 = vmatpush.msra.mxu3 %v10826_v4 }
 0x5ea   :  { %v2409_v45 = vadd.f32 %v2408_v58, %v2353_v15  ;;  %v2356_v58 = vadd.f32 %v8771_v13, %v2300_v5  ;;  %v6102_v15 = vld [vmem:[%s10555_s2 + $0x8d0] sm:$0xff]  ;;  %v2364_v13 = vpop.f32.mrf.mxu2 }
 0x5eb   :  { %3515 = vmatpush.msra.mxu3 %v10827_v53 }
 0x5ec   :  { %6067 = vmatmul.msk.f32.vlgmr.msrb.gmra.mxu0 %vm506_vm2, %v2409_v45  ;;  %v2303_v45 = vadd.f32 %v2302_v24, %v8703_v10  ;;  %v6106_v24 = vld [vmem:[%s10555_s2 + $0x8f0] sm:$0xff] }
 0x5ed   :  { %3187 = vmatpush.msrb.mxu0 %v7169_v19  ;;  %3516 = vmatpush.msra.mxu3 %v10828_v27  ;;  %v2311_v10 = vpop.f32.mrf.mxu1 }
 0x5ee   :  { %2789 = vmatmul.f32.gmra.mxu3 %v6098_v40  ;;  %v2359_v40 = vadd.f32 %v2358_v7, %v2303_v45 }
 0x5ef   :  { %3188 = vmatpush.msrb.mxu0 %v7172_v33 }
 0x5f1   :  { %3189 = vmatpush.msrb.mxu0 %v7177_v32  ;;  %v2411_v62 = vpop.f32.mrf.mxu3 }
 0x5f2   :  { %v2412_v30 = vadd.f32 %v2411_v62, %v2356_v58  ;;  %v2306_v62 = vadd.f32 %v2305_v8, %v8724_v9 }
 0x5f3   :  { %3190 = vmatpush.msrb.mxu0 %v7181_v42 }
 0x5f4   :  { %6068 = vmatmul.msk.f32.gmra.mxu0 %vm506_vm2, %v2412_v30  ;;  %v2362_v7 = vadd.f32 %v2361_v37, %v2306_v62  ;;  %v2367_v30 = vpop.f32.mrf.mxu2 }
 0x5f5   :  { %3191 = vmatpush.msrb.mxu0 %v7192_v47  ;;  %v2314_v9 = vpop.f32.mrf.mxu1 }
 0x5f6   :  { %2792 = vmatmul.f32.gmra.mxu3 %v6102_v15 }
 0x5f7   :  { %3192 = vmatpush.msrb.mxu0 %v7205_v54 }
 0x5f9   :  { %3193 = vmatpush.msrb.mxu0 %v7211_v20  ;;  %v2414_v5 = vpop.f32.mrf.mxu3 }
 0x5fa   :  { %v2415_v58 = vadd.f32 %v2414_v5, %v2359_v40  ;;  %v6110_v40 = vld [vmem:[%s10555_s2 + $0x910] sm:$0xff]  ;;  %v2309_v5 = vadd.f32 %v2308_v59, %v8744_v11  ;;  %v2312_v59 = vadd.f32 %v2311_v10, %v8764_v44 }
 0x5fb   :  { %3194 = vmatpush.msrb.mxu0 %v7219_v14  ;;  %v6114_v11 = vld [vmem:[%s10555_s2 + $0x930] sm:$0xff] }
 0x5fc   :  { %6069 = vmatmul.msk.f32.gmra.mxu0 %vm506_vm2, %v2415_v58  ;;  %v2365_v8 = vadd.f32 %v2364_v13, %v2309_v5 }
 0x5fd   :  { %3195 = vmatpush.msrb.mxu0 %v7236_v25  ;;  %v2317_v62 = vpop.f32.mrf.mxu1 }
 0x5fe   :  { %2795 = vmatmul.f32.gmra.mxu3 %v6106_v24  ;;  %v2370_v24 = vpop.f32.mrf.mxu2 }
 0x5ff   :  { %3196 = vmatpush.msrb.mxu0 %v7246_v39 }
 0x601   :  { %3197 = vmatpush.msrb.mxu0 %v7252_v52  ;;  %v2417_v45 = vpop.f32.mrf.mxu3 }
 0x602   :  { %v2418_v15 = vadd.f32 %v2417_v45, %v2362_v7  ;;  %v2368_v7 = vadd.f32 %v2367_v30, %v2312_v59  ;;  %v6122_v30 = vld [vmem:[%s10555_s2 + $0x970] sm:$0xff] }
 0x603   :  { %3198 = vmatpush.msrb.mxu0 %v7260_v48 }
 0x604   :  { %6070 = vmatmul.msk.f32.gmra.mxu0 %vm506_vm2, %v2418_v15  ;;  %v6118_v15 = vld [vmem:[%s10555_s2 + $0x950] sm:$0xff] }
 0x605   :  { %3199 = vmatpush.msrb.mxu0 %v7275_v51 }
 0x606   :  { %2798 = vmatmul.f32.gmra.mxu3 %v6110_v40  ;;  %v2315_v40 = vadd.f32 %v2314_v9, %v8783_v60  ;;  %v2373_v5 = vpop.f32.mrf.mxu2 }
 0x607   :  { %3200 = vmatpush.msrb.mxu0 %v7287_v61 }
 0x609   :  { %3201 = vmatpush.msrb.mxu0 %v7293_v31  ;;  %v2420_v37 = vpop.f32.mrf.mxu3 }
 0x60a   :  { %v2421_v58 = vadd.f32 %v2420_v37, %v2365_v8  ;;  %v2371_v8 = vadd.f32 %v2370_v24, %v2315_v40  ;;  %v2320_v37 = vpop.f32.mrf.mxu1  ;;  %v6126_v24 = vld [vmem:[%s10555_s2 + $0x990] sm:$0xff] }
 0x60b   :  { %3202 = vmatpush.msrb.mxu0 %v7299_v49  ;;  %v6130_v40 = vld [vmem:[%s10555_s2 + $0x9b0] sm:$0x3] }
 0x60c   :  { %6071 = vmatmul.msk.f32.gmra.mxu0 %vm506_vm2, %v2421_v58  ;;  %v2318_v58 = vadd.f32 %v2317_v62, %v8793_v1 }
 0x60e   :  { %2801 = vmatmul.f32.gmra.mxu3 %v6114_v11  ;;  %v2376_v11 = vpop.f32.mrf.mxu2  ;;  %v2374_v59 = vadd.f32 %v2373_v5, %v2318_v58 }
 0x611   :  { %v2423_v45 = vpop.f32.mrf.mxu3 }
 0x612   :  { %v2424_v13 = vadd.f32 %v2423_v45, %v2368_v7  ;;  %v2323_v7 = vpop.f32.mrf.mxu1  ;;  %v2321_v45 = vadd.f32 %v2320_v37, %v8805_v21 }
 0x613   :  { %v2324_v5 = vadd.f32 %v2323_v7, %v8817_v38  ;;  %v6084_v38 = vld [vmem:[%s10555_s2 + $0x840] sm:$0xff]  ;;  %v6164_v7 = vld [vmem:[%s10555_s2 + $0x9e8] sm:$0xff] }
 0x614   :  { %6072 = vmatmul.msk.f32.gmra.mxu0 %vm506_vm2, %v2424_v13  ;;  %v2377_v13 = vadd.f32 %v2376_v11, %v2321_v45  ;;  %2668 = vmatmul.f32.gmra.mxu1 %v6084_v38  ;;  %v6088_v45 = vld [vmem:[%s10555_s2 + $0x860] sm:$0xff] }
 0x615   :  { %v6104_v38 = vld [vmem:[%s10555_s2 + $0x8e0] sm:$0xff] }
 0x616   :  { %2804 = vmatmul.f32.gmra.mxu3 %v6118_v15  ;;  %v2379_v15 = vpop.f32.mrf.mxu2 }
 0x619   :  { %v2426_v44 = vpop.f32.mrf.mxu3 }
 0x61a   :  { %v2427_v10 = vadd.f32 %v2426_v44, %v2371_v8  ;;  %v2326_v8 = vpop.f32.mrf.mxu1  ;;  %v2380_v44 = vadd.f32 %v2379_v15, %v2324_v5 }
 0x61b   :  { %v2327_v58 = vadd.f32 %v2326_v8, %v8826_v34 }
 0x61c   :  { %6073 = vmatmul.msk.f32.gmra.mxu0 %vm506_vm2, %v2427_v10  ;;  %2671 = vmatmul.f32.gmra.mxu1 %v6088_v45  ;;  %v6112_v45 = vld [vmem:[%s10555_s2 + $0x920] sm:$0xff] }
 0x61e   :  { %2807 = vmatmul.f32.gmra.mxu3 %v6122_v30  ;;  %v2382_v37 = vpop.f32.mrf.mxu2  ;;  %v6160_v30 = vld [vmem:[%s10555_s2 + $0x9c8] sm:$0xff] }
 0x621   :  { %v2429_v60 = vpop.f32.mrf.mxu3 }
 0x622   :  { %v2430_v9 = vadd.f32 %v2429_v60, %v2374_v59  ;;  %v2329_v11 = vpop.f32.mrf.mxu1  ;;  %v2383_v59 = vadd.f32 %v2382_v37, %v2327_v58  ;;  %v6083_v37 = vld [vmem:[%s10555_s2 + $0x838] sm:$0xff] }
 0x623   :  { %v6087_v58 = vld [vmem:[%s10555_s2 + $0x858] sm:$0xff] }
 0x624   :  { %6074 = vmatmul.msk.f32.gmra.mxu0 %vm506_vm2, %v2430_v9 }
 0x626   :  { %2810 = vmatmul.f32.gmra.mxu3 %v6126_v24  ;;  %v2330_v24 = vadd.f32 %v2329_v11, %v8836_v36  ;;  %v2385_v34 = vpop.f32.mrf.mxu2  ;;  %v6092_v36 = vld [vmem:[%s10555_s2 + $0x880] sm:$0xff]  ;;  %v6180_v11 = vld [vmem:[%s10555_s2 + $0xa68] sm:$0xff] }
 0x627   :  { %2674 = vmatmul.f32.gmra.mxu1 %v6092_v36  ;;  %v6196_v36 = vld [vmem:[%s10555_s2 + $0xae8] sm:$0xff] }
 0x629   :  { %v2432_v1 = vpop.f32.mrf.mxu3 }
 0x62a   :  { %v2433_v62 = vadd.f32 %v2432_v1, %v2377_v13  ;;  %v2386_v13 = vadd.f32 %v2385_v34, %v2330_v24  ;;  %v2332_v15 = vpop.f32.mrf.mxu1  ;;  %v6095_v24 = vld [vmem:[%s10555_s2 + $0x898] sm:$0xff]  ;;  %v6188_v34 = vld [vmem:[%s10555_s2 + $0xaa8] sm:$0xff] }
 0x62b   :  { %v2333_v5 = vadd.f32 %v2332_v15, %v8852_v56  ;;  %v6096_v56 = vld [vmem:[%s10555_s2 + $0x8a0] sm:$0xff]  ;;  %v6099_v15 = vld [vmem:[%s10555_s2 + $0x8b8] sm:$0xff] }
 0x62c   :  { %6075 = vmatmul.msk.f32.gmra.mxu0 %vm506_vm2, %v2433_v62 }
 0x62d   :  { %v2389_v8 = vadd.f32 %v8860_v17, %v2333_v5  ;;  %v6176_v17 = vld [vmem:[%s10555_s2 + $0xa48] sm:$0xff]  ;;  %v6103_v5 = vld [vmem:[%s10555_s2 + $0x8d8] sm:$0xff] }
 0x62e   :  { %2813 = vmatmul.f32.gmra.mxu3 %v6130_v40  ;;  %v6168_v40 = vld [vmem:[%s10555_s2 + $0xa08] sm:$0xff] }
 0x62f   :  { %2677 = vmatmul.f32.gmra.mxu1 %v6096_v56  ;;  %v6200_v56 = vld [vmem:[%s10555_s2 + $0xb08] sm:$0xff] }
 0x631   :  { %v2435_v10 = vpop.f32.mrf.mxu3 }
 0x632   :  { %v2436_v21 = vadd.f32 %v2435_v10, %v2380_v44 }
 0x634   :  { %6076 = vmatmul.msk.f32.gmra.mxu0 %vm506_vm2, %v2436_v21  ;;  %v6172_v21 = vld [vmem:[%s10555_s2 + $0xa28] sm:$0xff] }
 0x636   :  { %3147 = vmatmul.f32.vlgmr.msrb.gmra.mxu3 %v6160_v30  ;;  %v6100_v30 = vld [vmem:[%s10555_s2 + $0x8c0] sm:$0xff] }
 0x637   :  { %2680 = vmatmul.f32.gmra.mxu1 %v6100_v30 }
 0x639   :  { %v2438_v60 = vpop.f32.mrf.mxu3 }
 0x63a   :  { %v2439_v9 = vadd.f32 %v2438_v60, %v2383_v59  ;;  %v6091_v59 = vld [vmem:[%s10555_s2 + $0x878] sm:$0xff]  ;;  %v6184_v60 = vld [vmem:[%s10555_s2 + $0xa88] sm:$0xff] }
 0x63c   :  { %6077 = vmatmul.msk.f32.gmra.mxu0 %vm506_vm2, %v2439_v9  ;;  %v6108_v9 = vld [vmem:[%s10555_s2 + $0x900] sm:$0xff] }
 0x63e   :  { %3150 = vmatmul.f32.gmra.mxu3 %v6164_v7 }
 0x63f   :  { %2683 = vmatmul.f32.gmra.mxu1 %v6104_v38  ;;  %v6128_v38 = vld [vmem:[%s10555_s2 + $0x9a0] sm:$0x3] }
 0x641   :  { %v2441_v1 = vpop.f32.mrf.mxu3 }
 0x642   :  { %v2442_v62 = vadd.f32 %v2441_v1, %v2386_v13  ;;  %v6192_v1 = vld [vmem:[%s10555_s2 + $0xac8] sm:$0xff] }
 0x644   :  { %6078 = vmatmul.msk.f32.gmra.mxu0 %vm506_vm2, %v2442_v62  ;;  %v6116_v62 = vld [vmem:[%s10555_s2 + $0x940] sm:$0xff] }
 0x646   :  { %3153 = vmatmul.f32.gmra.mxu3 %v6168_v40 }
 0x647   :  { %2686 = vmatmul.f32.gmra.mxu1 %v6108_v9 }
 0x649   :  { %v2444_v44 = vpop.f32.mrf.mxu3 }
 0x64a   :  { %v2445_v10 = vadd.f32 %v2444_v44, %v2389_v8  ;;  %v6303_v8 = vld [vmem:[%s10556_s3 + $0x38] sm:$0xff]  ;;  %v6120_v44 = vld [vmem:[%s10555_s2 + $0x960] sm:$0xff] }
 0x64b   :  { %3781 = vmatpush.msrb.mxu3 %v6303_v8  ;;  %v6127_v8 = vld [vmem:[%s10555_s2 + $0x998] sm:$0xff] }
 0x64c   :  { %6079 = vmatmul.msk.f32.gmra.mxu0 %vm506_vm2, %v2445_v10 }
 0x64e   :  { %3156 = vmatmul.f32.gmra.mxu3 %v6172_v21  ;;  %v6107_v21 = vld [vmem:[%s10555_s2 + $0x8f8] sm:$0xff] }
 0x64f   :  { %2689 = vmatmul.f32.gmra.mxu1 %v6112_v45  ;;  %v6119_v45 = vld [vmem:[%s10555_s2 + $0x958] sm:$0xff] }
 0x654   :  { %6132 = vmatmul.msk.f32.vlgmr.msra.gmra.mxu0 %vm506_vm2, %v6083_v37  ;;  %v6124_v37 = vld [vmem:[%s10555_s2 + $0x980] sm:$0xff] }
 0x655   :  { %3557 = vmatpush.msra.mxu0 %v10725_v43 }
 0x656   :  { %3159 = vmatmul.f32.gmra.mxu3 %v6176_v17  ;;  %v2778_v17 = vpop.f32.mrf.mxu3 }
 0x657   :  { %3558 = vmatpush.msra.mxu0 %v10727_v29  ;;  %2692 = vmatmul.f32.gmra.mxu1 %v6116_v62 }
 0x659   :  { %3559 = vmatpush.msra.mxu0 %v10729_v6 }
 0x65b   :  { %3560 = vmatpush.msra.mxu0 %v10730_v18 }
 0x65c   :  { %6133 = vmatmul.msk.f32.gmra.mxu0 %vm506_vm2, %v6087_v58  ;;  %v6111_v58 = vld [vmem:[%s10555_s2 + $0x918] sm:$0xff] }
 0x65d   :  { %3561 = vmatpush.msra.mxu0 %v10761_v57 }
 0x65e   :  { %3162 = vmatmul.f32.gmra.mxu3 %v6180_v11  ;;  %v6204_v11 = vld [vmem:[%s10555_s2 + $0xb28] sm:$0xff]  ;;  %v2781_v9 = vpop.f32.mrf.mxu3 }
 0x65f   :  { %3562 = vmatpush.msra.mxu0 %v10733_v22  ;;  %2695 = vmatmul.f32.gmra.mxu1 %v6120_v44  ;;  %v2666_v44 = vpop.f32.mrf.mxu1 }
 0x661   :  { %3563 = vmatpush.msra.mxu0 %v10762_v46 }
 0x663   :  { %3564 = vmatpush.msra.mxu0 %v10763_v28 }
 0x664   :  { %6134 = vmatmul.msk.f32.gmra.mxu0 %vm506_vm2, %v6091_v59 }
 0x665   :  { %3565 = vmatpush.msra.mxu0 %v10737_v0 }
 0x666   :  { %3165 = vmatmul.f32.gmra.mxu3 %v6184_v60  ;;  %v6115_v60 = vld [vmem:[%s10555_s2 + $0x938] sm:$0xff] }
 0x667   :  { %3566 = vmatpush.msra.mxu0 %v10738_v2  ;;  %2698 = vmatmul.f32.gmra.mxu1 %v6124_v37 }
 0x669   :  { %v9007_v7 = vpop.f32.mrf.mxu0  ;;  %3567 = vmatpush.msra.mxu0 %v10764_v3 }
 0x66b   :  { %3568 = vmatpush.msra.mxu0 %v10741_v35 }
 0x66c   :  { %6135 = vmatmul.msk.f32.gmra.mxu0 %vm506_vm2, %v6095_v24  ;;  %v6208_v24 = vld [vmem:[%s10555_s2 + $0xb48] sm:$0x3] }
 0x66d   :  { %3569 = vmatpush.msra.mxu0 %v10765_v63 }
 0x66e   :  { %3168 = vmatmul.f32.gmra.mxu3 %v6188_v34 }
 0x66f   :  { %3570 = vmatpush.msra.mxu0 %v10743_v26  ;;  %2701 = vmatmul.f32.gmra.mxu1 %v6128_v38 }
 0x671   :  { %v9023_v13 = vpop.f32.mrf.mxu0  ;;  %3571 = vmatpush.msra.mxu0 %v10766_v41 }
 0x673   :  { %3572 = vmatpush.msra.mxu0 %v10745_v16 }
 0x674   :  { %6136 = vmatmul.msk.f32.gmra.mxu0 %vm506_vm2, %v6099_v15  ;;  %v6238_v15 = vld [vmem:[%s10555_s2 + $0xb60] sm:$0xff] }
 0x676   :  { %3171 = vmatmul.f32.gmra.mxu3 %v6192_v1  ;;  %v2784_v1 = vpop.f32.mrf.mxu3 }
 0x679   :  { %v9037_v40 = vpop.f32.mrf.mxu0 }
 0x67c   :  { %6137 = vmatmul.msk.f32.gmra.mxu0 %vm506_vm2, %v6103_v5  ;;  %v6123_v5 = vld [vmem:[%s10555_s2 + $0x978] sm:$0xff] }
 0x67e   :  { %3174 = vmatmul.f32.gmra.mxu3 %v6196_v36 }
 0x681   :  { %v9052_v10 = vpop.f32.mrf.mxu0 }
 0x684   :  { %6138 = vmatmul.msk.f32.gmra.mxu0 %vm506_vm2, %v6107_v21  ;;  %v2722_v21 = vpop.f32.mrf.mxu2 }
 0x686   :  { %3177 = vmatmul.f32.gmra.mxu3 %v6200_v56 }
 0x689   :  { %v9064_v30 = vpop.f32.mrf.mxu0 }
 0x68a   :  { %10829 = vst [vmem:[#allocation45_spill] sm:$0xff] %v9064_v30 }
 0x68c   :  { %6139 = vmatmul.msk.f32.gmra.mxu0 %vm506_vm2, %v6111_v58  ;;  %v2725_v38 = vpop.f32.mrf.mxu2 }
 0x68e   :  { %3180 = vmatmul.f32.gmra.mxu3 %v6204_v11  ;;  %v6161_v11 = vld [vmem:[%s10555_s2 + $0x9d0] sm:$0xff] }
 0x691   :  { %v9076_v59 = vpop.f32.mrf.mxu0  ;;  %v2669_v37 = vpop.f32.mrf.mxu1 }
 0x692   :  { %10830 = vst [vmem:[#allocation54_spill] sm:$0xff] %v9076_v59 }
 0x694   :  { %6140 = vmatmul.msk.f32.gmra.mxu0 %vm506_vm2, %v6115_v60  ;;  %v10836_v60 = vld [vmem:[#allocation6_spill] sm:$0xff] }
 0x696   :  { %3183 = vmatmul.f32.gmra.mxu3 %v6208_v24  ;;  %v10837_v24 = vld [vmem:[#allocation7_spill] sm:$0xff] }
 0x699   :  { %v9085_v34 = vpop.f32.mrf.mxu0 }
 0x69a   :  { %10831 = vst [vmem:[#allocation25_spill] sm:$0xff] %v9085_v34  ;;  %v10845_v34 = vld [vmem:[#allocation14_spill] sm:$0xff] }
 0x69c   :  { %6141 = vmatmul.msk.f32.gmra.mxu0 %vm506_vm2, %v6119_v45 }
 0x69e   :  { %3517 = vmatmul.f32.vlgmr.msra.gmra.mxu3 %v6238_v15  ;;  %v2672_v15 = vpop.f32.mrf.mxu1 }
 0x69f   :  { %4110 = vmatpush.msra.mxu3 %v7194_v50  ;;  %v6131_v50 = vld [vmem:[%s10555_s2 + $0x9b8] sm:$0x3] }
 0x6a1   :  { %v9095_v62 = vpop.f32.mrf.mxu0 }
 0x6a2   :  { %10832 = vst [vmem:[#allocation27_spill] sm:$0xff] %v9095_v62  ;;  %v10844_v62 = vld [vmem:[#allocation13_spill] sm:$0xff] }
 0x6a4   :  { %6142 = vmatmul.msk.f32.gmra.mxu0 %vm506_vm2, %v6123_v5  ;;  %v10839_v5 = vld [vmem:[#allocation8_spill] sm:$0xff] }
 0x6a9   :  { %v9101_v36 = vpop.f32.mrf.mxu0 }
 0x6aa   :  { %10833 = vst [vmem:[#allocation28_spill] sm:$0xff] %v9101_v36 }
 0x6ac   :  { %6143 = vmatmul.msk.f32.gmra.mxu0 %vm506_vm2, %v6127_v8  ;;  %v2728_v8 = vpop.f32.mrf.mxu2 }
 0x6b1   :  { %v9107_v56 = vpop.f32.mrf.mxu0 }
 0x6b2   :  { %10834 = vst [vmem:[#allocation31_spill] sm:$0xff] %v9107_v56  ;;  %v10842_v56 = vld [vmem:[#allocation11_spill] sm:$0xff] }
 0x6b4   :  { %6144 = vmatmul.msk.f32.gmra.mxu0 %vm506_vm2, %v6131_v50  ;;  %v10840_v50 = vld [vmem:[#allocation9_spill] sm:$0xff] }
 0x6b9   :  { %v9113_v58 = vpop.f32.mrf.mxu0 }
 0x6ba   :  { %10835 = vst [vmem:[#allocation33_spill] sm:$0xff] %v9113_v58  ;;  %v10841_v58 = vld [vmem:[#allocation10_spill] sm:$0xff] }
 0x6bc   :  { %3203 = vmatmul.f32.vlgmr.msrb.gmra.mxu0 %v6161_v11  ;;  %v2723_v11 = vadd.f32 %v2722_v21, %v2666_v44 }
 0x6bd   :  { %3927 = vmatpush.msrb.mxu0 %v10809_v23  ;;  %v10843_v23 = vld [vmem:[#allocation12_spill] sm:$0xff] }
 0x6bf   :  { %3928 = vmatpush.msrb.mxu0 %v10836_v60  ;;  %v2675_v60 = vpop.f32.mrf.mxu1 }
 0x6c1   :  { %3929 = vmatpush.msrb.mxu0 %v10837_v24  ;;  %v9121_v45 = vpop.f32.mrf.mxu0  ;;  %v2731_v24 = vpop.f32.mrf.mxu2 }
 0x6c2   :  { %10838 = vst [vmem:[#allocation35_spill] sm:$0xff] %v9121_v45  ;;  %v2779_v45 = vadd.f32 %v2778_v17, %v2723_v11 }
 0x6c3   :  { %3930 = vmatpush.msrb.mxu0 %v10839_v5  ;;  %v10846_v5 = vld [vmem:[#allocation15_spill] sm:$0xff] }
 0x6c5   :  { %3931 = vmatpush.msrb.mxu0 %v10840_v50  ;;  %v2787_v50 = vpop.f32.mrf.mxu3 }
 0x6c7   :  { %3932 = vmatpush.msrb.mxu0 %v10841_v58  ;;  %v2726_v58 = vadd.f32 %v2725_v38, %v2669_v37 }
 0x6c9   :  { %3933 = vmatpush.msrb.mxu0 %v10842_v56  ;;  %v9127_v36 = vpop.f32.mrf.mxu0  ;;  %v2782_v44 = vadd.f32 %v2781_v9, %v2726_v58  ;;  %v2734_v17 = vpop.f32.mrf.mxu2  ;;  %v2732_v56 = vadd.f32 %v2731_v24, %v2675_v60 }
 0x6cb   :  { %3934 = vmatpush.msrb.mxu0 %v10843_v23  ;;  %v2788_v37 = vadd.f32 %v2787_v50, %v2732_v56 }
 0x6cd   :  { %3935 = vmatpush.msrb.mxu0 %v10844_v62  ;;  %v2678_v62 = vpop.f32.mrf.mxu1 }
 0x6cf   :  { %3936 = vmatpush.msrb.mxu0 %v10845_v34 }
 0x6d1   :  { %3937 = vmatpush.msrb.mxu0 %v10846_v5  ;;  %v2834_v59 = vpop.f32.mrf.mxu0 }
 0x6d2   :  { %v2835_v30 = vadd.f32 %v2834_v59, %v2779_v45  ;;  %v2735_v45 = vadd.f32 %v2734_v17, %v2678_v62 }
 0x6d3   :  { %3938 = vmatpush.msrb.mxu0 %v10824_v12  ;;  %v2729_v12 = vadd.f32 %v2728_v8, %v2672_v15 }
 0x6d4   :  { %6146 = vmatmul.msk.f32.vlgmr.msra.gmra.mxu1 %vm506_vm2, %v2835_v30  ;;  %v2790_v30 = vpop.f32.mrf.mxu3 }
 0x6d5   :  { %3613 = vmatpush.msra.mxu1 %v7169_v19  ;;  %3939 = vmatpush.msrb.mxu0 %v10825_v55  ;;  %v2785_v55 = vadd.f32 %v2784_v1, %v2729_v12  ;;  %v2791_v11 = vadd.f32 %v2790_v30, %v2735_v45 }
 0x6d7   :  { %3614 = vmatpush.msra.mxu1 %v7172_v33  ;;  %3940 = vmatpush.msrb.mxu0 %v10826_v4  ;;  %v2681_v4 = vpop.f32.mrf.mxu1 }
 0x6d9   :  { %3615 = vmatpush.msra.mxu1 %v7177_v32  ;;  %3941 = vmatpush.msrb.mxu0 %v10827_v53  ;;  %v2837_v59 = vpop.f32.mrf.mxu0  ;;  %v2737_v53 = vpop.f32.mrf.mxu2 }
 0x6da   :  { %v2838_v34 = vadd.f32 %v2837_v59, %v2782_v44  ;;  %v2738_v5 = vadd.f32 %v2737_v53, %v2681_v4 }
 0x6db   :  { %3616 = vmatpush.msra.mxu1 %v7181_v42  ;;  %3942 = vmatpush.msrb.mxu0 %v10828_v27 }
 0x6dc   :  { %6147 = vmatmul.msk.f32.gmra.mxu1 %vm506_vm2, %v2838_v34  ;;  %v2793_v27 = vpop.f32.mrf.mxu3 }
 0x6dd   :  { %3617 = vmatpush.msra.mxu1 %v7192_v47  ;;  %v2794_v44 = vadd.f32 %v2793_v27, %v2738_v5 }
 0x6df   :  { %3618 = vmatpush.msra.mxu1 %v7205_v54  ;;  %v2684_v15 = vpop.f32.mrf.mxu1 }
 0x6e1   :  { %3619 = vmatpush.msra.mxu1 %v7211_v20  ;;  %v2840_v9 = vpop.f32.mrf.mxu0  ;;  %v2740_v8 = vpop.f32.mrf.mxu2 }
 0x6e2   :  { %v2841_v21 = vadd.f32 %v2840_v9, %v2785_v55  ;;  %v2741_v34 = vadd.f32 %v2740_v8, %v2684_v15 }
 0x6e3   :  { %3620 = vmatpush.msra.mxu1 %v7219_v14 }
 0x6e4   :  { %6148 = vmatmul.msk.f32.gmra.mxu1 %vm506_vm2, %v2841_v21  ;;  %v2796_v23 = vpop.f32.mrf.mxu3 }
 0x6e5   :  { %3621 = vmatpush.msra.mxu1 %v7236_v25  ;;  %v2797_v12 = vadd.f32 %v2796_v23, %v2741_v34 }
 0x6e7   :  { %3622 = vmatpush.msra.mxu1 %v7246_v39  ;;  %v2687_v50 = vpop.f32.mrf.mxu1 }
 0x6e9   :  { %3623 = vmatpush.msra.mxu1 %v7252_v52  ;;  %v2843_v1 = vpop.f32.mrf.mxu0  ;;  %v2743_v58 = vpop.f32.mrf.mxu2 }
 0x6ea   :  { %v2844_v38 = vadd.f32 %v2843_v1, %v2788_v37  ;;  %v2744_v56 = vadd.f32 %v2743_v58, %v2687_v50  ;;  %v6163_v50 = vld [vmem:[%s10555_s2 + $0x9e0] sm:$0xff] }
 0x6eb   :  { %3624 = vmatpush.msra.mxu1 %v7260_v48  ;;  %3094 = vmatmul.f32.gmra.mxu2 %v6163_v50  ;;  %v6175_v50 = vld [vmem:[%s10555_s2 + $0xa40] sm:$0xff] }
 0x6ec   :  { %6149 = vmatmul.msk.f32.gmra.mxu1 %vm506_vm2, %v2844_v38  ;;  %v2799_v17 = vpop.f32.mrf.mxu3 }
 0x6ed   :  { %3625 = vmatpush.msra.mxu1 %v7275_v51  ;;  %v2800_v53 = vadd.f32 %v2799_v17, %v2744_v56  ;;  %v6165_v56 = vld [vmem:[%s10555_s2 + $0x9f0] sm:$0xff] }
 0x6ee   :  { %3206 = vmatmul.f32.gmra.mxu0 %v6165_v56  ;;  %v6190_v56 = vld [vmem:[%s10555_s2 + $0xab8] sm:$0xff] }
 0x6ef   :  { %3626 = vmatpush.msra.mxu1 %v7287_v61  ;;  %v2690_v30 = vpop.f32.mrf.mxu1 }
 0x6f1   :  { %3627 = vmatpush.msra.mxu1 %v7293_v31  ;;  %v2846_v60 = vpop.f32.mrf.mxu0  ;;  %v2746_v55 = vpop.f32.mrf.mxu2 }
 0x6f2   :  { %v2847_v24 = vadd.f32 %v2846_v60, %v2791_v11  ;;  %v2747_v45 = vadd.f32 %v2746_v55, %v2690_v30 }
 0x6f3   :  { %3628 = vmatpush.msra.mxu1 %v7299_v49 }
 0x6f4   :  { %6150 = vmatmul.msk.f32.gmra.mxu1 %vm506_vm2, %v2847_v24  ;;  %v2802_v4 = vpop.f32.mrf.mxu3 }
 0x6f5   :  { %v2803_v8 = vadd.f32 %v2802_v4, %v2747_v45  ;;  %v6171_v45 = vld [vmem:[%s10555_s2 + $0xa20] sm:$0xff] }
 0x6f7   :  { %v2693_v37 = vpop.f32.mrf.mxu1 }
 0x6f9   :  { %v2849_v62 = vpop.f32.mrf.mxu0  ;;  %v2749_v38 = vpop.f32.mrf.mxu2 }
 0x6fa   :  { %v2850_v59 = vadd.f32 %v2849_v62, %v2794_v44  ;;  %v2750_v60 = vadd.f32 %v2749_v38, %v2693_v37 }
 0x6fc   :  { %6151 = vmatmul.msk.f32.gmra.mxu1 %vm506_vm2, %v2850_v59  ;;  %v2805_v15 = vpop.f32.mrf.mxu3 }
 0x6fd   :  { %v2806_v58 = vadd.f32 %v2805_v15, %v2750_v60  ;;  %v6169_v15 = vld [vmem:[%s10555_s2 + $0xa10] sm:$0xff] }
 0x6fe   :  { %3209 = vmatmul.f32.gmra.mxu0 %v6169_v15 }
 0x6ff   :  { %v2696_v24 = vpop.f32.mrf.mxu1 }
 0x701   :  { %v2852_v9 = vpop.f32.mrf.mxu0  ;;  %v2752_v5 = vpop.f32.mrf.mxu2 }
 0x702   :  { %v2853_v21 = vadd.f32 %v2852_v9, %v2797_v12  ;;  %v2753_v59 = vadd.f32 %v2752_v5, %v2696_v24 }
 0x704   :  { %6152 = vmatmul.msk.f32.gmra.mxu1 %vm506_vm2, %v2853_v21  ;;  %v2808_v44 = vpop.f32.mrf.mxu3  ;;  %v6167_v21 = vld [vmem:[%s10555_s2 + $0xa00] sm:$0xff] }
 0x705   :  { %v2809_v30 = vadd.f32 %v2808_v44, %v2753_v59  ;;  %3097 = vmatmul.f32.gmra.mxu2 %v6167_v21  ;;  %v6162_v44 = vld [vmem:[%s10555_s2 + $0x9d8] sm:$0xff] }
 0x706   :  { %v6166_v59 = vld [vmem:[%s10555_s2 + $0x9f8] sm:$0xff] }
 0x707   :  { %v2699_v34 = vpop.f32.mrf.mxu1 }
 0x709   :  { %v2855_v1 = vpop.f32.mrf.mxu0  ;;  %v2755_v12 = vpop.f32.mrf.mxu2 }
 0x70a   :  { %v2856_v27 = vadd.f32 %v2855_v1, %v2800_v53  ;;  %v2756_v53 = vadd.f32 %v2755_v12, %v2699_v34  ;;  %v6183_v34 = vld [vmem:[%s10555_s2 + $0xa80] sm:$0xff]  ;;  %v6181_v12 = vld [vmem:[%s10555_s2 + $0xa70] sm:$0xff] }
 0x70c   :  { %6153 = vmatmul.msk.f32.gmra.mxu1 %vm506_vm2, %v2856_v27  ;;  %v2811_v9 = vpop.f32.mrf.mxu3 }
 0x70d   :  { %v2812_v37 = vadd.f32 %v2811_v9, %v2756_v53  ;;  %3100 = vmatmul.f32.gmra.mxu2 %v6171_v45  ;;  %v6201_v9 = vld [vmem:[%s10555_s2 + $0xb10] sm:$0xff]  ;;  %v6198_v45 = vld [vmem:[%s10555_s2 + $0xaf8] sm:$0xff] }
 0x70e   :  { %v6205_v53 = vld [vmem:[%s10555_s2 + $0xb30] sm:$0xff] }
 0x70f   :  { %v2702_v1 = vpop.f32.mrf.mxu1 }
 0x711   :  { %v2858_v11 = vpop.f32.mrf.mxu0  ;;  %v2758_v38 = vpop.f32.mrf.mxu2 }
 0x712   :  { %v2859_v23 = vadd.f32 %v2858_v11, %v2803_v8  ;;  %v2759_v11 = vadd.f32 %v2758_v38, %v2702_v1  ;;  %v6194_v1 = vld [vmem:[%s10555_s2 + $0xad8] sm:$0xff]  ;;  %v6209_v38 = vld [vmem:[%s10555_s2 + $0xb50] sm:$0x3] }
 0x714   :  { %6154 = vmatmul.msk.f32.gmra.mxu1 %vm506_vm2, %v2859_v23  ;;  %v2814_v23 = vpop.f32.mrf.mxu3 }
 0x715   :  { %v2815_v60 = vadd.f32 %v2814_v23, %v2759_v11  ;;  %3103 = vmatmul.f32.gmra.mxu2 %v6175_v50  ;;  %v6206_v23 = vld [vmem:[%s10555_s2 + $0xb38] sm:$0xff] }
 0x716   :  { %v6210_v50 = vld [vmem:[%s10555_s2 + $0xb58] sm:$0x3] }
 0x719   :  { %v2861_v62 = vpop.f32.mrf.mxu0 }
 0x71a   :  { %v2862_v17 = vadd.f32 %v2861_v62, %v2806_v58  ;;  %v6173_v58 = vld [vmem:[%s10555_s2 + $0xa30] sm:$0xff]  ;;  %v6179_v62 = vld [vmem:[%s10555_s2 + $0xa60] sm:$0xff] }
 0x71b   :  { %3212 = vmatmul.f32.gmra.mxu0 %v6173_v58 }
 0x71c   :  { %6155 = vmatmul.msk.f32.gmra.mxu1 %vm506_vm2, %v2862_v17  ;;  %v6177_v17 = vld [vmem:[%s10555_s2 + $0xa50] sm:$0xff] }
 0x71d   :  { %3106 = vmatmul.f32.gmra.mxu2 %v6179_v62 }
 0x721   :  { %v2864_v55 = vpop.f32.mrf.mxu0 }
 0x722   :  { %v2865_v4 = vadd.f32 %v2864_v55, %v2809_v30  ;;  %v6186_v30 = vld [vmem:[%s10555_s2 + $0xa98] sm:$0xff]  ;;  %v6203_v55 = vld [vmem:[%s10555_s2 + $0xb20] sm:$0xff] }
 0x723   :  { %3215 = vmatmul.f32.gmra.mxu0 %v6177_v17 }
 0x724   :  { %6156 = vmatmul.msk.f32.gmra.mxu1 %vm506_vm2, %v2865_v4  ;;  %v6207_v4 = vld [vmem:[%s10555_s2 + $0xb40] sm:$0x3] }
 0x725   :  { %3109 = vmatmul.f32.gmra.mxu2 %v6183_v34 }
 0x729   :  { %v2867_v27 = vpop.f32.mrf.mxu0 }
 0x72a   :  { %v2868_v8 = vadd.f32 %v2867_v27, %v2812_v37 }
 0x72b   :  { %3218 = vmatmul.f32.gmra.mxu0 %v6181_v12 }
 0x72c   :  { %6157 = vmatmul.msk.f32.gmra.mxu1 %vm506_vm2, %v2868_v8  ;;  %v6202_v8 = vld [vmem:[%s10555_s2 + $0xb18] sm:$0xff] }
 0x731   :  { %v2870_v24 = vpop.f32.mrf.mxu0 }
 0x732   :  { %v2871_v5 = vadd.f32 %v2870_v24, %v2815_v60  ;;  %v3148_v60 = vpop.f32.mrf.mxu3  ;;  %v3092_v24 = vpop.f32.mrf.mxu2 }
 0x734   :  { %6158 = vmatmul.msk.f32.gmra.mxu1 %vm506_vm2, %v2871_v5 }
 0x739   :  { %v3204_v58 = vpop.f32.mrf.mxu0 }
 0x73c   :  { %6211 = vmatmul.msk.f32.vlgmr.msrb.gmra.mxu1 %vm506_vm2, %v6162_v44  ;;  %v3151_v44 = vpop.f32.mrf.mxu3 }
 0x73d   :  { %3983 = vmatpush.msrb.mxu1 %v10725_v43  ;;  %v6170_v43 = vld [vmem:[%s10555_s2 + $0xa18] sm:$0xff] }
 0x73f   :  { %3984 = vmatpush.msrb.mxu1 %v10727_v29  ;;  %v6187_v29 = vld [vmem:[%s10555_s2 + $0xaa0] sm:$0xff] }
 0x740   :  { %3112 = vmatmul.f32.gmra.mxu2 %v6187_v29 }
 0x741   :  { %3985 = vmatpush.msrb.mxu1 %v10729_v6  ;;  %v6185_v6 = vld [vmem:[%s10555_s2 + $0xa90] sm:$0xff] }
 0x742   :  { %3221 = vmatmul.f32.gmra.mxu0 %v6185_v6 }
 0x743   :  { %3986 = vmatpush.msrb.mxu1 %v10730_v18 }
 0x744   :  { %6212 = vmatmul.msk.f32.gmra.mxu1 %vm506_vm2, %v6166_v59  ;;  %v3154_v12 = vpop.f32.mrf.mxu3 }
 0x745   :  { %3987 = vmatpush.msrb.mxu1 %v10761_v57  ;;  %v6191_v57 = vld [vmem:[%s10555_s2 + $0xac0] sm:$0xff] }
 0x747   :  { %3988 = vmatpush.msrb.mxu1 %v10733_v22  ;;  %v6174_v22 = vld [vmem:[%s10555_s2 + $0xa38] sm:$0xff] }
 0x748   :  { %3115 = vmatmul.f32.gmra.mxu2 %v6191_v57 }
 0x749   :  { %3989 = vmatpush.msrb.mxu1 %v10762_v46  ;;  %v6189_v46 = vld [vmem:[%s10555_s2 + $0xab0] sm:$0xff] }
 0x74a   :  { %3224 = vmatmul.f32.gmra.mxu0 %v6189_v46 }
 0x74b   :  { %3990 = vmatpush.msrb.mxu1 %v10763_v28  ;;  %v6193_v28 = vld [vmem:[%s10555_s2 + $0xad0] sm:$0xff] }
 0x74c   :  { %6213 = vmatmul.msk.f32.gmra.mxu1 %vm506_vm2, %v6170_v43  ;;  %v3157_v57 = vpop.f32.mrf.mxu3 }
 0x74d   :  { %3991 = vmatpush.msrb.mxu1 %v10737_v0 }
 0x74f   :  { %3992 = vmatpush.msrb.mxu1 %v10738_v2  ;;  %v6178_v2 = vld [vmem:[%s10555_s2 + $0xa58] sm:$0xff] }
 0x751   :  { %3993 = vmatpush.msrb.mxu1 %v10764_v3  ;;  %v9229_v18 = vpop.f32.mrf.mxu1  ;;  %v6182_v3 = vld [vmem:[%s10555_s2 + $0xa78] sm:$0xff] }
 0x752   :  { %3227 = vmatmul.f32.gmra.mxu0 %v6193_v28 }
 0x753   :  { %3994 = vmatpush.msrb.mxu1 %v10741_v35  ;;  %v6195_v35 = vld [vmem:[%s10555_s2 + $0xae0] sm:$0xff] }
 0x754   :  { %6214 = vmatmul.msk.f32.gmra.mxu1 %vm506_vm2, %v6174_v22  ;;  %3118 = vmatmul.f32.gmra.mxu2 %v6195_v35  ;;  %v3149_v22 = vadd.f32 %v3148_v60, %v3092_v24 }
 0x755   :  { %3995 = vmatpush.msrb.mxu1 %v10765_v63  ;;  %v6199_v63 = vld [vmem:[%s10555_s2 + $0xb00] sm:$0xff] }
 0x757   :  { %3996 = vmatpush.msrb.mxu1 %v10743_v26 }
 0x759   :  { %3997 = vmatpush.msrb.mxu1 %v10766_v41  ;;  %v9245_v0 = vpop.f32.mrf.mxu1  ;;  %v6197_v41 = vld [vmem:[%s10555_s2 + $0xaf0] sm:$0xff] }
 0x75a   :  { %3230 = vmatmul.f32.gmra.mxu0 %v6197_v41 }
 0x75b   :  { %3998 = vmatpush.msrb.mxu1 %v10745_v16 }
 0x75c   :  { %6215 = vmatmul.msk.f32.gmra.mxu1 %vm506_vm2, %v6178_v2  ;;  %3121 = vmatmul.f32.gmra.mxu2 %v6199_v63  ;;  %v3205_v2 = vadd.f32 %v3204_v58, %v3149_v22 }
 0x761   :  { %v9258_v26 = vpop.f32.mrf.mxu1 }
 0x762   :  { %3233 = vmatmul.f32.gmra.mxu0 %v6201_v9 }
 0x764   :  { %6216 = vmatmul.msk.f32.gmra.mxu1 %vm506_vm2, %v6182_v3  ;;  %3124 = vmatmul.f32.gmra.mxu2 %v6203_v55 }
 0x769   :  { %v9270_v16 = vpop.f32.mrf.mxu1 }
 0x76a   :  { %3236 = vmatmul.f32.gmra.mxu0 %v6205_v53 }
 0x76b   :  { %v3207_v59 = vpop.f32.mrf.mxu0 }
 0x76c   :  { %6217 = vmatmul.msk.f32.gmra.mxu1 %vm506_vm2, %v6186_v30  ;;  %3127 = vmatmul.f32.gmra.mxu2 %v6207_v4  ;;  %v3160_v30 = vpop.f32.mrf.mxu3 }
 0x76e   :  { %v3095_v17 = vpop.f32.mrf.mxu2 }
 0x76f   :  { %v3152_v63 = vadd.f32 %v3151_v44, %v3095_v17 }
 0x771   :  { %v9282_v21 = vpop.f32.mrf.mxu1  ;;  %v3208_v41 = vadd.f32 %v3207_v59, %v3152_v63 }
 0x772   :  { %3239 = vmatmul.f32.gmra.mxu0 %v6209_v38 }
 0x774   :  { %6218 = vmatmul.msk.f32.gmra.mxu1 %vm506_vm2, %v6190_v56 }
 0x779   :  { %v9294_v37 = vpop.f32.mrf.mxu1 }
 0x77b   :  { %v3210_v29 = vpop.f32.mrf.mxu0 }
 0x77c   :  { %6219 = vmatmul.msk.f32.gmra.mxu1 %vm506_vm2, %v6194_v1 }
 0x781   :  { %v9303_v27 = vpop.f32.mrf.mxu1 }
 0x784   :  { %6220 = vmatmul.msk.f32.gmra.mxu1 %vm506_vm2, %v6198_v45 }
 0x788   :  { %v3098_v43 = vpop.f32.mrf.mxu2 }
 0x789   :  { %v9309_v15 = vpop.f32.mrf.mxu1  ;;  %v3155_v4 = vadd.f32 %v3154_v12, %v3098_v43 }
 0x78b   :  { %v3211_v1 = vadd.f32 %v3210_v29, %v3155_v4 }
 0x78c   :  { %6221 = vmatmul.msk.f32.gmra.mxu1 %vm506_vm2, %v6202_v8 }
 0x790   :  { %v3101_v46 = vpop.f32.mrf.mxu2 }
 0x791   :  { %v9315_v11 = vpop.f32.mrf.mxu1 }
 0x794   :  { %6222 = vmatmul.msk.f32.gmra.mxu1 %vm506_vm2, %v6206_v23 }
 0x798   :  { %v3213_v28 = vpop.f32.mrf.mxu0  ;;  %v3104_v55 = vpop.f32.mrf.mxu2 }
 0x799   :  { %v9321_v5 = vpop.f32.mrf.mxu1  ;;  %v3161_v23 = vadd.f32 %v3160_v30, %v3104_v55 }
 0x79c   :  { %6223 = vmatmul.msk.f32.gmra.mxu1 %vm506_vm2, %v6210_v50 }
 0x7a0   :  { %v3216_v53 = vpop.f32.mrf.mxu0  ;;  %v3107_v38 = vpop.f32.mrf.mxu2 }
 0x7a1   :  { %v9327_v62 = vpop.f32.mrf.mxu1 }
 0x7a8   :  { %v3110_v60 = vpop.f32.mrf.mxu2 }
 0x7a9   :  { %v9329_v34 = vpop.f32.mrf.mxu1 }
 0x7b1   :  { %v9331_v6 = vpop.f32.mrf.mxu1 }
 0x7b9   :  { %v3260_v35 = vpop.f32.mrf.mxu1 }
 0x7ba   :  { %v3261_v3 = vadd.f32 %v3260_v35, %v3205_v2 }
 0x7bc   :  { %6225 = vmatmul.msk.f32.vlgmr.msrb.gmra.mxu2 %vm506_vm2, %v3261_v3 }
 0x7bd   :  { %4039 = vmatpush.msrb.mxu2 %v7169_v19  ;;  %v3163_v19 = vpop.f32.mrf.mxu3 }
 0x7bf   :  { %4040 = vmatpush.msrb.mxu2 %v7172_v33 }
 0x7c1   :  { %4041 = vmatpush.msrb.mxu2 %v7177_v32  ;;  %v3263_v9 = vpop.f32.mrf.mxu1  ;;  %v3158_v32 = vadd.f32 %v3157_v57, %v3101_v46 }
 0x7c2   :  { %v3264_v56 = vadd.f32 %v3263_v9, %v3208_v41 }
 0x7c3   :  { %4042 = vmatpush.msrb.mxu2 %v7181_v42  ;;  %v3219_v42 = vpop.f32.mrf.mxu0  ;;  %v3214_v8 = vadd.f32 %v3213_v28, %v3158_v32  ;;  %v6242_v32 = vld [vmem:[%s10555_s2 + $0xb80] sm:$0xff] }
 0x7c4   :  { %6226 = vmatmul.msk.f32.gmra.mxu2 %vm506_vm2, %v3264_v56  ;;  %3520 = vmatmul.f32.gmra.mxu3 %v6242_v32 }
 0x7c5   :  { %4043 = vmatpush.msrb.mxu2 %v7192_v47 }
 0x7c7   :  { %4044 = vmatpush.msrb.mxu2 %v7205_v54 }
 0x7c9   :  { %4045 = vmatpush.msrb.mxu2 %v7211_v20  ;;  %v3266_v33 = vpop.f32.mrf.mxu1  ;;  %v3166_v20 = vpop.f32.mrf.mxu3 }
 0x7ca   :  { %v3267_v45 = vadd.f32 %v3266_v33, %v3211_v1 }
 0x7cb   :  { %4046 = vmatpush.msrb.mxu2 %v7219_v14  ;;  %v3217_v14 = vadd.f32 %v3216_v53, %v3161_v23 }
 0x7cc   :  { %6227 = vmatmul.msk.f32.gmra.mxu2 %vm506_vm2, %v3267_v45  ;;  %v6239_v45 = vld [vmem:[%s10555_s2 + $0xb68] sm:$0xff] }
 0x7cd   :  { %4047 = vmatpush.msrb.mxu2 %v7236_v25  ;;  %v3222_v25 = vpop.f32.mrf.mxu0  ;;  %3573 = vmatmul.f32.vlgmr.msra.gmra.mxu0 %v6239_v45 }
 0x7cf   :  { %4048 = vmatpush.msrb.mxu2 %v7246_v39 }
 0x7d1   :  { %4049 = vmatpush.msrb.mxu2 %v7252_v52  ;;  %v3269_v47 = vpop.f32.mrf.mxu1  ;;  %v3164_v52 = vadd.f32 %v3163_v19, %v3107_v38  ;;  %v3169_v50 = vpop.f32.mrf.mxu3 }
 0x7d2   :  { %v3270_v54 = vadd.f32 %v3269_v47, %v3214_v8 }
 0x7d3   :  { %4050 = vmatpush.msrb.mxu2 %v7260_v48  ;;  %v3113_v48 = vpop.f32.mrf.mxu2  ;;  %v3220_v58 = vadd.f32 %v3219_v42, %v3164_v52  ;;  %v6240_v42 = vld [vmem:[%s10555_s2 + $0xb70] sm:$0xff] }
 0x7d4   :  { %6228 = vmatmul.msk.f32.gmra.mxu2 %vm506_vm2, %v3270_v54  ;;  %v3170_v22 = vadd.f32 %v3169_v50, %v3113_v48  ;;  %3629 = vmatmul.f32.vlgmr.msra.gmra.mxu1 %v6240_v42  ;;  %v6270_v42 = vld [vmem:[%s10555_s2 + $0xc60] sm:$0xff] }
 0x7d5   :  { %4051 = vmatpush.msrb.mxu2 %v7275_v51  ;;  %v3225_v17 = vpop.f32.mrf.mxu0  ;;  %v3167_v51 = vadd.f32 %v3166_v20, %v3110_v60 }
 0x7d7   :  { %4052 = vmatpush.msrb.mxu2 %v7287_v61  ;;  %v3223_v61 = vadd.f32 %v3222_v25, %v3167_v51  ;;  %v6243_v25 = vld [vmem:[%s10555_s2 + $0xb88] sm:$0xff] }
 0x7d8   :  { %3576 = vmatmul.f32.gmra.mxu0 %v6243_v25  ;;  %v6247_v51 = vld [vmem:[%s10555_s2 + $0xba8] sm:$0xff]  ;;  %v6261_v25 = vld [vmem:[%s10555_s2 + $0xc18] sm:$0xff] }
 0x7d9   :  { %4053 = vmatpush.msrb.mxu2 %v7293_v31  ;;  %v3272_v39 = vpop.f32.mrf.mxu1  ;;  %v3172_v12 = vpop.f32.mrf.mxu3 }
 0x7da   :  { %v3273_v24 = vadd.f32 %v3272_v39, %v3217_v14  ;;  %v6246_v39 = vld [vmem:[%s10555_s2 + $0xba0] sm:$0xff] }
 0x7db   :  { %4054 = vmatpush.msrb.mxu2 %v7299_v49  ;;  %v3116_v43 = vpop.f32.mrf.mxu2  ;;  %v3226_v49 = vadd.f32 %v3225_v17, %v3170_v22  ;;  %3523 = vmatmul.f32.gmra.mxu3 %v6246_v39  ;;  %v6251_v22 = vld [vmem:[%s10555_s2 + $0xbc8] sm:$0xff] }
 0x7dc   :  { %6229 = vmatmul.msk.f32.gmra.mxu2 %vm506_vm2, %v3273_v24  ;;  %v3173_v3 = vadd.f32 %v3172_v12, %v3116_v43  ;;  %v6244_v24 = vld [vmem:[%s10555_s2 + $0xb90] sm:$0xff] }
 0x7dd   :  { %v3228_v57 = vpop.f32.mrf.mxu0  ;;  %3632 = vmatmul.f32.gmra.mxu1 %v6244_v24  ;;  %v6248_v12 = vld [vmem:[%s10555_s2 + $0xbb0] sm:$0xff]  ;;  %v6278_v24 = vld [vmem:[%s10555_s2 + $0xca0] sm:$0xff] }
 0x7de   :  { %v3229_v41 = vadd.f32 %v3228_v57, %v3173_v3  ;;  %v6254_v57 = vld [vmem:[%s10555_s2 + $0xbe0] sm:$0xff]  ;;  %v6245_v3 = vld [vmem:[%s10555_s2 + $0xb98] sm:$0xff] }
 0x7e0   :  { %3579 = vmatmul.f32.gmra.mxu0 %v6247_v51  ;;  %v6283_v51 = vld [vmem:[%s10555_s2 + $0xcc8] sm:$0xff] }
 0x7e1   :  { %v3275_v44 = vpop.f32.mrf.mxu1  ;;  %v3175_v46 = vpop.f32.mrf.mxu3 }
 0x7e2   :  { %v3276_v59 = vadd.f32 %v3275_v44, %v3220_v58 }
 0x7e3   :  { %v3119_v35 = vpop.f32.mrf.mxu2 }
 0x7e4   :  { %6230 = vmatmul.msk.f32.gmra.mxu2 %vm506_vm2, %v3276_v59  ;;  %v3176_v9 = vadd.f32 %v3175_v46, %v3119_v35  ;;  %v6241_v46 = vld [vmem:[%s10555_s2 + $0xb78] sm:$0xff]  ;;  %v6258_v35 = vld [vmem:[%s10555_s2 + $0xc00] sm:$0xff] }
 0x7e5   :  { %v3231_v63 = vpop.f32.mrf.mxu0  ;;  %3635 = vmatmul.f32.gmra.mxu1 %v6248_v12  ;;  %v6286_v12 = vld [vmem:[%s10555_s2 + $0xce0] sm:$0x3] }
 0x7e6   :  { %v3232_v53 = vadd.f32 %v3231_v63, %v3176_v9  ;;  %v6259_v63 = vld [vmem:[%s10555_s2 + $0xc08] sm:$0xff] }
 0x7e7   :  { %v6263_v9 = vld [vmem:[%s10555_s2 + $0xc28] sm:$0xff] }
 0x7e8   :  { %3582 = vmatmul.f32.gmra.mxu0 %v6251_v22 }
 0x7e9   :  { %v3278_v31 = vpop.f32.mrf.mxu1  ;;  %v3178_v4 = vpop.f32.mrf.mxu3 }
 0x7ea   :  { %v3279_v29 = vadd.f32 %v3278_v31, %v3223_v61  ;;  %v6250_v61 = vld [vmem:[%s10555_s2 + $0xbc0] sm:$0xff] }
 0x7eb   :  { %v3122_v56 = vpop.f32.mrf.mxu2  ;;  %3526 = vmatmul.f32.gmra.mxu3 %v6250_v61 }
 0x7ec   :  { %6231 = vmatmul.msk.f32.gmra.mxu2 %vm506_vm2, %v3279_v29  ;;  %v3179_v38 = vadd.f32 %v3178_v4, %v3122_v56  ;;  %v6266_v56 = vld [vmem:[%s10555_s2 + $0xc40] sm:$0xff]  ;;  %v6264_v4 = vld [vmem:[%s10555_s2 + $0xc30] sm:$0xff] }
 0x7ed   :  { %v3234_v1 = vpop.f32.mrf.mxu0 }
 0x7ee   :  { %v3235_v54 = vadd.f32 %v3234_v1, %v3179_v38  ;;  %v10847_v1 = vld [vmem:[#allocation24_spill] sm:$0xff] }
 0x7f1   :  { %v3281_v2 = vpop.f32.mrf.mxu1  ;;  %v3181_v47 = vpop.f32.mrf.mxu3 }
 0x7f2   :  { %v3282_v28 = vadd.f32 %v3281_v2, %v3226_v49  ;;  %v6252_v49 = vld [vmem:[%s10555_s2 + $0xbd0] sm:$0xff]  ;;  %v6255_v2 = vld [vmem:[%s10555_s2 + $0xbe8] sm:$0xff] }
 0x7f3   :  { %v3125_v8 = vpop.f32.mrf.mxu2  ;;  %3529 = vmatmul.f32.gmra.mxu3 %v6254_v57  ;;  %3638 = vmatmul.f32.gmra.mxu1 %v6252_v49  ;;  %v6288_v57 = vld [vmem:[%s10555_s2 + $0xcf0] sm:$0x3]  ;;  %v6277_v49 = vld [vmem:[%s10555_s2 + $0xc98] sm:$0xff] }
 0x7f4   :  { %6232 = vmatmul.msk.f32.gmra.mxu2 %vm506_vm2, %v3282_v28  ;;  %v3182_v14 = vadd.f32 %v3181_v47, %v3125_v8  ;;  %3585 = vmatmul.f32.gmra.mxu0 %v6255_v2  ;;  %v6256_v28 = vld [vmem:[%s10555_s2 + $0xbf0] sm:$0xff]  ;;  %v6257_v8 = vld [vmem:[%s10555_s2 + $0xbf8] sm:$0xff] }
 0x7f5   :  { %v3237_v20 = vpop.f32.mrf.mxu0  ;;  %v10848_v47 = vld [vmem:[#allocation52_spill] sm:$0xff] }
 0x7f6   :  { %v3238_v52 = vadd.f32 %v3237_v20, %v3182_v14  ;;  %v6274_v14 = vld [vmem:[%s10555_s2 + $0xc80] sm:$0xff]  ;;  %v6281_v2 = vld [vmem:[%s10555_s2 + $0xcb8] sm:$0xff] }
 0x7f9   :  { %v3284_v30 = vpop.f32.mrf.mxu1  ;;  %v3184_v48 = vpop.f32.mrf.mxu3 }
 0x7fa   :  { %v3285_v55 = vadd.f32 %v3284_v30, %v3229_v41  ;;  %v6262_v41 = vld [vmem:[%s10555_s2 + $0xc20] sm:$0xff]  ;;  %v6260_v30 = vld [vmem:[%s10555_s2 + $0xc10] sm:$0xff] }
 0x7fb   :  { %v3128_v50 = vpop.f32.mrf.mxu2  ;;  %3532 = vmatmul.f32.gmra.mxu3 %v6258_v35  ;;  %3641 = vmatmul.f32.gmra.mxu1 %v6256_v28  ;;  %v6285_v28 = vld [vmem:[%s10555_s2 + $0xcd8] sm:$0xff] }
 0x7fc   :  { %6233 = vmatmul.msk.f32.gmra.mxu2 %vm506_vm2, %v3285_v55  ;;  %v3185_v17 = vadd.f32 %v3184_v48, %v3128_v50  ;;  %3588 = vmatmul.f32.gmra.mxu0 %v6259_v63  ;;  %v6249_v55 = vld [vmem:[%s10555_s2 + $0xbb8] sm:$0xff]  ;;  %v6279_v48 = vld [vmem:[%s10555_s2 + $0xca8] sm:$0xff] }
 0x7fd   :  { %v3240_v59 = vpop.f32.mrf.mxu0  ;;  %v6265_v50 = vld [vmem:[%s10555_s2 + $0xc38] sm:$0xff] }
 0x7fe   :  { %v3241_v43 = vadd.f32 %v3240_v59, %v3185_v17  ;;  %v6280_v17 = vld [vmem:[%s10555_s2 + $0xcb0] sm:$0xff]  ;;  %v6269_v59 = vld [vmem:[%s10555_s2 + $0xc58] sm:$0xff] }
 0x7ff   :  { %v6289_v63 = vld [vmem:[%s10555_s2 + $0xcf8] sm:$0x3] }
 0x801   :  { %v3287_v19 = vpop.f32.mrf.mxu1 }
 0x802   :  { %v3288_v33 = vadd.f32 %v3287_v19, %v3232_v53  ;;  %v6253_v53 = vld [vmem:[%s10555_s2 + $0xbd8] sm:$0xff]  ;;  %v2544_v19 = vadd.f32 %v9007_v7, %v10847_v1  ;;  %v6268_v7 = vld [vmem:[%s10555_s2 + $0xc50] sm:$0xff] }
 0x803   :  { %3535 = vmatmul.f32.gmra.mxu3 %v6262_v41  ;;  %3644 = vmatmul.f32.gmra.mxu1 %v6260_v30  ;;  %v3518_v30 = vpop.f32.mrf.mxu3 }
 0x804   :  { %6234 = vmatmul.msk.f32.gmra.mxu2 %vm506_vm2, %v3288_v33  ;;  %3591 = vmatmul.f32.gmra.mxu0 %v6263_v9  ;;  %v6267_v33 = vld [vmem:[%s10555_s2 + $0xc48] sm:$0xff]  ;;  %v2970_v38 = vadd.f32 %v9229_v18, %v2544_v19  ;;  %v2545_v18 = vadd.f32 %v9023_v13, %v10848_v47  ;;  %v6272_v13 = vld [vmem:[%s10555_s2 + $0xc70] sm:$0xff] }
 0x809   :  { %v3290_v23 = vpop.f32.mrf.mxu1 }
 0x80a   :  { %v3291_v60 = vadd.f32 %v3290_v23, %v3235_v54  ;;  %v6271_v54 = vld [vmem:[%s10555_s2 + $0xc68] sm:$0xff]  ;;  %v2971_v23 = vadd.f32 %v9245_v0, %v2545_v18 }
 0x80b   :  { %3538 = vmatmul.f32.gmra.mxu3 %v6266_v56  ;;  %3647 = vmatmul.f32.gmra.mxu1 %v6264_v4  ;;  %v6275_v0 = vld [vmem:[%s10555_s2 + $0xc88] sm:$0xff] }
 0x80c   :  { %6235 = vmatmul.msk.f32.gmra.mxu2 %vm506_vm2, %v3291_v60  ;;  %3594 = vmatmul.f32.gmra.mxu0 %v6267_v33 }
 0x811   :  { %v3293_v58 = vpop.f32.mrf.mxu1 }
 0x812   :  { %v3294_v44 = vadd.f32 %v3293_v58, %v3238_v52  ;;  %v6276_v52 = vld [vmem:[%s10555_s2 + $0xc90] sm:$0xff] }
 0x813   :  { %3541 = vmatmul.f32.gmra.mxu3 %v6270_v42  ;;  %3650 = vmatmul.f32.gmra.mxu1 %v6268_v7 }
 0x814   :  { %6236 = vmatmul.msk.f32.gmra.mxu2 %vm506_vm2, %v3294_v44  ;;  %3597 = vmatmul.f32.gmra.mxu0 %v6271_v54  ;;  %v6282_v44 = vld [vmem:[%s10555_s2 + $0xcc0] sm:$0xff] }
 0x819   :  { %v3296_v31 = vpop.f32.mrf.mxu1 }
 0x81a   :  { %v3297_v29 = vadd.f32 %v3296_v31, %v3241_v43  ;;  %v6284_v43 = vld [vmem:[%s10555_s2 + $0xcd0] sm:$0xff]  ;;  %v6273_v31 = vld [vmem:[%s10555_s2 + $0xc78] sm:$0xff] }
 0x81b   :  { %3544 = vmatmul.f32.gmra.mxu3 %v6274_v14  ;;  %3653 = vmatmul.f32.gmra.mxu1 %v6272_v13 }
 0x81c   :  { %6237 = vmatmul.msk.f32.gmra.mxu2 %vm506_vm2, %v3297_v29  ;;  %3600 = vmatmul.f32.gmra.mxu0 %v6275_v0  ;;  %v6287_v29 = vld [vmem:[%s10555_s2 + $0xce8] sm:$0x3] }
 0x823   :  { %3547 = vmatmul.f32.gmra.mxu3 %v6278_v24  ;;  %3656 = vmatmul.f32.gmra.mxu1 %v6276_v52 }
 0x824   :  { %6290 = vmatmul.msk.f32.vlgmr.msra.gmra.mxu2 %vm506_vm2, %v6241_v46  ;;  %3603 = vmatmul.f32.gmra.mxu0 %v6279_v48 }
 0x82b   :  { %3550 = vmatmul.f32.gmra.mxu3 %v6282_v44  ;;  %3659 = vmatmul.f32.gmra.mxu1 %v6280_v17 }
 0x82c   :  { %6291 = vmatmul.msk.f32.gmra.mxu2 %vm506_vm2, %v6245_v3  ;;  %3606 = vmatmul.f32.gmra.mxu0 %v6283_v51 }
 0x833   :  { %3553 = vmatmul.f32.gmra.mxu3 %v6286_v12  ;;  %3662 = vmatmul.f32.gmra.mxu1 %v6284_v43 }
 0x834   :  { %6292 = vmatmul.msk.f32.gmra.mxu2 %vm506_vm2, %v6249_v55  ;;  %3609 = vmatmul.f32.gmra.mxu0 %v6287_v29 }
 0x83b   :  { %3665 = vmatmul.f32.gmra.mxu1 %v6288_v57 }
 0x83c   :  { %6293 = vmatmul.msk.f32.gmra.mxu2 %vm506_vm2, %v6253_v53 }
 0x83f   :  { %v3357_v45 = vpop.f32.mrf.mxu2 }
 0x840   :  { %v9447_v32 = vadd.f32 %v3357_v45, %v2970_v38 }
 0x844   :  { %6294 = vmatmul.msk.f32.gmra.mxu2 %vm506_vm2, %v6257_v8 }
 0x847   :  { %v3360_v20 = vpop.f32.mrf.mxu2  ;;  %v3521_v53 = vpop.f32.mrf.mxu3 }
 0x848   :  { %v9465_v60 = vadd.f32 %v3360_v20, %v2971_v23 }
 0x84a   :  { %v3574_v41 = vpop.f32.mrf.mxu0 }
 0x84b   :  { %v3575_v7 = vadd.f32 %v3574_v41, %v3518_v30 }
 0x84c   :  { %6295 = vmatmul.msk.f32.gmra.mxu2 %vm506_vm2, %v6261_v25 }
 0x84f   :  { %v9480_v39 = vpop.f32.mrf.mxu2 }
 0x851   :  { %v3630_v9 = vpop.f32.mrf.mxu1 }
 0x852   :  { %v3631_v18 = vadd.f32 %v3630_v9, %v3575_v7 }
 0x854   :  { %6296 = vmatmul.msk.f32.gmra.mxu2 %vm506_vm2, %v6265_v50 }
 0x855   :  { %v3577_v56 = vpop.f32.mrf.mxu0 }
 0x856   :  { %v3578_v14 = vadd.f32 %v3577_v56, %v3521_v53 }
 0x857   :  { %v9495_v58 = vpop.f32.mrf.mxu2 }
 0x85a   :  { %v3633_v1 = vpop.f32.mrf.mxu1 }
 0x85b   :  { %v3634_v13 = vadd.f32 %v3633_v1, %v3578_v14 }
 0x85c   :  { %6297 = vmatmul.msk.f32.gmra.mxu2 %vm506_vm2, %v6269_v59 }
 0x85d   :  { %v3580_v33 = vpop.f32.mrf.mxu0 }
 0x85e   :  { %v3524_v38 = vpop.f32.mrf.mxu3 }
 0x85f   :  { %v9510_v61 = vpop.f32.mrf.mxu2  ;;  %v3581_v50 = vadd.f32 %v3580_v33, %v3524_v38 }
 0x862   :  { %v3636_v45 = vpop.f32.mrf.mxu1 }
 0x863   :  { %v3637_v44 = vadd.f32 %v3636_v45, %v3581_v50 }
 0x864   :  { %6298 = vmatmul.msk.f32.gmra.mxu2 %vm506_vm2, %v6273_v31 }
 0x865   :  { %v3583_v8 = vpop.f32.mrf.mxu0 }
 0x867   :  { %v9525_v22 = vpop.f32.mrf.mxu2 }
 0x86c   :  { %6299 = vmatmul.msk.f32.gmra.mxu2 %vm506_vm2, %v6277_v49 }
 0x86e   :  { %v3527_v47 = vpop.f32.mrf.mxu3 }
 0x86f   :  { %v9534_v46 = vpop.f32.mrf.mxu2  ;;  %v3584_v43 = vadd.f32 %v3583_v8, %v3527_v47 }
 0x870   :  { %v3639_v23 = vpop.f32.mrf.mxu1 }
 0x871   :  { %v3586_v25 = vpop.f32.mrf.mxu0  ;;  %v3640_v29 = vadd.f32 %v3639_v23, %v3584_v43 }
 0x874   :  { %6300 = vmatmul.msk.f32.gmra.mxu2 %vm506_vm2, %v6281_v2 }
 0x876   :  { %v3530_v0 = vpop.f32.mrf.mxu3 }
 0x877   :  { %v9540_v35 = vpop.f32.mrf.mxu2  ;;  %v3587_v2 = vadd.f32 %v3586_v25, %v3530_v0 }
 0x878   :  { %v3642_v48 = vpop.f32.mrf.mxu1 }
 0x879   :  { %v3589_v17 = vpop.f32.mrf.mxu0  ;;  %v3643_v41 = vadd.f32 %v3642_v48, %v3587_v2 }
 0x87c   :  { %6301 = vmatmul.msk.f32.gmra.mxu2 %vm506_vm2, %v6285_v28 }
 0x87e   :  { %v3533_v51 = vpop.f32.mrf.mxu3 }
 0x87f   :  { %v9546_v3 = vpop.f32.mrf.mxu2  ;;  %v3590_v53 = vadd.f32 %v3589_v17, %v3533_v51 }
 0x880   :  { %v3645_v31 = vpop.f32.mrf.mxu1 }
 0x881   :  { %v3592_v28 = vpop.f32.mrf.mxu0  ;;  %v3646_v38 = vadd.f32 %v3645_v31, %v3590_v53 }
 0x884   :  { %6302 = vmatmul.msk.f32.gmra.mxu2 %vm506_vm2, %v6289_v63 }
 0x886   :  { %v3536_v63 = vpop.f32.mrf.mxu3 }
 0x887   :  { %v9552_v55 = vpop.f32.mrf.mxu2  ;;  %v3593_v47 = vadd.f32 %v3592_v28, %v3536_v63 }
 0x888   :  { %v3648_v30 = vpop.f32.mrf.mxu1 }
 0x889   :  { %v3595_v1 = vpop.f32.mrf.mxu0 }
 0x88e   :  { %v3539_v33 = vpop.f32.mrf.mxu3 }
 0x88f   :  { %v9554_v4 = vpop.f32.mrf.mxu2 }
 0x890   :  { %v3651_v7 = vpop.f32.mrf.mxu1 }
 0x896   :  { %v3542_v23 = vpop.f32.mrf.mxu3 }
 0x897   :  { %v9556_v19 = vpop.f32.mrf.mxu2 }
 0x898   :  { %v3654_v25 = vpop.f32.mrf.mxu1 }
 0x89e   :  { %v3545_v50 = vpop.f32.mrf.mxu3 }
 0x89f   :  { %v9558_v42 = vpop.f32.mrf.mxu2 }
 0x8a0   :  { %v3657_v17 = vpop.f32.mrf.mxu1 }
 0x8a6   :  { %v3548_v31 = vpop.f32.mrf.mxu3 }
 0x8a7   :  { %v3686_v54 = vpop.f32.mrf.mxu2 }
 0x8a8   :  { %v3687_v20 = vadd.f32 %v3686_v54, %v3631_v18  ;;  %v3649_v18 = vadd.f32 %v3648_v30, %v3593_v47  ;;  %v3598_v54 = vpop.f32.mrf.mxu0  ;;  %v3660_v2 = vpop.f32.mrf.mxu1  ;;  %v6317_v30 = vld [vmem:[%s10555_s2 + $0xd00] sm:$0xff] }
 0x8a9   :  { %3943 = vmatmul.f32.vlgmr.msrb.gmra.mxu0 %v6317_v30  ;;  %v6321_v47 = vld [vmem:[%s10555_s2 + $0xd20] sm:$0xff]  ;;  %v6328_v30 = vld [vmem:[%s10555_s2 + $0xd58] sm:$0xff] }
 0x8aa   :  { %6304 = vmatmul.msk.f32.vlgmr.msrb.gmra.mxu3 %vm506_vm2, %v3687_v20 }
 0x8ae   :  { %v3551_v53 = vpop.f32.mrf.mxu3 }
 0x8af   :  { %v3689_v24 = vpop.f32.mrf.mxu2 }
 0x8b0   :  { %v3690_v52 = vadd.f32 %v3689_v24, %v3634_v13  ;;  %v3596_v13 = vadd.f32 %v3595_v1, %v3539_v33  ;;  %v3601_v24 = vpop.f32.mrf.mxu0 }
 0x8b1   :  { %v3602_v43 = vadd.f32 %v3601_v24, %v3545_v50  ;;  %3946 = vmatmul.f32.gmra.mxu0 %v6321_v47  ;;  %v6326_v50 = vld [vmem:[%s10555_s2 + $0xd48] sm:$0xff]  ;;  %v6336_v47 = vld [vmem:[%s10555_s2 + $0xd98] sm:$0xff] }
 0x8b2   :  { %6305 = vmatmul.msk.f32.gmra.mxu3 %vm506_vm2, %v3690_v52  ;;  %v3652_v0 = vadd.f32 %v3651_v7, %v3596_v13 }
 0x8b7   :  { %v3692_v59 = vpop.f32.mrf.mxu2 }
 0x8b8   :  { %v3693_v12 = vadd.f32 %v3692_v59, %v3637_v44  ;;  %v3599_v44 = vadd.f32 %v3598_v54, %v3542_v23  ;;  %v6327_v54 = vld [vmem:[%s10555_s2 + $0xd50] sm:$0xff] }
 0x8ba   :  { %6306 = vmatmul.msk.f32.gmra.mxu3 %vm506_vm2, %v3693_v12  ;;  %v3655_v59 = vadd.f32 %v3654_v25, %v3599_v44 }
 0x8bf   :  { %v3695_v57 = vpop.f32.mrf.mxu2 }
 0x8c0   :  { %v3696_v49 = vadd.f32 %v3695_v57, %v3640_v29  ;;  %v3604_v29 = vpop.f32.mrf.mxu0  ;;  %v6319_v57 = vld [vmem:[%s10555_s2 + $0xd10] sm:$0xff] }
 0x8c1   :  { %4055 = vmatmul.f32.vlgmr.msrb.gmra.mxu2 %v6319_v57  ;;  %v6334_v57 = vld [vmem:[%s10555_s2 + $0xd88] sm:$0xff] }
 0x8c2   :  { %6307 = vmatmul.msk.f32.gmra.mxu3 %vm506_vm2, %v3696_v49  ;;  %v3658_v49 = vadd.f32 %v3657_v17, %v3602_v43  ;;  %v6335_v43 = vld [vmem:[%s10555_s2 + $0xd90] sm:$0xff] }
 0x8c7   :  { %v3698_v9 = vpop.f32.mrf.mxu2 }
 0x8c8   :  { %v3699_v56 = vadd.f32 %v3698_v9, %v3643_v41  ;;  %v3605_v41 = vadd.f32 %v3604_v29, %v3548_v31  ;;  %v6318_v9 = vld [vmem:[%s10555_s2 + $0xd08] sm:$0xff]  ;;  %v3607_v1 = vpop.f32.mrf.mxu0  ;;  %v6320_v31 = vld [vmem:[%s10555_s2 + $0xd18] sm:$0xff]  ;;  %v6333_v29 = vld [vmem:[%s10555_s2 + $0xd80] sm:$0xff] }
 0x8c9   :  { %3999 = vmatmul.f32.vlgmr.msrb.gmra.mxu1 %v6318_v9  ;;  %v6341_v9 = vld [vmem:[%s10555_s2 + $0xdc0] sm:$0xff] }
 0x8ca   :  { %6308 = vmatmul.msk.f32.gmra.mxu3 %vm506_vm2, %v3699_v56  ;;  %v6323_v56 = vld [vmem:[%s10555_s2 + $0xd30] sm:$0xff]  ;;  %v3661_v33 = vadd.f32 %v3660_v2, %v3605_v41  ;;  %v6324_v2 = vld [vmem:[%s10555_s2 + $0xd38] sm:$0xff] }
 0x8cb   :  { %4058 = vmatmul.f32.gmra.mxu2 %v6323_v56  ;;  %v6343_v41 = vld [vmem:[%s10555_s2 + $0xdd0] sm:$0xff]  ;;  %v6342_v56 = vld [vmem:[%s10555_s2 + $0xdc8] sm:$0xff] }
 0x8cf   :  { %v3701_v45 = vpop.f32.mrf.mxu2 }
 0x8d0   :  { %v3702_v8 = vadd.f32 %v3701_v45, %v3646_v38  ;;  %v3663_v45 = vpop.f32.mrf.mxu1 }
 0x8d2   :  { %6309 = vmatmul.msk.f32.gmra.mxu3 %vm506_vm2, %v3702_v8  ;;  %v3608_v8 = vadd.f32 %v3607_v1, %v3551_v53  ;;  %v6347_v53 = vld [vmem:[%s10555_s2 + $0xdf0] sm:$0xff]  ;;  %v6332_v1 = vld [vmem:[%s10555_s2 + $0xd78] sm:$0xff] }
 0x8d3   :  { %4061 = vmatmul.f32.gmra.mxu2 %v6327_v54 }
 0x8d4   :  { %v3664_v23 = vadd.f32 %v3663_v45, %v3608_v8  ;;  %v6351_v8 = vld [vmem:[%s10555_s2 + $0xe10] sm:$0xff] }
 0x8d7   :  { %v3704_v20 = vpop.f32.mrf.mxu2 }
 0x8d8   :  { %v3705_v14 = vadd.f32 %v3704_v20, %v3649_v18  ;;  %v6322_v18 = vld [vmem:[%s10555_s2 + $0xd28] sm:$0xff]  ;;  %v3554_v20 = vpop.f32.mrf.mxu3  ;;  %v3666_v24 = vpop.f32.mrf.mxu1 }
 0x8d9   :  { %4002 = vmatmul.f32.gmra.mxu1 %v6322_v18  ;;  %v6349_v18 = vld [vmem:[%s10555_s2 + $0xe00] sm:$0xff] }
 0x8da   :  { %6310 = vmatmul.msk.f32.gmra.mxu3 %vm506_vm2, %v3705_v14  ;;  %v3610_v14 = vpop.f32.mrf.mxu0 }
 0x8df   :  { %v3707_v52 = vpop.f32.mrf.mxu2 }
 0x8e0   :  { %v3708_v48 = vadd.f32 %v3707_v52, %v3652_v0  ;;  %v3611_v0 = vadd.f32 %v3610_v14, %v3554_v20  ;;  %v6325_v52 = vld [vmem:[%s10555_s2 + $0xd40] sm:$0xff]  ;;  %v6355_v20 = vld [vmem:[%s10555_s2 + $0xe30] sm:$0xff]  ;;  %v6340_v14 = vld [vmem:[%s10555_s2 + $0xdb8] sm:$0xff] }
 0x8e1   :  { %3949 = vmatmul.f32.gmra.mxu0 %v6325_v52  ;;  %4005 = vmatmul.f32.gmra.mxu1 %v6326_v50  ;;  %v6357_v52 = vld [vmem:[%s10555_s2 + $0xe40] sm:$0xff]  ;;  %v6358_v50 = vld [vmem:[%s10555_s2 + $0xe48] sm:$0xff] }
 0x8e2   :  { %6311 = vmatmul.msk.f32.gmra.mxu3 %vm506_vm2, %v3708_v48  ;;  %v6331_v48 = vld [vmem:[%s10555_s2 + $0xd70] sm:$0xff]  ;;  %v3667_v44 = vadd.f32 %v3666_v24, %v3611_v0  ;;  %v6344_v24 = vld [vmem:[%s10555_s2 + $0xdd8] sm:$0xff] }
 0x8e3   :  { %4064 = vmatmul.f32.gmra.mxu2 %v6331_v48  ;;  %v6359_v0 = vld [vmem:[%s10555_s2 + $0xe50] sm:$0xff] }
 0x8e7   :  { %v3710_v51 = vpop.f32.mrf.mxu2 }
 0x8e8   :  { %v3711_v12 = vadd.f32 %v3710_v51, %v3655_v59  ;;  %v6329_v51 = vld [vmem:[%s10555_s2 + $0xd60] sm:$0xff] }
 0x8e9   :  { %3952 = vmatmul.f32.gmra.mxu0 %v6329_v51  ;;  %v6362_v51 = vld [vmem:[%s10555_s2 + $0xe68] sm:$0xff] }
 0x8ea   :  { %6312 = vmatmul.msk.f32.gmra.mxu3 %vm506_vm2, %v3711_v12  ;;  %v6330_v12 = vld [vmem:[%s10555_s2 + $0xd68] sm:$0xff] }
 0x8eb   :  { %4008 = vmatmul.f32.gmra.mxu1 %v6330_v12  ;;  %4067 = vmatmul.f32.gmra.mxu2 %v6335_v43  ;;  %v6367_v43 = vld [vmem:[%s10555_s2 + $0xe90] sm:$0x3] }
 0x8ef   :  { %v3713_v28 = vpop.f32.mrf.mxu2 }
 0x8f0   :  { %v3714_v63 = vadd.f32 %v3713_v28, %v3658_v49  ;;  %v6339_v49 = vld [vmem:[%s10555_s2 + $0xdb0] sm:$0xff]  ;;  %v6337_v28 = vld [vmem:[%s10555_s2 + $0xda0] sm:$0xff] }
 0x8f1   :  { %3955 = vmatmul.f32.gmra.mxu0 %v6333_v29  ;;  %v6365_v29 = vld [vmem:[%s10555_s2 + $0xe80] sm:$0x3] }
 0x8f2   :  { %6313 = vmatmul.msk.f32.gmra.mxu3 %vm506_vm2, %v3714_v63  ;;  %v6338_v63 = vld [vmem:[%s10555_s2 + $0xda8] sm:$0xff] }
 0x8f3   :  { %4011 = vmatmul.f32.gmra.mxu1 %v6334_v57  ;;  %4070 = vmatmul.f32.gmra.mxu2 %v6339_v49  ;;  %v6366_v57 = vld [vmem:[%s10555_s2 + $0xe88] sm:$0x3] }
 0x8f7   :  { %v3716_v38 = vpop.f32.mrf.mxu2 }
 0x8f8   :  { %v3717_v7 = vadd.f32 %v3716_v38, %v3661_v33  ;;  %v6345_v33 = vld [vmem:[%s10555_s2 + $0xde0] sm:$0xff]  ;;  %v6346_v38 = vld [vmem:[%s10555_s2 + $0xde8] sm:$0xff] }
 0x8f9   :  { %3958 = vmatmul.f32.gmra.mxu0 %v6337_v28 }
 0x8fa   :  { %6314 = vmatmul.msk.f32.gmra.mxu3 %vm506_vm2, %v3717_v7 }
 0x8fb   :  { %4014 = vmatmul.f32.gmra.mxu1 %v6338_v63  ;;  %4073 = vmatmul.f32.gmra.mxu2 %v6343_v41  ;;  %v6382_v63 = vld [vmem:[%s10556_s3 + $0x40] sm:$0xff]  ;;  %v6360_v41 = vld [vmem:[%s10555_s2 + $0xe58] sm:$0xff] }
 0x8fc   :  { %4207 = vmatpush.msra.mxu0 %v6382_v63 }
 0x8ff   :  { %v3719_v13 = vpop.f32.mrf.mxu2 }
 0x900   :  { %v3720_v25 = vadd.f32 %v3719_v13, %v3664_v23  ;;  %v6353_v13 = vld [vmem:[%s10555_s2 + $0xe20] sm:$0xff] }
 0x901   :  { %3961 = vmatmul.f32.gmra.mxu0 %v6341_v9  ;;  %v6364_v9 = vld [vmem:[%s10555_s2 + $0xe78] sm:$0xff] }
 0x902   :  { %6315 = vmatmul.msk.f32.gmra.mxu3 %vm506_vm2, %v3720_v25 }
 0x903   :  { %4017 = vmatmul.f32.gmra.mxu1 %v6342_v56  ;;  %4076 = vmatmul.f32.gmra.mxu2 %v6347_v53  ;;  %v6368_v53 = vld [vmem:[%s10555_s2 + $0xe98] sm:$0x3] }
 0x907   :  { %v3722_v17 = vpop.f32.mrf.mxu2 }
 0x908   :  { %v3723_v59 = vadd.f32 %v3722_v17, %v3667_v44  ;;  %v6363_v44 = vld [vmem:[%s10555_s2 + $0xe70] sm:$0xff]  ;;  %v6348_v17 = vld [vmem:[%s10555_s2 + $0xdf8] sm:$0xff] }
 0x909   :  { %3964 = vmatmul.f32.gmra.mxu0 %v6345_v33 }
 0x90a   :  { %6316 = vmatmul.msk.f32.gmra.mxu3 %vm506_vm2, %v3723_v59  ;;  %v6361_v59 = vld [vmem:[%s10555_s2 + $0xe60] sm:$0xff] }
 0x90b   :  { %4020 = vmatmul.f32.gmra.mxu1 %v6346_v38  ;;  %4079 = vmatmul.f32.gmra.mxu2 %v6351_v8 }
 0x911   :  { %3967 = vmatmul.f32.gmra.mxu0 %v6349_v18 }
 0x912   :  { %6369 = vmatmul.msk.f32.vlgmr.msra.gmra.mxu3 %vm506_vm2, %v6320_v31  ;;  %v6352_v31 = vld [vmem:[%s10555_s2 + $0xe18] sm:$0xff] }
 0x913   :  { %4082 = vmatmul.f32.gmra.mxu2 %v6355_v20 }
 0x919   :  { %3970 = vmatmul.f32.gmra.mxu0 %v6353_v13 }
 0x91a   :  { %6370 = vmatmul.msk.f32.gmra.mxu3 %vm506_vm2, %v6324_v2  ;;  %v6356_v2 = vld [vmem:[%s10555_s2 + $0xe38] sm:$0xff] }
 0x91b   :  { %4085 = vmatmul.f32.gmra.mxu2 %v6359_v0 }
 0x921   :  { %3973 = vmatmul.f32.gmra.mxu0 %v6357_v52 }
 0x922   :  { %6371 = vmatmul.msk.f32.gmra.mxu3 %vm506_vm2, %v6328_v30 }
 0x923   :  { %4088 = vmatmul.f32.gmra.mxu2 %v6363_v44 }
 0x929   :  { %3976 = vmatmul.f32.gmra.mxu0 %v6361_v59 }
 0x92a   :  { %6372 = vmatmul.msk.f32.gmra.mxu3 %vm506_vm2, %v6332_v1  ;;  %v3944_v1 = vpop.f32.mrf.mxu0 }
 0x92b   :  { %4091 = vmatmul.f32.gmra.mxu2 %v6367_v43 }
 0x92d   :  { %v3783_v45 = vpop.f32.mrf.mxu3 }
 0x92e   :  { %v9662_v7 = vadd.f32 %v3783_v45, %v9447_v32  ;;  %v6350_v32 = vld [vmem:[%s10555_s2 + $0xe08] sm:$0xff] }
 0x92f   :  { %4023 = vmatmul.f32.gmra.mxu1 %v6350_v32 }
 0x931   :  { %3979 = vmatmul.f32.gmra.mxu0 %v6365_v29 }
 0x932   :  { %6373 = vmatmul.msk.f32.gmra.mxu3 %vm506_vm2, %v6336_v47  ;;  %v3947_v8 = vpop.f32.mrf.mxu0 }
 0x935   :  { %v3786_v54 = vpop.f32.mrf.mxu3 }
 0x936   :  { %v9678_v23 = vadd.f32 %v3786_v54, %v9465_v60  ;;  %v6354_v60 = vld [vmem:[%s10555_s2 + $0xe28] sm:$0xff] }
 0x937   :  { %4026 = vmatmul.f32.gmra.mxu1 %v6354_v60 }
 0x93a   :  { %6374 = vmatmul.msk.f32.gmra.mxu3 %vm506_vm2, %v6340_v14 }
 0x93d   :  { %v9693_v25 = vpop.f32.mrf.mxu3 }
 0x93f   :  { %4029 = vmatmul.f32.gmra.mxu1 %v6358_v50 }
 0x942   :  { %6375 = vmatmul.msk.f32.gmra.mxu3 %vm506_vm2, %v6344_v24 }
 0x944   :  { %v4056_v45 = vpop.f32.mrf.mxu2 }
 0x945   :  { %v9708_v48 = vpop.f32.mrf.mxu3 }
 0x946   :  { %v4000_v33 = vpop.f32.mrf.mxu1 }
 0x947   :  { %4032 = vmatmul.f32.gmra.mxu1 %v6362_v51  ;;  %v4001_v0 = vadd.f32 %v4000_v33, %v3944_v1 }
 0x949   :  { %v4057_v50 = vadd.f32 %v4056_v45, %v4001_v0 }
 0x94a   :  { %6376 = vmatmul.msk.f32.gmra.mxu3 %vm506_vm2, %v6348_v17 }
 0x94d   :  { %v9723_v12 = vpop.f32.mrf.mxu3 }
 0x94e   :  { %v4059_v32 = vpop.f32.mrf.mxu2 }
 0x94f   :  { %4035 = vmatmul.f32.gmra.mxu1 %v6366_v57 }
 0x952   :  { %6377 = vmatmul.msk.f32.gmra.mxu3 %vm506_vm2, %v6352_v31 }
 0x955   :  { %v9738_v49 = vpop.f32.mrf.mxu3 }
 0x956   :  { %v4003_v18 = vpop.f32.mrf.mxu1  ;;  %v4062_v13 = vpop.f32.mrf.mxu2 }
 0x957   :  { %v4004_v51 = vadd.f32 %v4003_v18, %v3947_v8 }
 0x959   :  { %v4060_v43 = vadd.f32 %v4059_v32, %v4004_v51 }
 0x95a   :  { %6378 = vmatmul.msk.f32.gmra.mxu3 %vm506_vm2, %v6356_v2 }
 0x95d   :  { %v9744_v28 = vpop.f32.mrf.mxu3 }
 0x95e   :  { %v3950_v20 = vpop.f32.mrf.mxu0  ;;  %v4006_v14 = vpop.f32.mrf.mxu1 }
 0x95f   :  { %v4007_v63 = vadd.f32 %v4006_v14, %v3950_v20 }
 0x962   :  { %6379 = vmatmul.msk.f32.gmra.mxu3 %vm506_vm2, %v6360_v41 }
 0x965   :  { %v9753_v30 = vpop.f32.mrf.mxu3 }
 0x966   :  { %v3953_v24 = vpop.f32.mrf.mxu0  ;;  %v4065_v17 = vpop.f32.mrf.mxu2 }
 0x968   :  { %v4009_v52 = vpop.f32.mrf.mxu1 }
 0x969   :  { %v4010_v0 = vadd.f32 %v4009_v52, %v3953_v24 }
 0x96a   :  { %6380 = vmatmul.msk.f32.gmra.mxu3 %vm506_vm2, %v6364_v9  ;;  %v4063_v9 = vadd.f32 %v4062_v13, %v4007_v63 }
 0x96b   :  { %v4066_v18 = vadd.f32 %v4065_v17, %v4010_v0 }
 0x96d   :  { %v9759_v56 = vpop.f32.mrf.mxu3 }
 0x96e   :  { %v3956_v31 = vpop.f32.mrf.mxu0  ;;  %v4068_v41 = vpop.f32.mrf.mxu2 }
 0x970   :  { %v4012_v29 = vpop.f32.mrf.mxu1 }
 0x972   :  { %6381 = vmatmul.msk.f32.gmra.mxu3 %vm506_vm2, %v6368_v53 }
 0x975   :  { %v9765_v38 = vpop.f32.mrf.mxu3 }
 0x976   :  { %v3959_v53 = vpop.f32.mrf.mxu0  ;;  %v4071_v8 = vpop.f32.mrf.mxu2 }
 0x978   :  { %v4015_v33 = vpop.f32.mrf.mxu1 }
 0x97d   :  { %v9767_v47 = vpop.f32.mrf.mxu3 }
 0x97e   :  { %v4074_v14 = vpop.f32.mrf.mxu2 }
 0x980   :  { %v4018_v51 = vpop.f32.mrf.mxu1 }
 0x985   :  { %v9769_v54 = vpop.f32.mrf.mxu3 }
 0x988   :  { %v4021_v24 = vpop.f32.mrf.mxu1 }
 0x98d   :  { %v9771_v60 = vpop.f32.mrf.mxu3 }
 0x995   :  { %v4112_v44 = vpop.f32.mrf.mxu3 }
 0x996   :  { %v4113_v59 = vadd.f32 %v4112_v44, %v4057_v50  ;;  %v4013_v44 = vadd.f32 %v4012_v29, %v3956_v31 }
 0x998   :  { %6383 = vmatmul.msk.f32.vlgmr.msra.gmra.mxu0 %vm506_vm2, %v4113_v59  ;;  %v3962_v59 = vpop.f32.mrf.mxu0  ;;  %v4069_v20 = vadd.f32 %v4068_v41, %v4013_v44 }
 0x99d   :  { %v4115_v57 = vpop.f32.mrf.mxu3 }
 0x99e   :  { %v4116_v2 = vadd.f32 %v4115_v57, %v4060_v43  ;;  %v4016_v57 = vadd.f32 %v4015_v33, %v3959_v53 }
 0x9a0   :  { %6384 = vmatmul.msk.f32.gmra.mxu0 %vm506_vm2, %v4116_v2  ;;  %v3965_v2 = vpop.f32.mrf.mxu0  ;;  %v4072_v52 = vadd.f32 %v4071_v8, %v4016_v57 }
 0x9a5   :  { %v4118_v1 = vpop.f32.mrf.mxu3 }
 0x9a6   :  { %v4119_v45 = vadd.f32 %v4118_v1, %v4063_v9  ;;  %v4077_v9 = vpop.f32.mrf.mxu2  ;;  %v4019_v1 = vadd.f32 %v4018_v51, %v3962_v59 }
 0x9a8   :  { %6385 = vmatmul.msk.f32.gmra.mxu0 %vm506_vm2, %v4119_v45  ;;  %v4075_v31 = vadd.f32 %v4074_v14, %v4019_v1  ;;  %v3968_v29 = vpop.f32.mrf.mxu0 }
 0x9ac   :  { %v4024_v45 = vpop.f32.mrf.mxu1 }
 0x9ad   :  { %v4121_v50 = vpop.f32.mrf.mxu3 }
 0x9ae   :  { %v4122_v32 = vadd.f32 %v4121_v50, %v4066_v18  ;;  %v4022_v18 = vadd.f32 %v4021_v24, %v3965_v2  ;;  %v4080_v50 = vpop.f32.mrf.mxu2 }
 0x9b0   :  { %6386 = vmatmul.msk.f32.gmra.mxu0 %vm506_vm2, %v4122_v32  ;;  %v4078_v53 = vadd.f32 %v4077_v9, %v4022_v18  ;;  %v3971_v33 = vpop.f32.mrf.mxu0 }
 0x9b4   :  { %v4027_v44 = vpop.f32.mrf.mxu1 }
 0x9b5   :  { %v4124_v43 = vpop.f32.mrf.mxu3 }
 0x9b6   :  { %v4125_v13 = vadd.f32 %v4124_v43, %v4069_v20  ;;  %v4025_v20 = vadd.f32 %v4024_v45, %v3968_v29  ;;  %v4083_v59 = vpop.f32.mrf.mxu2 }
 0x9b8   :  { %6387 = vmatmul.msk.f32.gmra.mxu0 %vm506_vm2, %v4125_v13  ;;  %v4081_v51 = vadd.f32 %v4080_v50, %v4025_v20  ;;  %v4028_v13 = vadd.f32 %v4027_v44, %v3971_v33  ;;  %v3974_v57 = vpop.f32.mrf.mxu0 }
 0x9ba   :  { %v4084_v2 = vadd.f32 %v4083_v59, %v4028_v13 }
 0x9bd   :  { %v4127_v63 = vpop.f32.mrf.mxu3 }
 0x9be   :  { %v4128_v17 = vadd.f32 %v4127_v63, %v4072_v52  ;;  %v4030_v52 = vpop.f32.mrf.mxu1  ;;  %v4086_v24 = vpop.f32.mrf.mxu2 }
 0x9c0   :  { %6388 = vmatmul.msk.f32.gmra.mxu0 %vm506_vm2, %v4128_v17  ;;  %v4031_v17 = vadd.f32 %v4030_v52, %v3974_v57  ;;  %v3977_v1 = vpop.f32.mrf.mxu0 }
 0x9c2   :  { %v4087_v29 = vadd.f32 %v4086_v24, %v4031_v17  ;;  %v10849_v24 = vld [vmem:[#allocation26_spill] sm:$0xff] }
 0x9c5   :  { %v4130_v0 = vpop.f32.mrf.mxu3 }
 0x9c6   :  { %v4131_v41 = vadd.f32 %v4130_v0, %v4075_v31  ;;  %v4033_v31 = vpop.f32.mrf.mxu1  ;;  %v4089_v0 = vpop.f32.mrf.mxu2 }
 0x9c7   :  { %v4034_v18 = vadd.f32 %v4033_v31, %v3977_v1  ;;  %v10851_v31 = vld [vmem:[#allocation30_spill] sm:$0xff] }
 0x9c8   :  { %6389 = vmatmul.msk.f32.gmra.mxu0 %vm506_vm2, %v4131_v41 }
 0x9c9   :  { %v4090_v50 = vadd.f32 %v4089_v0, %v4034_v18  ;;  %v10853_v18 = vld [vmem:[#allocation32_spill] sm:$0xff] }
 0x9cd   :  { %v4133_v32 = vpop.f32.mrf.mxu3 }
 0x9ce   :  { %v4134_v8 = vadd.f32 %v4133_v32, %v4078_v53  ;;  %v3980_v53 = vpop.f32.mrf.mxu0  ;;  %v4036_v33 = vpop.f32.mrf.mxu1 }
 0x9cf   :  { %v4092_v20 = vpop.f32.mrf.mxu2 }
 0x9d0   :  { %6390 = vmatmul.msk.f32.gmra.mxu0 %vm506_vm2, %v4134_v8  ;;  %v4037_v8 = vadd.f32 %v4036_v33, %v3980_v53 }
 0x9d2   :  { %v4093_v59 = vadd.f32 %v4092_v20, %v4037_v8 }
 0x9d5   :  { %v4136_v43 = vpop.f32.mrf.mxu3 }
 0x9d6   :  { %v4137_v14 = vadd.f32 %v4136_v43, %v4081_v51 }
 0x9d8   :  { %6391 = vmatmul.msk.f32.gmra.mxu0 %vm506_vm2, %v4137_v14 }
 0x9dd   :  { %v4139_v63 = vpop.f32.mrf.mxu3 }
 0x9de   :  { %v4140_v9 = vadd.f32 %v4139_v63, %v4084_v2  ;;  %v2546_v63 = vadd.f32 %v9037_v40, %v10849_v24  ;;  %v10857_v24 = vld [vmem:[#allocation36_spill] sm:$0xff] }
 0x9e0   :  { %6392 = vmatmul.msk.f32.gmra.mxu0 %vm506_vm2, %v4140_v9  ;;  %v10850_v9 = vld [vmem:[#allocation29_spill] sm:$0xff]  ;;  %v2972_v1 = vadd.f32 %v9258_v26, %v2546_v63  ;;  %v10855_v26 = vld [vmem:[#allocation34_spill] sm:$0xff]  ;;  %v10858_v63 = vld [vmem:[#allocation27_spill] sm:$0xff] }
 0x9e1   :  { %v2547_v17 = vadd.f32 %v9052_v10, %v10850_v9  ;;  %v2551_v9 = vadd.f32 %v10858_v63, %v10857_v24 }
 0x9e3   :  { %v2973_v0 = vadd.f32 %v9270_v16, %v2547_v17 }
 0x9e5   :  { %v4142_v45 = vpop.f32.mrf.mxu3 }
 0x9e6   :  { %v4143_v41 = vadd.f32 %v4142_v45, %v4087_v29  ;;  %v10852_v29 = vld [vmem:[#allocation45_spill] sm:$0xff] }
 0x9e7   :  { %v2548_v45 = vadd.f32 %v10852_v29, %v10851_v31 }
 0x9e8   :  { %6393 = vmatmul.msk.f32.gmra.mxu0 %vm506_vm2, %v4143_v41  ;;  %v3398_v41 = vadd.f32 %v9480_v39, %v2972_v1 }
 0x9e9   :  { %v2974_v33 = vadd.f32 %v9282_v21, %v2548_v45 }
 0x9ea   :  { %v3824_v40 = vadd.f32 %v9693_v25, %v3398_v41 }
 0x9ed   :  { %v4145_v32 = vpop.f32.mrf.mxu3 }
 0x9ee   :  { %v4146_v44 = vadd.f32 %v4145_v32, %v4090_v50  ;;  %v10854_v50 = vld [vmem:[#allocation54_spill] sm:$0xff]  ;;  %v3399_v32 = vadd.f32 %v9495_v58, %v2973_v0 }
 0x9ef   :  { %v2549_v53 = vadd.f32 %v10854_v50, %v10853_v18  ;;  %v2977_v18 = vadd.f32 %v9309_v15, %v2551_v9 }
 0x9f0   :  { %6394 = vmatmul.msk.f32.gmra.mxu0 %vm506_vm2, %v4146_v44  ;;  %v10856_v44 = vld [vmem:[#allocation25_spill] sm:$0xff]  ;;  %v3825_v21 = vadd.f32 %v9708_v48, %v3399_v32 }
 0x9f1   :  { %v2550_v8 = vadd.f32 %v10856_v44, %v10855_v26  ;;  %v2975_v20 = vadd.f32 %v9294_v37, %v2549_v53  ;;  %v3403_v26 = vadd.f32 %v9540_v35, %v2977_v18 }
 0x9f3   :  { %v2976_v58 = vadd.f32 %v9303_v27, %v2550_v8 }
 0x9f5   :  { %v4148_v51 = vpop.f32.mrf.mxu3 }
 0x9f6   :  { %v4149_v43 = vadd.f32 %v4148_v51, %v4093_v59  ;;  %v3400_v59 = vadd.f32 %v9510_v61, %v2974_v33 }
 0x9f8   :  { %6395 = vmatmul.msk.f32.gmra.mxu0 %vm506_vm2, %v4149_v43  ;;  %v3826_v25 = vadd.f32 %v9723_v12, %v3400_v59  ;;  %v3829_v59 = vadd.f32 %v9753_v30, %v3403_v26 }
 0xa15   :  { %v4209_v14 = vpop.f32.mrf.mxu0 }
 0xa16   :  { %v9807_v16 = vadd.f32 %v4209_v14, %v9662_v7  ;;  %v3402_v7 = vadd.f32 %v9534_v46, %v2976_v58 }
 0xa18   :  { %v4295_v61 = vmul.f32 %v9807_v16, %v9807_v16  ;;  %v3828_v14 = vadd.f32 %v9744_v28, %v3402_v7  ;;  %v10860_v7 = vld [vmem:[#allocation28_spill] sm:$0xff] }
 0xa1d   :  { %v4212_v13 = vpop.f32.mrf.mxu0 }
 0xa1e   :  { %v9801_v10 = vadd.f32 %v4212_v13, %v9678_v23  ;;  %v3401_v23 = vadd.f32 %v9525_v22, %v2975_v20  ;;  %v4262_v13 = vsel %vm4261_vm3, %v9807_v16, 0.0 }
 0xa20   :  { %v4296_v37 = vmul.f32 %v9801_v10, %v9801_v10  ;;  %v3827_v48 = vadd.f32 %v9738_v49, %v3401_v23  ;;  %v4263_v27 = vsel %vm4261_vm3, %v9801_v10, 0.0 }
 0xa21   :  { %v4264_v17 = vadd.f32 %v4263_v27, %v4262_v13 }
 0xa22   :  { %v4309_v46 = vsel %vm4261_vm3, %v4296_v37, 0.0  ;;  %v10859_v37 = vld [vmem:[#allocation50_spill] sm:$0xff] }
 0xa25   :  { %v4215_v57 = vpop.f32.mrf.mxu0 }
 0xa26   :  { %v9811_v51 = vadd.f32 %v4215_v57, %v3824_v40 }
 0xa28   :  { %v4297_v22 = vmul.f32 %v9811_v51, %v9811_v51  ;;  %v4265_v57 = vsel %vm4261_vm3, %v9811_v51, 0.0 }
 0xa29   :  { %v4266_v41 = vadd.f32 %v4265_v57, %v4264_v17 }
 0xa2a   :  { %v4311_v1 = vsel %vm4261_vm3, %v4297_v22, 0.0 }
 0xa2d   :  { %v4218_v52 = vpop.f32.mrf.mxu0 }
 0xa2e   :  { %v9818_v43 = vadd.f32 %v4218_v52, %v3825_v21 }
 0xa30   :  { %v4298_v49 = vmul.f32 %v9818_v43, %v9818_v43  ;;  %v4267_v31 = vsel %vm4261_vm3, %v9818_v43, 0.0 }
 0xa31   :  { %v4268_v40 = vadd.f32 %v4267_v31, %v4266_v41 }
 0xa32   :  { %v4313_v50 = vsel %vm4261_vm3, %v4298_v49, 0.0 }
 0xa35   :  { %v4221_v2 = vpop.f32.mrf.mxu0 }
 0xa36   :  { %v9828_v12 = vadd.f32 %v4221_v2, %v3826_v25  ;;  %v4308_v2 = vsel %vm4261_vm3, %v4295_v61, 0.0  ;;  %v2552_v61 = vadd.f32 %v10860_v7, %v10859_v37 }
 0xa37   :  { %v4310_v0 = vadd.f32 %v4309_v46, %v4308_v2 }
 0xa38   :  { %v4299_v29 = vmul.f32 %v9828_v12, %v9828_v12  ;;  %v4269_v53 = vsel %vm4261_vm3, %v9828_v12, 0.0  ;;  %v2978_v13 = vadd.f32 %v9315_v11, %v2552_v61 }
 0xa39   :  { %v4312_v32 = vadd.f32 %v4311_v1, %v4310_v0  ;;  %v10862_v1 = vld [vmem:[#allocation31_spill] sm:$0xff] }
 0xa3a   :  { %v4315_v44 = vsel %vm4261_vm3, %v4299_v29, 0.0  ;;  %v3404_v24 = vadd.f32 %v9546_v3, %v2978_v13  ;;  %v10867_v13 = vld [vmem:[#allocation38_spill] sm:$0xff] }
 0xa3b   :  { %v4314_v20 = vadd.f32 %v4313_v50, %v4312_v32  ;;  %v10863_v32 = vld [vmem:[#allocation55_spill] sm:$0xff] }
 0xa3c   :  { %v3830_v2 = vadd.f32 %v9759_v56, %v3404_v24 }
 0xa3d   :  { %v4224_v39 = vpop.f32.mrf.mxu0  ;;  %v4316_v23 = vadd.f32 %v4315_v44, %v4314_v20 }
 0xa3e   :  { %v9838_v52 = vadd.f32 %v4224_v39, %v3827_v48  ;;  %v4270_v39 = vadd.f32 %v4269_v53, %v4268_v40  ;;  %v10864_v40 = vld [vmem:[#allocation33_spill] sm:$0xff] }
 0xa3f   :  { %v2554_v26 = vadd.f32 %v10864_v40, %v10863_v32 }
 0xa40   :  { %v4300_v33 = vmul.f32 %v9838_v52, %v9838_v52  ;;  %v4271_v8 = vsel %vm4261_vm3, %v9838_v52, 0.0 }
 0xa41   :  { %v4272_v25 = vadd.f32 %v4271_v8, %v4270_v39 }
 0xa42   :  { %v4317_v21 = vsel %vm4261_vm3, %v4300_v33, 0.0 }
 0xa43   :  { %v4318_v22 = vadd.f32 %v4317_v21, %v4316_v23  ;;  %v10866_v23 = vld [vmem:[#allocation35_spill] sm:$0xff] }
 0xa45   :  { %v4227_v28 = vpop.f32.mrf.mxu0 }
 0xa46   :  { %v9848_v45 = vadd.f32 %v4227_v28, %v3828_v14  ;;  %v10861_v28 = vld [vmem:[#allocation53_spill] sm:$0xff] }
 0xa47   :  { %v2553_v31 = vadd.f32 %v10862_v1, %v10861_v28 }
 0xa48   :  { %v4301_v15 = vmul.f32 %v9848_v45, %v9848_v45  ;;  %v4273_v58 = vsel %vm4261_vm3, %v9848_v45, 0.0 }
 0xa49   :  { %v4274_v14 = vadd.f32 %v4273_v58, %v4272_v25  ;;  %v2979_v29 = vadd.f32 %v9321_v5, %v2553_v31  ;;  %v2980_v5 = vadd.f32 %v9327_v62, %v2554_v26  ;;  %v10865_v58 = vld [vmem:[#allocation37_spill] sm:$0xff] }
 0xa4a   :  { %v4319_v48 = vsel %vm4261_vm3, %v4301_v15, 0.0  ;;  %v2555_v25 = vadd.f32 %v10866_v23, %v10865_v58 }
 0xa4b   :  { %v4320_v57 = vadd.f32 %v4319_v48, %v4318_v22  ;;  %v3405_v18 = vadd.f32 %v9552_v55, %v2979_v29  ;;  %v3406_v20 = vadd.f32 %v9554_v4, %v2980_v5 }
 0xa4c   :  { %v2981_v62 = vadd.f32 %v9329_v34, %v2555_v25 }
 0xa4d   :  { %v4230_v35 = vpop.f32.mrf.mxu0  ;;  %v3831_v53 = vadd.f32 %v9765_v38, %v3405_v18 }
 0xa4e   :  { %v9869_v27 = vadd.f32 %v4230_v35, %v3829_v59  ;;  %v3832_v59 = vadd.f32 %v9767_v47, %v3406_v20  ;;  %v3407_v61 = vadd.f32 %v9556_v19, %v2981_v62 }
 0xa50   :  { %v4275_v30 = vsel %vm4261_vm3, %v9869_v27, 0.0  ;;  %v4302_v46 = vmul.f32 %v9869_v27, %v9869_v27  ;;  %v3833_v22 = vadd.f32 %v9769_v54, %v3407_v61 }
 0xa51   :  { %v4276_v49 = vadd.f32 %v4275_v30, %v4274_v14  ;;  %v2556_v30 = vadd.f32 %v9127_v36, %v10867_v13 }
 0xa52   :  { %v4321_v63 = vsel %vm4261_vm3, %v4302_v46, 0.0 }
 0xa53   :  { %v4322_v9 = vadd.f32 %v4321_v63, %v4320_v57  ;;  %v2982_v34 = vadd.f32 %v9331_v6, %v2556_v30 }
 0xa55   :  { %v4233_v17 = vpop.f32.mrf.mxu0  ;;  %v3408_v63 = vadd.f32 %v9558_v42, %v2982_v34 }
 0xa56   :  { %v9881_v11 = vadd.f32 %v4233_v17, %v3830_v2 }
 0xa57   :  { %v3834_v2 = vadd.f32 %v9771_v60, %v3408_v63 }
 0xa58   :  { %v4277_v0 = vsel %vm4261_vm3, %v9881_v11, 0.0  ;;  %v4303_v41 = vmul.f32 %v9881_v11, %v9881_v11 }
 0xa59   :  { %v4278_v3 = vadd.f32 %v4277_v0, %v4276_v49 }
 0xa5a   :  { %v4323_v50 = vsel %vm4261_vm3, %v4303_v41, 0.0 }
 0xa5b   :  { %v4324_v56 = vadd.f32 %v4323_v50, %v4322_v9 }
 0xa5d   :  { %v4236_v33 = vpop.f32.mrf.mxu0 }
 0xa5e   :  { %v9893_v44 = vadd.f32 %v4236_v33, %v3831_v53 }
 0xa60   :  { %v4279_v8 = vsel %vm4261_vm3, %v9893_v44, 0.0  ;;  %v4304_v15 = vmul.f32 %v9893_v44, %v9893_v44 }
 0xa61   :  { %v4280_v55 = vadd.f32 %v4279_v8, %v4278_v3 }
 0xa62   :  { %v4325_v39 = vsel %vm4261_vm3, %v4304_v15, 0.0 }
 0xa63   :  { %v4326_v38 = vadd.f32 %v4325_v39, %v4324_v56 }
 0xa65   :  { %v4239_v21 = vpop.f32.mrf.mxu0 }
 0xa66   :  { %v9905_v35 = vadd.f32 %v4239_v21, %v3832_v59 }
 0xa68   :  { %v4281_v37 = vsel %vm4261_vm3, %v9905_v35, 0.0  ;;  %v4305_v7 = vmul.f32 %v9905_v35, %v9905_v35 }
 0xa69   :  { %v4282_v4 = vadd.f32 %v4281_v37, %v4280_v55 }
 0xa6a   :  { %v4327_v48 = vsel %vm4261_vm3, %v4305_v7, 0.0 }
 0xa6b   :  { %v4328_v47 = vadd.f32 %v4327_v48, %v4326_v38 }
 0xa6d   :  { %v4242_v14 = vpop.f32.mrf.mxu0 }
 0xa6e   :  { %v4259_v46 = vadd.f32 %v4242_v14, %v3833_v22 }
 0xa70   :  { %v4283_v57 = vsel %vm4261_vm3, %v4259_v46, 0.0  ;;  %v4306_v49 = vmul.f32 %v4259_v46, %v4259_v46 }
 0xa71   :  { %v4284_v24 = vadd.f32 %v4283_v57, %v4282_v4 }
 0xa72   :  { %v4329_v19 = vsel %vm4261_vm3, %v4306_v49, 0.0 }
 0xa73   :  { %v4330_v9 = vadd.f32 %v4329_v19, %v4328_v47 }
 0xa75   :  { %v4245_v17 = vpop.f32.mrf.mxu0 }
 0xa76   :  { %v4260_v54 = vadd.f32 %v4245_v17, %v3834_v2 }
 0xa78   :  { %v4286_v28 = vsel %vm4285_vm4, %v4260_v54, 0.0  ;;  %v4307_v36 = vmul.f32 %v4260_v54, %v4260_v54 }
 0xa79   :  { %v4287_v1 = vadd.f32 %v4286_v28, %v4284_v24 }
 0xa7a   :  { %v4331_v6 = vsel %vm4285_vm4, %v4307_v36, 0.0 }
 0xa7b   :  { %v4288_v31 = vrot.slane %v4287_v1, 4  ;;  %v4332_v29 = vadd.f32 %v4331_v6, %v4330_v9 }
 0xa7d   :  { %v4289_v0 = vadd.f32 %v4288_v31, %v4287_v1  ;;  %v4333_v41 = vrot.slane %v4332_v29, 4 }
 0xa7f   :  { %v4290_v3 = vrot.slane %v4289_v0, 2  ;;  %v4334_v42 = vadd.f32 %v4333_v41, %v4332_v29 }
 0xa81   :  { %v4291_v18 = vadd.f32 %v4290_v3, %v4289_v0  ;;  %v4335_v50 = vrot.slane %v4334_v42, 2 }
 0xa83   :  { %v4292_v56 = vrot.slane %v4291_v18, 1  ;;  %v4336_v53 = vadd.f32 %v4335_v50, %v4334_v42 }
 0xa85   :  { %v4293_v60 = vadd.f32 %v4292_v56, %v4291_v18  ;;  %v4337_v33 = vrot.slane %v4336_v53, 1 }
 0xa87   :  { %v4294_v32 = vmul.f32 0.010204081, %v4293_v60  ;;  %v4338_v40 = vadd.f32 %v4337_v33, %v4336_v53 }
 0xa89   :  { %v4339_v26 = vmul.f32 0.010204081, %v4338_v40  ;;  %v4340_v5 = vmul.f32 %v4294_v32, %v4294_v32  ;;  %v4354_v8 = vsub.f32 %v4260_v54, %v4294_v32  ;;  %v4353_v15 = vsub.f32 %v4259_v46, %v4294_v32 }
 0xa8a   :  { %v4352_v55 = vsub.f32 %v9905_v35, %v4294_v32  ;;  %v4351_v20 = vsub.f32 %v9893_v44, %v4294_v32  ;;  %v4350_v39 = vsub.f32 %v9881_v11, %v4294_v32  ;;  %v4349_v38 = vsub.f32 %v9869_v27, %v4294_v32  ;;  %v9932_v11 = vld [vmem:[%s10562_s9] sm:$0x3f] }
 0xa8b   :  { %v4341_v59 = vsub.f32 %v4339_v26, %v4340_v5  ;;  %v4348_v21 = vsub.f32 %v9848_v45, %v4294_v32  ;;  %v9935_v27 = vperm.slane %v9932_v11, 1  ;;  %v9938_v44 = vperm.slane %v9932_v11, 2 }
 0xa8c   :  { %v4347_v35 = vsub.f32 %v9838_v52, %v4294_v32  ;;  %v4346_v19 = vsub.f32 %v9828_v12, %v4294_v32  ;;  %v4345_v9 = vsub.f32 %v9818_v43, %v4294_v32  ;;  %v4344_v28 = vsub.f32 %v9811_v51, %v4294_v32 }
 0xa8d   :  { %v4355_v58 = vadd.f32 1e-05, %v4341_v59  ;;  %v4343_v6 = vsub.f32 %v9801_v10, %v4294_v32  ;;  %v4342_v31 = vsub.f32 %v9807_v16, %v4294_v32 }
 0xa8f   :  { %6599 = vrsqrt.f32 %v4355_v58  ;;  %vm4362_vm6 = vweird.f32 %v4355_v58 }
 0xa95   :  { %v6600_v23 = vpop.eup %6599 }
 0xa96   :  { %v4357_v25 = vmul.f32 %v6600_v23, %v4355_v58  ;;  %vm4363_vm5 = vweird.f32 %v6600_v23 }
 0xa97   :  { %vm4364_vm7 = vmor %vm4362_vm6, %vm4363_vm5 }
 0xa98   :  { %v4358_v62 = vmul.f32 %v6600_v23, %v4357_v25 }
 0xa9a   :  { %v4359_v37 = vmul.f32 0.5, %v4358_v62 }
 0xa9c   :  { %v4360_v7 = vsub.f32 1.5, %v4359_v37 }
 0xa9e   :  { %v4361_v4 = vmul.f32 %v6600_v23, %v4360_v7  ;;  %v4420_v7 = vld [vmem:[%s10557_s4] sm:$0xff] }
 0xaa0   :  { %v4365_v45 = vsel %vm4364_vm7, %v6600_v23, %v4361_v4  ;;  %v4464_v4 = vld [vmem:[%s10558_s5 + $0x8] sm:$0xff] }
 0xaa1   :  { %v4378_v61 = vmul.f32 %v4365_v45, %v4354_v8  ;;  %v4377_v48 = vmul.f32 %v4365_v45, %v4353_v15  ;;  %v4376_v47 = vmul.f32 %v4365_v45, %v4352_v55  ;;  %v4375_v22 = vmul.f32 %v4365_v45, %v4351_v20 }
 0xaa2   :  { %v4374_v14 = vmul.f32 %v4365_v45, %v4350_v39  ;;  %v4373_v13 = vmul.f32 %v4365_v45, %v4349_v38  ;;  %v4372_v30 = vmul.f32 %v4365_v45, %v4348_v21  ;;  %v4371_v46 = vmul.f32 %v4365_v45, %v4347_v35  ;;  %v6470_v35 = vld [vmem:[%s10558_s5 + $0x60] sm:$0xff] }
 0xaa3   :  { %v4392_v34 = vmul.f32 %v9935_v27, %v4378_v61  ;;  %v4391_v57 = vmul.f32 %v9935_v27, %v4377_v48  ;;  %v4390_v49 = vmul.f32 %v9935_v27, %v4376_v47  ;;  %v4389_v24 = vmul.f32 %v9935_v27, %v4375_v22  ;;  %v6439_v61 = vld [vmem:[%s10557_s4 + $0x60] sm:$0xff]  ;;  %v4421_v48 = vld [vmem:[%s10557_s4 + $0x8] sm:$0xff]  ;;  %v4422_v22 = vld [vmem:[%s10557_s4 + $0x10] sm:$0x3] }
 0xaa4   :  { %v4388_v54 = vmul.f32 %v9935_v27, %v4374_v14  ;;  %v4387_v1 = vmul.f32 %v9935_v27, %v4373_v13  ;;  %v4370_v12 = vmul.f32 %v4365_v45, %v4346_v19  ;;  %v4369_v29 = vmul.f32 %v4365_v45, %v4345_v9  ;;  %v6401_v47 = vld [vmem:[%s10557_s4 + $0x20] sm:$0xff]  ;;  %v6402_v14 = vld [vmem:[%s10557_s4 + $0x28] sm:$0x3]  ;;  %v6415_v13 = vld [vmem:[%s10557_s4 + $0x30] sm:$0xff] }
 0xaa5   :  { %v4406_v63 = vadd.f32 %v9938_v44, %v4392_v34  ;;  %v4405_v52 = vadd.f32 %v9938_v44, %v4391_v57  ;;  %v4404_v17 = vadd.f32 %v9938_v44, %v4390_v49  ;;  %v4403_v36 = vadd.f32 %v9938_v44, %v4389_v24  ;;  %v6416_v34 = vld [vmem:[%s10557_s4 + $0x38] sm:$0xff]  ;;  %v6417_v57 = vld [vmem:[%s10557_s4 + $0x40] sm:$0x3]  ;;  %v6407_v24 = vld [vmem:[%s10558_s5 + $0x10] sm:$0xff] }
 0xaa6   :  { %v4368_v0 = vmul.f32 %v4365_v45, %v4344_v28  ;;  %v4367_v51 = vmul.f32 %v4365_v45, %v4343_v6  ;;  %v4366_v41 = vmul.f32 %v4365_v45, %v4342_v31  ;;  %v4402_v16 = vadd.f32 %v9938_v44, %v4388_v54  ;;  %v6400_v45 = vld [vmem:[%s10557_s4 + $0x18] sm:$0xff]  ;;  %v6440_v54 = vld [vmem:[%s10557_s4 + $0x68] sm:$0xff]  ;;  %v6434_v6 = vld [vmem:[%s10558_s5 + $0x30] sm:$0xff] }
 0xaa7   :  { %v9949_v2 = vmax.f32 %v4406_v63, 0.0  ;;  %v9962_v43 = vmax.f32 %v4405_v52, 0.0  ;;  %v9968_v10 = vmax.f32 %v4404_v17, 0.0  ;;  %v4386_v3 = vmul.f32 %v9935_v27, %v4372_v30  ;;  %v6447_v30 = vld [vmem:[%s10558_s5 + $0x48] sm:$0xff]  ;;  %v6408_v49 = vld [vmem:[%s10558_s5 + $0x18] sm:$0xff]  ;;  %v6422_v52 = vld [vmem:[%s10558_s5 + $0x20] sm:$0xff] }
 0xaa8   :  { %v9975_v42 = vmax.f32 %v4403_v36, 0.0  ;;  %v4401_v18 = vadd.f32 %v9938_v44, %v4387_v1  ;;  %v4385_v50 = vmul.f32 %v9935_v27, %v4371_v46  ;;  %v9982_v56 = vmax.f32 %v4402_v16, 0.0  ;;  %v6446_v46 = vld [vmem:[%s10558_s5 + $0x40] sm:$0xff]  ;;  %4530 = vmatpush.msrb.mxu3 %v6408_v49  ;;  %v6423_v63 = vld [vmem:[%s10558_s5 + $0x28] sm:$0xff]  ;;  %v6459_v19 = vld [vmem:[%s10558_s5 + $0x58] sm:$0xff] }
 0xaa9   :  { %6396 = vmatpush.msk.msra.mxu1 %vm4433_vm8, %v9949_v2  ;;  %6403 = vmatpush.msk.msra.mxu2 %vm4433_vm8, %v9949_v2  ;;  %v4400_v53 = vadd.f32 %v9938_v44, %v4386_v3  ;;  %v4384_v60 = vmul.f32 %v9935_v27, %v4370_v12  ;;  %v4383_v40 = vmul.f32 %v9935_v27, %v4369_v29  ;;  %v6458_v17 = vld [vmem:[%s10558_s5 + $0x50] sm:$0xff]  ;;  %v6435_v28 = vld [vmem:[%s10558_s5 + $0x38] sm:$0xff]  ;;  %v6487_v49 = vld [vmem:[%s10557_s4 + $0xc0] sm:$0xff] }
 0xaaa   :  { %6442 = vmatpush.msk.msrb.mxu0 %vm4433_vm8, %v9949_v2  ;;  %v9989_v33 = vmax.f32 %v4401_v18, 0.0  ;;  %v4399_v32 = vadd.f32 %v9938_v44, %v4385_v50  ;;  %v4382_v8 = vmul.f32 %v9935_v27, %v4368_v0  ;;  %v4381_v20 = vmul.f32 %v9935_v27, %v4367_v51  ;;  %4531 = vmatpush.msrb.mxu3 %v6407_v24  ;;  %v6441_v31 = vld [vmem:[%s10557_s4 + $0x70] sm:$0x3]  ;;  %v6427_v0 = vld [vmem:[%s10557_s4 + $0x48] sm:$0xff]  ;;  %v6429_v3 = vld [vmem:[%s10557_s4 + $0x58] sm:$0x3] }
 0xaab   :  { %4441 = vmatpush.msra.mxu1 %v9962_v43  ;;  %4482 = vmatpush.msra.mxu2 %v9962_v43  ;;  %v9996_v26 = vmax.f32 %v4400_v53, 0.0  ;;  %v4398_v5 = vadd.f32 %v9938_v44, %v4384_v60  ;;  %v4397_v55 = vadd.f32 %v9938_v44, %v4383_v40  ;;  %v4380_v59 = vmul.f32 %v9935_v27, %v4366_v41  ;;  %v6471_v27 = vld [vmem:[%s10558_s5 + $0x68] sm:$0xff]  ;;  %v6428_v41 = vld [vmem:[%s10557_s4 + $0x50] sm:$0xff] }
 0xaac   :  { %4754 = vmatpush.msrb.mxu0 %v9962_v43  ;;  %v10003_v15 = vmax.f32 %v4399_v32, 0.0  ;;  %v4396_v38 = vadd.f32 %v9938_v44, %v4382_v8  ;;  %v4395_v58 = vadd.f32 %v9938_v44, %v4381_v20  ;;  %4642 = vmatpush.msra.mxu3 %v6423_v63  ;;  %v6463_v32 = vld [vmem:[%s10557_s4 + $0x90] sm:$0xff]  ;;  %v6464_v8 = vld [vmem:[%s10557_s4 + $0x98] sm:$0xff] }
 0xaad   :  { %4442 = vmatpush.msra.mxu1 %v9968_v10  ;;  %4483 = vmatpush.msra.mxu2 %v9968_v10  ;;  %v10010_v39 = vmax.f32 %v4398_v5, 0.0  ;;  %v10017_v21 = vmax.f32 %v4397_v55, 0.0  ;;  %v4394_v25 = vadd.f32 %v9938_v44, %v4380_v59  ;;  %v4463_v44 = vld [vmem:[%s10558_s5] sm:$0xff] }
 0xaae   :  { %4755 = vmatpush.msrb.mxu0 %v9968_v10  ;;  %v10023_v23 = vmax.f32 %v4396_v38, 0.0  ;;  %v10029_v62 = vmax.f32 %v4395_v58, 0.0  ;;  %4643 = vmatpush.msra.mxu3 %v6422_v52  ;;  %v6451_v58 = vld [vmem:[%s10557_s4 + $0x78] sm:$0xff]  ;;  %v6488_v52 = vld [vmem:[%s10557_s4 + $0xc8] sm:$0xff] }
 0xaaf   :  { %4443 = vmatpush.msra.mxu1 %v9975_v42  ;;  %4484 = vmatpush.msra.mxu2 %v9975_v42  ;;  %v10034_v37 = vmax.f32 %v4394_v25, 0.0 }
 0xab0   :  { %4756 = vmatpush.msrb.mxu0 %v9975_v42 }
 0xab1   :  { %4444 = vmatpush.msra.mxu1 %v9982_v56  ;;  %4485 = vmatpush.msra.mxu2 %v9982_v56 }
 0xab2   :  { %4757 = vmatpush.msrb.mxu0 %v9982_v56 }
 0xab3   :  { %4445 = vmatpush.msra.mxu1 %v9989_v33  ;;  %4486 = vmatpush.msra.mxu2 %v9989_v33 }
 0xab4   :  { %4758 = vmatpush.msrb.mxu0 %v9989_v33 }
 0xab5   :  { %4446 = vmatpush.msra.mxu1 %v9996_v26  ;;  %4487 = vmatpush.msra.mxu2 %v9996_v26 }
 0xab6   :  { %4759 = vmatpush.msrb.mxu0 %v9996_v26 }
 0xab7   :  { %4447 = vmatpush.msra.mxu1 %v10003_v15  ;;  %4488 = vmatpush.msra.mxu2 %v10003_v15 }
 0xab8   :  { %4760 = vmatpush.msrb.mxu0 %v10003_v15 }
 0xab9   :  { %4448 = vmatpush.msra.mxu1 %v10010_v39  ;;  %4489 = vmatpush.msra.mxu2 %v10010_v39 }
 0xaba   :  { %4761 = vmatpush.msrb.mxu0 %v10010_v39 }
 0xabb   :  { %4449 = vmatpush.msra.mxu1 %v10017_v21  ;;  %4490 = vmatpush.msra.mxu2 %v10017_v21 }
 0xabc   :  { %4762 = vmatpush.msrb.mxu0 %v10017_v21 }
 0xabd   :  { %4450 = vmatpush.msra.mxu1 %v10023_v23  ;;  %4491 = vmatpush.msra.mxu2 %v10023_v23 }
 0xabe   :  { %4763 = vmatpush.msrb.mxu0 %v10023_v23 }
 0xabf   :  { %4451 = vmatpush.msra.mxu1 %v10029_v62  ;;  %4492 = vmatpush.msra.mxu2 %v10029_v62 }
 0xac0   :  { %4764 = vmatpush.msrb.mxu0 %v10029_v62 }
 0xac1   :  { %4452 = vmatpush.msra.mxu1 %v10034_v37  ;;  %4493 = vmatpush.msra.mxu2 %v10034_v37 }
 0xac2   :  { %4765 = vmatpush.msrb.mxu0 %v10034_v37  ;;  %6397 = vmatmul.msk.f32.vlgmr.msra.gmra.mxu1 %vm4423_vm9, %v4420_v7 }
 0xac3   :  { %4565 = vmatpush.msrb.mxu1 %v4464_v4  ;;  %6418 = vmatpush.msk.msrb.mxu2 %vm4433_vm8, %v9949_v2 }
 0xac4   :  { %4962 = vmatpush.msra.mxu0 %v6471_v27  ;;  %6404 = vmatmul.msk.f32.vlgmr.msra.gmra.mxu2 %vm4423_vm9, %v6400_v45 }
 0xac5   :  { %4566 = vmatpush.msrb.mxu1 %v4463_v44  ;;  %4594 = vmatpush.msrb.mxu2 %v9962_v43 }
 0xac6   :  { %4963 = vmatpush.msra.mxu0 %v6470_v35 }
 0xac7   :  { %6430 = vmatpush.msk.msra.mxu1 %vm4433_vm8, %v9949_v2  ;;  %6443 = vmatmul.msk.f32.vlgmr.msrb.gmra.mxu0 %vm4423_vm9, %v6439_v61 }
 0xac8   :  { %4595 = vmatpush.msrb.mxu2 %v9968_v10  ;;  %6490 = vmatpush.msk.msrb.mxu0 %vm4433_vm8, %v9949_v2 }
 0xac9   :  { %4674 = vmatpush.msra.mxu1 %v9962_v43 }
 0xaca   :  { %4596 = vmatpush.msrb.mxu2 %v9975_v42  ;;  %5074 = vmatpush.msrb.mxu0 %v9962_v43 }
 0xacb   :  { %4675 = vmatpush.msra.mxu1 %v9968_v10 }
 0xacc   :  { %6398 = vmatmul.msk.f32.gmra.mxu1 %vm4423_vm9, %v4421_v48  ;;  %4597 = vmatpush.msrb.mxu2 %v9982_v56 }
 0xacd   :  { %5075 = vmatpush.msrb.mxu0 %v9968_v10  ;;  %6405 = vmatmul.msk.f32.gmra.mxu2 %vm4423_vm9, %v6401_v47 }
 0xace   :  { %4676 = vmatpush.msra.mxu1 %v9975_v42  ;;  %4598 = vmatpush.msrb.mxu2 %v9989_v33 }
 0xacf   :  { %5076 = vmatpush.msrb.mxu0 %v9975_v42 }
 0xad0   :  { %4677 = vmatpush.msra.mxu1 %v9982_v56  ;;  %4599 = vmatpush.msrb.mxu2 %v9996_v26 }
 0xad1   :  { %5077 = vmatpush.msrb.mxu0 %v9982_v56 }
 0xad2   :  { %4678 = vmatpush.msra.mxu1 %v9989_v33  ;;  %4600 = vmatpush.msrb.mxu2 %v10003_v15 }
 0xad3   :  { %5078 = vmatpush.msrb.mxu0 %v9989_v33 }
 0xad4   :  { %4679 = vmatpush.msra.mxu1 %v9996_v26  ;;  %4601 = vmatpush.msrb.mxu2 %v10010_v39 }
 0xad5   :  { %5079 = vmatpush.msrb.mxu0 %v9996_v26  ;;  %6399 = vmatmul.msk.f32.gmra.mxu1 %vm4423_vm9, %v4422_v22 }
 0xad6   :  { %6406 = vmatmul.msk.f32.gmra.mxu2 %vm4423_vm9, %v6402_v14  ;;  %4680 = vmatpush.msra.mxu1 %v10003_v15 }
 0xad7   :  { %5080 = vmatpush.msrb.mxu0 %v10003_v15  ;;  %4602 = vmatpush.msrb.mxu2 %v10017_v21 }
 0xad8   :  { %4681 = vmatpush.msra.mxu1 %v10010_v39  ;;  %6444 = vmatmul.msk.f32.gmra.mxu0 %vm4423_vm9, %v6440_v54  ;;  %v6475_v54 = vld [vmem:[%s10557_s4 + $0xa8] sm:$0xff] }
 0xad9   :  { %5081 = vmatpush.msrb.mxu0 %v10010_v39  ;;  %4603 = vmatpush.msrb.mxu2 %v10023_v23 }
 0xada   :  { %4682 = vmatpush.msra.mxu1 %v10017_v21 }
 0xadb   :  { %5082 = vmatpush.msrb.mxu0 %v10017_v21  ;;  %4604 = vmatpush.msrb.mxu2 %v10029_v62 }
 0xadc   :  { %4683 = vmatpush.msra.mxu1 %v10023_v23 }
 0xadd   :  { %5083 = vmatpush.msrb.mxu0 %v10023_v23  ;;  %4605 = vmatpush.msrb.mxu2 %v10034_v37 }
 0xade   :  { %6419 = vmatmul.msk.f32.vlgmr.msrb.gmra.mxu2 %vm4423_vm9, %v6415_v13  ;;  %4684 = vmatpush.msra.mxu1 %v10029_v62 }
 0xadf   :  { %4802 = vmatpush.msra.mxu2 %v6447_v30  ;;  %5084 = vmatpush.msrb.mxu0 %v10029_v62 }
 0xae0   :  { %4685 = vmatpush.msra.mxu1 %v10034_v37  ;;  %6445 = vmatmul.msk.f32.gmra.mxu0 %vm4423_vm9, %v6441_v31 }
 0xae1   :  { %4803 = vmatpush.msra.mxu2 %v6446_v46  ;;  %5085 = vmatpush.msrb.mxu0 %v10034_v37 }
 0xae3   :  { %6466 = vmatpush.msk.msrb.mxu2 %vm4433_vm8, %v9949_v2 }
 0xae5   :  { %4914 = vmatpush.msrb.mxu2 %v9962_v43 }
 0xae6   :  { %6420 = vmatmul.msk.f32.gmra.mxu2 %vm4423_vm9, %v6416_v34 }
 0xae7   :  { %4915 = vmatpush.msrb.mxu2 %v9968_v10 }
 0xae9   :  { %4916 = vmatpush.msrb.mxu2 %v9975_v42 }
 0xaeb   :  { %4917 = vmatpush.msrb.mxu2 %v9982_v56 }
 0xaed   :  { %4918 = vmatpush.msrb.mxu2 %v9989_v33 }
 0xaee   :  { %6421 = vmatmul.msk.f32.gmra.mxu2 %vm4423_vm9, %v6417_v57 }
 0xaef   :  { %4919 = vmatpush.msrb.mxu2 %v9996_v26 }
 0xaf1   :  { %4920 = vmatpush.msrb.mxu2 %v10003_v15 }
 0xaf3   :  { %4921 = vmatpush.msrb.mxu2 %v10010_v39 }
 0xaf5   :  { %4922 = vmatpush.msrb.mxu2 %v10017_v21 }
 0xaf7   :  { %4923 = vmatpush.msrb.mxu2 %v10023_v23 }
 0xaf9   :  { %4924 = vmatpush.msrb.mxu2 %v10029_v62 }
 0xafb   :  { %4925 = vmatpush.msrb.mxu2 %v10034_v37 }
 0xb3f   :  { %v4454_v9 = vpop.f32.mrf.mxu1 }
 0xb40   :  { %6412 = vmatmul.msk.f32.vlgmr.msrb.gmra.mxu1 %vm4261_vm3, %v4454_v9  ;;  %v6489_v9 = vld [vmem:[%s10557_s4 + $0xd0] sm:$0x3] }
 0xb41   :  { %4882 = vmatpush.msrb.mxu1 %v6459_v19 }
 0xb43   :  { %4883 = vmatpush.msrb.mxu1 %v6458_v17 }
 0xb47   :  { %v4495_v36 = vpop.f32.mrf.mxu2 }
 0xb48   :  { %6409 = vmatmul.msk.f32.vlgmr.msrb.gmra.mxu3 %vm4261_vm3, %v4495_v36  ;;  %v6477_v36 = vld [vmem:[%s10557_s4 + $0xb8] sm:$0x3] }
 0xb49   :  { %v4457_v1 = vpop.f32.mrf.mxu1  ;;  %4722 = vmatpush.msrb.mxu3 %v6435_v28  ;;  %v6476_v28 = vld [vmem:[%s10557_s4 + $0xb0] sm:$0xff] }
 0xb4a   :  { %6413 = vmatmul.msk.f32.gmra.mxu1 %vm4261_vm3, %v4457_v1 }
 0xb4b   :  { %4723 = vmatpush.msrb.mxu3 %v6434_v6 }
 0xb50   :  { %v4498_v12 = vpop.f32.mrf.mxu2 }
 0xb51   :  { %6410 = vmatmul.msk.f32.gmra.mxu3 %vm4261_vm3, %v4498_v12  ;;  %v6483_v12 = vld [vmem:[%s10558_s5 + $0x78] sm:$0xff] }
 0xb52   :  { %v4460_v29 = vpop.f32.mrf.mxu1 }
 0xb53   :  { %6414 = vmatmul.msk.f32.gmra.mxu1 %vm4261_vm3, %v4460_v29  ;;  %v6482_v29 = vld [vmem:[%s10558_s5 + $0x70] sm:$0xff] }
 0xb59   :  { %v4501_v51 = vpop.f32.mrf.mxu2 }
 0xb5a   :  { %6411 = vmatmul.msk.f32.gmra.mxu3 %vm4261_vm3, %v4501_v51  ;;  %v6494_v51 = vld [vmem:[%s10558_s5 + $0x80] sm:$0xff] }
 0xb5b   :  { %6431 = vmatmul.msk.f32.vlgmr.msra.gmra.mxu1 %vm4423_vm9, %v6427_v0  ;;  %v6495_v0 = vld [vmem:[%s10558_s5 + $0x88] sm:$0xff] }
 0xb5c   :  { %6478 = vmatpush.msk.msra.mxu1 %vm4433_vm8, %v9949_v2 }
 0xb5e   :  { %4994 = vmatpush.msra.mxu1 %v9962_v43 }
 0xb60   :  { %4995 = vmatpush.msra.mxu1 %v9968_v10 }
 0xb61   :  { %v4607_v16 = vpop.f32.mrf.mxu2 }
 0xb62   :  { %4996 = vmatpush.msra.mxu1 %v9975_v42  ;;  %6424 = vmatmul.msk.f32.vlgmr.msra.gmra.mxu3 %vm4261_vm3, %v4607_v16 }
 0xb63   :  { %6454 = vmatpush.msk.msra.mxu3 %vm4433_vm8, %v9949_v2  ;;  %6432 = vmatmul.msk.f32.gmra.mxu1 %vm4423_vm9, %v6428_v41 }
 0xb64   :  { %4997 = vmatpush.msra.mxu1 %v9982_v56 }
 0xb65   :  { %4834 = vmatpush.msra.mxu3 %v9962_v43 }
 0xb66   :  { %4998 = vmatpush.msra.mxu1 %v9989_v33 }
 0xb67   :  { %4835 = vmatpush.msra.mxu3 %v9968_v10  ;;  %v4767_v10 = vpop.f32.mrf.mxu0 }
 0xb68   :  { %4999 = vmatpush.msra.mxu1 %v9996_v26  ;;  %6448 = vmatmul.msk.f32.vlgmr.msra.gmra.mxu2 %vm4261_vm3, %v4767_v10 }
 0xb69   :  { %4836 = vmatpush.msra.mxu3 %v9975_v42  ;;  %v4610_v2 = vpop.f32.mrf.mxu2  ;;  %5122 = vmatpush.msra.mxu2 %v6495_v0  ;;  %v6522_v0 = vld [vmem:[%s10560_s7 + $0x68] sm:$0xff] }
 0xb6a   :  { %5000 = vmatpush.msra.mxu1 %v10003_v15  ;;  %6425 = vmatmul.msk.f32.gmra.mxu3 %vm4261_vm3, %v4610_v2 }
 0xb6b   :  { %4837 = vmatpush.msra.mxu3 %v9982_v56  ;;  %6433 = vmatmul.msk.f32.gmra.mxu1 %vm4423_vm9, %v6429_v3 }
 0xb6c   :  { %5001 = vmatpush.msra.mxu1 %v10010_v39  ;;  %5123 = vmatpush.msra.mxu2 %v6494_v51  ;;  %v6521_v51 = vld [vmem:[%s10560_s7 + $0x60] sm:$0xff] }
 0xb6d   :  { %4838 = vmatpush.msra.mxu3 %v9989_v33 }
 0xb6e   :  { %5002 = vmatpush.msra.mxu1 %v10017_v21 }
 0xb6f   :  { %4839 = vmatpush.msra.mxu3 %v9996_v26  ;;  %v4770_v18 = vpop.f32.mrf.mxu0 }
 0xb70   :  { %5003 = vmatpush.msra.mxu1 %v10023_v23  ;;  %6449 = vmatmul.msk.f32.gmra.mxu2 %vm4261_vm3, %v4770_v18 }
 0xb71   :  { %4840 = vmatpush.msra.mxu3 %v10003_v15  ;;  %v4613_v43 = vpop.f32.mrf.mxu2 }
 0xb72   :  { %5004 = vmatpush.msra.mxu1 %v10029_v62  ;;  %6426 = vmatmul.msk.f32.gmra.mxu3 %vm4261_vm3, %v4613_v43 }
 0xb73   :  { %4841 = vmatpush.msra.mxu3 %v10010_v39  ;;  %v6465_v39 = vld [vmem:[%s10557_s4 + $0xa0] sm:$0x3] }
 0xb74   :  { %5005 = vmatpush.msra.mxu1 %v10034_v37 }
 0xb75   :  { %4842 = vmatpush.msra.mxu3 %v10017_v21 }
 0xb77   :  { %4843 = vmatpush.msra.mxu3 %v10023_v23  ;;  %v4773_v56 = vpop.f32.mrf.mxu0 }
 0xb78   :  { %6450 = vmatmul.msk.f32.gmra.mxu2 %vm4261_vm3, %v4773_v56 }
 0xb79   :  { %4844 = vmatpush.msra.mxu3 %v10029_v62  ;;  %v6452_v62 = vld [vmem:[%s10557_s4 + $0x80] sm:$0xff] }
 0xb7b   :  { %4845 = vmatpush.msra.mxu3 %v10034_v37  ;;  %v6453_v37 = vld [vmem:[%s10557_s4 + $0x88] sm:$0x3] }
 0xb80   :  { %6467 = vmatmul.msk.f32.vlgmr.msrb.gmra.mxu2 %vm4423_vm9, %v6463_v32 }
 0xb88   :  { %6468 = vmatmul.msk.f32.gmra.mxu2 %vm4423_vm9, %v6464_v8  ;;  %v6505_v8 = vld [vmem:[%s10560_s7 + $0x28] sm:$0xff] }
 0xb90   :  { %6469 = vmatmul.msk.f32.gmra.mxu2 %vm4423_vm9, %v6465_v39 }
 0xbbd   :  { %v4568_v42 = vpop.f32.mrf.mxu1 }
 0xbc7   :  { %v4571_v50 = vpop.f32.mrf.mxu1 }
 0xbcb   :  { %v4533_v53 = vpop.f32.mrf.mxu3 }
 0xbcc   :  { %v4569_v60 = vadd.f32 %v4568_v42, %v4533_v53 }
 0xbd0   :  { %v4574_v33 = vpop.f32.mrf.mxu1 }
 0xbd4   :  { %v4536_v40 = vpop.f32.mrf.mxu3 }
 0xbd5   :  { %v4572_v26 = vadd.f32 %v4571_v50, %v4536_v40 }
 0xbd8   :  { %v4687_v5 = vpop.f32.mrf.mxu1 }
 0xbd9   :  { %6436 = vmatmul.msk.f32.vlgmr.msrb.gmra.mxu3 %vm4261_vm3, %v4687_v5  ;;  %v6506_v5 = vld [vmem:[%s10560_s7 + $0x30] sm:$0xff] }
 0xbda   :  { %5042 = vmatpush.msrb.mxu3 %v6483_v12  ;;  %v6532_v12 = vld [vmem:[%s10560_s7 + $0x98] sm:$0xff] }
 0xbdc   :  { %5043 = vmatpush.msrb.mxu3 %v6482_v29  ;;  %v6531_v29 = vld [vmem:[%s10560_s7 + $0x90] sm:$0xff] }
 0xbdd   :  { %v4539_v15 = vpop.f32.mrf.mxu3 }
 0xbde   :  { %v4575_v55 = vadd.f32 %v4574_v33, %v4539_v15  ;;  %v6504_v15 = vld [vmem:[%s10560_s7 + $0x20] sm:$0xff] }
 0xbe0   :  { %v4690_v20 = vpop.f32.mrf.mxu1 }
 0xbe1   :  { %6437 = vmatmul.msk.f32.gmra.mxu3 %vm4261_vm3, %v4690_v20 }
 0xbe5   :  { %v4645_v38 = vpop.f32.mrf.mxu3 }
 0xbe6   :  { %v4654_v59 = vadd.f32 %v4645_v38, %v4569_v60 }
 0xbe8   :  { %v4693_v21 = vpop.f32.mrf.mxu1 }
 0xbe9   :  { %6438 = vmatmul.msk.f32.gmra.mxu3 %vm4261_vm3, %v4693_v21 }
 0xbeb   :  { %v4805_v7 = vpop.f32.mrf.mxu2 }
 0xbed   :  { %v4648_v23 = vpop.f32.mrf.mxu3 }
 0xbee   :  { %v4655_v25 = vadd.f32 %v4648_v23, %v4572_v26  ;;  %v6507_v26 = vld [vmem:[%s10560_s7 + $0x38] sm:$0xff] }
 0xbef   :  { %5222 = vmatpush.msrb.mxu2 %v6507_v26 }
 0xbf1   :  { %6455 = vmatmul.msk.f32.vlgmr.msra.gmra.mxu3 %vm4423_vm9, %v6451_v58  ;;  %5223 = vmatpush.msrb.mxu2 %v6506_v5  ;;  %v6561_v5 = vld [vmem:[%s10560_s7 + $0x100] sm:$0xff] }
 0xbf3   :  { %v4808_v4 = vpop.f32.mrf.mxu2  ;;  %5224 = vmatpush.msrb.mxu2 %v6505_v8  ;;  %v5649_v8 = vld [vmem:[%s10561_s8 + $0x78] sm:$0xff] }
 0xbf5   :  { %v4651_v45 = vpop.f32.mrf.mxu3  ;;  %5225 = vmatpush.msrb.mxu2 %v6504_v15  ;;  %v5648_v15 = vld [vmem:[%s10561_s8 + $0x70] sm:$0xff] }
 0xbf6   :  { %v4656_v46 = vadd.f32 %v4651_v45, %v4575_v55 }
 0xbf9   :  { %6456 = vmatmul.msk.f32.gmra.mxu3 %vm4423_vm9, %v6452_v62 }
 0xbfb   :  { %v4811_v27 = vpop.f32.mrf.mxu2 }
 0xc01   :  { %6457 = vmatmul.msk.f32.gmra.mxu3 %vm4423_vm9, %v6453_v37 }
 0xc03   :  { %v4927_v44 = vpop.f32.mrf.mxu2 }
 0xc04   :  { %6472 = vmatmul.msk.f32.vlgmr.msra.gmra.mxu0 %vm4261_vm3, %v4927_v44 }
 0xc0b   :  { %v4930_v47 = vpop.f32.mrf.mxu2 }
 0xc0c   :  { %6473 = vmatmul.msk.f32.gmra.mxu0 %vm4261_vm3, %v4930_v47  ;;  %v6501_v47 = vld [vmem:[%s10559_s6 + $0x2] sm:$0x3] }
 0xc13   :  { %v4933_v30 = vpop.f32.mrf.mxu2 }
 0xc14   :  { %6474 = vmatmul.msk.f32.gmra.mxu0 %vm4261_vm3, %v4933_v30  ;;  %v5174_v30 = vld [vmem:[%s10560_s7 + $0x10] sm:$0xff] }
 0xc1c   :  { %6491 = vmatmul.msk.f32.vlgmr.msrb.gmra.mxu0 %vm4423_vm9, %v6487_v49  ;;  %v6515_v49 = vld [vmem:[%s10560_s7 + $0x50] sm:$0xff] }
 0xc24   :  { %6492 = vmatmul.msk.f32.gmra.mxu0 %vm4423_vm9, %v6488_v52  ;;  %v6513_v52 = vld [vmem:[%s10560_s7 + $0x40] sm:$0xff] }
 0xc2c   :  { %6493 = vmatmul.msk.f32.gmra.mxu0 %vm4423_vm9, %v6489_v9 }
 0xc5c   :  { %v4725_v35 = vpop.f32.mrf.mxu3 }
 0xc5d   :  { %v4734_v61 = vadd.f32 %v4725_v35, %v4654_v59 }
 0xc5f   :  { %v4814_v48 = vadd.f32 %v4805_v7, %v4734_v61  ;;  %v5137_v7 = vperm.slane %v9932_v11, 3  ;;  %v5144_v11 = vld [vmem:[%s10559_s6] sm:$0x3] }
 0xc64   :  { %v4728_v22 = vpop.f32.mrf.mxu3 }
 0xc65   :  { %v4735_v14 = vadd.f32 %v4728_v22, %v4655_v25  ;;  %v6510_v22 = vld [vmem:[%s10559_s6 + $0x4] sm:$0x3] }
 0xc67   :  { %v4815_v13 = vadd.f32 %v4808_v4, %v4735_v14  ;;  %v6526_v14 = vld [vmem:[%s10559_s6 + $0x8] sm:$0x3] }
 0xc6c   :  { %v4731_v34 = vpop.f32.mrf.mxu3 }
 0xc6d   :  { %v4736_v57 = vadd.f32 %v4731_v34, %v4656_v46  ;;  %v5173_v46 = vld [vmem:[%s10560_s7 + $0x8] sm:$0xff]  ;;  %v5172_v34 = vld [vmem:[%s10560_s7] sm:$0xff] }
 0xc6f   :  { %v4816_v24 = vadd.f32 %v4811_v27, %v4736_v57  ;;  %v6516_v57 = vld [vmem:[%s10560_s7 + $0x58] sm:$0xff] }
 0xc74   :  { %v4847_v63 = vpop.f32.mrf.mxu3 }
 0xc75   :  { %6460 = vmatmul.msk.f32.vlgmr.msrb.gmra.mxu1 %vm4261_vm3, %v4847_v63  ;;  %v6514_v63 = vld [vmem:[%s10560_s7 + $0x48] sm:$0xff] }
 0xc7c   :  { %v4850_v19 = vpop.f32.mrf.mxu3 }
 0xc7d   :  { %6461 = vmatmul.msk.f32.gmra.mxu1 %vm4261_vm3, %v4850_v19  ;;  %v6558_v19 = vld [vmem:[%s10559_s6 + $0x10] sm:$0x3] }
 0xc81   :  { %v4965_v1 = vpop.f32.mrf.mxu0 }
 0xc84   :  { %v4853_v17 = vpop.f32.mrf.mxu3 }
 0xc85   :  { %6462 = vmatmul.msk.f32.gmra.mxu1 %vm4261_vm3, %v4853_v17 }
 0xc89   :  { %v4968_v6 = vpop.f32.mrf.mxu0 }
 0xc8d   :  { %6479 = vmatmul.msk.f32.vlgmr.msra.gmra.mxu1 %vm4423_vm9, %v6475_v54  ;;  %v6518_v54 = vld [vmem:[%s10559_s6 + $0x6] sm:$0x3] }
 0xc91   :  { %v4971_v31 = vpop.f32.mrf.mxu0 }
 0xc95   :  { %6480 = vmatmul.msk.f32.gmra.mxu1 %vm4423_vm9, %v6476_v28  ;;  %v6534_v28 = vld [vmem:[%s10559_s6 + $0xa] sm:$0x3] }
 0xc99   :  { %v5087_v41 = vpop.f32.mrf.mxu0 }
 0xc9a   :  { %6496 = vmatmul.msk.f32.vlgmr.msra.gmra.mxu2 %vm4261_vm3, %v5087_v41  ;;  %v6530_v41 = vld [vmem:[%s10560_s7 + $0x88] sm:$0xff] }
 0xc9d   :  { %6481 = vmatmul.msk.f32.gmra.mxu1 %vm4423_vm9, %v6477_v36 }
 0xca1   :  { %v5090_v43 = vpop.f32.mrf.mxu0 }
 0xca2   :  { %6497 = vmatmul.msk.f32.gmra.mxu2 %vm4261_vm3, %v5090_v43  ;;  %v6539_v43 = vld [vmem:[%s10560_s7 + $0xb0] sm:$0xff] }
 0xca9   :  { %v5093_v50 = vpop.f32.mrf.mxu0 }
 0xcaa   :  { %6498 = vmatmul.msk.f32.gmra.mxu2 %vm4261_vm3, %v5093_v50  ;;  %v6537_v50 = vld [vmem:[%s10560_s7 + $0xa0] sm:$0xff] }
 0xcf2   :  { %v4885_v16 = vpop.f32.mrf.mxu1 }
 0xcf3   :  { %v4894_v3 = vadd.f32 %v4885_v16, %v4814_v48 }
 0xcf5   :  { %v4974_v2 = vadd.f32 %v4965_v1, %v4894_v3  ;;  %v6550_v1 = vld [vmem:[%s10559_s6 + $0xe] sm:$0x3]  ;;  %v6529_v3 = vld [vmem:[%s10560_s7 + $0x80] sm:$0xff] }
 0xcfa   :  { %v4888_v10 = vpop.f32.mrf.mxu1 }
 0xcfb   :  { %v4895_v42 = vadd.f32 %v4888_v10, %v4815_v13  ;;  %v5175_v13 = vld [vmem:[%s10560_s7 + $0x18] sm:$0xff] }
 0xcfc   :  { %5245 = vmatpush.msra.mxu0 %v5175_v13  ;;  %v6548_v10 = vld [vmem:[%s10560_s7 + $0xd8] sm:$0xff]  ;;  %v5634_v13 = vld [vmem:[%s10561_s8] sm:$0xff] }
 0xcfd   :  { %v4975_v18 = vadd.f32 %v4968_v6, %v4895_v42  ;;  %v6524_v6 = vld [vmem:[%s10560_s7 + $0x78] sm:$0xff]  ;;  %v6538_v42 = vld [vmem:[%s10560_s7 + $0xa8] sm:$0xff] }
 0xcfe   :  { %5246 = vmatpush.msra.mxu0 %v5174_v30 }
 0xd00   :  { %5247 = vmatpush.msra.mxu0 %v5173_v46 }
 0xd02   :  { %v4891_v56 = vpop.f32.mrf.mxu1  ;;  %5248 = vmatpush.msra.mxu0 %v5172_v34 }
 0xd03   :  { %v4896_v53 = vadd.f32 %v4891_v56, %v4816_v24  ;;  %v6542_v24 = vld [vmem:[%s10559_s6 + $0xc] sm:$0x3] }
 0xd04   :  { %5352 = vmatpush.msrb.mxu0 %v6524_v6  ;;  %v6546_v56 = vld [vmem:[%s10560_s7 + $0xc8] sm:$0xff] }
 0xd05   :  { %v4976_v60 = vadd.f32 %v4971_v31, %v4896_v53  ;;  %v6523_v31 = vld [vmem:[%s10560_s7 + $0x70] sm:$0xff] }
 0xd06   :  { %5353 = vmatpush.msrb.mxu0 %v6523_v31 }
 0xd08   :  { %5354 = vmatpush.msrb.mxu0 %v6522_v0 }
 0xd0a   :  { %v5007_v33 = vpop.f32.mrf.mxu1  ;;  %5355 = vmatpush.msrb.mxu0 %v6521_v51 }
 0xd0b   :  { %6484 = vmatmul.msk.f32.vlgmr.msrb.gmra.mxu3 %vm4261_vm3, %v5007_v33  ;;  %v6564_v33 = vld [vmem:[%s10560_s7 + $0x118] sm:$0xff] }
 0xd12   :  { %v5010_v32 = vpop.f32.mrf.mxu1 }
 0xd13   :  { %6485 = vmatmul.msk.f32.gmra.mxu3 %vm4261_vm3, %v5010_v32  ;;  %v6563_v32 = vld [vmem:[%s10560_s7 + $0x110] sm:$0xff] }
 0xd1a   :  { %v5013_v40 = vpop.f32.mrf.mxu1 }
 0xd1b   :  { %6486 = vmatmul.msk.f32.gmra.mxu3 %vm4261_vm3, %v5013_v40  ;;  %v6562_v40 = vld [vmem:[%s10560_s7 + $0x108] sm:$0xff] }
 0xd1d   :  { %v5125_v55 = vpop.f32.mrf.mxu2 }
 0xd25   :  { %v5128_v39 = vpop.f32.mrf.mxu2 }
 0xd2d   :  { %v5131_v23 = vpop.f32.mrf.mxu2 }
 0xd8e   :  { %v5045_v20 = vpop.f32.mrf.mxu3 }
 0xd8f   :  { %v5054_v21 = vadd.f32 %v5045_v20, %v4974_v2  ;;  %v6540_v2 = vld [vmem:[%s10560_s7 + $0xb8] sm:$0xff] }
 0xd91   :  { %v5134_v37 = vadd.f32 %v5125_v55, %v5054_v21  ;;  %v5647_v55 = vld [vmem:[%s10561_s8 + $0x68] sm:$0xff] }
 0xd92   :  { %v6554_v21 = vld [vmem:[%s10560_s7 + $0xe8] sm:$0xff] }
 0xd93   :  { %v5138_v44 = vadd.f32 %v5137_v7, %v5134_v37  ;;  %v5645_v37 = vld [vmem:[%s10561_s8 + $0x58] sm:$0xff] }
 0xd95   :  { %v5141_v48 = vmax.f32 %v5138_v44, 0.0  ;;  %v5640_v44 = vld [vmem:[%s10561_s8 + $0x30] sm:$0xff] }
 0xd96   :  { %v5048_v38 = vpop.f32.mrf.mxu3 }
 0xd97   :  { %v5055_v59 = vadd.f32 %v5048_v38, %v4975_v18  ;;  %v6547_v18 = vld [vmem:[%s10560_s7 + $0xd0] sm:$0xff] }
 0xd99   :  { %v5135_v25 = vadd.f32 %v5128_v39, %v5055_v59  ;;  %v6556_v39 = vld [vmem:[%s10560_s7 + $0xf8] sm:$0xff]  ;;  %v6555_v59 = vld [vmem:[%s10560_s7 + $0xf0] sm:$0xff] }
 0xd9b   :  { %v5139_v27 = vadd.f32 %v5137_v7, %v5135_v25 }
 0xd9d   :  { %v10328_v61 = vmax.f32 %v5139_v27, 0.0  ;;  %v5642_v27 = vld [vmem:[%s10561_s8 + $0x40] sm:$0xff] }
 0xd9e   :  { %v5051_v58 = vpop.f32.mrf.mxu3 }
 0xd9f   :  { %v5056_v62 = vadd.f32 %v5051_v58, %v4976_v60  ;;  %v6545_v60 = vld [vmem:[%s10560_s7 + $0xc0] sm:$0xff] }
 0xda0   :  { %v6553_v58 = vld [vmem:[%s10560_s7 + $0xe0] sm:$0xff] }
 0xda1   :  { %v5136_v4 = vadd.f32 %v5131_v23, %v5056_v62  ;;  %v5646_v62 = vld [vmem:[%s10561_s8 + $0x60] sm:$0xff] }
 0xda3   :  { %v5140_v45 = vadd.f32 %v5137_v7, %v5136_v4  ;;  %v5644_v7 = vld [vmem:[%s10561_s8 + $0x50] sm:$0xff]  ;;  %v5643_v4 = vld [vmem:[%s10561_s8 + $0x48] sm:$0xff] }
 0xda5   :  { %v10326_v35 = vmax.f32 %v5140_v45, 0.0  ;;  %v5641_v45 = vld [vmem:[%s10561_s8 + $0x38] sm:$0xff] }
 0xda7   :  { %6499 = vmatpush.msk.msra.mxu3 %vm4433_vm8, %v10326_v35  ;;  %6502 = vmatpush.msk.msrb.mxu1 %vm4433_vm8, %v10326_v35 }
 0xda8   :  { %6519 = vmatpush.msk.msra.mxu2 %vm4433_vm8, %v10326_v35 }
 0xda9   :  { %5166 = vmatpush.msra.mxu3 %v10328_v61  ;;  %5195 = vmatpush.msrb.mxu1 %v10328_v61 }
 0xdaa   :  { %5326 = vmatpush.msra.mxu2 %v10328_v61 }
 0xdab   :  { %5167 = vmatpush.msra.mxu3 %v5141_v48  ;;  %5196 = vmatpush.msrb.mxu1 %v5141_v48 }
 0xdac   :  { %5327 = vmatpush.msra.mxu2 %v5141_v48  ;;  %6500 = vmatmul.msk.f32.vlgmr.msra.gmra.mxu3 %vm5145_vm10, %v5144_v11  ;;  %v5637_v11 = vld [vmem:[%s10561_s8 + $0x18] sm:$0xff] }
 0xdad   :  { %6503 = vmatmul.msk.f32.vlgmr.msrb.gmra.mxu1 %vm5145_vm10, %v6501_v47  ;;  %6511 = vmatpush.msk.msrb.mxu3 %vm4433_vm8, %v10326_v35  ;;  %v5636_v47 = vld [vmem:[%s10561_s8 + $0x10] sm:$0xff] }
 0xdae   :  { %5298 = vmatpush.msra.mxu1 %v6516_v57 }
 0xdaf   :  { %5272 = vmatpush.msrb.mxu3 %v10328_v61 }
 0xdb0   :  { %5299 = vmatpush.msra.mxu1 %v6515_v49 }
 0xdb1   :  { %5273 = vmatpush.msrb.mxu3 %v5141_v48 }
 0xdb2   :  { %5300 = vmatpush.msra.mxu1 %v6514_v63 }
 0xdb3   :  { %6527 = vmatpush.msk.msra.mxu3 %vm4433_vm8, %v10326_v35 }
 0xdb4   :  { %6512 = vmatmul.msk.f32.vlgmr.msrb.gmra.mxu3 %vm5145_vm10, %v6510_v22  ;;  %5301 = vmatpush.msra.mxu1 %v6513_v52 }
 0xdb5   :  { %5380 = vmatpush.msra.mxu3 %v10328_v61 }
 0xdb6   :  { %5406 = vmatpush.msrb.mxu1 %v6532_v12 }
 0xdb7   :  { %5381 = vmatpush.msra.mxu3 %v5141_v48 }
 0xdb8   :  { %5407 = vmatpush.msrb.mxu1 %v6531_v29 }
 0xdb9   :  { %6543 = vmatpush.msk.msrb.mxu3 %vm4433_vm8, %v10326_v35 }
 0xdba   :  { %5408 = vmatpush.msrb.mxu1 %v6530_v41 }
 0xdbb   :  { %5488 = vmatpush.msrb.mxu3 %v10328_v61 }
 0xdbc   :  { %6528 = vmatmul.msk.f32.vlgmr.msra.gmra.mxu3 %vm5145_vm10, %v6526_v14  ;;  %5409 = vmatpush.msrb.mxu1 %v6529_v3  ;;  %v5635_v14 = vld [vmem:[%s10561_s8 + $0x8] sm:$0xff] }
 0xdbd   :  { %5489 = vmatpush.msrb.mxu3 %v5141_v48 }
 0xdbf   :  { %6559 = vmatpush.msk.msra.mxu3 %vm4433_vm8, %v10326_v35 }
 0xdc1   :  { %5596 = vmatpush.msra.mxu3 %v10328_v61 }
 0xdc3   :  { %5597 = vmatpush.msra.mxu3 %v5141_v48 }
 0xdc4   :  { %6544 = vmatmul.msk.f32.vlgmr.msrb.gmra.mxu3 %vm5145_vm10, %v6542_v24 }
 0xdcc   :  { %6560 = vmatmul.msk.f32.vlgmr.msra.gmra.mxu3 %vm5145_vm10, %v6558_v19 }
 0xe2a   :  { %v5198_v9 = vpop.f32.mrf.mxu1 }
 0xe2b   :  { %6508 = vmatmul.msk.f32.vlgmr.msrb.gmra.mxu2 %vm5206_vm11, %v5198_v9 }
 0xe2c   :  { %6535 = vmatpush.msk.msrb.mxu2 %vm4433_vm8, %v10326_v35 }
 0xe2e   :  { %5434 = vmatpush.msrb.mxu2 %v10328_v61 }
 0xe2f   :  { %v5169_v17 = vpop.f32.mrf.mxu3 }
 0xe30   :  { %5435 = vmatpush.msrb.mxu2 %v5141_v48  ;;  %6509 = vmatmul.msk.f32.vlgmr.msra.gmra.mxu0 %vm5206_vm11, %v5169_v17 }
 0xe31   :  { %5460 = vmatpush.msra.mxu0 %v6540_v2 }
 0xe33   :  { %6520 = vmatmul.msk.f32.vlgmr.msra.gmra.mxu2 %vm5145_vm10, %v6518_v54  ;;  %5461 = vmatpush.msra.mxu0 %v6539_v43 }
 0xe34   :  { %6551 = vmatpush.msk.msra.mxu2 %vm4433_vm8, %v10326_v35  ;;  %v5639_v35 = vld [vmem:[%s10561_s8 + $0x28] sm:$0xff] }
 0xe35   :  { %5462 = vmatpush.msra.mxu0 %v6538_v42 }
 0xe36   :  { %5542 = vmatpush.msra.mxu2 %v10328_v61  ;;  %v5638_v61 = vld [vmem:[%s10561_s8 + $0x20] sm:$0xff]  ;;  %s6629_s8 = smov [#allocation2]  }
 0xe37   :  { %v5275_v36 = vpop.f32.mrf.mxu3  ;;  %5463 = vmatpush.msra.mxu0 %v6537_v50  ;;  %s5677_s26 = sshll.u32 %s6629_s8, 4  ;;  %s5678_s26 = int_to_ptr.vmem [resolvable:$true] %s5677_s26 }
 0xe38   :  { %5543 = vmatpush.msra.mxu2 %v5141_v48  ;;  %6517 = vmatmul.msk.f32.vlgmr.msra.gmra.mxu1 %vm5206_vm11, %v5275_v36  ;;  %v6602_v36 = vld [vmem:[%s10562_s9] sm:$0x3f] }
 0xe39   :  { %5514 = vmatpush.msra.mxu1 %v6548_v10  ;;  %v5650_v29 = vperm.slane %v6602_v36, 5 }
 0xe3b   :  { %6536 = vmatmul.msk.f32.vlgmr.msrb.gmra.mxu2 %vm5145_vm10, %v6534_v28  ;;  %5515 = vmatpush.msra.mxu1 %v6547_v18 }
 0xe3c   :  { %5651 = vmatpush.msrb.mxu2 %v5649_v8 }
 0xe3d   :  { %5516 = vmatpush.msra.mxu1 %v6546_v56 }
 0xe3e   :  { %5652 = vmatpush.msrb.mxu2 %v5648_v15 }
 0xe3f   :  { %v5383_v16 = vpop.f32.mrf.mxu3  ;;  %5517 = vmatpush.msra.mxu1 %v6545_v60 }
 0xe40   :  { %6533 = vmatmul.msk.f32.vlgmr.msrb.gmra.mxu1 %vm5206_vm11, %v5383_v16  ;;  %5653 = vmatpush.msrb.mxu2 %v5647_v55 }
 0xe41   :  { %5622 = vmatpush.msrb.mxu1 %v6564_v33 }
 0xe42   :  { %5654 = vmatpush.msrb.mxu2 %v5646_v62 }
 0xe43   :  { %6552 = vmatmul.msk.f32.vlgmr.msra.gmra.mxu2 %vm5145_vm10, %v6550_v1  ;;  %5623 = vmatpush.msrb.mxu1 %v6563_v32  ;;  %v5631_v1 = vperm.slane %v6602_v36, 4 }
 0xe44   :  { %5655 = vmatpush.msrb.mxu2 %v5645_v37 }
 0xe45   :  { %5624 = vmatpush.msrb.mxu1 %v6562_v40 }
 0xe46   :  { %5656 = vmatpush.msrb.mxu2 %v5644_v7 }
 0xe47   :  { %v5491_v53 = vpop.f32.mrf.mxu3  ;;  %5625 = vmatpush.msrb.mxu1 %v6561_v5 }
 0xe48   :  { %6549 = vmatmul.msk.f32.vlgmr.msra.gmra.mxu1 %vm5206_vm11, %v5491_v53  ;;  %5657 = vmatpush.msrb.mxu2 %v5643_v4 }
 0xe4a   :  { %5658 = vmatpush.msrb.mxu2 %v5642_v27 }
 0xe4c   :  { %5659 = vmatpush.msrb.mxu2 %v5641_v45 }
 0xe4e   :  { %5660 = vmatpush.msrb.mxu2 %v5640_v44 }
 0xe4f   :  { %v5599_v26 = vpop.f32.mrf.mxu3 }
 0xe50   :  { %6565 = vmatmul.msk.f32.vlgmr.msrb.gmra.mxu1 %vm5206_vm11, %v5599_v26  ;;  %5661 = vmatpush.msrb.mxu2 %v5639_v35 }
 0xe52   :  { %5662 = vmatpush.msrb.mxu2 %v5638_v61 }
 0xe54   :  { %5663 = vmatpush.msrb.mxu2 %v5637_v11 }
 0xe56   :  { %5664 = vmatpush.msrb.mxu2 %v5636_v47 }
 0xe58   :  { %5665 = vmatpush.msrb.mxu2 %v5635_v14 }
 0xe5a   :  { %5666 = vmatpush.msrb.mxu2 %v5634_v13 }
 0xead   :  { %v5250_v22 = vpop.f32.mrf.mxu0 }
 0xeae   :  { %v5227_v20 = vpop.f32.mrf.mxu2 }
 0xeaf   :  { %v5251_v34 = vadd.f32 %v5250_v22, %v5227_v20 }
 0xeb5   :  { %v5303_v48 = vpop.f32.mrf.mxu1 }
 0xeb6   :  { %v5329_v38 = vpop.f32.mrf.mxu2  ;;  %v5306_v57 = vadd.f32 %v5303_v48, %v5251_v34 }
 0xeb7   :  { %6525 = vmatmul.msk.f32.vlgmr.msrb.gmra.mxu0 %vm5206_vm11, %v5329_v38 }
 0xeb8   :  { %5568 = vmatpush.msrb.mxu0 %v6556_v39 }
 0xeba   :  { %5569 = vmatpush.msrb.mxu0 %v6555_v59 }
 0xebc   :  { %5570 = vmatpush.msrb.mxu0 %v6554_v21 }
 0xebd   :  { %v5411_v30 = vpop.f32.mrf.mxu1 }
 0xebe   :  { %v5437_v23 = vpop.f32.mrf.mxu2  ;;  %5571 = vmatpush.msrb.mxu0 %v6553_v58 }
 0xebf   :  { %6541 = vmatmul.msk.f32.vlgmr.msra.gmra.mxu0 %vm5206_vm11, %v5437_v23 }
 0xec5   :  { %v5519_v24 = vpop.f32.mrf.mxu1 }
 0xec6   :  { %v5545_v25 = vpop.f32.mrf.mxu2 }
 0xec7   :  { %6557 = vmatmul.msk.f32.vlgmr.msrb.gmra.mxu0 %vm5206_vm11, %v5545_v25 }
 0xecd   :  { %v5627_v54 = vpop.f32.mrf.mxu1 }
 0xf34   :  { %v5357_v46 = vpop.f32.mrf.mxu0 }
 0xf35   :  { %v5360_v49 = vadd.f32 %v5357_v46, %v5306_v57 }
 0xf37   :  { %v5414_v52 = vadd.f32 %v5411_v30, %v5360_v49 }
 0xf3c   :  { %v5465_v63 = vpop.f32.mrf.mxu0 }
 0xf3d   :  { %v5468_v19 = vadd.f32 %v5465_v63, %v5414_v52 }
 0xf3f   :  { %v5522_v9 = vadd.f32 %v5519_v24, %v5468_v19 }
 0xf44   :  { %v5573_v17 = vpop.f32.mrf.mxu0 }
 0xf45   :  { %v5576_v28 = vadd.f32 %v5573_v17, %v5522_v9 }
 0xf47   :  { %v5630_v6 = vadd.f32 %v5627_v54, %v5576_v28 }
 0xf49   :  { %v5632_v31 = vadd.f32 %v5631_v1, %v5630_v6 }
 0xf4b   :  { %v5633_v12 = vmax.f32 %v5632_v31, 0.0 }
 0xf4d   :  { %5667 = vmatmul.f32.vlgmr.msrb.gmra.mxu2 %v5633_v12 }
 0xfd0   :  { %v5668_v0 = vpop.f32.mrf.mxu2 }
 0xfd1   :  { %v5669_v51 = vadd.f32 %v5668_v0, %v5650_v29 }
 0xfd3   :  { %5671 = vst.msk [vmem:[#allocation2] sm:$0x3] %vm4285_vm4, %v5669_v51 }
 0xfd4   :  { %5682 = dma.vmem_to_hbm [thread:$0]  %s5678_s26, 32, %s5680_s29, [#allocation3]  }
 0xfd5   :  { %6627 = dma.done.wait [#allocation3], 32  }
 0xfd6   :  { %6628 = vsyncadd [#allocation3], 4294967264 }
 0xfd7   :  { %5687 = vsyncpa [#allocation3], 1 }

</bundles_post_ra>
